<compile_context>
chip_gen: v7x
topology: tpu7x:2x2x1
jax: 0.10.0
libtpu: 0.0.40
codegen_flags: <defaults>
</compile_context>

<pallas_src>
import functools

import jax
import jax.numpy as jnp
import numpy as np
from jax.experimental import pallas as pl
from jax.experimental.pallas import tpu as pltpu


# ----------------------------- in-kernel helpers ----------------------------------- #

def _gn_relu(y, mask, gamma, beta, amat, eps):
    """GroupNorm (+affine) + ReLU over the masked-valid rows of y: (M, C).

    amat is a (C, C) matrix with amat[c, c'] = [group(c)==group(c')] / (Cg * count),
    so `row_sums @ amat` yields the per-group mean broadcast back to channels, keeping
    the channel axis lane-aligned (no reshapes to (G, Cg))."""
    mean = jnp.dot(jnp.sum(y * mask, axis=0, keepdims=True), amat,
                   preferred_element_type=jnp.float32)                  # (1, C)
    cen = (y - mean) * mask
    var = jnp.dot(jnp.sum(cen * cen, axis=0, keepdims=True), amat,
                  preferred_element_type=jnp.float32)                   # (1, C) biased
    out = (y - mean) * jax.lax.rsqrt(var + eps) * gamma + beta
    return jnp.maximum(out, 0.0)


def _conv4x4_s2(x_ref, w_ref, b_ref, m, c, phase_w):
    """4x4 / stride-2 conv over space-to-depth phases.

    x_ref: (1, 2, 2, P, Cin) phases, spatial flattened with row width `phase_w`.
    Each of the 16 taps is a contiguous (M, Cin) slice hitting the MXU against a
    (Cin, Cout) tap weight."""
    acc = jnp.zeros((m, c), jnp.float32)
    for i in range(4):
        for j in range(4):
            start = (i // 2) * phase_w + (j // 2)
            xt = x_ref[0, i % 2, j % 2, pl.ds(start, m), :]
            acc = acc + jnp.dot(xt, w_ref[i * 4 + j],
                                preferred_element_type=jnp.float32)
    return acc + b_ref[...]


# ----------------------------- Pallas kernels -------------------------------------- #

def conv1_gn_relu_kernel(x_ref, w_ref, b_ref, g_ref, bb_ref, mask_ref, amat_ref,
                         o_ref, *, starts, eps):
    # Conv2d(1, 64, 3, stride=1) + GroupNorm + ReLU.
    # x: (1, Hp*Wp, 1); Cin=1 so the conv is 9 VPU broadcast multiply-adds (no MXU).
    m, c = o_ref.shape[1], o_ref.shape[2]
    w = w_ref[...]                                   # (9, C)
    acc = jnp.zeros((m, c), jnp.float32)
    for t, s in enumerate(starts):
        acc = acc + x_ref[0, pl.ds(s, m), :] * w[t:t + 1, :]
    acc = acc + b_ref[...]
    o_ref[0] = _gn_relu(acc, mask_ref[...], g_ref[...], bb_ref[...], amat_ref[...], eps)


def conv_gn_relu_kernel(x_ref, w_ref, b_ref, g_ref, bb_ref, mask_ref, amat_ref,
                        o_ref, *, phase_w, eps):
    # Conv2d(64, 64, 4, stride=2, pad=1) + GroupNorm + ReLU.
    m, c = o_ref.shape[1], o_ref.shape[2]
    acc = _conv4x4_s2(x_ref, w_ref, b_ref, m, c, phase_w)
    o_ref[0] = _gn_relu(acc, mask_ref[...], g_ref[...], bb_ref[...], amat_ref[...], eps)


def conv_gn_pool_fc_kernel(x_ref, w_ref, b_ref, g_ref, bb_ref, mask_ref, amat_ref,
                           fcw_ref, fcb_ref, o_ref, *, phase_w, inv_count, eps):
    # Conv2d(64, 64, 4, 2, 1) + feature(=identity) + GroupNorm + ReLU
    # + AdaptiveAvgPool2d((1,1)) + Linear(64, 10), all fused.
    m, c = mask_ref.shape[0], w_ref.shape[2]
    acc = _conv4x4_s2(x_ref, w_ref, b_ref, m, c, phase_w)
    mask = mask_ref[...]
    y = _gn_relu(acc, mask, g_ref[...], bb_ref[...], amat_ref[...], eps)
    pooled = jnp.sum(y * mask, axis=0, keepdims=True) * inv_count       # (1, C)
    o_ref[0] = jnp.dot(pooled, fcw_ref[...],
                       preferred_element_type=jnp.float32) + fcb_ref[...]


# ----------------------------- wrapper glue ----------------------------------------- #

def _bcast(shape):
    """Full-array block, independent of the batch grid index."""
    zeros = (0,) * len(shape)
    return pl.BlockSpec(shape, lambda n, _z=zeros: _z)


def _mask_and_amat(m, row_w, valid_w, count, c, groups):
    """Row-validity mask (M,1) and group-averaging matrix (C,C) as tiny constants."""
    cg = c // groups
    mask = (np.arange(m) % row_w < valid_w).astype(np.float32).reshape(m, 1)
    g = np.arange(c) // cg
    amat = (g[:, None] == g[None, :]).astype(np.float32) / float(cg * count)
    return jnp.asarray(mask), jnp.asarray(amat)


def _pick_pad_hi(size, oh):
    """Smallest extra right/bottom zero-pad so the padded size is even and all 16
    flattened tap slices (length oh * S2, start <= S2 + 1) stay in-bounds."""
    for ph in range(1, 8):
        tot = size + 1 + ph
        if tot % 2:
            continue
        s2 = tot // 2
        if (oh + 1) * s2 + 1 <= s2 * s2:
            return ph, s2
    raise ValueError("no suitable padding found")


def _phase_prep(x, pad_lo, pad_hi):
    """(N, S, S, C) -> zero-pad -> space-to-depth phases (N, 2, 2, S2*S2, C)."""
    n, s, _, c = x.shape
    xp = jnp.pad(x, ((0, 0), (pad_lo, pad_hi), (pad_lo, pad_hi), (0, 0)))
    s2 = (s + pad_lo + pad_hi) // 2
    ph = xp.reshape(n, s2, 2, s2, 2, c).transpose(0, 2, 4, 1, 3, 5)
    return ph.reshape(n, 2, 2, s2 * s2, c), s2


def continuous_resnet_forward(x, p, *, num_groups=32, eps=1e-5):
    # x: (N, 1, H, W) NCHW at the module boundary (PyTorch semantics).
    n, cin, h, w = x.shape
    assert cin == 1, "ContinuousResNet default channels=1 (conv1 is specialized to Cin=1)"
    c = p["w1"].shape[0]                                         # 64
    sem = pltpu.CompilerParams(dimension_semantics=("parallel",))

    # ---- stage 1: Conv2d(1, 64, 3, stride=1) + GN + ReLU (single fused kernel) ----
    oh1, ow1 = h - 2, w - 2                 # true output 14x14
    wpad1, hpad1 = w + 2, h + 1             # computed row width 18 (contiguous taps)
    m1 = oh1 * wpad1                        # 252 computed rows per sample
    x1 = jnp.pad(x[:, 0], ((0, 0), (0, hpad1 - h), (0, wpad1 - w)))
    x1 = x1.reshape(n, hpad1 * wpad1, 1)
    w1 = p["w1"].reshape(c, 9).T            # (9, 64), tap order (i, j)
    starts1 = tuple(i * wpad1 + j for i in range(3) for j in range(3))
    mask1, amat1 = _mask_and_amat(m1, wpad1, ow1, oh1 * ow1, c, num_groups)
    out1 = pl.pallas_call(
        functools.partial(conv1_gn_relu_kernel, starts=starts1, eps=eps),
        grid=(n,),
        in_specs=[
            pl.BlockSpec((1, hpad1 * wpad1, 1), lambda i: (i, 0, 0)),
            _bcast((9, c)), _bcast((1, c)), _bcast((1, c)), _bcast((1, c)),
            _bcast((m1, 1)), _bcast((c, c)),
        ],
        out_specs=pl.BlockSpec((1, m1, c), lambda i: (i, 0, 0)),
        out_shape=jax.ShapeDtypeStruct((n, m1, c), jnp.float32),
        compiler_params=sem,
    )(x1, w1, p["b1"].reshape(1, c), p["gn1_g"].reshape(1, c),
      p["gn1_b"].reshape(1, c), mask1, amat1)
    y1 = out1.reshape(n, oh1, wpad1, c)[:, :, :ow1, :]           # (N, 14, 14, 64) NHWC

    # ---- stage 2: Conv2d(64, 64, 4, 2, 1) + GN + ReLU (single fused kernel) ----
    oh2 = (oh1 - 2) // 2 + 1                                     # 7
    pad_hi2, s2ph = _pick_pad_hi(oh1, oh2)                       # phase width 9
    x2, _ = _phase_prep(y1, 1, pad_hi2)                          # (N, 2, 2, 81, 64)
    m2 = oh2 * s2ph                                              # 63
    wt2 = jnp.transpose(p["w2"], (2, 3, 1, 0)).reshape(16, c, c)
    mask2, amat2 = _mask_and_amat(m2, s2ph, oh2, oh2 * oh2, c, num_groups)
    out2 = pl.pallas_call(
        functools.partial(conv_gn_relu_kernel, phase_w=s2ph, eps=eps),
        grid=(n,),
        in_specs=[
            pl.BlockSpec((1, 2, 2, s2ph * s2ph, c), lambda i: (i, 0, 0, 0, 0)),
            _bcast((16, c, c)), _bcast((1, c)), _bcast((1, c)), _bcast((1, c)),
            _bcast((m2, 1)), _bcast((c, c)),
        ],
        out_specs=pl.BlockSpec((1, m2, c), lambda i: (i, 0, 0)),
        out_shape=jax.ShapeDtypeStruct((n, m2, c), jnp.float32),
        compiler_params=sem,
    )(x2, wt2, p["b2"].reshape(1, c), p["gn2_g"].reshape(1, c),
      p["gn2_b"].reshape(1, c), mask2, amat2)
    y2 = out2.reshape(n, oh2, s2ph, c)[:, :, :oh2, :]            # (N, 7, 7, 64)

    # ---- stage 3: Conv2d(64, 64, 4, 2, 1) + feature + GN + ReLU + avgpool + fc ----
    # TODO(synk): plug in a real ODE-block `feature` here if one is specified.
    oh3 = (oh2 - 2) // 2 + 1                                     # 3
    pad_hi3, s3ph = _pick_pad_hi(oh2, oh3)                       # phase width 5
    x3, _ = _phase_prep(y2, 1, pad_hi3)                          # (N, 2, 2, 25, 64)
    m3 = oh3 * s3ph                                              # 15
    wt3 = jnp.transpose(p["w3"], (2, 3, 1, 0)).reshape(16, c, c)
    mask3, amat3 = _mask_and_amat(m3, s3ph, oh3, oh3 * oh3, c, num_groups)
    n_cls = p["fc_w"].shape[0]
    out3 = pl.pallas_call(
        functools.partial(conv_gn_pool_fc_kernel, phase_w=s3ph,
                          inv_count=1.0 / (oh3 * oh3), eps=eps),
        grid=(n,),
        in_specs=[
            pl.BlockSpec((1, 2, 2, s3ph * s3ph, c), lambda i: (i, 0, 0, 0, 0)),
            _bcast((16, c, c)), _bcast((1, c)), _bcast((1, c)), _bcast((1, c)),
            _bcast((m3, 1)), _bcast((c, c)),
            _bcast((c, n_cls)), _bcast((1, n_cls)),
        ],
        out_specs=pl.BlockSpec((1, 1, n_cls), lambda i: (i, 0, 0)),
        out_shape=jax.ShapeDtypeStruct((n, 1, n_cls), jnp.float32),
        compiler_params=sem,
    )(x3, wt3, p["b3"].reshape(1, c), p["gn3_g"].reshape(1, c),
      p["gn3_b"].reshape(1, c), mask3, amat3,
      p["fc_w"].T, p["fc_b"].reshape(1, n_cls))
    return out3.reshape(n, n_cls)


# ----------------------------- pure-JAX reference ----------------------------------- #

def reference_forward(x, p):
    def conv(x, w, b, s, pad):
        y = jax.lax.conv_general_dilated(
            x, w, (s, s), [(pad, pad), (pad, pad)],
            dimension_numbers=("NCHW", "OIHW", "NCHW"))
        return y + b.reshape(1, -1, 1, 1)

    def gn(x, g, bb, relu=True):
        n, c, h, w = x.shape
        gr, cg = 32, c // 32
        xg = x.reshape(n, gr, cg * h * w)
        m = xg.mean(-1, keepdims=True)
        v = ((xg - m) ** 2).mean(-1, keepdims=True)
        y = ((xg - m) / jnp.sqrt(v + 1e-5)).reshape(n, c, h, w)
        y = y * g.reshape(1, -1, 1, 1) + bb.reshape(1, -1, 1, 1)
        return jnp.maximum(y, 0.0) if relu else y

    x = conv(x, p["w1"], p["b1"], 1, 0); x = gn(x, p["gn1_g"], p["gn1_b"])
    x = conv(x, p["w2"], p["b2"], 2, 1); x = gn(x, p["gn2_g"], p["gn2_b"])
    x = conv(x, p["w3"], p["b3"], 2, 1)
    x = gn(x, p["gn3_g"], p["gn3_b"])
    pooled = x.mean((2, 3))
    return pooled @ p["fc_w"].T + p["fc_b"]


# ----------------------------- main -------------------------------------------------- #

if __name__ == "__main__":
    key = jax.random.PRNGKey(0)
    ks = jax.random.split(key, 14)
    C_IN = 1                      # ContinuousResNet default channels=1
    N, H, W = 2, 16, 16

    params = {
        "w1": 0.1 * jax.random.normal(ks[0], (64, C_IN, 3, 3), jnp.float32),
        "b1": 0.1 * jax.random.normal(ks[1], (64,), jnp.float32),
        "w2": 0.05 * jax.random.normal(ks[2], (64, 64, 4, 4), jnp.float32),
        "b2": 0.1 * jax.random.normal(ks[3], (64,), jnp.float32),
        "w3": 0.05 * jax.random.normal(ks[4], (64, 64, 4, 4), jnp.float32),
        "b3": 0.1 * jax.random.normal(ks[5], (64,), jnp.float32),
        "gn1_g": 1.0 + 0.1 * jax.random.normal(ks[6], (64,), jnp.float32),
        "gn1_b": 0.1 * jax.random.normal(ks[7], (64,), jnp.float32),
        "gn2_g": 1.0 + 0.1 * jax.random.normal(ks[8], (64,), jnp.float32),
        "gn2_b": 0.1 * jax.random.normal(ks[9], (64,), jnp.float32),
        "gn3_g": 1.0 + 0.1 * jax.random.normal(ks[10], (64,), jnp.float32),
        "gn3_b": 0.1 * jax.random.normal(ks[11], (64,), jnp.float32),
        "fc_w": 0.1 * jax.random.normal(ks[12], (10, 64), jnp.float32),
        "fc_b": 0.1 * jax.random.normal(ks[13], (10,), jnp.float32),
    }

    x = jax.random.normal(key, (N, C_IN, H, W), jnp.float32)

    fwd = jax.jit(continuous_resnet_forward)
    out = jax.block_until_ready(fwd(x, params))
    ref = jax.block_until_ready(reference_forward(x, params))

    assert out.shape == (N, 10), out.shape
    np.testing.assert_allclose(np.asarray(out), np.asarray(ref), rtol=1e-3, atol=1e-3)
    print("KERNEL_OK")
</pallas_src>

<mosaic_0001>
module attributes {stable_mosaic.version = 11 : i64} {
  func.func @conv1_gn_relu_kernel(%arg0: i32, %arg1: memref<1x306x1xf32, #tpu.memory_space<vmem>>, %arg2: memref<9x64xf32, #tpu.memory_space<vmem>>, %arg3: memref<1x64xf32, #tpu.memory_space<vmem>>, %arg4: memref<1x64xf32, #tpu.memory_space<vmem>>, %arg5: memref<1x64xf32, #tpu.memory_space<vmem>>, %arg6: memref<252x1xf32, #tpu.memory_space<vmem>>, %arg7: memref<64x64xf32, #tpu.memory_space<vmem>>, %arg8: memref<1x252x64xf32, #tpu.memory_space<vmem>>) attributes {dimension_semantics = [#tpu.dimension_semantics<parallel>], iteration_bounds = array<i64: 2>, scalar_prefetch = 0 : i64, scratch_operands = 0 : i64, tpu.core_type = #tpu.core_type<tc>, window_params = [{transform_indices = @transform_0, window_bounds = array<i64: 1, 306, 1>}, {pipeline_mode = #tpu.pipeline_mode<synchronous>, transform_indices = @transform_1, window_bounds = array<i64: 9, 64>}, {pipeline_mode = #tpu.pipeline_mode<synchronous>, transform_indices = @transform_2, window_bounds = array<i64: 1, 64>}, {pipeline_mode = #tpu.pipeline_mode<synchronous>, transform_indices = @transform_3, window_bounds = array<i64: 1, 64>}, {pipeline_mode = #tpu.pipeline_mode<synchronous>, transform_indices = @transform_4, window_bounds = array<i64: 1, 64>}, {pipeline_mode = #tpu.pipeline_mode<synchronous>, transform_indices = @transform_5, window_bounds = array<i64: 252, 1>}, {pipeline_mode = #tpu.pipeline_mode<synchronous>, transform_indices = @transform_6, window_bounds = array<i64: 64, 64>}, {transform_indices = @transform_7, window_bounds = array<i64: 1, 252, 64>}]} {
    %c0 = arith.constant 0 : index
    %c0_0 = arith.constant 0 : index
    %0 = vector.load %arg2[%c0, %c0_0] : memref<9x64xf32, #tpu.memory_space<vmem>>, vector<9x64xf32>
    %cst = arith.constant 0.000000e+00 : f32
    %1 = vector.broadcast %cst : f32 to vector<252x64xf32>
    %c0_1 = arith.constant 0 : index
    %c0_2 = arith.constant 0 : index
    %c0_3 = arith.constant 0 : index
    %2 = vector.load %arg1[%c0_1, %c0_2, %c0_3] : memref<1x306x1xf32, #tpu.memory_space<vmem>>, vector<1x252x1xf32>
    %3 = vector.shape_cast %2 : vector<1x252x1xf32> to vector<252x1xf32>
    %4 = vector.extract_strided_slice %0 {offsets = [0, 0], sizes = [1, 64], strides = [1, 1]} : vector<9x64xf32> to vector<1x64xf32>
    %5 = vector.broadcast %3 : vector<252x1xf32> to vector<252x64xf32>
    %6 = vector.broadcast %4 : vector<1x64xf32> to vector<252x64xf32>
    %7 = arith.mulf %5, %6 : vector<252x64xf32>
    %8 = arith.addf %1, %7 : vector<252x64xf32>
    %c0_4 = arith.constant 0 : index
    %c1 = arith.constant 1 : index
    %c0_5 = arith.constant 0 : index
    %9 = vector.load %arg1[%c0_4, %c1, %c0_5] : memref<1x306x1xf32, #tpu.memory_space<vmem>>, vector<1x252x1xf32>
    %10 = vector.shape_cast %9 : vector<1x252x1xf32> to vector<252x1xf32>
    %11 = vector.extract_strided_slice %0 {offsets = [1, 0], sizes = [1, 64], strides = [1, 1]} : vector<9x64xf32> to vector<1x64xf32>
    %12 = vector.broadcast %10 : vector<252x1xf32> to vector<252x64xf32>
    %13 = vector.broadcast %11 : vector<1x64xf32> to vector<252x64xf32>
    %14 = arith.mulf %12, %13 : vector<252x64xf32>
    %15 = arith.addf %8, %14 : vector<252x64xf32>
    %c0_6 = arith.constant 0 : index
    %c2 = arith.constant 2 : index
    %c0_7 = arith.constant 0 : index
    %16 = vector.load %arg1[%c0_6, %c2, %c0_7] : memref<1x306x1xf32, #tpu.memory_space<vmem>>, vector<1x252x1xf32>
    %17 = vector.shape_cast %16 : vector<1x252x1xf32> to vector<252x1xf32>
    %18 = vector.extract_strided_slice %0 {offsets = [2, 0], sizes = [1, 64], strides = [1, 1]} : vector<9x64xf32> to vector<1x64xf32>
    %19 = vector.broadcast %17 : vector<252x1xf32> to vector<252x64xf32>
    %20 = vector.broadcast %18 : vector<1x64xf32> to vector<252x64xf32>
    %21 = arith.mulf %19, %20 : vector<252x64xf32>
    %22 = arith.addf %15, %21 : vector<252x64xf32>
    %c0_8 = arith.constant 0 : index
    %c18 = arith.constant 18 : index
    %c0_9 = arith.constant 0 : index
    %23 = vector.load %arg1[%c0_8, %c18, %c0_9] : memref<1x306x1xf32, #tpu.memory_space<vmem>>, vector<1x252x1xf32>
    %24 = vector.shape_cast %23 : vector<1x252x1xf32> to vector<252x1xf32>
    %25 = vector.extract_strided_slice %0 {offsets = [3, 0], sizes = [1, 64], strides = [1, 1]} : vector<9x64xf32> to vector<1x64xf32>
    %26 = vector.broadcast %24 : vector<252x1xf32> to vector<252x64xf32>
    %27 = vector.broadcast %25 : vector<1x64xf32> to vector<252x64xf32>
    %28 = arith.mulf %26, %27 : vector<252x64xf32>
    %29 = arith.addf %22, %28 : vector<252x64xf32>
    %c0_10 = arith.constant 0 : index
    %c19 = arith.constant 19 : index
    %c0_11 = arith.constant 0 : index
    %30 = vector.load %arg1[%c0_10, %c19, %c0_11] : memref<1x306x1xf32, #tpu.memory_space<vmem>>, vector<1x252x1xf32>
    %31 = vector.shape_cast %30 : vector<1x252x1xf32> to vector<252x1xf32>
    %32 = vector.extract_strided_slice %0 {offsets = [4, 0], sizes = [1, 64], strides = [1, 1]} : vector<9x64xf32> to vector<1x64xf32>
    %33 = vector.broadcast %31 : vector<252x1xf32> to vector<252x64xf32>
    %34 = vector.broadcast %32 : vector<1x64xf32> to vector<252x64xf32>
    %35 = arith.mulf %33, %34 : vector<252x64xf32>
    %36 = arith.addf %29, %35 : vector<252x64xf32>
    %c0_12 = arith.constant 0 : index
    %c20 = arith.constant 20 : index
    %c0_13 = arith.constant 0 : index
    %37 = vector.load %arg1[%c0_12, %c20, %c0_13] : memref<1x306x1xf32, #tpu.memory_space<vmem>>, vector<1x252x1xf32>
    %38 = vector.shape_cast %37 : vector<1x252x1xf32> to vector<252x1xf32>
    %39 = vector.extract_strided_slice %0 {offsets = [5, 0], sizes = [1, 64], strides = [1, 1]} : vector<9x64xf32> to vector<1x64xf32>
    %40 = vector.broadcast %38 : vector<252x1xf32> to vector<252x64xf32>
    %41 = vector.broadcast %39 : vector<1x64xf32> to vector<252x64xf32>
    %42 = arith.mulf %40, %41 : vector<252x64xf32>
    %43 = arith.addf %36, %42 : vector<252x64xf32>
    %c0_14 = arith.constant 0 : index
    %c36 = arith.constant 36 : index
    %c0_15 = arith.constant 0 : index
    %44 = vector.load %arg1[%c0_14, %c36, %c0_15] : memref<1x306x1xf32, #tpu.memory_space<vmem>>, vector<1x252x1xf32>
    %45 = vector.shape_cast %44 : vector<1x252x1xf32> to vector<252x1xf32>
    %46 = vector.extract_strided_slice %0 {offsets = [6, 0], sizes = [1, 64], strides = [1, 1]} : vector<9x64xf32> to vector<1x64xf32>
    %47 = vector.broadcast %45 : vector<252x1xf32> to vector<252x64xf32>
    %48 = vector.broadcast %46 : vector<1x64xf32> to vector<252x64xf32>
    %49 = arith.mulf %47, %48 : vector<252x64xf32>
    %50 = arith.addf %43, %49 : vector<252x64xf32>
    %c0_16 = arith.constant 0 : index
    %c37 = arith.constant 37 : index
    %c0_17 = arith.constant 0 : index
    %51 = vector.load %arg1[%c0_16, %c37, %c0_17] : memref<1x306x1xf32, #tpu.memory_space<vmem>>, vector<1x252x1xf32>
    %52 = vector.shape_cast %51 : vector<1x252x1xf32> to vector<252x1xf32>
    %53 = vector.extract_strided_slice %0 {offsets = [7, 0], sizes = [1, 64], strides = [1, 1]} : vector<9x64xf32> to vector<1x64xf32>
    %54 = vector.broadcast %52 : vector<252x1xf32> to vector<252x64xf32>
    %55 = vector.broadcast %53 : vector<1x64xf32> to vector<252x64xf32>
    %56 = arith.mulf %54, %55 : vector<252x64xf32>
    %57 = arith.addf %50, %56 : vector<252x64xf32>
    %c0_18 = arith.constant 0 : index
    %c38 = arith.constant 38 : index
    %c0_19 = arith.constant 0 : index
    %58 = vector.load %arg1[%c0_18, %c38, %c0_19] : memref<1x306x1xf32, #tpu.memory_space<vmem>>, vector<1x252x1xf32>
    %59 = vector.shape_cast %58 : vector<1x252x1xf32> to vector<252x1xf32>
    %60 = vector.extract_strided_slice %0 {offsets = [8, 0], sizes = [1, 64], strides = [1, 1]} : vector<9x64xf32> to vector<1x64xf32>
    %61 = vector.broadcast %59 : vector<252x1xf32> to vector<252x64xf32>
    %62 = vector.broadcast %60 : vector<1x64xf32> to vector<252x64xf32>
    %63 = arith.mulf %61, %62 : vector<252x64xf32>
    %64 = arith.addf %57, %63 : vector<252x64xf32>
    %c0_20 = arith.constant 0 : index
    %c0_21 = arith.constant 0 : index
    %65 = vector.load %arg3[%c0_20, %c0_21] : memref<1x64xf32, #tpu.memory_space<vmem>>, vector<1x64xf32>
    %66 = vector.broadcast %65 : vector<1x64xf32> to vector<252x64xf32>
    %67 = arith.addf %64, %66 : vector<252x64xf32>
    %c0_22 = arith.constant 0 : index
    %c0_23 = arith.constant 0 : index
    %68 = vector.load %arg6[%c0_22, %c0_23] : memref<252x1xf32, #tpu.memory_space<vmem>>, vector<252x1xf32>
    %c0_24 = arith.constant 0 : index
    %c0_25 = arith.constant 0 : index
    %69 = vector.load %arg4[%c0_24, %c0_25] : memref<1x64xf32, #tpu.memory_space<vmem>>, vector<1x64xf32>
    %c0_26 = arith.constant 0 : index
    %c0_27 = arith.constant 0 : index
    %70 = vector.load %arg5[%c0_26, %c0_27] : memref<1x64xf32, #tpu.memory_space<vmem>>, vector<1x64xf32>
    %c0_28 = arith.constant 0 : index
    %c0_29 = arith.constant 0 : index
    %71 = vector.load %arg7[%c0_28, %c0_29] : memref<64x64xf32, #tpu.memory_space<vmem>>, vector<64x64xf32>
    %72 = vector.broadcast %68 : vector<252x1xf32> to vector<252x64xf32>
    %73 = arith.mulf %67, %72 : vector<252x64xf32>
    %cst_30 = arith.constant dense<0.000000e+00> : vector<64xf32>
    %74 = vector.multi_reduction <add>, %73, %cst_30 [0] : vector<252x64xf32> to vector<64xf32>
    %75 = vector.shape_cast %74 : vector<64xf32> to vector<1x64xf32>
    %cst_31 = arith.constant dense<0.000000e+00> : vector<1x64xf32>
    %76 = tpu.matmul %75, %71, %cst_31 {dimension_numbers = #tpu.dot_dimension_numbers<[1], [0], [0], [1], [0, 0, 1, 1], [], []>} : vector<1x64xf32>, vector<64x64xf32>, vector<1x64xf32> -> vector<1x64xf32>
    %77 = vector.broadcast %76 : vector<1x64xf32> to vector<252x64xf32>
    %78 = arith.subf %67, %77 : vector<252x64xf32>
    %79 = vector.broadcast %68 : vector<252x1xf32> to vector<252x64xf32>
    %80 = arith.mulf %78, %79 : vector<252x64xf32>
    %81 = arith.mulf %80, %80 : vector<252x64xf32>
    %cst_32 = arith.constant dense<0.000000e+00> : vector<64xf32>
    %82 = vector.multi_reduction <add>, %81, %cst_32 [0] : vector<252x64xf32> to vector<64xf32>
    %83 = vector.shape_cast %82 : vector<64xf32> to vector<1x64xf32>
    %cst_33 = arith.constant dense<0.000000e+00> : vector<1x64xf32>
    %84 = tpu.matmul %83, %71, %cst_33 {dimension_numbers = #tpu.dot_dimension_numbers<[1], [0], [0], [1], [0, 0, 1, 1], [], []>} : vector<1x64xf32>, vector<64x64xf32>, vector<1x64xf32> -> vector<1x64xf32>
    %85 = vector.broadcast %76 : vector<1x64xf32> to vector<252x64xf32>
    %86 = arith.subf %67, %85 : vector<252x64xf32>
    %cst_34 = arith.constant 9.99999974E-6 : f32
    %87 = vector.broadcast %cst_34 : f32 to vector<1x64xf32>
    %88 = arith.addf %84, %87 : vector<1x64xf32>
    %89 = math.rsqrt %88 : vector<1x64xf32>
    %90 = vector.broadcast %89 : vector<1x64xf32> to vector<252x64xf32>
    %91 = arith.mulf %86, %90 : vector<252x64xf32>
    %92 = vector.broadcast %69 : vector<1x64xf32> to vector<252x64xf32>
    %93 = arith.mulf %91, %92 : vector<252x64xf32>
    %94 = vector.broadcast %70 : vector<1x64xf32> to vector<252x64xf32>
    %95 = arith.addf %93, %94 : vector<252x64xf32>
    %cst_35 = arith.constant 0.000000e+00 : f32
    %96 = vector.broadcast %cst_35 : f32 to vector<252x64xf32>
    %97 = arith.maximumf %95, %96 : vector<252x64xf32>
    %c0_36 = arith.constant 0 : index
    %c0_37 = arith.constant 0 : index
    %c0_38 = arith.constant 0 : index
    %98 = vector.load %arg8[%c0_36, %c0_37, %c0_38] : memref<1x252x64xf32, #tpu.memory_space<vmem>>, vector<1x252x64xf32>
    %99 = vector.shape_cast %98 : vector<1x252x64xf32> to vector<252x64xf32>
    %100 = vector.shape_cast %97 : vector<252x64xf32> to vector<1x252x64xf32>
    tpu.vector_store %arg8[%c0_36, %c0_37, %c0_38], %100 {strides = array<i32>} : memref<1x252x64xf32, #tpu.memory_space<vmem>>, vector<1x252x64xf32>,
    return
  }
  func.func @transform_0(%arg0: i32) -> (i32, i32, i32) {
    %c0_i32 = arith.constant 0 : i32
    %c0_i32_0 = arith.constant 0 : i32
    %c0_i32_1 = arith.constant 0 : i32
    return %arg0, %c0_i32, %c0_i32_0 : i32, i32, i32
  }
  func.func @transform_1(%arg0: i32) -> (i32, i32) {
    %c0_i32 = arith.constant 0 : i32
    %c0_i32_0 = arith.constant 0 : i32
    %c0_i32_1 = arith.constant 0 : i32
    return %c0_i32, %c0_i32_0 : i32, i32
  }
  func.func @transform_2(%arg0: i32) -> (i32, i32) {
    %c0_i32 = arith.constant 0 : i32
    %c0_i32_0 = arith.constant 0 : i32
    %c0_i32_1 = arith.constant 0 : i32
    return %c0_i32, %c0_i32_0 : i32, i32
  }
  func.func @transform_3(%arg0: i32) -> (i32, i32) {
    %c0_i32 = arith.constant 0 : i32
    %c0_i32_0 = arith.constant 0 : i32
    %c0_i32_1 = arith.constant 0 : i32
    return %c0_i32, %c0_i32_0 : i32, i32
  }
  func.func @transform_4(%arg0: i32) -> (i32, i32) {
    %c0_i32 = arith.constant 0 : i32
    %c0_i32_0 = arith.constant 0 : i32
    %c0_i32_1 = arith.constant 0 : i32
    return %c0_i32, %c0_i32_0 : i32, i32
  }
  func.func @transform_5(%arg0: i32) -> (i32, i32) {
    %c0_i32 = arith.constant 0 : i32
    %c0_i32_0 = arith.constant 0 : i32
    %c0_i32_1 = arith.constant 0 : i32
    return %c0_i32, %c0_i32_0 : i32, i32
  }
  func.func @transform_6(%arg0: i32) -> (i32, i32) {
    %c0_i32 = arith.constant 0 : i32
    %c0_i32_0 = arith.constant 0 : i32
    %c0_i32_1 = arith.constant 0 : i32
    return %c0_i32, %c0_i32_0 : i32, i32
  }
  func.func @transform_7(%arg0: i32) -> (i32, i32, i32) {
    %c0_i32 = arith.constant 0 : i32
    %c0_i32_0 = arith.constant 0 : i32
    %c0_i32_1 = arith.constant 0 : i32
    return %arg0, %c0_i32, %c0_i32_0 : i32, i32, i32
  }
}

module attributes {stable_mosaic.version = 11 : i64} {
  func.func @conv_gn_relu_kernel(%arg0: i32, %arg1: memref<1x2x2x81x64xf32, #tpu.memory_space<vmem>>, %arg2: memref<16x64x64xf32, #tpu.memory_space<vmem>>, %arg3: memref<1x64xf32, #tpu.memory_space<vmem>>, %arg4: memref<1x64xf32, #tpu.memory_space<vmem>>, %arg5: memref<1x64xf32, #tpu.memory_space<vmem>>, %arg6: memref<63x1xf32, #tpu.memory_space<vmem>>, %arg7: memref<64x64xf32, #tpu.memory_space<vmem>>, %arg8: memref<1x63x64xf32, #tpu.memory_space<vmem>>) attributes {dimension_semantics = [#tpu.dimension_semantics<parallel>], iteration_bounds = array<i64: 2>, scalar_prefetch = 0 : i64, scratch_operands = 0 : i64, tpu.core_type = #tpu.core_type<tc>, window_params = [{transform_indices = @transform_0, window_bounds = array<i64: 1, 2, 2, 81, 64>}, {pipeline_mode = #tpu.pipeline_mode<synchronous>, transform_indices = @transform_1, window_bounds = array<i64: 16, 64, 64>}, {pipeline_mode = #tpu.pipeline_mode<synchronous>, transform_indices = @transform_2, window_bounds = array<i64: 1, 64>}, {pipeline_mode = #tpu.pipeline_mode<synchronous>, transform_indices = @transform_3, window_bounds = array<i64: 1, 64>}, {pipeline_mode = #tpu.pipeline_mode<synchronous>, transform_indices = @transform_4, window_bounds = array<i64: 1, 64>}, {pipeline_mode = #tpu.pipeline_mode<synchronous>, transform_indices = @transform_5, window_bounds = array<i64: 63, 1>}, {pipeline_mode = #tpu.pipeline_mode<synchronous>, transform_indices = @transform_6, window_bounds = array<i64: 64, 64>}, {transform_indices = @transform_7, window_bounds = array<i64: 1, 63, 64>}]} {
    %cst = arith.constant 0.000000e+00 : f32
    %0 = vector.broadcast %cst : f32 to vector<63x64xf32>
    %c0 = arith.constant 0 : index
    %c0_0 = arith.constant 0 : index
    %c0_1 = arith.constant 0 : index
    %c0_2 = arith.constant 0 : index
    %c0_3 = arith.constant 0 : index
    %1 = vector.load %arg1[%c0, %c0_0, %c0_1, %c0_2, %c0_3] : memref<1x2x2x81x64xf32, #tpu.memory_space<vmem>>, vector<1x1x1x63x64xf32>
    %2 = vector.shape_cast %1 : vector<1x1x1x63x64xf32> to vector<63x64xf32>
    %c0_4 = arith.constant 0 : index
    %c0_5 = arith.constant 0 : index
    %c0_6 = arith.constant 0 : index
    %3 = vector.load %arg2[%c0_4, %c0_5, %c0_6] : memref<16x64x64xf32, #tpu.memory_space<vmem>>, vector<1x64x64xf32>
    %4 = vector.shape_cast %3 : vector<1x64x64xf32> to vector<64x64xf32>
    %cst_7 = arith.constant dense<0.000000e+00> : vector<63x64xf32>
    %5 = tpu.matmul %2, %4, %cst_7 {dimension_numbers = #tpu.dot_dimension_numbers<[1], [0], [0], [1], [0, 0, 1, 1], [], []>} : vector<63x64xf32>, vector<64x64xf32>, vector<63x64xf32> -> vector<63x64xf32>
    %6 = arith.addf %0, %5 : vector<63x64xf32>
    %c0_8 = arith.constant 0 : index
    %c0_9 = arith.constant 0 : index
    %c1 = arith.constant 1 : index
    %c0_10 = arith.constant 0 : index
    %c0_11 = arith.constant 0 : index
    %7 = vector.load %arg1[%c0_8, %c0_9, %c1, %c0_10, %c0_11] : memref<1x2x2x81x64xf32, #tpu.memory_space<vmem>>, vector<1x1x1x63x64xf32>
    %8 = vector.shape_cast %7 : vector<1x1x1x63x64xf32> to vector<63x64xf32>
    %c1_12 = arith.constant 1 : index
    %c0_13 = arith.constant 0 : index
    %c0_14 = arith.constant 0 : index
    %9 = vector.load %arg2[%c1_12, %c0_13, %c0_14] : memref<16x64x64xf32, #tpu.memory_space<vmem>>, vector<1x64x64xf32>
    %10 = vector.shape_cast %9 : vector<1x64x64xf32> to vector<64x64xf32>
    %cst_15 = arith.constant dense<0.000000e+00> : vector<63x64xf32>
    %11 = tpu.matmul %8, %10, %cst_15 {dimension_numbers = #tpu.dot_dimension_numbers<[1], [0], [0], [1], [0, 0, 1, 1], [], []>} : vector<63x64xf32>, vector<64x64xf32>, vector<63x64xf32> -> vector<63x64xf32>
    %12 = arith.addf %6, %11 : vector<63x64xf32>
    %c0_16 = arith.constant 0 : index
    %c0_17 = arith.constant 0 : index
    %c0_18 = arith.constant 0 : index
    %c1_19 = arith.constant 1 : index
    %c0_20 = arith.constant 0 : index
    %13 = vector.load %arg1[%c0_16, %c0_17, %c0_18, %c1_19, %c0_20] : memref<1x2x2x81x64xf32, #tpu.memory_space<vmem>>, vector<1x1x1x63x64xf32>
    %14 = vector.shape_cast %13 : vector<1x1x1x63x64xf32> to vector<63x64xf32>
    %c2 = arith.constant 2 : index
    %c0_21 = arith.constant 0 : index
    %c0_22 = arith.constant 0 : index
    %15 = vector.load %arg2[%c2, %c0_21, %c0_22] : memref<16x64x64xf32, #tpu.memory_space<vmem>>, vector<1x64x64xf32>
    %16 = vector.shape_cast %15 : vector<1x64x64xf32> to vector<64x64xf32>
    %cst_23 = arith.constant dense<0.000000e+00> : vector<63x64xf32>
    %17 = tpu.matmul %14, %16, %cst_23 {dimension_numbers = #tpu.dot_dimension_numbers<[1], [0], [0], [1], [0, 0, 1, 1], [], []>} : vector<63x64xf32>, vector<64x64xf32>, vector<63x64xf32> -> vector<63x64xf32>
    %18 = arith.addf %12, %17 : vector<63x64xf32>
    %c0_24 = arith.constant 0 : index
    %c0_25 = arith.constant 0 : index
    %c1_26 = arith.constant 1 : index
    %c1_27 = arith.constant 1 : index
    %c0_28 = arith.constant 0 : index
    %19 = vector.load %arg1[%c0_24, %c0_25, %c1_26, %c1_27, %c0_28] : memref<1x2x2x81x64xf32, #tpu.memory_space<vmem>>, vector<1x1x1x63x64xf32>
    %20 = vector.shape_cast %19 : vector<1x1x1x63x64xf32> to vector<63x64xf32>
    %c3 = arith.constant 3 : index
    %c0_29 = arith.constant 0 : index
    %c0_30 = arith.constant 0 : index
    %21 = vector.load %arg2[%c3, %c0_29, %c0_30] : memref<16x64x64xf32, #tpu.memory_space<vmem>>, vector<1x64x64xf32>
    %22 = vector.shape_cast %21 : vector<1x64x64xf32> to vector<64x64xf32>
    %cst_31 = arith.constant dense<0.000000e+00> : vector<63x64xf32>
    %23 = tpu.matmul %20, %22, %cst_31 {dimension_numbers = #tpu.dot_dimension_numbers<[1], [0], [0], [1], [0, 0, 1, 1], [], []>} : vector<63x64xf32>, vector<64x64xf32>, vector<63x64xf32> -> vector<63x64xf32>
    %24 = arith.addf %18, %23 : vector<63x64xf32>
    %c0_32 = arith.constant 0 : index
    %c1_33 = arith.constant 1 : index
    %c0_34 = arith.constant 0 : index
    %c0_35 = arith.constant 0 : index
    %c0_36 = arith.constant 0 : index
    %25 = vector.load %arg1[%c0_32, %c1_33, %c0_34, %c0_35, %c0_36] : memref<1x2x2x81x64xf32, #tpu.memory_space<vmem>>, vector<1x1x1x63x64xf32>
    %26 = vector.shape_cast %25 : vector<1x1x1x63x64xf32> to vector<63x64xf32>
    %c4 = arith.constant 4 : index
    %c0_37 = arith.constant 0 : index
    %c0_38 = arith.constant 0 : index
    %27 = vector.load %arg2[%c4, %c0_37, %c0_38] : memref<16x64x64xf32, #tpu.memory_space<vmem>>, vector<1x64x64xf32>
    %28 = vector.shape_cast %27 : vector<1x64x64xf32> to vector<64x64xf32>
    %cst_39 = arith.constant dense<0.000000e+00> : vector<63x64xf32>
    %29 = tpu.matmul %26, %28, %cst_39 {dimension_numbers = #tpu.dot_dimension_numbers<[1], [0], [0], [1], [0, 0, 1, 1], [], []>} : vector<63x64xf32>, vector<64x64xf32>, vector<63x64xf32> -> vector<63x64xf32>
    %30 = arith.addf %24, %29 : vector<63x64xf32>
    %c0_40 = arith.constant 0 : index
    %c1_41 = arith.constant 1 : index
    %c1_42 = arith.constant 1 : index
    %c0_43 = arith.constant 0 : index
    %c0_44 = arith.constant 0 : index
    %31 = vector.load %arg1[%c0_40, %c1_41, %c1_42, %c0_43, %c0_44] : memref<1x2x2x81x64xf32, #tpu.memory_space<vmem>>, vector<1x1x1x63x64xf32>
    %32 = vector.shape_cast %31 : vector<1x1x1x63x64xf32> to vector<63x64xf32>
    %c5 = arith.constant 5 : index
    %c0_45 = arith.constant 0 : index
    %c0_46 = arith.constant 0 : index
    %33 = vector.load %arg2[%c5, %c0_45, %c0_46] : memref<16x64x64xf32, #tpu.memory_space<vmem>>, vector<1x64x64xf32>
    %34 = vector.shape_cast %33 : vector<1x64x64xf32> to vector<64x64xf32>
    %cst_47 = arith.constant dense<0.000000e+00> : vector<63x64xf32>
    %35 = tpu.matmul %32, %34, %cst_47 {dimension_numbers = #tpu.dot_dimension_numbers<[1], [0], [0], [1], [0, 0, 1, 1], [], []>} : vector<63x64xf32>, vector<64x64xf32>, vector<63x64xf32> -> vector<63x64xf32>
    %36 = arith.addf %30, %35 : vector<63x64xf32>
    %c0_48 = arith.constant 0 : index
    %c1_49 = arith.constant 1 : index
    %c0_50 = arith.constant 0 : index
    %c1_51 = arith.constant 1 : index
    %c0_52 = arith.constant 0 : index
    %37 = vector.load %arg1[%c0_48, %c1_49, %c0_50, %c1_51, %c0_52] : memref<1x2x2x81x64xf32, #tpu.memory_space<vmem>>, vector<1x1x1x63x64xf32>
    %38 = vector.shape_cast %37 : vector<1x1x1x63x64xf32> to vector<63x64xf32>
    %c6 = arith.constant 6 : index
    %c0_53 = arith.constant 0 : index
    %c0_54 = arith.constant 0 : index
    %39 = vector.load %arg2[%c6, %c0_53, %c0_54] : memref<16x64x64xf32, #tpu.memory_space<vmem>>, vector<1x64x64xf32>
    %40 = vector.shape_cast %39 : vector<1x64x64xf32> to vector<64x64xf32>
    %cst_55 = arith.constant dense<0.000000e+00> : vector<63x64xf32>
    %41 = tpu.matmul %38, %40, %cst_55 {dimension_numbers = #tpu.dot_dimension_numbers<[1], [0], [0], [1], [0, 0, 1, 1], [], []>} : vector<63x64xf32>, vector<64x64xf32>, vector<63x64xf32> -> vector<63x64xf32>
    %42 = arith.addf %36, %41 : vector<63x64xf32>
    %c0_56 = arith.constant 0 : index
    %c1_57 = arith.constant 1 : index
    %c1_58 = arith.constant 1 : index
    %c1_59 = arith.constant 1 : index
    %c0_60 = arith.constant 0 : index
    %43 = vector.load %arg1[%c0_56, %c1_57, %c1_58, %c1_59, %c0_60] : memref<1x2x2x81x64xf32, #tpu.memory_space<vmem>>, vector<1x1x1x63x64xf32>
    %44 = vector.shape_cast %43 : vector<1x1x1x63x64xf32> to vector<63x64xf32>
    %c7 = arith.constant 7 : index
    %c0_61 = arith.constant 0 : index
    %c0_62 = arith.constant 0 : index
    %45 = vector.load %arg2[%c7, %c0_61, %c0_62] : memref<16x64x64xf32, #tpu.memory_space<vmem>>, vector<1x64x64xf32>
    %46 = vector.shape_cast %45 : vector<1x64x64xf32> to vector<64x64xf32>
    %cst_63 = arith.constant dense<0.000000e+00> : vector<63x64xf32>
    %47 = tpu.matmul %44, %46, %cst_63 {dimension_numbers = #tpu.dot_dimension_numbers<[1], [0], [0], [1], [0, 0, 1, 1], [], []>} : vector<63x64xf32>, vector<64x64xf32>, vector<63x64xf32> -> vector<63x64xf32>
    %48 = arith.addf %42, %47 : vector<63x64xf32>
    %c0_64 = arith.constant 0 : index
    %c0_65 = arith.constant 0 : index
    %c0_66 = arith.constant 0 : index
    %c9 = arith.constant 9 : index
    %c0_67 = arith.constant 0 : index
    %49 = vector.load %arg1[%c0_64, %c0_65, %c0_66, %c9, %c0_67] : memref<1x2x2x81x64xf32, #tpu.memory_space<vmem>>, vector<1x1x1x63x64xf32>
    %50 = vector.shape_cast %49 : vector<1x1x1x63x64xf32> to vector<63x64xf32>
    %c8 = arith.constant 8 : index
    %c0_68 = arith.constant 0 : index
    %c0_69 = arith.constant 0 : index
    %51 = vector.load %arg2[%c8, %c0_68, %c0_69] : memref<16x64x64xf32, #tpu.memory_space<vmem>>, vector<1x64x64xf32>
    %52 = vector.shape_cast %51 : vector<1x64x64xf32> to vector<64x64xf32>
    %cst_70 = arith.constant dense<0.000000e+00> : vector<63x64xf32>
    %53 = tpu.matmul %50, %52, %cst_70 {dimension_numbers = #tpu.dot_dimension_numbers<[1], [0], [0], [1], [0, 0, 1, 1], [], []>} : vector<63x64xf32>, vector<64x64xf32>, vector<63x64xf32> -> vector<63x64xf32>
    %54 = arith.addf %48, %53 : vector<63x64xf32>
    %c0_71 = arith.constant 0 : index
    %c0_72 = arith.constant 0 : index
    %c1_73 = arith.constant 1 : index
    %c9_74 = arith.constant 9 : index
    %c0_75 = arith.constant 0 : index
    %55 = vector.load %arg1[%c0_71, %c0_72, %c1_73, %c9_74, %c0_75] : memref<1x2x2x81x64xf32, #tpu.memory_space<vmem>>, vector<1x1x1x63x64xf32>
    %56 = vector.shape_cast %55 : vector<1x1x1x63x64xf32> to vector<63x64xf32>
    %c9_76 = arith.constant 9 : index
    %c0_77 = arith.constant 0 : index
    %c0_78 = arith.constant 0 : index
    %57 = vector.load %arg2[%c9_76, %c0_77, %c0_78] : memref<16x64x64xf32, #tpu.memory_space<vmem>>, vector<1x64x64xf32>
    %58 = vector.shape_cast %57 : vector<1x64x64xf32> to vector<64x64xf32>
    %cst_79 = arith.constant dense<0.000000e+00> : vector<63x64xf32>
    %59 = tpu.matmul %56, %58, %cst_79 {dimension_numbers = #tpu.dot_dimension_numbers<[1], [0], [0], [1], [0, 0, 1, 1], [], []>} : vector<63x64xf32>, vector<64x64xf32>, vector<63x64xf32> -> vector<63x64xf32>
    %60 = arith.addf %54, %59 : vector<63x64xf32>
    %c0_80 = arith.constant 0 : index
    %c0_81 = arith.constant 0 : index
    %c0_82 = arith.constant 0 : index
    %c10 = arith.constant 10 : index
    %c0_83 = arith.constant 0 : index
    %61 = vector.load %arg1[%c0_80, %c0_81, %c0_82, %c10, %c0_83] : memref<1x2x2x81x64xf32, #tpu.memory_space<vmem>>, vector<1x1x1x63x64xf32>
    %62 = vector.shape_cast %61 : vector<1x1x1x63x64xf32> to vector<63x64xf32>
    %c10_84 = arith.constant 10 : index
    %c0_85 = arith.constant 0 : index
    %c0_86 = arith.constant 0 : index
    %63 = vector.load %arg2[%c10_84, %c0_85, %c0_86] : memref<16x64x64xf32, #tpu.memory_space<vmem>>, vector<1x64x64xf32>
    %64 = vector.shape_cast %63 : vector<1x64x64xf32> to vector<64x64xf32>
    %cst_87 = arith.constant dense<0.000000e+00> : vector<63x64xf32>
    %65 = tpu.matmul %62, %64, %cst_87 {dimension_numbers = #tpu.dot_dimension_numbers<[1], [0], [0], [1], [0, 0, 1, 1], [], []>} : vector<63x64xf32>, vector<64x64xf32>, vector<63x64xf32> -> vector<63x64xf32>
    %66 = arith.addf %60, %65 : vector<63x64xf32>
    %c0_88 = arith.constant 0 : index
    %c0_89 = arith.constant 0 : index
    %c1_90 = arith.constant 1 : index
    %c10_91 = arith.constant 10 : index
    %c0_92 = arith.constant 0 : index
    %67 = vector.load %arg1[%c0_88, %c0_89, %c1_90, %c10_91, %c0_92] : memref<1x2x2x81x64xf32, #tpu.memory_space<vmem>>, vector<1x1x1x63x64xf32>
    %68 = vector.shape_cast %67 : vector<1x1x1x63x64xf32> to vector<63x64xf32>
    %c11 = arith.constant 11 : index
    %c0_93 = arith.constant 0 : index
    %c0_94 = arith.constant 0 : index
    %69 = vector.load %arg2[%c11, %c0_93, %c0_94] : memref<16x64x64xf32, #tpu.memory_space<vmem>>, vector<1x64x64xf32>
    %70 = vector.shape_cast %69 : vector<1x64x64xf32> to vector<64x64xf32>
    %cst_95 = arith.constant dense<0.000000e+00> : vector<63x64xf32>
    %71 = tpu.matmul %68, %70, %cst_95 {dimension_numbers = #tpu.dot_dimension_numbers<[1], [0], [0], [1], [0, 0, 1, 1], [], []>} : vector<63x64xf32>, vector<64x64xf32>, vector<63x64xf32> -> vector<63x64xf32>
    %72 = arith.addf %66, %71 : vector<63x64xf32>
    %c0_96 = arith.constant 0 : index
    %c1_97 = arith.constant 1 : index
    %c0_98 = arith.constant 0 : index
    %c9_99 = arith.constant 9 : index
    %c0_100 = arith.constant 0 : index
    %73 = vector.load %arg1[%c0_96, %c1_97, %c0_98, %c9_99, %c0_100] : memref<1x2x2x81x64xf32, #tpu.memory_space<vmem>>, vector<1x1x1x63x64xf32>
    %74 = vector.shape_cast %73 : vector<1x1x1x63x64xf32> to vector<63x64xf32>
    %c12 = arith.constant 12 : index
    %c0_101 = arith.constant 0 : index
    %c0_102 = arith.constant 0 : index
    %75 = vector.load %arg2[%c12, %c0_101, %c0_102] : memref<16x64x64xf32, #tpu.memory_space<vmem>>, vector<1x64x64xf32>
    %76 = vector.shape_cast %75 : vector<1x64x64xf32> to vector<64x64xf32>
    %cst_103 = arith.constant dense<0.000000e+00> : vector<63x64xf32>
    %77 = tpu.matmul %74, %76, %cst_103 {dimension_numbers = #tpu.dot_dimension_numbers<[1], [0], [0], [1], [0, 0, 1, 1], [], []>} : vector<63x64xf32>, vector<64x64xf32>, vector<63x64xf32> -> vector<63x64xf32>
    %78 = arith.addf %72, %77 : vector<63x64xf32>
    %c0_104 = arith.constant 0 : index
    %c1_105 = arith.constant 1 : index
    %c1_106 = arith.constant 1 : index
    %c9_107 = arith.constant 9 : index
    %c0_108 = arith.constant 0 : index
    %79 = vector.load %arg1[%c0_104, %c1_105, %c1_106, %c9_107, %c0_108] : memref<1x2x2x81x64xf32, #tpu.memory_space<vmem>>, vector<1x1x1x63x64xf32>
    %80 = vector.shape_cast %79 : vector<1x1x1x63x64xf32> to vector<63x64xf32>
    %c13 = arith.constant 13 : index
    %c0_109 = arith.constant 0 : index
    %c0_110 = arith.constant 0 : index
    %81 = vector.load %arg2[%c13, %c0_109, %c0_110] : memref<16x64x64xf32, #tpu.memory_space<vmem>>, vector<1x64x64xf32>
    %82 = vector.shape_cast %81 : vector<1x64x64xf32> to vector<64x64xf32>
    %cst_111 = arith.constant dense<0.000000e+00> : vector<63x64xf32>
    %83 = tpu.matmul %80, %82, %cst_111 {dimension_numbers = #tpu.dot_dimension_numbers<[1], [0], [0], [1], [0, 0, 1, 1], [], []>} : vector<63x64xf32>, vector<64x64xf32>, vector<63x64xf32> -> vector<63x64xf32>
    %84 = arith.addf %78, %83 : vector<63x64xf32>
    %c0_112 = arith.constant 0 : index
    %c1_113 = arith.constant 1 : index
    %c0_114 = arith.constant 0 : index
    %c10_115 = arith.constant 10 : index
    %c0_116 = arith.constant 0 : index
    %85 = vector.load %arg1[%c0_112, %c1_113, %c0_114, %c10_115, %c0_116] : memref<1x2x2x81x64xf32, #tpu.memory_space<vmem>>, vector<1x1x1x63x64xf32>
    %86 = vector.shape_cast %85 : vector<1x1x1x63x64xf32> to vector<63x64xf32>
    %c14 = arith.constant 14 : index
    %c0_117 = arith.constant 0 : index
    %c0_118 = arith.constant 0 : index
    %87 = vector.load %arg2[%c14, %c0_117, %c0_118] : memref<16x64x64xf32, #tpu.memory_space<vmem>>, vector<1x64x64xf32>
    %88 = vector.shape_cast %87 : vector<1x64x64xf32> to vector<64x64xf32>
    %cst_119 = arith.constant dense<0.000000e+00> : vector<63x64xf32>
    %89 = tpu.matmul %86, %88, %cst_119 {dimension_numbers = #tpu.dot_dimension_numbers<[1], [0], [0], [1], [0, 0, 1, 1], [], []>} : vector<63x64xf32>, vector<64x64xf32>, vector<63x64xf32> -> vector<63x64xf32>
    %90 = arith.addf %84, %89 : vector<63x64xf32>
    %c0_120 = arith.constant 0 : index
    %c1_121 = arith.constant 1 : index
    %c1_122 = arith.constant 1 : index
    %c10_123 = arith.constant 10 : index
    %c0_124 = arith.constant 0 : index
    %91 = vector.load %arg1[%c0_120, %c1_121, %c1_122, %c10_123, %c0_124] : memref<1x2x2x81x64xf32, #tpu.memory_space<vmem>>, vector<1x1x1x63x64xf32>
    %92 = vector.shape_cast %91 : vector<1x1x1x63x64xf32> to vector<63x64xf32>
    %c15 = arith.constant 15 : index
    %c0_125 = arith.constant 0 : index
    %c0_126 = arith.constant 0 : index
    %93 = vector.load %arg2[%c15, %c0_125, %c0_126] : memref<16x64x64xf32, #tpu.memory_space<vmem>>, vector<1x64x64xf32>
    %94 = vector.shape_cast %93 : vector<1x64x64xf32> to vector<64x64xf32>
    %cst_127 = arith.constant dense<0.000000e+00> : vector<63x64xf32>
    %95 = tpu.matmul %92, %94, %cst_127 {dimension_numbers = #tpu.dot_dimension_numbers<[1], [0], [0], [1], [0, 0, 1, 1], [], []>} : vector<63x64xf32>, vector<64x64xf32>, vector<63x64xf32> -> vector<63x64xf32>
    %96 = arith.addf %90, %95 : vector<63x64xf32>
    %c0_128 = arith.constant 0 : index
    %c0_129 = arith.constant 0 : index
    %97 = vector.load %arg3[%c0_128, %c0_129] : memref<1x64xf32, #tpu.memory_space<vmem>>, vector<1x64xf32>
    %98 = vector.broadcast %97 : vector<1x64xf32> to vector<63x64xf32>
    %99 = arith.addf %96, %98 : vector<63x64xf32>
    %c0_130 = arith.constant 0 : index
    %c0_131 = arith.constant 0 : index
    %100 = vector.load %arg6[%c0_130, %c0_131] : memref<63x1xf32, #tpu.memory_space<vmem>>, vector<63x1xf32>
    %c0_132 = arith.constant 0 : index
    %c0_133 = arith.constant 0 : index
    %101 = vector.load %arg4[%c0_132, %c0_133] : memref<1x64xf32, #tpu.memory_space<vmem>>, vector<1x64xf32>
    %c0_134 = arith.constant 0 : index
    %c0_135 = arith.constant 0 : index
    %102 = vector.load %arg5[%c0_134, %c0_135] : memref<1x64xf32, #tpu.memory_space<vmem>>, vector<1x64xf32>
    %c0_136 = arith.constant 0 : index
    %c0_137 = arith.constant 0 : index
    %103 = vector.load %arg7[%c0_136, %c0_137] : memref<64x64xf32, #tpu.memory_space<vmem>>, vector<64x64xf32>
    %104 = vector.broadcast %100 : vector<63x1xf32> to vector<63x64xf32>
    %105 = arith.mulf %99, %104 : vector<63x64xf32>
    %cst_138 = arith.constant dense<0.000000e+00> : vector<64xf32>
    %106 = vector.multi_reduction <add>, %105, %cst_138 [0] : vector<63x64xf32> to vector<64xf32>
    %107 = vector.shape_cast %106 : vector<64xf32> to vector<1x64xf32>
    %cst_139 = arith.constant dense<0.000000e+00> : vector<1x64xf32>
    %108 = tpu.matmul %107, %103, %cst_139 {dimension_numbers = #tpu.dot_dimension_numbers<[1], [0], [0], [1], [0, 0, 1, 1], [], []>} : vector<1x64xf32>, vector<64x64xf32>, vector<1x64xf32> -> vector<1x64xf32>
    %109 = vector.broadcast %108 : vector<1x64xf32> to vector<63x64xf32>
    %110 = arith.subf %99, %109 : vector<63x64xf32>
    %111 = vector.broadcast %100 : vector<63x1xf32> to vector<63x64xf32>
    %112 = arith.mulf %110, %111 : vector<63x64xf32>
    %113 = arith.mulf %112, %112 : vector<63x64xf32>
    %cst_140 = arith.constant dense<0.000000e+00> : vector<64xf32>
    %114 = vector.multi_reduction <add>, %113, %cst_140 [0] : vector<63x64xf32> to vector<64xf32>
    %115 = vector.shape_cast %114 : vector<64xf32> to vector<1x64xf32>
    %cst_141 = arith.constant dense<0.000000e+00> : vector<1x64xf32>
    %116 = tpu.matmul %115, %103, %cst_141 {dimension_numbers = #tpu.dot_dimension_numbers<[1], [0], [0], [1], [0, 0, 1, 1], [], []>} : vector<1x64xf32>, vector<64x64xf32>, vector<1x64xf32> -> vector<1x64xf32>
    %117 = vector.broadcast %108 : vector<1x64xf32> to vector<63x64xf32>
    %118 = arith.subf %99, %117 : vector<63x64xf32>
    %cst_142 = arith.constant 9.99999974E-6 : f32
    %119 = vector.broadcast %cst_142 : f32 to vector<1x64xf32>
    %120 = arith.addf %116, %119 : vector<1x64xf32>
    %121 = math.rsqrt %120 : vector<1x64xf32>
    %122 = vector.broadcast %121 : vector<1x64xf32> to vector<63x64xf32>
    %123 = arith.mulf %118, %122 : vector<63x64xf32>
    %124 = vector.broadcast %101 : vector<1x64xf32> to vector<63x64xf32>
    %125 = arith.mulf %123, %124 : vector<63x64xf32>
    %126 = vector.broadcast %102 : vector<1x64xf32> to vector<63x64xf32>
    %127 = arith.addf %125, %126 : vector<63x64xf32>
    %cst_143 = arith.constant 0.000000e+00 : f32
    %128 = vector.broadcast %cst_143 : f32 to vector<63x64xf32>
    %129 = arith.maximumf %127, %128 : vector<63x64xf32>
    %c0_144 = arith.constant 0 : index
    %c0_145 = arith.constant 0 : index
    %c0_146 = arith.constant 0 : index
    %130 = vector.load %arg8[%c0_144, %c0_145, %c0_146] : memref<1x63x64xf32, #tpu.memory_space<vmem>>, vector<1x63x64xf32>
    %131 = vector.shape_cast %130 : vector<1x63x64xf32> to vector<63x64xf32>
    %132 = vector.shape_cast %129 : vector<63x64xf32> to vector<1x63x64xf32>
    tpu.vector_store %arg8[%c0_144, %c0_145, %c0_146], %132 {strides = array<i32>} : memref<1x63x64xf32, #tpu.memory_space<vmem>>, vector<1x63x64xf32>,
    return
  }
  func.func @transform_0(%arg0: i32) -> (i32, i32, i32, i32, i32) {
    %c0_i32 = arith.constant 0 : i32
    %c0_i32_0 = arith.constant 0 : i32
    %c0_i32_1 = arith.constant 0 : i32
    %c0_i32_2 = arith.constant 0 : i32
    %c0_i32_3 = arith.constant 0 : i32
    return %arg0, %c0_i32, %c0_i32_0, %c0_i32_1, %c0_i32_2 : i32, i32, i32, i32, i32
  }
  func.func @transform_1(%arg0: i32) -> (i32, i32, i32) {
    %c0_i32 = arith.constant 0 : i32
    %c0_i32_0 = arith.constant 0 : i32
    %c0_i32_1 = arith.constant 0 : i32
    %c0_i32_2 = arith.constant 0 : i32
    return %c0_i32, %c0_i32_0, %c0_i32_1 : i32, i32, i32
  }
  func.func @transform_2(%arg0: i32) -> (i32, i32) {
    %c0_i32 = arith.constant 0 : i32
    %c0_i32_0 = arith.constant 0 : i32
    %c0_i32_1 = arith.constant 0 : i32
    return %c0_i32, %c0_i32_0 : i32, i32
  }
  func.func @transform_3(%arg0: i32) -> (i32, i32) {
    %c0_i32 = arith.constant 0 : i32
    %c0_i32_0 = arith.constant 0 : i32
    %c0_i32_1 = arith.constant 0 : i32
    return %c0_i32, %c0_i32_0 : i32, i32
  }
  func.func @transform_4(%arg0: i32) -> (i32, i32) {
    %c0_i32 = arith.constant 0 : i32
    %c0_i32_0 = arith.constant 0 : i32
    %c0_i32_1 = arith.constant 0 : i32
    return %c0_i32, %c0_i32_0 : i32, i32
  }
  func.func @transform_5(%arg0: i32) -> (i32, i32) {
    %c0_i32 = arith.constant 0 : i32
    %c0_i32_0 = arith.constant 0 : i32
    %c0_i32_1 = arith.constant 0 : i32
    return %c0_i32, %c0_i32_0 : i32, i32
  }
  func.func @transform_6(%arg0: i32) -> (i32, i32) {
    %c0_i32 = arith.constant 0 : i32
    %c0_i32_0 = arith.constant 0 : i32
    %c0_i32_1 = arith.constant 0 : i32
    return %c0_i32, %c0_i32_0 : i32, i32
  }
  func.func @transform_7(%arg0: i32) -> (i32, i32, i32) {
    %c0_i32 = arith.constant 0 : i32
    %c0_i32_0 = arith.constant 0 : i32
    %c0_i32_1 = arith.constant 0 : i32
    return %arg0, %c0_i32, %c0_i32_0 : i32, i32, i32
  }
}

module attributes {stable_mosaic.version = 11 : i64} {
  func.func @conv_gn_pool_fc_kernel(%arg0: i32, %arg1: memref<1x2x2x25x64xf32, #tpu.memory_space<vmem>>, %arg2: memref<16x64x64xf32, #tpu.memory_space<vmem>>, %arg3: memref<1x64xf32, #tpu.memory_space<vmem>>, %arg4: memref<1x64xf32, #tpu.memory_space<vmem>>, %arg5: memref<1x64xf32, #tpu.memory_space<vmem>>, %arg6: memref<15x1xf32, #tpu.memory_space<vmem>>, %arg7: memref<64x64xf32, #tpu.memory_space<vmem>>, %arg8: memref<64x10xf32, #tpu.memory_space<vmem>>, %arg9: memref<1x10xf32, #tpu.memory_space<vmem>>, %arg10: memref<1x1x10xf32, #tpu.memory_space<vmem>>) attributes {dimension_semantics = [#tpu.dimension_semantics<parallel>], iteration_bounds = array<i64: 2>, scalar_prefetch = 0 : i64, scratch_operands = 0 : i64, tpu.core_type = #tpu.core_type<tc>, window_params = [{transform_indices = @transform_0, window_bounds = array<i64: 1, 2, 2, 25, 64>}, {pipeline_mode = #tpu.pipeline_mode<synchronous>, transform_indices = @transform_1, window_bounds = array<i64: 16, 64, 64>}, {pipeline_mode = #tpu.pipeline_mode<synchronous>, transform_indices = @transform_2, window_bounds = array<i64: 1, 64>}, {pipeline_mode = #tpu.pipeline_mode<synchronous>, transform_indices = @transform_3, window_bounds = array<i64: 1, 64>}, {pipeline_mode = #tpu.pipeline_mode<synchronous>, transform_indices = @transform_4, window_bounds = array<i64: 1, 64>}, {pipeline_mode = #tpu.pipeline_mode<synchronous>, transform_indices = @transform_5, window_bounds = array<i64: 15, 1>}, {pipeline_mode = #tpu.pipeline_mode<synchronous>, transform_indices = @transform_6, window_bounds = array<i64: 64, 64>}, {pipeline_mode = #tpu.pipeline_mode<synchronous>, transform_indices = @transform_7, window_bounds = array<i64: 64, 10>}, {pipeline_mode = #tpu.pipeline_mode<synchronous>, transform_indices = @transform_8, window_bounds = array<i64: 1, 10>}, {transform_indices = @transform_9, window_bounds = array<i64: 1, 1, 10>}]} {
    %cst = arith.constant 0.000000e+00 : f32
    %0 = vector.broadcast %cst : f32 to vector<15x64xf32>
    %c0 = arith.constant 0 : index
    %c0_0 = arith.constant 0 : index
    %c0_1 = arith.constant 0 : index
    %c0_2 = arith.constant 0 : index
    %c0_3 = arith.constant 0 : index
    %1 = vector.load %arg1[%c0, %c0_0, %c0_1, %c0_2, %c0_3] : memref<1x2x2x25x64xf32, #tpu.memory_space<vmem>>, vector<1x1x1x15x64xf32>
    %2 = vector.shape_cast %1 : vector<1x1x1x15x64xf32> to vector<15x64xf32>
    %c0_4 = arith.constant 0 : index
    %c0_5 = arith.constant 0 : index
    %c0_6 = arith.constant 0 : index
    %3 = vector.load %arg2[%c0_4, %c0_5, %c0_6] : memref<16x64x64xf32, #tpu.memory_space<vmem>>, vector<1x64x64xf32>
    %4 = vector.shape_cast %3 : vector<1x64x64xf32> to vector<64x64xf32>
    %cst_7 = arith.constant dense<0.000000e+00> : vector<15x64xf32>
    %5 = tpu.matmul %2, %4, %cst_7 {dimension_numbers = #tpu.dot_dimension_numbers<[1], [0], [0], [1], [0, 0, 1, 1], [], []>} : vector<15x64xf32>, vector<64x64xf32>, vector<15x64xf32> -> vector<15x64xf32>
    %6 = arith.addf %0, %5 : vector<15x64xf32>
    %c0_8 = arith.constant 0 : index
    %c0_9 = arith.constant 0 : index
    %c1 = arith.constant 1 : index
    %c0_10 = arith.constant 0 : index
    %c0_11 = arith.constant 0 : index
    %7 = vector.load %arg1[%c0_8, %c0_9, %c1, %c0_10, %c0_11] : memref<1x2x2x25x64xf32, #tpu.memory_space<vmem>>, vector<1x1x1x15x64xf32>
    %8 = vector.shape_cast %7 : vector<1x1x1x15x64xf32> to vector<15x64xf32>
    %c1_12 = arith.constant 1 : index
    %c0_13 = arith.constant 0 : index
    %c0_14 = arith.constant 0 : index
    %9 = vector.load %arg2[%c1_12, %c0_13, %c0_14] : memref<16x64x64xf32, #tpu.memory_space<vmem>>, vector<1x64x64xf32>
    %10 = vector.shape_cast %9 : vector<1x64x64xf32> to vector<64x64xf32>
    %cst_15 = arith.constant dense<0.000000e+00> : vector<15x64xf32>
    %11 = tpu.matmul %8, %10, %cst_15 {dimension_numbers = #tpu.dot_dimension_numbers<[1], [0], [0], [1], [0, 0, 1, 1], [], []>} : vector<15x64xf32>, vector<64x64xf32>, vector<15x64xf32> -> vector<15x64xf32>
    %12 = arith.addf %6, %11 : vector<15x64xf32>
    %c0_16 = arith.constant 0 : index
    %c0_17 = arith.constant 0 : index
    %c0_18 = arith.constant 0 : index
    %c1_19 = arith.constant 1 : index
    %c0_20 = arith.constant 0 : index
    %13 = vector.load %arg1[%c0_16, %c0_17, %c0_18, %c1_19, %c0_20] : memref<1x2x2x25x64xf32, #tpu.memory_space<vmem>>, vector<1x1x1x15x64xf32>
    %14 = vector.shape_cast %13 : vector<1x1x1x15x64xf32> to vector<15x64xf32>
    %c2 = arith.constant 2 : index
    %c0_21 = arith.constant 0 : index
    %c0_22 = arith.constant 0 : index
    %15 = vector.load %arg2[%c2, %c0_21, %c0_22] : memref<16x64x64xf32, #tpu.memory_space<vmem>>, vector<1x64x64xf32>
    %16 = vector.shape_cast %15 : vector<1x64x64xf32> to vector<64x64xf32>
    %cst_23 = arith.constant dense<0.000000e+00> : vector<15x64xf32>
    %17 = tpu.matmul %14, %16, %cst_23 {dimension_numbers = #tpu.dot_dimension_numbers<[1], [0], [0], [1], [0, 0, 1, 1], [], []>} : vector<15x64xf32>, vector<64x64xf32>, vector<15x64xf32> -> vector<15x64xf32>
    %18 = arith.addf %12, %17 : vector<15x64xf32>
    %c0_24 = arith.constant 0 : index
    %c0_25 = arith.constant 0 : index
    %c1_26 = arith.constant 1 : index
    %c1_27 = arith.constant 1 : index
    %c0_28 = arith.constant 0 : index
    %19 = vector.load %arg1[%c0_24, %c0_25, %c1_26, %c1_27, %c0_28] : memref<1x2x2x25x64xf32, #tpu.memory_space<vmem>>, vector<1x1x1x15x64xf32>
    %20 = vector.shape_cast %19 : vector<1x1x1x15x64xf32> to vector<15x64xf32>
    %c3 = arith.constant 3 : index
    %c0_29 = arith.constant 0 : index
    %c0_30 = arith.constant 0 : index
    %21 = vector.load %arg2[%c3, %c0_29, %c0_30] : memref<16x64x64xf32, #tpu.memory_space<vmem>>, vector<1x64x64xf32>
    %22 = vector.shape_cast %21 : vector<1x64x64xf32> to vector<64x64xf32>
    %cst_31 = arith.constant dense<0.000000e+00> : vector<15x64xf32>
    %23 = tpu.matmul %20, %22, %cst_31 {dimension_numbers = #tpu.dot_dimension_numbers<[1], [0], [0], [1], [0, 0, 1, 1], [], []>} : vector<15x64xf32>, vector<64x64xf32>, vector<15x64xf32> -> vector<15x64xf32>
    %24 = arith.addf %18, %23 : vector<15x64xf32>
    %c0_32 = arith.constant 0 : index
    %c1_33 = arith.constant 1 : index
    %c0_34 = arith.constant 0 : index
    %c0_35 = arith.constant 0 : index
    %c0_36 = arith.constant 0 : index
    %25 = vector.load %arg1[%c0_32, %c1_33, %c0_34, %c0_35, %c0_36] : memref<1x2x2x25x64xf32, #tpu.memory_space<vmem>>, vector<1x1x1x15x64xf32>
    %26 = vector.shape_cast %25 : vector<1x1x1x15x64xf32> to vector<15x64xf32>
    %c4 = arith.constant 4 : index
    %c0_37 = arith.constant 0 : index
    %c0_38 = arith.constant 0 : index
    %27 = vector.load %arg2[%c4, %c0_37, %c0_38] : memref<16x64x64xf32, #tpu.memory_space<vmem>>, vector<1x64x64xf32>
    %28 = vector.shape_cast %27 : vector<1x64x64xf32> to vector<64x64xf32>
    %cst_39 = arith.constant dense<0.000000e+00> : vector<15x64xf32>
    %29 = tpu.matmul %26, %28, %cst_39 {dimension_numbers = #tpu.dot_dimension_numbers<[1], [0], [0], [1], [0, 0, 1, 1], [], []>} : vector<15x64xf32>, vector<64x64xf32>, vector<15x64xf32> -> vector<15x64xf32>
    %30 = arith.addf %24, %29 : vector<15x64xf32>
    %c0_40 = arith.constant 0 : index
    %c1_41 = arith.constant 1 : index
    %c1_42 = arith.constant 1 : index
    %c0_43 = arith.constant 0 : index
    %c0_44 = arith.constant 0 : index
    %31 = vector.load %arg1[%c0_40, %c1_41, %c1_42, %c0_43, %c0_44] : memref<1x2x2x25x64xf32, #tpu.memory_space<vmem>>, vector<1x1x1x15x64xf32>
    %32 = vector.shape_cast %31 : vector<1x1x1x15x64xf32> to vector<15x64xf32>
    %c5 = arith.constant 5 : index
    %c0_45 = arith.constant 0 : index
    %c0_46 = arith.constant 0 : index
    %33 = vector.load %arg2[%c5, %c0_45, %c0_46] : memref<16x64x64xf32, #tpu.memory_space<vmem>>, vector<1x64x64xf32>
    %34 = vector.shape_cast %33 : vector<1x64x64xf32> to vector<64x64xf32>
    %cst_47 = arith.constant dense<0.000000e+00> : vector<15x64xf32>
    %35 = tpu.matmul %32, %34, %cst_47 {dimension_numbers = #tpu.dot_dimension_numbers<[1], [0], [0], [1], [0, 0, 1, 1], [], []>} : vector<15x64xf32>, vector<64x64xf32>, vector<15x64xf32> -> vector<15x64xf32>
    %36 = arith.addf %30, %35 : vector<15x64xf32>
    %c0_48 = arith.constant 0 : index
    %c1_49 = arith.constant 1 : index
    %c0_50 = arith.constant 0 : index
    %c1_51 = arith.constant 1 : index
    %c0_52 = arith.constant 0 : index
    %37 = vector.load %arg1[%c0_48, %c1_49, %c0_50, %c1_51, %c0_52] : memref<1x2x2x25x64xf32, #tpu.memory_space<vmem>>, vector<1x1x1x15x64xf32>
    %38 = vector.shape_cast %37 : vector<1x1x1x15x64xf32> to vector<15x64xf32>
    %c6 = arith.constant 6 : index
    %c0_53 = arith.constant 0 : index
    %c0_54 = arith.constant 0 : index
    %39 = vector.load %arg2[%c6, %c0_53, %c0_54] : memref<16x64x64xf32, #tpu.memory_space<vmem>>, vector<1x64x64xf32>
    %40 = vector.shape_cast %39 : vector<1x64x64xf32> to vector<64x64xf32>
    %cst_55 = arith.constant dense<0.000000e+00> : vector<15x64xf32>
    %41 = tpu.matmul %38, %40, %cst_55 {dimension_numbers = #tpu.dot_dimension_numbers<[1], [0], [0], [1], [0, 0, 1, 1], [], []>} : vector<15x64xf32>, vector<64x64xf32>, vector<15x64xf32> -> vector<15x64xf32>
    %42 = arith.addf %36, %41 : vector<15x64xf32>
    %c0_56 = arith.constant 0 : index
    %c1_57 = arith.constant 1 : index
    %c1_58 = arith.constant 1 : index
    %c1_59 = arith.constant 1 : index
    %c0_60 = arith.constant 0 : index
    %43 = vector.load %arg1[%c0_56, %c1_57, %c1_58, %c1_59, %c0_60] : memref<1x2x2x25x64xf32, #tpu.memory_space<vmem>>, vector<1x1x1x15x64xf32>
    %44 = vector.shape_cast %43 : vector<1x1x1x15x64xf32> to vector<15x64xf32>
    %c7 = arith.constant 7 : index
    %c0_61 = arith.constant 0 : index
    %c0_62 = arith.constant 0 : index
    %45 = vector.load %arg2[%c7, %c0_61, %c0_62] : memref<16x64x64xf32, #tpu.memory_space<vmem>>, vector<1x64x64xf32>
    %46 = vector.shape_cast %45 : vector<1x64x64xf32> to vector<64x64xf32>
    %cst_63 = arith.constant dense<0.000000e+00> : vector<15x64xf32>
    %47 = tpu.matmul %44, %46, %cst_63 {dimension_numbers = #tpu.dot_dimension_numbers<[1], [0], [0], [1], [0, 0, 1, 1], [], []>} : vector<15x64xf32>, vector<64x64xf32>, vector<15x64xf32> -> vector<15x64xf32>
    %48 = arith.addf %42, %47 : vector<15x64xf32>
    %c0_64 = arith.constant 0 : index
    %c0_65 = arith.constant 0 : index
    %c0_66 = arith.constant 0 : index
    %c5_67 = arith.constant 5 : index
    %c0_68 = arith.constant 0 : index
    %49 = vector.load %arg1[%c0_64, %c0_65, %c0_66, %c5_67, %c0_68] : memref<1x2x2x25x64xf32, #tpu.memory_space<vmem>>, vector<1x1x1x15x64xf32>
    %50 = vector.shape_cast %49 : vector<1x1x1x15x64xf32> to vector<15x64xf32>
    %c8 = arith.constant 8 : index
    %c0_69 = arith.constant 0 : index
    %c0_70 = arith.constant 0 : index
    %51 = vector.load %arg2[%c8, %c0_69, %c0_70] : memref<16x64x64xf32, #tpu.memory_space<vmem>>, vector<1x64x64xf32>
    %52 = vector.shape_cast %51 : vector<1x64x64xf32> to vector<64x64xf32>
    %cst_71 = arith.constant dense<0.000000e+00> : vector<15x64xf32>
    %53 = tpu.matmul %50, %52, %cst_71 {dimension_numbers = #tpu.dot_dimension_numbers<[1], [0], [0], [1], [0, 0, 1, 1], [], []>} : vector<15x64xf32>, vector<64x64xf32>, vector<15x64xf32> -> vector<15x64xf32>
    %54 = arith.addf %48, %53 : vector<15x64xf32>
    %c0_72 = arith.constant 0 : index
    %c0_73 = arith.constant 0 : index
    %c1_74 = arith.constant 1 : index
    %c5_75 = arith.constant 5 : index
    %c0_76 = arith.constant 0 : index
    %55 = vector.load %arg1[%c0_72, %c0_73, %c1_74, %c5_75, %c0_76] : memref<1x2x2x25x64xf32, #tpu.memory_space<vmem>>, vector<1x1x1x15x64xf32>
    %56 = vector.shape_cast %55 : vector<1x1x1x15x64xf32> to vector<15x64xf32>
    %c9 = arith.constant 9 : index
    %c0_77 = arith.constant 0 : index
    %c0_78 = arith.constant 0 : index
    %57 = vector.load %arg2[%c9, %c0_77, %c0_78] : memref<16x64x64xf32, #tpu.memory_space<vmem>>, vector<1x64x64xf32>
    %58 = vector.shape_cast %57 : vector<1x64x64xf32> to vector<64x64xf32>
    %cst_79 = arith.constant dense<0.000000e+00> : vector<15x64xf32>
    %59 = tpu.matmul %56, %58, %cst_79 {dimension_numbers = #tpu.dot_dimension_numbers<[1], [0], [0], [1], [0, 0, 1, 1], [], []>} : vector<15x64xf32>, vector<64x64xf32>, vector<15x64xf32> -> vector<15x64xf32>
    %60 = arith.addf %54, %59 : vector<15x64xf32>
    %c0_80 = arith.constant 0 : index
    %c0_81 = arith.constant 0 : index
    %c0_82 = arith.constant 0 : index
    %c6_83 = arith.constant 6 : index
    %c0_84 = arith.constant 0 : index
    %61 = vector.load %arg1[%c0_80, %c0_81, %c0_82, %c6_83, %c0_84] : memref<1x2x2x25x64xf32, #tpu.memory_space<vmem>>, vector<1x1x1x15x64xf32>
    %62 = vector.shape_cast %61 : vector<1x1x1x15x64xf32> to vector<15x64xf32>
    %c10 = arith.constant 10 : index
    %c0_85 = arith.constant 0 : index
    %c0_86 = arith.constant 0 : index
    %63 = vector.load %arg2[%c10, %c0_85, %c0_86] : memref<16x64x64xf32, #tpu.memory_space<vmem>>, vector<1x64x64xf32>
    %64 = vector.shape_cast %63 : vector<1x64x64xf32> to vector<64x64xf32>
    %cst_87 = arith.constant dense<0.000000e+00> : vector<15x64xf32>
    %65 = tpu.matmul %62, %64, %cst_87 {dimension_numbers = #tpu.dot_dimension_numbers<[1], [0], [0], [1], [0, 0, 1, 1], [], []>} : vector<15x64xf32>, vector<64x64xf32>, vector<15x64xf32> -> vector<15x64xf32>
    %66 = arith.addf %60, %65 : vector<15x64xf32>
    %c0_88 = arith.constant 0 : index
    %c0_89 = arith.constant 0 : index
    %c1_90 = arith.constant 1 : index
    %c6_91 = arith.constant 6 : index
    %c0_92 = arith.constant 0 : index
    %67 = vector.load %arg1[%c0_88, %c0_89, %c1_90, %c6_91, %c0_92] : memref<1x2x2x25x64xf32, #tpu.memory_space<vmem>>, vector<1x1x1x15x64xf32>
    %68 = vector.shape_cast %67 : vector<1x1x1x15x64xf32> to vector<15x64xf32>
    %c11 = arith.constant 11 : index
    %c0_93 = arith.constant 0 : index
    %c0_94 = arith.constant 0 : index
    %69 = vector.load %arg2[%c11, %c0_93, %c0_94] : memref<16x64x64xf32, #tpu.memory_space<vmem>>, vector<1x64x64xf32>
    %70 = vector.shape_cast %69 : vector<1x64x64xf32> to vector<64x64xf32>
    %cst_95 = arith.constant dense<0.000000e+00> : vector<15x64xf32>
    %71 = tpu.matmul %68, %70, %cst_95 {dimension_numbers = #tpu.dot_dimension_numbers<[1], [0], [0], [1], [0, 0, 1, 1], [], []>} : vector<15x64xf32>, vector<64x64xf32>, vector<15x64xf32> -> vector<15x64xf32>
    %72 = arith.addf %66, %71 : vector<15x64xf32>
    %c0_96 = arith.constant 0 : index
    %c1_97 = arith.constant 1 : index
    %c0_98 = arith.constant 0 : index
    %c5_99 = arith.constant 5 : index
    %c0_100 = arith.constant 0 : index
    %73 = vector.load %arg1[%c0_96, %c1_97, %c0_98, %c5_99, %c0_100] : memref<1x2x2x25x64xf32, #tpu.memory_space<vmem>>, vector<1x1x1x15x64xf32>
    %74 = vector.shape_cast %73 : vector<1x1x1x15x64xf32> to vector<15x64xf32>
    %c12 = arith.constant 12 : index
    %c0_101 = arith.constant 0 : index
    %c0_102 = arith.constant 0 : index
    %75 = vector.load %arg2[%c12, %c0_101, %c0_102] : memref<16x64x64xf32, #tpu.memory_space<vmem>>, vector<1x64x64xf32>
    %76 = vector.shape_cast %75 : vector<1x64x64xf32> to vector<64x64xf32>
    %cst_103 = arith.constant dense<0.000000e+00> : vector<15x64xf32>
    %77 = tpu.matmul %74, %76, %cst_103 {dimension_numbers = #tpu.dot_dimension_numbers<[1], [0], [0], [1], [0, 0, 1, 1], [], []>} : vector<15x64xf32>, vector<64x64xf32>, vector<15x64xf32> -> vector<15x64xf32>
    %78 = arith.addf %72, %77 : vector<15x64xf32>
    %c0_104 = arith.constant 0 : index
    %c1_105 = arith.constant 1 : index
    %c1_106 = arith.constant 1 : index
    %c5_107 = arith.constant 5 : index
    %c0_108 = arith.constant 0 : index
    %79 = vector.load %arg1[%c0_104, %c1_105, %c1_106, %c5_107, %c0_108] : memref<1x2x2x25x64xf32, #tpu.memory_space<vmem>>, vector<1x1x1x15x64xf32>
    %80 = vector.shape_cast %79 : vector<1x1x1x15x64xf32> to vector<15x64xf32>
    %c13 = arith.constant 13 : index
    %c0_109 = arith.constant 0 : index
    %c0_110 = arith.constant 0 : index
    %81 = vector.load %arg2[%c13, %c0_109, %c0_110] : memref<16x64x64xf32, #tpu.memory_space<vmem>>, vector<1x64x64xf32>
    %82 = vector.shape_cast %81 : vector<1x64x64xf32> to vector<64x64xf32>
    %cst_111 = arith.constant dense<0.000000e+00> : vector<15x64xf32>
    %83 = tpu.matmul %80, %82, %cst_111 {dimension_numbers = #tpu.dot_dimension_numbers<[1], [0], [0], [1], [0, 0, 1, 1], [], []>} : vector<15x64xf32>, vector<64x64xf32>, vector<15x64xf32> -> vector<15x64xf32>
    %84 = arith.addf %78, %83 : vector<15x64xf32>
    %c0_112 = arith.constant 0 : index
    %c1_113 = arith.constant 1 : index
    %c0_114 = arith.constant 0 : index
    %c6_115 = arith.constant 6 : index
    %c0_116 = arith.constant 0 : index
    %85 = vector.load %arg1[%c0_112, %c1_113, %c0_114, %c6_115, %c0_116] : memref<1x2x2x25x64xf32, #tpu.memory_space<vmem>>, vector<1x1x1x15x64xf32>
    %86 = vector.shape_cast %85 : vector<1x1x1x15x64xf32> to vector<15x64xf32>
    %c14 = arith.constant 14 : index
    %c0_117 = arith.constant 0 : index
    %c0_118 = arith.constant 0 : index
    %87 = vector.load %arg2[%c14, %c0_117, %c0_118] : memref<16x64x64xf32, #tpu.memory_space<vmem>>, vector<1x64x64xf32>
    %88 = vector.shape_cast %87 : vector<1x64x64xf32> to vector<64x64xf32>
    %cst_119 = arith.constant dense<0.000000e+00> : vector<15x64xf32>
    %89 = tpu.matmul %86, %88, %cst_119 {dimension_numbers = #tpu.dot_dimension_numbers<[1], [0], [0], [1], [0, 0, 1, 1], [], []>} : vector<15x64xf32>, vector<64x64xf32>, vector<15x64xf32> -> vector<15x64xf32>
    %90 = arith.addf %84, %89 : vector<15x64xf32>
    %c0_120 = arith.constant 0 : index
    %c1_121 = arith.constant 1 : index
    %c1_122 = arith.constant 1 : index
    %c6_123 = arith.constant 6 : index
    %c0_124 = arith.constant 0 : index
    %91 = vector.load %arg1[%c0_120, %c1_121, %c1_122, %c6_123, %c0_124] : memref<1x2x2x25x64xf32, #tpu.memory_space<vmem>>, vector<1x1x1x15x64xf32>
    %92 = vector.shape_cast %91 : vector<1x1x1x15x64xf32> to vector<15x64xf32>
    %c15 = arith.constant 15 : index
    %c0_125 = arith.constant 0 : index
    %c0_126 = arith.constant 0 : index
    %93 = vector.load %arg2[%c15, %c0_125, %c0_126] : memref<16x64x64xf32, #tpu.memory_space<vmem>>, vector<1x64x64xf32>
    %94 = vector.shape_cast %93 : vector<1x64x64xf32> to vector<64x64xf32>
    %cst_127 = arith.constant dense<0.000000e+00> : vector<15x64xf32>
    %95 = tpu.matmul %92, %94, %cst_127 {dimension_numbers = #tpu.dot_dimension_numbers<[1], [0], [0], [1], [0, 0, 1, 1], [], []>} : vector<15x64xf32>, vector<64x64xf32>, vector<15x64xf32> -> vector<15x64xf32>
    %96 = arith.addf %90, %95 : vector<15x64xf32>
    %c0_128 = arith.constant 0 : index
    %c0_129 = arith.constant 0 : index
    %97 = vector.load %arg3[%c0_128, %c0_129] : memref<1x64xf32, #tpu.memory_space<vmem>>, vector<1x64xf32>
    %98 = vector.broadcast %97 : vector<1x64xf32> to vector<15x64xf32>
    %99 = arith.addf %96, %98 : vector<15x64xf32>
    %c0_130 = arith.constant 0 : index
    %c0_131 = arith.constant 0 : index
    %100 = vector.load %arg6[%c0_130, %c0_131] : memref<15x1xf32, #tpu.memory_space<vmem>>, vector<15x1xf32>
    %c0_132 = arith.constant 0 : index
    %c0_133 = arith.constant 0 : index
    %101 = vector.load %arg4[%c0_132, %c0_133] : memref<1x64xf32, #tpu.memory_space<vmem>>, vector<1x64xf32>
    %c0_134 = arith.constant 0 : index
    %c0_135 = arith.constant 0 : index
    %102 = vector.load %arg5[%c0_134, %c0_135] : memref<1x64xf32, #tpu.memory_space<vmem>>, vector<1x64xf32>
    %c0_136 = arith.constant 0 : index
    %c0_137 = arith.constant 0 : index
    %103 = vector.load %arg7[%c0_136, %c0_137] : memref<64x64xf32, #tpu.memory_space<vmem>>, vector<64x64xf32>
    %104 = vector.broadcast %100 : vector<15x1xf32> to vector<15x64xf32>
    %105 = arith.mulf %99, %104 : vector<15x64xf32>
    %cst_138 = arith.constant dense<0.000000e+00> : vector<64xf32>
    %106 = vector.multi_reduction <add>, %105, %cst_138 [0] : vector<15x64xf32> to vector<64xf32>
    %107 = vector.shape_cast %106 : vector<64xf32> to vector<1x64xf32>
    %cst_139 = arith.constant dense<0.000000e+00> : vector<1x64xf32>
    %108 = tpu.matmul %107, %103, %cst_139 {dimension_numbers = #tpu.dot_dimension_numbers<[1], [0], [0], [1], [0, 0, 1, 1], [], []>} : vector<1x64xf32>, vector<64x64xf32>, vector<1x64xf32> -> vector<1x64xf32>
    %109 = vector.broadcast %108 : vector<1x64xf32> to vector<15x64xf32>
    %110 = arith.subf %99, %109 : vector<15x64xf32>
    %111 = vector.broadcast %100 : vector<15x1xf32> to vector<15x64xf32>
    %112 = arith.mulf %110, %111 : vector<15x64xf32>
    %113 = arith.mulf %112, %112 : vector<15x64xf32>
    %cst_140 = arith.constant dense<0.000000e+00> : vector<64xf32>
    %114 = vector.multi_reduction <add>, %113, %cst_140 [0] : vector<15x64xf32> to vector<64xf32>
    %115 = vector.shape_cast %114 : vector<64xf32> to vector<1x64xf32>
    %cst_141 = arith.constant dense<0.000000e+00> : vector<1x64xf32>
    %116 = tpu.matmul %115, %103, %cst_141 {dimension_numbers = #tpu.dot_dimension_numbers<[1], [0], [0], [1], [0, 0, 1, 1], [], []>} : vector<1x64xf32>, vector<64x64xf32>, vector<1x64xf32> -> vector<1x64xf32>
    %117 = vector.broadcast %108 : vector<1x64xf32> to vector<15x64xf32>
    %118 = arith.subf %99, %117 : vector<15x64xf32>
    %cst_142 = arith.constant 9.99999974E-6 : f32
    %119 = vector.broadcast %cst_142 : f32 to vector<1x64xf32>
    %120 = arith.addf %116, %119 : vector<1x64xf32>
    %121 = math.rsqrt %120 : vector<1x64xf32>
    %122 = vector.broadcast %121 : vector<1x64xf32> to vector<15x64xf32>
    %123 = arith.mulf %118, %122 : vector<15x64xf32>
    %124 = vector.broadcast %101 : vector<1x64xf32> to vector<15x64xf32>
    %125 = arith.mulf %123, %124 : vector<15x64xf32>
    %126 = vector.broadcast %102 : vector<1x64xf32> to vector<15x64xf32>
    %127 = arith.addf %125, %126 : vector<15x64xf32>
    %cst_143 = arith.constant 0.000000e+00 : f32
    %128 = vector.broadcast %cst_143 : f32 to vector<15x64xf32>
    %129 = arith.maximumf %127, %128 : vector<15x64xf32>
    %130 = vector.broadcast %100 : vector<15x1xf32> to vector<15x64xf32>
    %131 = arith.mulf %129, %130 : vector<15x64xf32>
    %cst_144 = arith.constant dense<0.000000e+00> : vector<64xf32>
    %132 = vector.multi_reduction <add>, %131, %cst_144 [0] : vector<15x64xf32> to vector<64xf32>
    %133 = vector.shape_cast %132 : vector<64xf32> to vector<1x64xf32>
    %cst_145 = arith.constant 0.111111112 : f32
    %134 = vector.broadcast %cst_145 : f32 to vector<1x64xf32>
    %135 = arith.mulf %133, %134 : vector<1x64xf32>
    %c0_146 = arith.constant 0 : index
    %c0_147 = arith.constant 0 : index
    %136 = vector.load %arg8[%c0_146, %c0_147] : memref<64x10xf32, #tpu.memory_space<vmem>>, vector<64x10xf32>
    %cst_148 = arith.constant dense<0.000000e+00> : vector<1x10xf32>
    %137 = tpu.matmul %135, %136, %cst_148 {dimension_numbers = #tpu.dot_dimension_numbers<[1], [0], [0], [1], [0, 0, 1, 1], [], []>} : vector<1x64xf32>, vector<64x10xf32>, vector<1x10xf32> -> vector<1x10xf32>
    %c0_149 = arith.constant 0 : index
    %c0_150 = arith.constant 0 : index
    %138 = vector.load %arg9[%c0_149, %c0_150] : memref<1x10xf32, #tpu.memory_space<vmem>>, vector<1x10xf32>
    %139 = arith.addf %137, %138 : vector<1x10xf32>
    %c0_151 = arith.constant 0 : index
    %c0_152 = arith.constant 0 : index
    %c0_153 = arith.constant 0 : index
    %140 = vector.load %arg10[%c0_151, %c0_152, %c0_153] : memref<1x1x10xf32, #tpu.memory_space<vmem>>, vector<1x1x10xf32>
    %141 = vector.shape_cast %140 : vector<1x1x10xf32> to vector<1x10xf32>
    %142 = vector.shape_cast %139 : vector<1x10xf32> to vector<1x1x10xf32>
    tpu.vector_store %arg10[%c0_151, %c0_152, %c0_153], %142 {strides = array<i32>} : memref<1x1x10xf32, #tpu.memory_space<vmem>>, vector<1x1x10xf32>,
    return
  }
  func.func @transform_0(%arg0: i32) -> (i32, i32, i32, i32, i32) {
    %c0_i32 = arith.constant 0 : i32
    %c0_i32_0 = arith.constant 0 : i32
    %c0_i32_1 = arith.constant 0 : i32
    %c0_i32_2 = arith.constant 0 : i32
    %c0_i32_3 = arith.constant 0 : i32
    return %arg0, %c0_i32, %c0_i32_0, %c0_i32_1, %c0_i32_2 : i32, i32, i32, i32, i32
  }
  func.func @transform_1(%arg0: i32) -> (i32, i32, i32) {
    %c0_i32 = arith.constant 0 : i32
    %c0_i32_0 = arith.constant 0 : i32
    %c0_i32_1 = arith.constant 0 : i32
    %c0_i32_2 = arith.constant 0 : i32
    return %c0_i32, %c0_i32_0, %c0_i32_1 : i32, i32, i32
  }
  func.func @transform_2(%arg0: i32) -> (i32, i32) {
    %c0_i32 = arith.constant 0 : i32
    %c0_i32_0 = arith.constant 0 : i32
    %c0_i32_1 = arith.constant 0 : i32
    return %c0_i32, %c0_i32_0 : i32, i32
  }
  func.func @transform_3(%arg0: i32) -> (i32, i32) {
    %c0_i32 = arith.constant 0 : i32
    %c0_i32_0 = arith.constant 0 : i32
    %c0_i32_1 = arith.constant 0 : i32
    return %c0_i32, %c0_i32_0 : i32, i32
  }
  func.func @transform_4(%arg0: i32) -> (i32, i32) {
    %c0_i32 = arith.constant 0 : i32
    %c0_i32_0 = arith.constant 0 : i32
    %c0_i32_1 = arith.constant 0 : i32
    return %c0_i32, %c0_i32_0 : i32, i32
  }
  func.func @transform_5(%arg0: i32) -> (i32, i32) {
    %c0_i32 = arith.constant 0 : i32
    %c0_i32_0 = arith.constant 0 : i32
    %c0_i32_1 = arith.constant 0 : i32
    return %c0_i32, %c0_i32_0 : i32, i32
  }
  func.func @transform_6(%arg0: i32) -> (i32, i32) {
    %c0_i32 = arith.constant 0 : i32
    %c0_i32_0 = arith.constant 0 : i32
    %c0_i32_1 = arith.constant 0 : i32
    return %c0_i32, %c0_i32_0 : i32, i32
  }
  func.func @transform_7(%arg0: i32) -> (i32, i32) {
    %c0_i32 = arith.constant 0 : i32
    %c0_i32_0 = arith.constant 0 : i32
    %c0_i32_1 = arith.constant 0 : i32
    return %c0_i32, %c0_i32_0 : i32, i32
  }
  func.func @transform_8(%arg0: i32) -> (i32, i32) {
    %c0_i32 = arith.constant 0 : i32
    %c0_i32_0 = arith.constant 0 : i32
    %c0_i32_1 = arith.constant 0 : i32
    return %c0_i32, %c0_i32_0 : i32, i32
  }
  func.func @transform_9(%arg0: i32) -> (i32, i32, i32) {
    %c0_i32 = arith.constant 0 : i32
    %c0_i32_0 = arith.constant 0 : i32
    %c0_i32_1 = arith.constant 0 : i32
    return %arg0, %c0_i32, %c0_i32_0 : i32, i32, i32
  }
}

</mosaic_0001>

<bundles_post_ra>
// kernel: continuous_resnet_forward.3
= control target key start
LH: loop header
LB: loop body
LE: loop exit
PB: predicated region body
PF: predicated region fallthrough
CT: control target
= control target key end

     0   :  { %s3679_s24 = smov 0   ;;  %s6120_s0 = inlined_call_operand.vmem [shape: f32[2,306,1], index: 0, kind: input, shape index: {}]   ;;  %s6121_s1 = inlined_call_operand.vmem [shape: f32[9,64], index: 1, kind: input, shape index: {}]   ;;  %s6122_s2 = inlined_call_operand.vmem [shape: f32[1,64], index: 2, kind: input, shape index: {}]   ;;  %s6123_s3 = inlined_call_operand.vmem [shape: f32[1,64], index: 3, kind: input, shape index: {}]   ;;  %s6124_s4 = inlined_call_operand.vmem [shape: f32[1,64], index: 4, kind: input, shape index: {}]   ;;  %s6125_s5 = inlined_call_operand.vmem [shape: f32[252,1], index: 5, kind: input, shape index: {}]   ;;  %s6126_s6 = inlined_call_operand.vmem [shape: f32[64,64], index: 6, kind: input, shape index: {}]   ;;  %s6127_s7 = inlined_call_operand.vmem [shape: f32[2,252,64], index: 7, kind: output, shape index: {}]  }
   0x1 LB: > { %s3512_s25 = sadd.s32 4294967295, %s3633_s24   ;;  %p3516_p0 = scmp.ge.s32.totalorder %s3633_s24, 1  ;;  %s3633_s24 = sphi %s3679_s24, %s17_s24  }
   0x2   : > { %p237_p1 = scmp.lt.s32.totalorder %s3633_s24, 3 }
   0x4   : > { %p238_p2 = pnand %p3516_p0, %p237_p1 }
   0x6   : > { %241 = sbr.rel (%p238_p2) target bundleno = 1368 (0x558), region = 48 }
   0xd   : > { %p269_p3 = scmp.lt.s32.totalorder %s3512_s25, 1  ;;  %v3635_v0 = vmov 0   ;;  %vm3637_vm0 = vmmov 0   ;;  %vm2894_vm1 = vcmask 523264   ;;  %vm2956_vm2 = vcmask 519168  }
   0xe   : > { %3623 = vset.pattern.permute.xlu1 %v3635_v0  ;;  %3622 = vset.pattern.permute.xlu0 %v3635_v0 }
   0xf   : > { %s6623_s25 = smov (!%p269_p3, %s3512_s25), 1 }
  0x10   : > { %s3609_s26 = smul.u32 312, %s6623_s25  ;;  %s3528_s17 = sshll.u32 %s6623_s25, 8 }
  0x11   : > { %s6031_s19 = scalar_lea.vmem %s6127_s7, %s3528_s17 }
  0x12   : > { %s3693_s29 = scalar_lea.vmem %s6120_s0, %s3609_s26 }
  0x13   : > { %v283_v1 = vld [vmem:[%s3693_s29 + $0x10] sm:$0xff]  ;;  %v281_v2 = vld [vmem:[%s3693_s29] sm:$0xff]  ;;  %v284_v3 = vld [vmem:[%s3693_s29 + $0x18] sm:$0xff] }
  0x14   : > { %325 = vperm.xlu1 %3623, %v283_v1   ;;  %315 = vperm.xlu0 %3622, %v281_v2   ;;  %v282_v4 = vld [vmem:[%s3693_s29 + $0x8] sm:$0xff]  ;;  %v285_v6 = vld [vmem:[%s3693_s29 + $0x20] sm:$0xff]  ;;  %v288_v7 = vld [vmem:[%s3693_s29 + $0x38] sm:$0xff] }
  0x15   : > { %v286_v5 = vld [vmem:[%s3693_s29 + $0x28] sm:$0xff]  ;;  %v287_v8 = vld [vmem:[%s3693_s29 + $0x30] sm:$0xff]  ;;  %v289_v10 = vld [vmem:[%s3693_s29 + $0x40] sm:$0xff] }
  0x16   : > { %v290_v9 = vld [vmem:[%s3693_s29 + $0x48] sm:$0xff]  ;;  %v292_v11 = vld [vmem:[%s3693_s29 + $0x58] sm:$0xff]  ;;  %v291_v12 = vld [vmem:[%s3693_s29 + $0x50] sm:$0xff] }
  0x17   : > { %v294_v13 = vld [vmem:[%s3693_s29 + $0x68] sm:$0xff]  ;;  %v293_v14 = vld [vmem:[%s3693_s29 + $0x60] sm:$0xff]  ;;  %v296_v15 = vld [vmem:[%s3693_s29 + $0x78] sm:$0xff] }
  0x18   : > { %330 = vperm.xlu1 %3623, %v284_v3   ;;  %320 = vperm.xlu0 %3622, %v282_v4   ;;  %v295_v16 = vld [vmem:[%s3693_s29 + $0x70] sm:$0xff]  ;;  %v298_v17 = vld [vmem:[%s3693_s29 + $0x88] sm:$0xff]  ;;  %v297_v18 = vld [vmem:[%s3693_s29 + $0x80] sm:$0xff] }
  0x19   : > { %v300_v19 = vld [vmem:[%s3693_s29 + $0x98] sm:$0xff]  ;;  %v299_v20 = vld [vmem:[%s3693_s29 + $0x90] sm:$0xff]  ;;  %v302_v21 = vld [vmem:[%s3693_s29 + $0xa8] sm:$0xff] }
  0x1a   : > { %v301_v22 = vld [vmem:[%s3693_s29 + $0xa0] sm:$0xff]  ;;  %v304_v23 = vld [vmem:[%s3693_s29 + $0xb8] sm:$0xff]  ;;  %v303_v24 = vld [vmem:[%s3693_s29 + $0xb0] sm:$0xff] }
  0x1b   : > { %v306_v25 = vld [vmem:[%s3693_s29 + $0xc8] sm:$0xff]  ;;  %v305_v26 = vld [vmem:[%s3693_s29 + $0xc0] sm:$0xff]  ;;  %v308_v27 = vld [vmem:[%s3693_s29 + $0xd8] sm:$0xff] }
  0x1c   : > { %340 = vperm.xlu1 %3623, %v286_v5   ;;  %335 = vperm.xlu0 %3622, %v285_v6   ;;  %v307_v28 = vld [vmem:[%s3693_s29 + $0xd0] sm:$0xff]  ;;  %v310_v29 = vld [vmem:[%s3693_s29 + $0xe8] sm:$0xff]  ;;  %v309_v30 = vld [vmem:[%s3693_s29 + $0xe0] sm:$0xff] }
  0x1d   : > { %v312_v31 = vld [vmem:[%s3693_s29 + $0xf8] sm:$0xf]  ;;  %v311_v32 = vld [vmem:[%s3693_s29 + $0xf0] sm:$0xff]  ;;  %v541_v34 = vld [vmem:[%s3693_s29 + $0x1] sm:$0xff] }
  0x1e   : > { %v542_v33 = vld [vmem:[%s3693_s29 + $0x9] sm:$0xff]  ;;  %v544_v35 = vld [vmem:[%s3693_s29 + $0x19] sm:$0xff]  ;;  %v543_v36 = vld [vmem:[%s3693_s29 + $0x11] sm:$0xff] }
  0x1f   : > { %v546_v37 = vld [vmem:[%s3693_s29 + $0x29] sm:$0xff]  ;;  %v545_v38 = vld [vmem:[%s3693_s29 + $0x21] sm:$0xff]  ;;  %v548_v39 = vld [vmem:[%s3693_s29 + $0x39] sm:$0xff] }
  0x20   : > { %350 = vperm.xlu1 %3623, %v288_v7   ;;  %345 = vperm.xlu0 %3622, %v287_v8   ;;  %v547_v40 = vld [vmem:[%s3693_s29 + $0x31] sm:$0xff]  ;;  %v550_v41 = vld [vmem:[%s3693_s29 + $0x49] sm:$0xff]  ;;  %v549_v42 = vld [vmem:[%s3693_s29 + $0x41] sm:$0xff] }
  0x21   : > { %v552_v43 = vld [vmem:[%s3693_s29 + $0x59] sm:$0xff]  ;;  %v551_v44 = vld [vmem:[%s3693_s29 + $0x51] sm:$0xff]  ;;  %v554_v45 = vld [vmem:[%s3693_s29 + $0x69] sm:$0xff] }
  0x22   : > { %v553_v46 = vld [vmem:[%s3693_s29 + $0x61] sm:$0xff]  ;;  %v556_v47 = vld [vmem:[%s3693_s29 + $0x79] sm:$0xff]  ;;  %v555_v48 = vld [vmem:[%s3693_s29 + $0x71] sm:$0xff] }
  0x23   : > { %v558_v49 = vld [vmem:[%s3693_s29 + $0x89] sm:$0xff]  ;;  %v557_v50 = vld [vmem:[%s3693_s29 + $0x81] sm:$0xff]  ;;  %v560_v51 = vld [vmem:[%s3693_s29 + $0x99] sm:$0xff] }
  0x24   : > { %360 = vperm.xlu1 %3623, %v290_v9   ;;  %355 = vperm.xlu0 %3622, %v289_v10   ;;  %v559_v52 = vld [vmem:[%s3693_s29 + $0x91] sm:$0xff]  ;;  %v562_v53 = vld [vmem:[%s3693_s29 + $0xa9] sm:$0xff]  ;;  %v561_v54 = vld [vmem:[%s3693_s29 + $0xa1] sm:$0xff] }
  0x25   : > { %v564_v55 = vld [vmem:[%s3693_s29 + $0xb9] sm:$0xff]  ;;  %v563_v56 = vld [vmem:[%s3693_s29 + $0xb1] sm:$0xff]  ;;  %v566_v57 = vld [vmem:[%s3693_s29 + $0xc9] sm:$0xff] }
  0x26   : > { %v565_v58 = vld [vmem:[%s3693_s29 + $0xc1] sm:$0xff]  ;;  %v568_v59 = vld [vmem:[%s3693_s29 + $0xd9] sm:$0xff]  ;;  %v567_v60 = vld [vmem:[%s3693_s29 + $0xd1] sm:$0xff] }
  0x27   : > { %v570_v61 = vld [vmem:[%s3693_s29 + $0xe9] sm:$0xff]  ;;  %v569_v62 = vld [vmem:[%s3693_s29 + $0xe1] sm:$0xff]  ;;  %v572_v63 = vld [vmem:[%s3693_s29 + $0xf9] sm:$0xf] }
  0x28   : > { %370 = vperm.xlu1 %3623, %v292_v11   ;;  %365 = vperm.xlu0 %3622, %v291_v12   ;;  %v571_v0 = vld [vmem:[%s3693_s29 + $0xf1] sm:$0xff]  ;;  %v801_v2 = vld [vmem:[%s3693_s29 + $0x2] sm:$0xff]  ;;  %v3766_v5 = vld [vmem:[%s3693_s29 + $0x1a] sm:$0xff] }
  0x29   : > { %v802_v1 = vld [vmem:[%s3693_s29 + $0xa] sm:$0xff]  ;;  %v3769_v6 = vld [vmem:[%s3693_s29 + $0x12] sm:$0xff]  ;;  %v3781_v10 = vld [vmem:[%s3693_s29 + $0x22] sm:$0xff] }
  0x2a   : > { %v3778_v9 = vld [vmem:[%s3693_s29 + $0x2a] sm:$0xff] }
  0x2c   : > { %380 = vperm.xlu1 %3623, %v294_v13   ;;  %375 = vperm.xlu0 %3622, %v293_v14   ;;  %v3790_v13 = vld [vmem:[%s3693_s29 + $0x3a] sm:$0xff]  ;;  %v3793_v14 = vld [vmem:[%s3693_s29 + $0x32] sm:$0xff] }
  0x30   : > { %390 = vperm.xlu1 %3623, %v296_v15   ;;  %385 = vperm.xlu0 %3622, %v295_v16  }
  0x34   : > { %400 = vperm.xlu1 %3623, %v298_v17   ;;  %395 = vperm.xlu0 %3622, %v297_v18   ;;  %v3802_v17 = vld [vmem:[%s3693_s29 + $0x4a] sm:$0xff]  ;;  %v3805_v18 = vld [vmem:[%s3693_s29 + $0x42] sm:$0xff] }
  0x38   : > { %410 = vperm.xlu1 %3623, %v300_v19   ;;  %405 = vperm.xlu0 %3622, %v299_v20  }
  0x3c   : > { %420 = vperm.xlu1 %3623, %v302_v21   ;;  %415 = vperm.xlu0 %3622, %v301_v22   ;;  %v3814_v21 = vld [vmem:[%s3693_s29 + $0x5a] sm:$0xff]  ;;  %v3817_v22 = vld [vmem:[%s3693_s29 + $0x52] sm:$0xff] }
  0x40   : > { %430 = vperm.xlu1 %3623, %v304_v23   ;;  %425 = vperm.xlu0 %3622, %v303_v24  }
  0x44   : > { %440 = vperm.xlu1 %3623, %v306_v25   ;;  %435 = vperm.xlu0 %3622, %v305_v26   ;;  %v3826_v25 = vld [vmem:[%s3693_s29 + $0x6a] sm:$0xff]  ;;  %v3829_v26 = vld [vmem:[%s3693_s29 + $0x62] sm:$0xff] }
  0x48   : > { %450 = vperm.xlu1 %3623, %v308_v27   ;;  %445 = vperm.xlu0 %3622, %v307_v28  }
  0x4c   : > { %460 = vperm.xlu1 %3623, %v310_v29   ;;  %455 = vperm.xlu0 %3622, %v309_v30   ;;  %v3838_v29 = vld [vmem:[%s3693_s29 + $0x7a] sm:$0xff]  ;;  %v3841_v30 = vld [vmem:[%s3693_s29 + $0x72] sm:$0xff] }
  0x50   : > { %470 = vperm.xlu1 %3623, %v312_v31   ;;  %465 = vperm.xlu0 %3622, %v311_v32  }
  0x54   : > { %580 = vperm.xlu1 %3623, %v542_v33   ;;  %575 = vperm.xlu0 %3622, %v541_v34   ;;  %v3850_v33 = vld [vmem:[%s3693_s29 + $0x8a] sm:$0xff]  ;;  %v3853_v34 = vld [vmem:[%s3693_s29 + $0x82] sm:$0xff] }
  0x58   : > { %590 = vperm.xlu1 %3623, %v544_v35   ;;  %585 = vperm.xlu0 %3622, %v543_v36  }
  0x5c   : > { %600 = vperm.xlu1 %3623, %v546_v37   ;;  %595 = vperm.xlu0 %3622, %v545_v38   ;;  %v3862_v37 = vld [vmem:[%s3693_s29 + $0x9a] sm:$0xff]  ;;  %v3865_v38 = vld [vmem:[%s3693_s29 + $0x92] sm:$0xff] }
  0x60   : > { %610 = vperm.xlu1 %3623, %v548_v39   ;;  %605 = vperm.xlu0 %3622, %v547_v40  }
  0x64   : > { %620 = vperm.xlu1 %3623, %v550_v41   ;;  %615 = vperm.xlu0 %3622, %v549_v42   ;;  %v3874_v41 = vld [vmem:[%s3693_s29 + $0xaa] sm:$0xff]  ;;  %v3877_v42 = vld [vmem:[%s3693_s29 + $0xa2] sm:$0xff] }
  0x68   : > { %630 = vperm.xlu1 %3623, %v552_v43   ;;  %625 = vperm.xlu0 %3622, %v551_v44  }
  0x6c   : > { %640 = vperm.xlu1 %3623, %v554_v45   ;;  %635 = vperm.xlu0 %3622, %v553_v46   ;;  %v3886_v45 = vld [vmem:[%s3693_s29 + $0xba] sm:$0xff]  ;;  %v3889_v46 = vld [vmem:[%s3693_s29 + $0xb2] sm:$0xff] }
  0x70   : > { %650 = vperm.xlu1 %3623, %v556_v47   ;;  %645 = vperm.xlu0 %3622, %v555_v48  }
  0x74   : > { %660 = vperm.xlu1 %3623, %v558_v49   ;;  %655 = vperm.xlu0 %3622, %v557_v50   ;;  %v3898_v49 = vld [vmem:[%s3693_s29 + $0xca] sm:$0xff]  ;;  %v3901_v50 = vld [vmem:[%s3693_s29 + $0xc2] sm:$0xff] }
  0x78   : > { %670 = vperm.xlu1 %3623, %v560_v51   ;;  %665 = vperm.xlu0 %3622, %v559_v52  }
  0x7c   : > { %680 = vperm.xlu1 %3623, %v562_v53   ;;  %675 = vperm.xlu0 %3622, %v561_v54   ;;  %v3910_v53 = vld [vmem:[%s3693_s29 + $0xda] sm:$0xff]  ;;  %v3913_v54 = vld [vmem:[%s3693_s29 + $0xd2] sm:$0xff] }
  0x80   : > { %690 = vperm.xlu1 %3623, %v564_v55   ;;  %685 = vperm.xlu0 %3622, %v563_v56  }
  0x84   : > { %700 = vperm.xlu1 %3623, %v566_v57   ;;  %695 = vperm.xlu0 %3622, %v565_v58   ;;  %v3922_v57 = vld [vmem:[%s3693_s29 + $0xea] sm:$0xff]  ;;  %v3925_v58 = vld [vmem:[%s3693_s29 + $0xe2] sm:$0xff] }
  0x88   : > { %710 = vperm.xlu1 %3623, %v568_v59   ;;  %705 = vperm.xlu0 %3622, %v567_v60  }
  0x8c   : > { %720 = vperm.xlu1 %3623, %v570_v61   ;;  %715 = vperm.xlu0 %3622, %v569_v62   ;;  %v832_v61 = vld [vmem:[%s3693_s29 + $0xfa] sm:$0xf]  ;;  %v3935_v62 = vld [vmem:[%s3693_s29 + $0xf2] sm:$0xff] }
  0x90   : > { %730 = vperm.xlu1 %3623, %v572_v63   ;;  %725 = vperm.xlu0 %3622, %v571_v0  }
  0x93   : > { %v3761_v3 = vpop.permute.xlu1 %325  ;;  %v3763_v4 = vpop.permute.xlu0 %315 }
  0x94   : > { %840 = vperm.xlu1 %3623, %v802_v1   ;;  %835 = vperm.xlu0 %3622, %v801_v2  }
  0x97   : > { %v3771_v7 = vpop.permute.xlu1 %330  ;;  %v3773_v8 = vpop.permute.xlu0 %320 }
  0x98   : > { %850 = vperm.xlu1 %3623, %v3766_v5   ;;  %845 = vperm.xlu0 %3622, %v3769_v6  }
  0x9b   : > { %v3783_v11 = vpop.permute.xlu1 %340  ;;  %v3785_v12 = vpop.permute.xlu0 %335 }
  0x9c   : > { %860 = vperm.xlu1 %3623, %v3778_v9   ;;  %855 = vperm.xlu0 %3622, %v3781_v10  }
  0x9f   : > { %v3795_v15 = vpop.permute.xlu1 %350  ;;  %v3797_v16 = vpop.permute.xlu0 %345 }
  0xa0   : > { %6166 = vst [vmem:[#allocation2_spill] sm:$0xff] %v3795_v15  ;;  %6167 = vst [vmem:[#allocation3_spill] sm:$0xff] %v3797_v16  ;;  %870 = vperm.xlu1 %3623, %v3790_v13   ;;  %865 = vperm.xlu0 %3622, %v3793_v14   ;;  %v2386_v16 = vld [vmem:[%s3693_s29 + $0xee] sm:$0xff] }
  0xa3   : > { %v3807_v19 = vpop.permute.xlu1 %360  ;;  %v3809_v20 = vpop.permute.xlu0 %355 }
  0xa4   : > { %6168 = vst [vmem:[#allocation4_spill] sm:$0xff] %v3807_v19  ;;  %6169 = vst [vmem:[#allocation5_spill] sm:$0xff] %v3809_v20  ;;  %880 = vperm.xlu1 %3623, %v3802_v17   ;;  %875 = vperm.xlu0 %3622, %v3805_v18  }
  0xa7   : > { %v3819_v23 = vpop.permute.xlu1 %370  ;;  %v3821_v24 = vpop.permute.xlu0 %365 }
  0xa8   : > { %6170 = vst [vmem:[#allocation6_spill] sm:$0xff] %v3819_v23  ;;  %6171 = vst [vmem:[#allocation7_spill] sm:$0xff] %v3821_v24  ;;  %890 = vperm.xlu1 %3623, %v3814_v21   ;;  %885 = vperm.xlu0 %3622, %v3817_v22   ;;  %v4557_v24 = vld [vmem:[%s3693_s29 + $0xfc] sm:$0xff] }
  0xab   : > { %v3831_v27 = vpop.permute.xlu1 %380  ;;  %v3833_v28 = vpop.permute.xlu0 %375 }
  0xac   : > { %6172 = vst [vmem:[#allocation8_spill] sm:$0xff] %v3831_v27  ;;  %6173 = vst [vmem:[#allocation9_spill] sm:$0xff] %v3833_v28  ;;  %900 = vperm.xlu1 %3623, %v3826_v25   ;;  %895 = vperm.xlu0 %3622, %v3829_v26  }
  0xaf   : > { %v3843_v31 = vpop.permute.xlu1 %390  ;;  %v3845_v32 = vpop.permute.xlu0 %385 }
  0xb0   : > { %6174 = vst [vmem:[#allocation10_spill] sm:$0xff] %v3845_v32  ;;  %910 = vperm.xlu1 %3623, %v3838_v29   ;;  %905 = vperm.xlu0 %3622, %v3841_v30  }
  0xb3   : > { %v3855_v35 = vpop.permute.xlu1 %400  ;;  %v3857_v36 = vpop.permute.xlu0 %395 }
  0xb4   : > { %920 = vperm.xlu1 %3623, %v3850_v33   ;;  %915 = vperm.xlu0 %3622, %v3853_v34  }
  0xb7   : > { %v3867_v39 = vpop.permute.xlu1 %410  ;;  %v3869_v40 = vpop.permute.xlu0 %405 }
  0xb8   : > { %930 = vperm.xlu1 %3623, %v3862_v37   ;;  %925 = vperm.xlu0 %3622, %v3865_v38  }
  0xbb   : > { %v3879_v43 = vpop.permute.xlu1 %420  ;;  %v3881_v44 = vpop.permute.xlu0 %415 }
  0xbc   : > { %940 = vperm.xlu1 %3623, %v3874_v41   ;;  %935 = vperm.xlu0 %3622, %v3877_v42  }
  0xbf   : > { %v3891_v47 = vpop.permute.xlu1 %430  ;;  %v3893_v48 = vpop.permute.xlu0 %425 }
  0xc0   : > { %6175 = vst [vmem:[#allocation11_spill] sm:$0xff] %v3891_v47  ;;  %6176 = vst [vmem:[#allocation12_spill] sm:$0xff] %v3893_v48  ;;  %950 = vperm.xlu1 %3623, %v3886_v45   ;;  %945 = vperm.xlu0 %3622, %v3889_v46  }
  0xc3   : > { %v3903_v51 = vpop.permute.xlu1 %440  ;;  %v3905_v52 = vpop.permute.xlu0 %435 }
  0xc4   : > { %6177 = vst [vmem:[#allocation13_spill] sm:$0xff] %v3903_v51  ;;  %6178 = vst [vmem:[#allocation14_spill] sm:$0xff] %v3905_v52  ;;  %960 = vperm.xlu1 %3623, %v3898_v49   ;;  %955 = vperm.xlu0 %3622, %v3901_v50   ;;  %v1856_v51 = vld [vmem:[%s3693_s29 + $0x9c] sm:$0xff] }
  0xc7   : > { %v3915_v55 = vpop.permute.xlu1 %450  ;;  %v3917_v56 = vpop.permute.xlu0 %445 }
  0xc8   : > { %6179 = vst [vmem:[#allocation15_spill] sm:$0xff] %v3915_v55  ;;  %6180 = vst [vmem:[#allocation16_spill] sm:$0xff] %v3917_v56  ;;  %970 = vperm.xlu1 %3623, %v3910_v53   ;;  %965 = vperm.xlu0 %3622, %v3913_v54  }
  0xcb   : > { %v3927_v59 = vpop.permute.xlu1 %460  ;;  %v3929_v60 = vpop.permute.xlu0 %455 }
  0xcc   : > { %6181 = vst [vmem:[#allocation17_spill] sm:$0xff] %v3927_v59  ;;  %6182 = vst [vmem:[#allocation18_spill] sm:$0xff] %v3929_v60  ;;  %980 = vperm.xlu1 %3623, %v3922_v57   ;;  %975 = vperm.xlu0 %3622, %v3925_v58  }
  0xcf   : > { %v3937_v63 = vpop.permute.xlu1 %470  ;;  %v3939_v0 = vpop.permute.xlu0 %465 }
  0xd0   : > { %6183 = vst [vmem:[#allocation19_spill] sm:$0xff] %v3937_v63  ;;  %6184 = vst [vmem:[#allocation20_spill] sm:$0xff] %v3939_v0  ;;  %990 = vperm.xlu1 %3623, %v832_v61   ;;  %985 = vperm.xlu0 %3622, %v3935_v62  }
  0xd3   : > { %v3942_v1 = vpop.permute.xlu1 %580  ;;  %v3944_v2 = vpop.permute.xlu0 %575 }
  0xd4   : > { %6185 = vst [vmem:[#allocation21_spill] sm:$0xff] %v3942_v1  ;;  %6186 = vst [vmem:[#allocation22_spill] sm:$0xff] %v3944_v2  ;;  %1100 = vperm.xlu1 %3623, %v3766_v5   ;;  %1095 = vperm.xlu0 %3622, %v3769_v6  }
  0xd7   : > { %v3948_v60 = vpop.permute.xlu1 %590  ;;  %v3950_v59 = vpop.permute.xlu0 %585 }
  0xd8   : > { %6187 = vst [vmem:[#allocation23_spill] sm:$0xff] %v3948_v60  ;;  %6188 = vst [vmem:[#allocation24_spill] sm:$0xff] %v3950_v59  ;;  %1110 = vperm.xlu1 %3623, %v3778_v9   ;;  %1105 = vperm.xlu0 %3622, %v3781_v10   ;;  %v2126_v60 = vld [vmem:[%s3693_s29 + $0xed] sm:$0xff] }
  0xdb   : > { %v3954_v0 = vpop.permute.xlu1 %600  ;;  %v3956_v61 = vpop.permute.xlu0 %595 }
  0xdc   : > { %6189 = vst [vmem:[#allocation25_spill] sm:$0xff] %v3954_v0  ;;  %6190 = vst [vmem:[#allocation26_spill] sm:$0xff] %v3956_v61  ;;  %1120 = vperm.xlu1 %3623, %v3790_v13   ;;  %1115 = vperm.xlu0 %3622, %v3793_v14  }
  0xdf   : > { %v3960_v63 = vpop.permute.xlu1 %610  ;;  %v3962_v5 = vpop.permute.xlu0 %605 }
  0xe0   : > { %6191 = vst [vmem:[#allocation27_spill] sm:$0xff] %v3960_v63  ;;  %6192 = vst [vmem:[#allocation28_spill] sm:$0xff] %v3962_v5  ;;  %1130 = vperm.xlu1 %3623, %v3802_v17   ;;  %1125 = vperm.xlu0 %3622, %v3805_v18   ;;  %v2108_v63 = vld [vmem:[%s3693_s29 + $0x5d] sm:$0xff] }
  0xe3   : > { %v3966_v6 = vpop.permute.xlu1 %620  ;;  %v3968_v9 = vpop.permute.xlu0 %615 }
  0xe4   : > { %6193 = vst [vmem:[#allocation29_spill] sm:$0xff] %v3966_v6  ;;  %6194 = vst [vmem:[#allocation30_spill] sm:$0xff] %v3968_v9  ;;  %1140 = vperm.xlu1 %3623, %v3814_v21   ;;  %1135 = vperm.xlu0 %3622, %v3817_v22  }
  0xe7   : > { %v3972_v10 = vpop.permute.xlu1 %630  ;;  %v3974_v13 = vpop.permute.xlu0 %625 }
  0xe8   : > { %6195 = vst [vmem:[#allocation31_spill] sm:$0xff] %v3972_v10  ;;  %6196 = vst [vmem:[#allocation32_spill] sm:$0xff] %v3974_v13  ;;  %1150 = vperm.xlu1 %3623, %v3826_v25   ;;  %1145 = vperm.xlu0 %3622, %v3829_v26   ;;  %v2101_v13 = vld [vmem:[%s3693_s29 + $0x25] sm:$0xff] }
  0xeb   : > { %v3978_v14 = vpop.permute.xlu1 %640  ;;  %v3980_v17 = vpop.permute.xlu0 %635 }
  0xec   : > { %6197 = vst [vmem:[#allocation33_spill] sm:$0xff] %v3978_v14  ;;  %6198 = vst [vmem:[#allocation34_spill] sm:$0xff] %v3980_v17  ;;  %1160 = vperm.xlu1 %3623, %v3838_v29   ;;  %1155 = vperm.xlu0 %3622, %v3841_v30  }
  0xef   : > { %v3984_v18 = vpop.permute.xlu1 %650  ;;  %v3986_v21 = vpop.permute.xlu0 %645 }
  0xf0   : > { %6199 = vst [vmem:[#allocation35_spill] sm:$0xff] %v3986_v21  ;;  %1170 = vperm.xlu1 %3623, %v3850_v33   ;;  %1165 = vperm.xlu0 %3622, %v3853_v34  }
  0xf3   : > { %v3990_v22 = vpop.permute.xlu1 %660  ;;  %v3992_v25 = vpop.permute.xlu0 %655 }
  0xf4   : > { %1180 = vperm.xlu1 %3623, %v3862_v37   ;;  %1175 = vperm.xlu0 %3622, %v3865_v38  }
  0xf7   : > { %v3996_v26 = vpop.permute.xlu1 %670  ;;  %v3998_v29 = vpop.permute.xlu0 %665 }
  0xf8   : > { %1190 = vperm.xlu1 %3623, %v3874_v41   ;;  %1185 = vperm.xlu0 %3622, %v3877_v42  }
  0xfb   : > { %v4002_v30 = vpop.permute.xlu1 %680  ;;  %v4004_v33 = vpop.permute.xlu0 %675 }
  0xfc   : > { %1200 = vperm.xlu1 %3623, %v3886_v45   ;;  %1195 = vperm.xlu0 %3622, %v3889_v46   ;;  %v1090_v46 = vld [vmem:[%s3693_s29 + $0xfa] sm:$0xff] }
  0xff   : > { %v4008_v34 = vpop.permute.xlu1 %690  ;;  %v4010_v37 = vpop.permute.xlu0 %685 }
 0x100   : > { %6200 = vst [vmem:[#allocation36_spill] sm:$0xff] %v4008_v34  ;;  %6201 = vst [vmem:[#allocation37_spill] sm:$0xff] %v4010_v37  ;;  %1210 = vperm.xlu1 %3623, %v3898_v49   ;;  %1205 = vperm.xlu0 %3622, %v3901_v50   ;;  %v2114_v37 = vld [vmem:[%s3693_s29 + $0x8d] sm:$0xff] }
 0x103   : > { %v4014_v38 = vpop.permute.xlu1 %700  ;;  %v4016_v41 = vpop.permute.xlu0 %695 }
 0x104   : > { %6202 = vst [vmem:[#allocation38_spill] sm:$0xff] %v4014_v38  ;;  %6203 = vst [vmem:[#allocation39_spill] sm:$0xff] %v4016_v41  ;;  %1220 = vperm.xlu1 %3623, %v3910_v53   ;;  %1215 = vperm.xlu0 %3622, %v3913_v54   ;;  %v1092_v53 = vld [vmem:[%s3693_s29 + $0x10a] sm:$0xf]  ;;  %v1091_v54 = vld [vmem:[%s3693_s29 + $0x102] sm:$0xff] }
 0x107   : > { %v4020_v42 = vpop.permute.xlu1 %710  ;;  %v4022_v45 = vpop.permute.xlu0 %705 }
 0x108   : > { %6204 = vst [vmem:[#allocation40_spill] sm:$0xff] %v4020_v42  ;;  %6205 = vst [vmem:[#allocation41_spill] sm:$0xff] %v4022_v45  ;;  %1230 = vperm.xlu1 %3623, %v3922_v57   ;;  %1225 = vperm.xlu0 %3622, %v3925_v58   ;;  %v1322_v57 = vld [vmem:[%s3693_s29 + $0x1b] sm:$0xff]  ;;  %v1321_v58 = vld [vmem:[%s3693_s29 + $0x13] sm:$0xff] }
 0x10b   : > { %v4027_v49 = vpop.permute.xlu1 %720  ;;  %v4029_v50 = vpop.permute.xlu0 %715 }
 0x10c   : > { %6206 = vst [vmem:[#allocation42_spill] sm:$0xff] %v4027_v49  ;;  %6207 = vst [vmem:[#allocation43_spill] sm:$0xff] %v4029_v50  ;;  %1240 = vperm.xlu1 %3623, %v1090_v46   ;;  %1235 = vperm.xlu0 %3622, %v3935_v62   ;;  %v1324_v62 = vld [vmem:[%s3693_s29 + $0x2b] sm:$0xff]  ;;  %v1323_v46 = vld [vmem:[%s3693_s29 + $0x23] sm:$0xff] }
 0x10f   : > { %v4034_v42 = vpop.permute.xlu1 %730  ;;  %v4036_v55 = vpop.permute.xlu0 %725 }
 0x110   : > { %6208 = vst [vmem:[#allocation44_spill] sm:$0xff] %v4034_v42  ;;  %6209 = vst [vmem:[#allocation45_spill] sm:$0xff] %v4036_v55  ;;  %1250 = vperm.xlu1 %3623, %v1092_v53   ;;  %1245 = vperm.xlu0 %3622, %v1091_v54   ;;  %v1326_v53 = vld [vmem:[%s3693_s29 + $0x3b] sm:$0xff]  ;;  %v1325_v54 = vld [vmem:[%s3693_s29 + $0x33] sm:$0xff] }
 0x113   : > { %v4040_v49 = vpop.permute.xlu1 %840  ;;  %v4042_v50 = vpop.permute.xlu0 %835 }
 0x114   : > { %6210 = vst [vmem:[#allocation46_spill] sm:$0xff] %v4040_v49  ;;  %6211 = vst [vmem:[#allocation47_spill] sm:$0xff] %v4042_v50  ;;  %1360 = vperm.xlu1 %3623, %v1322_v57   ;;  %1355 = vperm.xlu0 %3622, %v1321_v58   ;;  %v1328_v57 = vld [vmem:[%s3693_s29 + $0x4b] sm:$0xff]  ;;  %v1327_v58 = vld [vmem:[%s3693_s29 + $0x43] sm:$0xff] }
 0x117   : > { %v4046_v45 = vpop.permute.xlu1 %850  ;;  %v4048_v42 = vpop.permute.xlu0 %845 }
 0x118   : > { %6212 = vst [vmem:[#allocation48_spill] sm:$0xff] %v4046_v45  ;;  %6213 = vst [vmem:[#allocation49_spill] sm:$0xff] %v4048_v42  ;;  %1370 = vperm.xlu1 %3623, %v1324_v62   ;;  %1365 = vperm.xlu0 %3622, %v1323_v46   ;;  %v1330_v62 = vld [vmem:[%s3693_s29 + $0x5b] sm:$0xff]  ;;  %v1329_v46 = vld [vmem:[%s3693_s29 + $0x53] sm:$0xff] }
 0x11b   : > { %v4052_v55 = vpop.permute.xlu1 %860  ;;  %v4054_v49 = vpop.permute.xlu0 %855 }
 0x11c   : > { %6214 = vst [vmem:[#allocation50_spill] sm:$0xff] %v4052_v55  ;;  %6215 = vst [vmem:[#allocation51_spill] sm:$0xff] %v4054_v49  ;;  %1380 = vperm.xlu1 %3623, %v1326_v53   ;;  %1375 = vperm.xlu0 %3622, %v1325_v54   ;;  %v1332_v53 = vld [vmem:[%s3693_s29 + $0x6b] sm:$0xff]  ;;  %v1331_v54 = vld [vmem:[%s3693_s29 + $0x63] sm:$0xff] }
 0x11f   : > { %v4058_v50 = vpop.permute.xlu1 %870  ;;  %v4060_v45 = vpop.permute.xlu0 %865 }
 0x120   : > { %6216 = vst [vmem:[#allocation52_spill] sm:$0xff] %v4058_v50  ;;  %6217 = vst [vmem:[#allocation53_spill] sm:$0xff] %v4060_v45  ;;  %1390 = vperm.xlu1 %3623, %v1328_v57   ;;  %1385 = vperm.xlu0 %3622, %v1327_v58   ;;  %v1334_v57 = vld [vmem:[%s3693_s29 + $0x7b] sm:$0xff]  ;;  %v1333_v58 = vld [vmem:[%s3693_s29 + $0x73] sm:$0xff] }
 0x123   : > { %v4064_v42 = vpop.permute.xlu1 %880  ;;  %v4066_v55 = vpop.permute.xlu0 %875 }
 0x124   : > { %6218 = vst [vmem:[#allocation54_spill] sm:$0xff] %v4064_v42  ;;  %6219 = vst [vmem:[#allocation55_spill] sm:$0xff] %v4066_v55  ;;  %1400 = vperm.xlu1 %3623, %v1330_v62   ;;  %1395 = vperm.xlu0 %3622, %v1329_v46   ;;  %v1336_v62 = vld [vmem:[%s3693_s29 + $0x8b] sm:$0xff]  ;;  %v1335_v46 = vld [vmem:[%s3693_s29 + $0x83] sm:$0xff] }
 0x127   : > { %v4070_v49 = vpop.permute.xlu1 %890  ;;  %v4072_v50 = vpop.permute.xlu0 %885 }
 0x128   : > { %6220 = vst [vmem:[#allocation56_spill] sm:$0xff] %v4070_v49  ;;  %6221 = vst [vmem:[#allocation57_spill] sm:$0xff] %v4072_v50  ;;  %1410 = vperm.xlu1 %3623, %v1332_v53   ;;  %1405 = vperm.xlu0 %3622, %v1331_v54   ;;  %v1338_v53 = vld [vmem:[%s3693_s29 + $0x9b] sm:$0xff]  ;;  %v1337_v54 = vld [vmem:[%s3693_s29 + $0x93] sm:$0xff] }
 0x12b   : > { %v4076_v45 = vpop.permute.xlu1 %900  ;;  %v4078_v42 = vpop.permute.xlu0 %895 }
 0x12c   : > { %6222 = vst [vmem:[#allocation58_spill] sm:$0xff] %v4076_v45  ;;  %6223 = vst [vmem:[#allocation59_spill] sm:$0xff] %v4078_v42  ;;  %1420 = vperm.xlu1 %3623, %v1334_v57   ;;  %1415 = vperm.xlu0 %3622, %v1333_v58   ;;  %v1340_v57 = vld [vmem:[%s3693_s29 + $0xab] sm:$0xff]  ;;  %v1339_v58 = vld [vmem:[%s3693_s29 + $0xa3] sm:$0xff] }
 0x12f   : > { %v4082_v55 = vpop.permute.xlu1 %910  ;;  %v4084_v49 = vpop.permute.xlu0 %905 }
 0x130   : > { %6224 = vst [vmem:[#allocation60_spill] sm:$0xff] %v4084_v49  ;;  %1430 = vperm.xlu1 %3623, %v1336_v62   ;;  %1425 = vperm.xlu0 %3622, %v1335_v46   ;;  %v1581_v62 = vld [vmem:[%s3693_s29 + $0x14] sm:$0xff] }
 0x131   : > { %v1341_v46 = vld [vmem:[%s3693_s29 + $0xb3] sm:$0xff] }
 0x133   : > { %v4088_v50 = vpop.permute.xlu1 %920  ;;  %v4090_v45 = vpop.permute.xlu0 %915 }
 0x134   : > { %1440 = vperm.xlu1 %3623, %v1338_v53   ;;  %1435 = vperm.xlu0 %3622, %v1337_v54   ;;  %v1583_v53 = vld [vmem:[%s3693_s29 + $0x24] sm:$0xff]  ;;  %v1582_v54 = vld [vmem:[%s3693_s29 + $0x1c] sm:$0xff] }
 0x137   : > { %v4094_v42 = vpop.permute.xlu1 %930  ;;  %v4096_v41 = vpop.permute.xlu0 %925 }
 0x138   : > { %1450 = vperm.xlu1 %3623, %v1340_v57   ;;  %1445 = vperm.xlu0 %3622, %v1339_v58   ;;  %v1842_v57 = vld [vmem:[%s3693_s29 + $0x2c] sm:$0xff] }
 0x13b   : > { %v4100_v49 = vpop.permute.xlu1 %940  ;;  %v4102_v38 = vpop.permute.xlu0 %935 }
 0x13c   : > { %1615 = vperm.xlu1 %3623, %v1581_v62   ;;  %1455 = vperm.xlu0 %3622, %v1341_v46   ;;  %v1843_v62 = vld [vmem:[%s3693_s29 + $0x34] sm:$0xff] }
 0x13f   : > { %v4106_v34 = vpop.permute.xlu1 %950  ;;  %v4108_v21 = vpop.permute.xlu0 %945 }
 0x140   : > { %6225 = vst [vmem:[#allocation61_spill] sm:$0xff] %v4106_v34  ;;  %6226 = vst [vmem:[#allocation62_spill] sm:$0xff] %v4108_v21  ;;  %1625 = vperm.xlu1 %3623, %v1583_v53   ;;  %1620 = vperm.xlu0 %3622, %v1582_v54   ;;  %v2102_v34 = vld [vmem:[%s3693_s29 + $0x2d] sm:$0xff] }
 0x143   : > { %v4111_v58 = vpop.permute.xlu1 %960  ;;  %v4113_v17 = vpop.permute.xlu0 %955 }
 0x144   : > { %6227 = vst [vmem:[#allocation63_spill] sm:$0xff] %v4111_v58  ;;  %6228 = vst [vmem:[#allocation64_spill] sm:$0xff] %v4113_v17  ;;  %1880 = vperm.xlu1 %3623, %v1842_v57   ;;  %1875 = vperm.xlu0 %3622, %v1583_v53   ;;  %v1844_v58 = vld [vmem:[%s3693_s29 + $0x3c] sm:$0xff] }
 0x147   : > { %v4116_v46 = vpop.permute.xlu1 %970  ;;  %v4118_v14 = vpop.permute.xlu0 %965 }
 0x148   : > { %6229 = vst [vmem:[#allocation65_spill] sm:$0xff] %v4116_v46  ;;  %6230 = vst [vmem:[#allocation66_spill] sm:$0xff] %v4118_v14  ;;  %1885 = vperm.xlu1 %3623, %v1843_v62   ;;  %1630 = vperm.xlu0 %3622, %v1842_v57   ;;  %v2361_v14 = vld [vmem:[%s3693_s29 + $0x26] sm:$0xff]  ;;  %v2103_v57 = vld [vmem:[%s3693_s29 + $0x35] sm:$0xff] }
 0x14b   : > { %v4122_v54 = vpop.permute.xlu1 %980  ;;  %v4124_v10 = vpop.permute.xlu0 %975 }
 0x14c   : > { %6231 = vst [vmem:[#allocation67_spill] sm:$0xff] %v4122_v54  ;;  %6232 = vst [vmem:[#allocation68_spill] sm:$0xff] %v4124_v10  ;;  %2140 = vperm.xlu1 %3623, %v2102_v34   ;;  %2135 = vperm.xlu0 %3622, %v2101_v13   ;;  %v2362_v34 = vld [vmem:[%s3693_s29 + $0x2e] sm:$0xff] }
 0x14f   : > { %v4127_v53 = vpop.permute.xlu1 %990  ;;  %v4129_v46 = vpop.permute.xlu0 %985 }
 0x150   : > { %6233 = vst [vmem:[#allocation69_spill] sm:$0xff] %v4127_v53  ;;  %6234 = vst [vmem:[#allocation70_spill] sm:$0xff] %v4129_v46  ;;  %1890 = vperm.xlu1 %3623, %v1844_v58   ;;  %1635 = vperm.xlu0 %3622, %v1843_v62   ;;  %v2104_v46 = vld [vmem:[%s3693_s29 + $0x3d] sm:$0xff] }
 0x151   : > { %v1845_v62 = vld [vmem:[%s3693_s29 + $0x44] sm:$0xff] }
 0x153   : > { %v4133_v17 = vpop.permute.xlu1 %1100  ;;  %v4135_v9 = vpop.permute.xlu0 %1095 }
 0x154   : > { %6235 = vst [vmem:[#allocation71_spill] sm:$0xff] %v4133_v17  ;;  %6236 = vst [vmem:[#allocation72_spill] sm:$0xff] %v4135_v9  ;;  %2395 = vperm.xlu1 %3623, %v2361_v14   ;;  %2145 = vperm.xlu0 %3622, %v2103_v57   ;;  %v2363_v14 = vld [vmem:[%s3693_s29 + $0x36] sm:$0xff] }
 0x157   : > { %v4138_v13 = vpop.permute.xlu1 %1110  ;;  %v4140_v53 = vpop.permute.xlu0 %1105 }
 0x158   : > { %6237 = vst [vmem:[#allocation73_spill] sm:$0xff] %v4138_v13  ;;  %6238 = vst [vmem:[#allocation74_spill] sm:$0xff] %v4140_v53  ;;  %1640 = vperm.xlu1 %3623, %v1844_v58   ;;  %2400 = vperm.xlu0 %3622, %v2362_v34   ;;  %v2105_v58 = vld [vmem:[%s3693_s29 + $0x45] sm:$0xff] }
 0x159   : > { %v1846_v34 = vld [vmem:[%s3693_s29 + $0x4c] sm:$0xff] }
 0x15b   : > { %v4144_v10 = vpop.permute.xlu1 %1120  ;;  %v4146_v54 = vpop.permute.xlu0 %1115 }
 0x15c   : > { %6239 = vst [vmem:[#allocation75_spill] sm:$0xff] %v4144_v10  ;;  %6240 = vst [vmem:[#allocation76_spill] sm:$0xff] %v4146_v54  ;;  %2150 = vperm.xlu1 %3623, %v2104_v46   ;;  %1895 = vperm.xlu0 %3622, %v1845_v62   ;;  %v2364_v46 = vld [vmem:[%s3693_s29 + $0x3e] sm:$0xff] }
 0x15f   : > { %v4149_v57 = vpop.permute.xlu1 %1130  ;;  %v4151_v13 = vpop.permute.xlu0 %1125 }
 0x160   : > { %6241 = vst [vmem:[#allocation77_spill] sm:$0xff] %v4149_v57  ;;  %6242 = vst [vmem:[#allocation78_spill] sm:$0xff] %v4151_v13  ;;  %1645 = vperm.xlu1 %3623, %v1845_v62   ;;  %2405 = vperm.xlu0 %3622, %v2363_v14   ;;  %v2106_v57 = vld [vmem:[%s3693_s29 + $0x4d] sm:$0xff] }
 0x161   : > { %v1847_v13 = vld [vmem:[%s3693_s29 + $0x54] sm:$0xff] }
 0x163   : > { %v4155_v53 = vpop.permute.xlu1 %1140  ;;  %v4157_v9 = vpop.permute.xlu0 %1135 }
 0x164   : > { %6243 = vst [vmem:[#allocation79_spill] sm:$0xff] %v4155_v53  ;;  %6244 = vst [vmem:[#allocation80_spill] sm:$0xff] %v4157_v9  ;;  %2155 = vperm.xlu1 %3623, %v2105_v58   ;;  %1900 = vperm.xlu0 %3622, %v1846_v34   ;;  %v2660_v58 = vld [vmem:[%s6125_s5] sm:$0xff] }
 0x165   : > { %v2365_v9 = vld [vmem:[%s3693_s29 + $0x46] sm:$0xff] }
 0x167   : > { %v4160_v54 = vpop.permute.xlu1 %1150  ;;  %v4162_v10 = vpop.permute.xlu0 %1145 }
 0x168   : > { %6245 = vst [vmem:[#allocation81_spill] sm:$0xff] %v4160_v54  ;;  %6246 = vst [vmem:[#allocation82_spill] sm:$0xff] %v4162_v10  ;;  %1650 = vperm.xlu1 %3623, %v1846_v34   ;;  %2410 = vperm.xlu0 %3622, %v2364_v46   ;;  %v2661_v46 = vld [vmem:[%s6125_s5 + $0x8] sm:$0xff]  ;;  %v1848_v10 = vld [vmem:[%s3693_s29 + $0x5c] sm:$0xff] }
 0x16b   : > { %v4166_v62 = vpop.permute.xlu1 %1160  ;;  %v4168_v14 = vpop.permute.xlu0 %1155 }
 0x16c   : > { %6247 = vst [vmem:[#allocation83_spill] sm:$0xff] %v4166_v62  ;;  %6248 = vst [vmem:[#allocation84_spill] sm:$0xff] %v4168_v14  ;;  %2160 = vperm.xlu1 %3623, %v2106_v57   ;;  %1905 = vperm.xlu0 %3622, %v1847_v13   ;;  %v2107_v14 = vld [vmem:[%s3693_s29 + $0x55] sm:$0xff] }
 0x16f   : > { %v4174_v54 = vpop.permute.xlu1 %1170  ;;  %v4176_v34 = vpop.permute.xlu0 %1165 }
 0x170   : > { %6249 = vst [vmem:[#allocation85_spill] sm:$0xff] %v4176_v34  ;;  %2704 = vperm.xlu1 %3623, %v2660_v58   ;;  %2415 = vperm.xlu0 %3622, %v2365_v9   ;;  %v2662_v9 = vld [vmem:[%s6125_s5 + $0x10] sm:$0xff] }
 0x171   : > { %v2366_v58 = vld [vmem:[%s3693_s29 + $0x4e] sm:$0xff] }
 0x173   : > { %v4181_v62 = vpop.permute.xlu1 %1180  ;;  %v4183_v57 = vpop.permute.xlu0 %1175 }
 0x174   : > { %1655 = vperm.xlu1 %3623, %v1847_v13   ;;  %2709 = vperm.xlu0 %3622, %v2661_v46   ;;  %v1849_v13 = vld [vmem:[%s3693_s29 + $0x64] sm:$0xff] }
 0x177   : > { %v4187_v53 = vpop.permute.xlu1 %1190  ;;  %v4189_v34 = vpop.permute.xlu0 %1185 }
 0x178   : > { %2165 = vperm.xlu1 %3623, %v2107_v14   ;;  %1910 = vperm.xlu0 %3622, %v1848_v10   ;;  %v2367_v14 = vld [vmem:[%s3693_s29 + $0x56] sm:$0xff] }
 0x17b   : > { %v4195_v17 = vpop.permute.xlu1 %1200  ;;  %v4197_v6 = vpop.permute.xlu0 %1195 }
 0x17c   : > { %6250 = vst [vmem:[#allocation86_spill] sm:$0xff] %v4195_v17  ;;  %2714 = vperm.xlu1 %3623, %v2662_v9   ;;  %2420 = vperm.xlu0 %3622, %v2366_v58   ;;  %v2663_v9 = vld [vmem:[%s6125_s5 + $0x18] sm:$0xff] }
 0x17f   : > { %v4200_v46 = vpop.permute.xlu1 %1210  ;;  %v4202_v5 = vpop.permute.xlu0 %1205 }
 0x180   : > { %6251 = vst [vmem:[#allocation87_spill] sm:$0xff] %v4200_v46  ;;  %6252 = vst [vmem:[#allocation88_spill] sm:$0xff] %v4202_v5  ;;  %1915 = vperm.xlu1 %3623, %v1849_v13   ;;  %1660 = vperm.xlu0 %3622, %v1848_v10   ;;  %v2109_v10 = vld [vmem:[%s3693_s29 + $0x65] sm:$0xff] }
 0x181   : > { %v1850_v5 = vld [vmem:[%s3693_s29 + $0x6c] sm:$0xff] }
 0x183   : > { %v4206_v61 = vpop.permute.xlu1 %1220  ;;  %v4208_v0 = vpop.permute.xlu0 %1215 }
 0x184   : > { %6253 = vst [vmem:[#allocation89_spill] sm:$0xff] %v4206_v61  ;;  %6254 = vst [vmem:[#allocation90_spill] sm:$0xff] %v4208_v0  ;;  %2425 = vperm.xlu1 %3623, %v2367_v14   ;;  %2170 = vperm.xlu0 %3622, %v2108_v63   ;;  %v2664_v63 = vld [vmem:[%s6125_s5 + $0x20] sm:$0xff] }
 0x185   : > { %v2368_v14 = vld [vmem:[%s3693_s29 + $0x5e] sm:$0xff] }
 0x187   : > { %v4213_v58 = vpop.permute.xlu1 %1230  ;;  %v4215_v46 = vpop.permute.xlu0 %1225 }
 0x188   : > { %6255 = vst [vmem:[#allocation91_spill] sm:$0xff] %v4213_v58  ;;  %6256 = vst [vmem:[#allocation92_spill] sm:$0xff] %v4215_v46  ;;  %1665 = vperm.xlu1 %3623, %v1849_v13   ;;  %2719 = vperm.xlu0 %3622, %v2663_v9   ;;  %v1851_v13 = vld [vmem:[%s3693_s29 + $0x74] sm:$0xff] }
 0x18b   : > { %v4219_v61 = vpop.permute.xlu1 %1240  ;;  %v4221_v0 = vpop.permute.xlu0 %1235 }
 0x18c   : > { %6257 = vst [vmem:[#allocation93_spill] sm:$0xff] %v4219_v61  ;;  %6258 = vst [vmem:[#allocation94_spill] sm:$0xff] %v4221_v0  ;;  %2175 = vperm.xlu1 %3623, %v2109_v10   ;;  %1920 = vperm.xlu0 %3622, %v1850_v5   ;;  %v2369_v10 = vld [vmem:[%s3693_s29 + $0x66] sm:$0xff] }
 0x18d   : > { %v2110_v0 = vld [vmem:[%s3693_s29 + $0x6d] sm:$0xff] }
 0x18f   : > { %v4227_v58 = vpop.permute.xlu1 %1250  ;;  %v4229_v46 = vpop.permute.xlu0 %1245 }
 0x190   : > { %6259 = vst [vmem:[#allocation95_spill] sm:$0xff] %v4227_v58  ;;  %6260 = vst [vmem:[#allocation96_spill] sm:$0xff] %v4229_v46  ;;  %2724 = vperm.xlu1 %3623, %v2664_v63   ;;  %2430 = vperm.xlu0 %3622, %v2368_v14   ;;  %v2665_v63 = vld [vmem:[%s6125_s5 + $0x28] sm:$0xff]  ;;  %v1852_v58 = vld [vmem:[%s3693_s29 + $0x7c] sm:$0xff] }
 0x193   : > { %v4232_v9 = vpop.permute.xlu1 %1360  ;;  %v4234_v61 = vpop.permute.xlu0 %1355 }
 0x194   : > { %6261 = vst [vmem:[#allocation97_spill] sm:$0xff] %v4232_v9  ;;  %6262 = vst [vmem:[#allocation98_spill] sm:$0xff] %v4234_v61  ;;  %1925 = vperm.xlu1 %3623, %v1851_v13   ;;  %1670 = vperm.xlu0 %3622, %v1850_v5   ;;  %v2111_v5 = vld [vmem:[%s3693_s29 + $0x75] sm:$0xff] }
 0x197   : > { %v4238_v21 = vpop.permute.xlu1 %1370  ;;  %v4240_v59 = vpop.permute.xlu0 %1365 }
 0x198   : > { %6263 = vst [vmem:[#allocation99_spill] sm:$0xff] %v4238_v21  ;;  %6264 = vst [vmem:[#allocation100_spill] sm:$0xff] %v4240_v59  ;;  %2435 = vperm.xlu1 %3623, %v2369_v10   ;;  %2180 = vperm.xlu0 %3622, %v2110_v0   ;;  %v2666_v0 = vld [vmem:[%s6125_s5 + $0x30] sm:$0xff] }
 0x199   : > { %v2370_v10 = vld [vmem:[%s3693_s29 + $0x6e] sm:$0xff] }
 0x19b   : > { %v4245_v14 = vpop.permute.xlu1 %1380  ;;  %v4247_v46 = vpop.permute.xlu0 %1375 }
 0x19c   : > { %6265 = vst [vmem:[#allocation101_spill] sm:$0xff] %v4245_v14  ;;  %6266 = vst [vmem:[#allocation102_spill] sm:$0xff] %v4247_v46  ;;  %1675 = vperm.xlu1 %3623, %v1851_v13   ;;  %2729 = vperm.xlu0 %3622, %v2665_v63   ;;  %v1853_v13 = vld [vmem:[%s3693_s29 + $0x84] sm:$0xff] }
 0x19f   : > { %v4251_v21 = vpop.permute.xlu1 %1390  ;;  %v4253_v59 = vpop.permute.xlu0 %1385 }
 0x1a0   : > { %6267 = vst [vmem:[#allocation103_spill] sm:$0xff] %v4251_v21  ;;  %6268 = vst [vmem:[#allocation104_spill] sm:$0xff] %v4253_v59  ;;  %2185 = vperm.xlu1 %3623, %v2111_v5   ;;  %1930 = vperm.xlu0 %3622, %v1852_v58   ;;  %v2371_v5 = vld [vmem:[%s3693_s29 + $0x76] sm:$0xff] }
 0x1a1   : > { %v2112_v59 = vld [vmem:[%s3693_s29 + $0x7d] sm:$0xff] }
 0x1a3   : > { %v4259_v14 = vpop.permute.xlu1 %1400  ;;  %v4261_v46 = vpop.permute.xlu0 %1395 }
 0x1a4   : > { %6269 = vst [vmem:[#allocation105_spill] sm:$0xff] %v4259_v14  ;;  %6270 = vst [vmem:[#allocation106_spill] sm:$0xff] %v4261_v46  ;;  %2734 = vperm.xlu1 %3623, %v2666_v0   ;;  %2440 = vperm.xlu0 %3622, %v2370_v10   ;;  %v2667_v0 = vld [vmem:[%s6125_s5 + $0x38] sm:$0xff] }
 0x1a7   : > { %v4264_v63 = vpop.permute.xlu1 %1410  ;;  %v4266_v21 = vpop.permute.xlu0 %1405 }
 0x1a8   : > { %6271 = vst [vmem:[#allocation107_spill] sm:$0xff] %v4264_v63  ;;  %6272 = vst [vmem:[#allocation108_spill] sm:$0xff] %v4266_v21  ;;  %1935 = vperm.xlu1 %3623, %v1853_v13   ;;  %1680 = vperm.xlu0 %3622, %v1852_v58   ;;  %v2113_v58 = vld [vmem:[%s3693_s29 + $0x85] sm:$0xff] }
 0x1a9   : > { %v1854_v21 = vld [vmem:[%s3693_s29 + $0x8c] sm:$0xff] }
 0x1ab   : > { %v4270_v61 = vpop.permute.xlu1 %1420  ;;  %v4272_v9 = vpop.permute.xlu0 %1415 }
 0x1ac   : > { %6273 = vst [vmem:[#allocation109_spill] sm:$0xff] %v4270_v61  ;;  %6274 = vst [vmem:[#allocation110_spill] sm:$0xff] %v4272_v9  ;;  %2445 = vperm.xlu1 %3623, %v2371_v5   ;;  %2190 = vperm.xlu0 %3622, %v2112_v59   ;;  %v2668_v59 = vld [vmem:[%s6125_s5 + $0x40] sm:$0xff] }
 0x1ad   : > { %v2372_v5 = vld [vmem:[%s3693_s29 + $0x7e] sm:$0xff] }
 0x1af   : > { %v4277_v10 = vpop.permute.xlu1 %1430  ;;  %v4279_v63 = vpop.permute.xlu0 %1425 }
 0x1b0   : > { %6275 = vst [vmem:[#allocation111_spill] sm:$0xff] %v4279_v63  ;;  %1685 = vperm.xlu1 %3623, %v1853_v13   ;;  %2739 = vperm.xlu0 %3622, %v2667_v0   ;;  %v1855_v13 = vld [vmem:[%s3693_s29 + $0x94] sm:$0xff] }
 0x1b3   : > { %v4283_v61 = vpop.permute.xlu1 %1440  ;;  %v4285_v9 = vpop.permute.xlu0 %1435 }
 0x1b4   : > { %2195 = vperm.xlu1 %3623, %v2113_v58   ;;  %1940 = vperm.xlu0 %3622, %v1854_v21   ;;  %v2373_v58 = vld [vmem:[%s3693_s29 + $0x86] sm:$0xff] }
 0x1b7   : > { %v4291_v46 = vpop.permute.xlu1 %1450  ;;  %v4293_v63 = vpop.permute.xlu0 %1445 }
 0x1b8   : > { %2744 = vperm.xlu1 %3623, %v2668_v59   ;;  %2450 = vperm.xlu0 %3622, %v2372_v5   ;;  %v2669_v59 = vld [vmem:[%s6125_s5 + $0x48] sm:$0xff] }
 0x1bb   : > { %v4296_v0 = vpop.permute.xlu1 %1615  ;;  %v4298_v14 = vpop.permute.xlu0 %1455 }
 0x1bc   : > { %6276 = vst [vmem:[#allocation112_spill] sm:$0xff] %v4296_v0  ;;  %6277 = vst [vmem:[#allocation113_spill] sm:$0xff] %v4298_v14  ;;  %1945 = vperm.xlu1 %3623, %v1855_v13   ;;  %1690 = vperm.xlu0 %3622, %v1854_v21   ;;  %v2115_v21 = vld [vmem:[%s3693_s29 + $0x95] sm:$0xff] }
 0x1bf   : > { %v4302_v56 = vpop.permute.xlu1 %1625  ;;  %v4304_v52 = vpop.permute.xlu0 %1620 }
 0x1c0   : > { %6278 = vst [vmem:[#allocation114_spill] sm:$0xff] %v4302_v56  ;;  %6279 = vst [vmem:[#allocation115_spill] sm:$0xff] %v4304_v52  ;;  %2455 = vperm.xlu1 %3623, %v2373_v58   ;;  %2200 = vperm.xlu0 %3622, %v2114_v37   ;;  %v2670_v37 = vld [vmem:[%s6125_s5 + $0x50] sm:$0xff] }
 0x1c1   : > { %v2374_v58 = vld [vmem:[%s3693_s29 + $0x8e] sm:$0xff] }
 0x1c3   : > { %v4309_v5 = vpop.permute.xlu1 %1880  ;;  %v4311_v0 = vpop.permute.xlu0 %1875 }
 0x1c4   : > { %6280 = vst [vmem:[#allocation116_spill] sm:$0xff] %v4309_v5  ;;  %6281 = vst [vmem:[#allocation117_spill] sm:$0xff] %v4311_v0  ;;  %1695 = vperm.xlu1 %3623, %v1855_v13   ;;  %2749 = vperm.xlu0 %3622, %v2669_v59   ;;  %v1857_v13 = vld [vmem:[%s3693_s29 + $0xa4] sm:$0xff] }
 0x1c7   : > { %v4315_v56 = vpop.permute.xlu1 %1885  ;;  %v4317_v52 = vpop.permute.xlu0 %1630 }
 0x1c8   : > { %6282 = vst [vmem:[#allocation118_spill] sm:$0xff] %v4315_v56  ;;  %6283 = vst [vmem:[#allocation119_spill] sm:$0xff] %v4317_v52  ;;  %2205 = vperm.xlu1 %3623, %v2115_v21   ;;  %1950 = vperm.xlu0 %3622, %v1856_v51   ;;  %v2375_v21 = vld [vmem:[%s3693_s29 + $0x96] sm:$0xff] }
 0x1c9   : > { %v2116_v52 = vld [vmem:[%s3693_s29 + $0x9d] sm:$0xff] }
 0x1cb   : > { %v4323_v5 = vpop.permute.xlu1 %2140  ;;  %v4325_v0 = vpop.permute.xlu0 %2135 }
 0x1cc   : > { %6284 = vst [vmem:[#allocation120_spill] sm:$0xff] %v4323_v5  ;;  %6285 = vst [vmem:[#allocation121_spill] sm:$0xff] %v4325_v0  ;;  %2754 = vperm.xlu1 %3623, %v2670_v37   ;;  %2460 = vperm.xlu0 %3622, %v2374_v58   ;;  %v2671_v37 = vld [vmem:[%s6125_s5 + $0x58] sm:$0xff] }
 0x1cf   : > { %v4328_v59 = vpop.permute.xlu1 %1890  ;;  %v4330_v56 = vpop.permute.xlu0 %1635 }
 0x1d0   : > { %6286 = vst [vmem:[#allocation122_spill] sm:$0xff] %v4328_v59  ;;  %6287 = vst [vmem:[#allocation123_spill] sm:$0xff] %v4330_v56  ;;  %1955 = vperm.xlu1 %3623, %v1857_v13   ;;  %1700 = vperm.xlu0 %3622, %v1856_v51   ;;  %v2117_v51 = vld [vmem:[%s3693_s29 + $0xa5] sm:$0xff] }
 0x1d1   : > { %v1858_v56 = vld [vmem:[%s3693_s29 + $0xac] sm:$0xff] }
 0x1d3   : > { %v4334_v48 = vpop.permute.xlu1 %2395  ;;  %v4336_v47 = vpop.permute.xlu0 %2145 }
 0x1d4   : > { %6288 = vst [vmem:[#allocation124_spill] sm:$0xff] %v4334_v48  ;;  %6289 = vst [vmem:[#allocation125_spill] sm:$0xff] %v4336_v47  ;;  %2465 = vperm.xlu1 %3623, %v2375_v21   ;;  %2210 = vperm.xlu0 %3622, %v2116_v52   ;;  %v2672_v52 = vld [vmem:[%s6125_s5 + $0x60] sm:$0xff] }
 0x1d5   : > { %v2376_v21 = vld [vmem:[%s3693_s29 + $0x9e] sm:$0xff] }
 0x1d7   : > { %v4341_v58 = vpop.permute.xlu1 %1640  ;;  %v4343_v59 = vpop.permute.xlu0 %2400 }
 0x1d8   : > { %6290 = vst [vmem:[#allocation126_spill] sm:$0xff] %v4341_v58  ;;  %6291 = vst [vmem:[#allocation127_spill] sm:$0xff] %v4343_v59  ;;  %1705 = vperm.xlu1 %3623, %v1857_v13   ;;  %2759 = vperm.xlu0 %3622, %v2671_v37   ;;  %v1859_v37 = vld [vmem:[%s3693_s29 + $0xb4] sm:$0xff] }
 0x1db   : > { %v4347_v48 = vpop.permute.xlu1 %2150  ;;  %v4349_v47 = vpop.permute.xlu0 %1895 }
 0x1dc   : > { %6292 = vst [vmem:[#allocation128_spill] sm:$0xff] %v4347_v48  ;;  %6293 = vst [vmem:[#allocation129_spill] sm:$0xff] %v4349_v47  ;;  %2215 = vperm.xlu1 %3623, %v2117_v51   ;;  %1960 = vperm.xlu0 %3622, %v1858_v56   ;;  %v2377_v51 = vld [vmem:[%s3693_s29 + $0xa6] sm:$0xff] }
 0x1dd   : > { %v2118_v47 = vld [vmem:[%s3693_s29 + $0xad] sm:$0xff] }
 0x1df   : > { %v4355_v58 = vpop.permute.xlu1 %1645  ;;  %v4357_v13 = vpop.permute.xlu0 %2405 }
 0x1e0   : > { %6294 = vst [vmem:[#allocation130_spill] sm:$0xff] %v4355_v58  ;;  %6295 = vst [vmem:[#allocation131_spill] sm:$0xff] %v4357_v13  ;;  %2764 = vperm.xlu1 %3623, %v2672_v52   ;;  %2470 = vperm.xlu0 %3622, %v2376_v21   ;;  %v1342_v52 = vld [vmem:[%s3693_s29 + $0xbb] sm:$0xff]  ;;  %v2673_v21 = vld [vmem:[%s6125_s5 + $0x68] sm:$0xff] }
 0x1e3   : > { %v4360_v59 = vpop.permute.xlu1 %2155  ;;  %v4362_v48 = vpop.permute.xlu0 %1900 }
 0x1e4   : > { %6296 = vst [vmem:[#allocation132_spill] sm:$0xff] %v4360_v59  ;;  %6297 = vst [vmem:[#allocation133_spill] sm:$0xff] %v4362_v48  ;;  %1965 = vperm.xlu1 %3623, %v1859_v37   ;;  %1710 = vperm.xlu0 %3622, %v1858_v56   ;;  %v1860_v56 = vld [vmem:[%s3693_s29 + $0xbc] sm:$0xff] }
 0x1e7   : > { %v4366_v5 = vpop.permute.xlu1 %1650  ;;  %v4368_v0 = vpop.permute.xlu0 %2410 }
 0x1e8   : > { %6298 = vst [vmem:[#allocation134_spill] sm:$0xff] %v4366_v5  ;;  %6299 = vst [vmem:[#allocation135_spill] sm:$0xff] %v4368_v0  ;;  %2475 = vperm.xlu1 %3623, %v2377_v51   ;;  %2220 = vperm.xlu0 %3622, %v2118_v47   ;;  %v2378_v47 = vld [vmem:[%s3693_s29 + $0xae] sm:$0xff] }
 0x1e9   : > { %v2119_v51 = vld [vmem:[%s3693_s29 + $0xb5] sm:$0xff] }
 0x1eb   : > { %v4374_v58 = vpop.permute.xlu1 %2160  ;;  %v4376_v48 = vpop.permute.xlu0 %1905 }
 0x1ec   : > { %6300 = vst [vmem:[#allocation136_spill] sm:$0xff] %v4374_v58  ;;  %6301 = vst [vmem:[#allocation137_spill] sm:$0xff] %v4376_v48  ;;  %1460 = vperm.xlu1 %3623, %v1342_v52   ;;  %2769 = vperm.xlu0 %3622, %v2673_v21   ;;  %v1343_v52 = vld [vmem:[%s3693_s29 + $0xc3] sm:$0xff]  ;;  %v2674_v21 = vld [vmem:[%s6125_s5 + $0x70] sm:$0xff] }
 0x1ef   : > { %v4379_v59 = vpop.permute.xlu1 %2704  ;;  %v4381_v5 = vpop.permute.xlu0 %2415 }
 0x1f0   : > { %6302 = vst [vmem:[#allocation138_spill] sm:$0xff] %v4379_v59  ;;  %6303 = vst [vmem:[#allocation139_spill] sm:$0xff] %v4381_v5  ;;  %1970 = vperm.xlu1 %3623, %v1860_v56   ;;  %1715 = vperm.xlu0 %3622, %v1859_v37   ;;  %v1861_v37 = vld [vmem:[%s3693_s29 + $0xc4] sm:$0xff] }
 0x1f3   : > { %v4385_v0 = vpop.permute.xlu1 %1655  ;;  %v4387_v13 = vpop.permute.xlu0 %2709 }
 0x1f4   : > { %6304 = vst [vmem:[#allocation140_spill] sm:$0xff] %v4385_v0  ;;  %6305 = vst [vmem:[#allocation141_spill] sm:$0xff] %v4387_v13  ;;  %2480 = vperm.xlu1 %3623, %v2378_v47   ;;  %2225 = vperm.xlu0 %3622, %v2119_v51   ;;  %v2379_v47 = vld [vmem:[%s3693_s29 + $0xb6] sm:$0xff] }
 0x1f5   : > { %v2120_v51 = vld [vmem:[%s3693_s29 + $0xbd] sm:$0xff] }
 0x1f7   : > { %v4393_v59 = vpop.permute.xlu1 %2165  ;;  %v4395_v48 = vpop.permute.xlu0 %1910 }
 0x1f8   : > { %6306 = vst [vmem:[#allocation142_spill] sm:$0xff] %v4393_v59  ;;  %6307 = vst [vmem:[#allocation143_spill] sm:$0xff] %v4395_v48  ;;  %1465 = vperm.xlu1 %3623, %v1343_v52   ;;  %2774 = vperm.xlu0 %3622, %v2674_v21   ;;  %v1344_v52 = vld [vmem:[%s3693_s29 + $0xcb] sm:$0xff]  ;;  %v2675_v21 = vld [vmem:[%s6125_s5 + $0x78] sm:$0xff] }
 0x1fb   : > { %v4398_v58 = vpop.permute.xlu1 %2714  ;;  %v4400_v0 = vpop.permute.xlu0 %2420 }
 0x1fc   : > { %6308 = vst [vmem:[#allocation144_spill] sm:$0xff] %v4398_v58  ;;  %6309 = vst [vmem:[#allocation145_spill] sm:$0xff] %v4400_v0  ;;  %1975 = vperm.xlu1 %3623, %v1861_v37   ;;  %1720 = vperm.xlu0 %3622, %v1860_v56   ;;  %v1862_v56 = vld [vmem:[%s3693_s29 + $0xcc] sm:$0xff] }
 0x1ff   : > { %v4404_v13 = vpop.permute.xlu1 %1915  ;;  %v4406_v5 = vpop.permute.xlu0 %1660 }
 0x200   : > { %6310 = vst [vmem:[#allocation146_spill] sm:$0xff] %v4404_v13  ;;  %6311 = vst [vmem:[#allocation147_spill] sm:$0xff] %v4406_v5  ;;  %2485 = vperm.xlu1 %3623, %v2379_v47   ;;  %2230 = vperm.xlu0 %3622, %v2120_v51   ;;  %v2380_v47 = vld [vmem:[%s3693_s29 + $0xbe] sm:$0xff] }
 0x201   : > { %v2121_v51 = vld [vmem:[%s3693_s29 + $0xc5] sm:$0xff] }
 0x203   : > { %v4412_v58 = vpop.permute.xlu1 %2425  ;;  %v4414_v0 = vpop.permute.xlu0 %2170 }
 0x204   : > { %6312 = vst [vmem:[#allocation148_spill] sm:$0xff] %v4412_v58  ;;  %6313 = vst [vmem:[#allocation149_spill] sm:$0xff] %v4414_v0  ;;  %1470 = vperm.xlu1 %3623, %v1344_v52   ;;  %2779 = vperm.xlu0 %3622, %v2675_v21   ;;  %v1345_v52 = vld [vmem:[%s3693_s29 + $0xd3] sm:$0xff]  ;;  %v2676_v21 = vld [vmem:[%s6125_s5 + $0x80] sm:$0xff] }
 0x207   : > { %v4417_v48 = vpop.permute.xlu1 %1665  ;;  %v4419_v13 = vpop.permute.xlu0 %2719 }
 0x208   : > { %6314 = vst [vmem:[#allocation150_spill] sm:$0xff] %v4417_v48  ;;  %6315 = vst [vmem:[#allocation151_spill] sm:$0xff] %v4419_v13  ;;  %1980 = vperm.xlu1 %3623, %v1862_v56   ;;  %1725 = vperm.xlu0 %3622, %v1861_v37   ;;  %v1863_v37 = vld [vmem:[%s3693_s29 + $0xd4] sm:$0xff] }
 0x20b   : > { %v4423_v5 = vpop.permute.xlu1 %2175  ;;  %v4425_v59 = vpop.permute.xlu0 %1920 }
 0x20c   : > { %6316 = vst [vmem:[#allocation152_spill] sm:$0xff] %v4423_v5  ;;  %6317 = vst [vmem:[#allocation153_spill] sm:$0xff] %v4425_v59  ;;  %2490 = vperm.xlu1 %3623, %v2380_v47   ;;  %2235 = vperm.xlu0 %3622, %v2121_v51   ;;  %v2381_v47 = vld [vmem:[%s3693_s29 + $0xc6] sm:$0xff] }
 0x20d   : > { %v2122_v51 = vld [vmem:[%s3693_s29 + $0xcd] sm:$0xff] }
 0x20f   : > { %v4431_v48 = vpop.permute.xlu1 %2724  ;;  %v4433_v13 = vpop.permute.xlu0 %2430 }
 0x210   : > { %6318 = vst [vmem:[#allocation154_spill] sm:$0xff] %v4431_v48  ;;  %6319 = vst [vmem:[#allocation155_spill] sm:$0xff] %v4433_v13  ;;  %1475 = vperm.xlu1 %3623, %v1345_v52   ;;  %2784 = vperm.xlu0 %3622, %v2676_v21   ;;  %v1346_v52 = vld [vmem:[%s3693_s29 + $0xdb] sm:$0xff]  ;;  %v2677_v21 = vld [vmem:[%s6125_s5 + $0x88] sm:$0xff] }
 0x213   : > { %v4436_v0 = vpop.permute.xlu1 %1925  ;;  %v4438_v5 = vpop.permute.xlu0 %1670 }
 0x214   : > { %6320 = vst [vmem:[#allocation156_spill] sm:$0xff] %v4436_v0  ;;  %6321 = vst [vmem:[#allocation157_spill] sm:$0xff] %v4438_v5  ;;  %1985 = vperm.xlu1 %3623, %v1863_v37   ;;  %1730 = vperm.xlu0 %3622, %v1862_v56   ;;  %v1864_v56 = vld [vmem:[%s3693_s29 + $0xdc] sm:$0xff] }
 0x217   : > { %v4442_v59 = vpop.permute.xlu1 %2435  ;;  %v4444_v58 = vpop.permute.xlu0 %2180 }
 0x218   : > { %6322 = vst [vmem:[#allocation158_spill] sm:$0xff] %v4442_v59  ;;  %6323 = vst [vmem:[#allocation159_spill] sm:$0xff] %v4444_v58  ;;  %2495 = vperm.xlu1 %3623, %v2381_v47   ;;  %2240 = vperm.xlu0 %3622, %v2122_v51   ;;  %v2382_v47 = vld [vmem:[%s3693_s29 + $0xce] sm:$0xff] }
 0x219   : > { %v2123_v51 = vld [vmem:[%s3693_s29 + $0xd5] sm:$0xff] }
 0x21b   : > { %v4450_v0 = vpop.permute.xlu1 %1675  ;;  %v4452_v5 = vpop.permute.xlu0 %2729 }
 0x21c   : > { %6324 = vst [vmem:[#allocation160_spill] sm:$0xff] %v4450_v0  ;;  %6325 = vst [vmem:[#allocation161_spill] sm:$0xff] %v4452_v5  ;;  %1480 = vperm.xlu1 %3623, %v1346_v52   ;;  %2789 = vperm.xlu0 %3622, %v2677_v21   ;;  %v1347_v52 = vld [vmem:[%s3693_s29 + $0xe3] sm:$0xff]  ;;  %v2678_v21 = vld [vmem:[%s6125_s5 + $0x90] sm:$0xff] }
 0x21f   : > { %v4455_v48 = vpop.permute.xlu1 %2185  ;;  %v4457_v59 = vpop.permute.xlu0 %1930 }
 0x220   : > { %6326 = vst [vmem:[#allocation162_spill] sm:$0xff] %v4455_v48  ;;  %6327 = vst [vmem:[#allocation163_spill] sm:$0xff] %v4457_v59  ;;  %1990 = vperm.xlu1 %3623, %v1864_v56   ;;  %1735 = vperm.xlu0 %3622, %v1863_v37   ;;  %v1865_v37 = vld [vmem:[%s3693_s29 + $0xe4] sm:$0xff] }
 0x223   : > { %v4461_v58 = vpop.permute.xlu1 %2734  ;;  %v4463_v13 = vpop.permute.xlu0 %2440 }
 0x224   : > { %6328 = vst [vmem:[#allocation164_spill] sm:$0xff] %v4461_v58  ;;  %6329 = vst [vmem:[#allocation165_spill] sm:$0xff] %v4463_v13  ;;  %2500 = vperm.xlu1 %3623, %v2382_v47   ;;  %2245 = vperm.xlu0 %3622, %v2123_v51   ;;  %v2383_v47 = vld [vmem:[%s3693_s29 + $0xd6] sm:$0xff] }
 0x225   : > { %v2124_v51 = vld [vmem:[%s3693_s29 + $0xdd] sm:$0xff] }
 0x227   : > { %v4469_v48 = vpop.permute.xlu1 %1935  ;;  %v4471_v59 = vpop.permute.xlu0 %1680 }
 0x228   : > { %6330 = vst [vmem:[#allocation166_spill] sm:$0xff] %v4469_v48  ;;  %6331 = vst [vmem:[#allocation167_spill] sm:$0xff] %v4471_v59  ;;  %1485 = vperm.xlu1 %3623, %v1347_v52   ;;  %2794 = vperm.xlu0 %3622, %v2678_v21   ;;  %v1348_v52 = vld [vmem:[%s3693_s29 + $0xeb] sm:$0xff]  ;;  %v2679_v21 = vld [vmem:[%s6125_s5 + $0x98] sm:$0xff] }
 0x22b   : > { %v4474_v5 = vpop.permute.xlu1 %2445  ;;  %v4476_v58 = vpop.permute.xlu0 %2190 }
 0x22c   : > { %6332 = vst [vmem:[#allocation168_spill] sm:$0xff] %v4474_v5  ;;  %6333 = vst [vmem:[#allocation169_spill] sm:$0xff] %v4476_v58  ;;  %1995 = vperm.xlu1 %3623, %v1865_v37   ;;  %1740 = vperm.xlu0 %3622, %v1864_v56   ;;  %v1866_v56 = vld [vmem:[%s3693_s29 + $0xec] sm:$0xff] }
 0x22f   : > { %v4480_v13 = vpop.permute.xlu1 %1685  ;;  %v4482_v0 = vpop.permute.xlu0 %2739 }
 0x230   : > { %6334 = vst [vmem:[#allocation170_spill] sm:$0xff] %v4480_v13  ;;  %6335 = vst [vmem:[#allocation171_spill] sm:$0xff] %v4482_v0  ;;  %2505 = vperm.xlu1 %3623, %v2383_v47   ;;  %2250 = vperm.xlu0 %3622, %v2124_v51   ;;  %v2384_v47 = vld [vmem:[%s3693_s29 + $0xde] sm:$0xff] }
 0x231   : > { %v2125_v51 = vld [vmem:[%s3693_s29 + $0xe5] sm:$0xff] }
 0x233   : > { %v4488_v59 = vpop.permute.xlu1 %2195  ;;  %v4490_v58 = vpop.permute.xlu0 %1940 }
 0x234   : > { %6336 = vst [vmem:[#allocation172_spill] sm:$0xff] %v4488_v59  ;;  %6337 = vst [vmem:[#allocation173_spill] sm:$0xff] %v4490_v58  ;;  %1490 = vperm.xlu1 %3623, %v1348_v52   ;;  %2799 = vperm.xlu0 %3622, %v2679_v21   ;;  %v1349_v52 = vld [vmem:[%s3693_s29 + $0xf3] sm:$0xff]  ;;  %v2680_v21 = vld [vmem:[%s6125_s5 + $0xa0] sm:$0xff] }
 0x235   : > { %v1867_v58 = vld [vmem:[%s3693_s29 + $0xf4] sm:$0xff] }
 0x237   : > { %v4493_v5 = vpop.permute.xlu1 %2744  ;;  %v4495_v13 = vpop.permute.xlu0 %2450 }
 0x238   : > { %6338 = vst [vmem:[#allocation174_spill] sm:$0xff] %v4493_v5  ;;  %6339 = vst [vmem:[#allocation175_spill] sm:$0xff] %v4495_v13  ;;  %2000 = vperm.xlu1 %3623, %v1866_v56   ;;  %1745 = vperm.xlu0 %3622, %v1865_v37   ;;  %v473_v37 = vlaneseq }
 0x23b   : > { %v4499_v0 = vpop.permute.xlu1 %1945  ;;  %v4501_v48 = vpop.permute.xlu0 %1690 }
 0x23c   : > { %6340 = vst [vmem:[#allocation176_spill] sm:$0xff] %v4499_v0  ;;  %2510 = vperm.xlu1 %3623, %v2384_v47   ;;  %2255 = vperm.xlu0 %3622, %v2125_v51   ;;  %v4516_v47 = vshrl.u32 %v473_v37, 7  ;;  %v2385_v51 = vld [vmem:[%s3693_s29 + $0xe6] sm:$0xff]  ;;  %v1350_v37 = vld [vmem:[%s3693_s29 + $0xfb] sm:$0xff] }
 0x23e   : > { %v735_v2 = vsub.s32 1, %v4516_v47  ;;  %v1255_v1 = vsub.s32 3, %v4516_v47  ;;  %v2035_v20 = vsub.s32 6, %v4516_v47 }
 0x23f   : > { %v4507_v5 = vpop.permute.xlu1 %2455  ;;  %v4509_v13 = vpop.permute.xlu0 %2200 }
 0x240   : > { %6341 = vst [vmem:[#allocation177_spill] sm:$0xff] %v4507_v5  ;;  %6342 = vst [vmem:[#allocation178_spill] sm:$0xff] %v4509_v13  ;;  %1495 = vperm.xlu1 %3623, %v1349_v52   ;;  %2804 = vperm.xlu0 %3622, %v2680_v21   ;;  %v4526_v52 = vsub.s32 0, %v4516_v47  ;;  %v4531_v21 = vld [vmem:[%s6121_s1] sm:$0xff] }
 0x242   : > { %6345 = vst [vmem:[#allocation181_spill] sm:$0xff] %v4526_v52  ;;  %v4548_v32 = vrot.slane %v4531_v21, %v4526_v52  ;;  %v1775_v52 = vsub.s32 5, %v4516_v47 }
 0x243   : > { %v4512_v0 = vpop.permute.xlu1 %1695  ;;  %v4514_v59 = vpop.permute.xlu0 %2749 }
 0x244   : > { %6343 = vst [vmem:[#allocation179_spill] sm:$0xff] %v4514_v59  ;;  %2005 = vperm.xlu1 %3623, %v1867_v58   ;;  %1750 = vperm.xlu0 %3622, %v1866_v56   ;;  %v995_v56 = vsub.s32 2, %v4516_v47  ;;  %v2681_v59 = vld [vmem:[%s6125_s5 + $0xa8] sm:$0xff] }
 0x246   : > { %v4553_v27 = vrot.slane %v4531_v21, %v995_v56  ;;  %v4570_v56 = vrot.slane %v4531_v21, %v1255_v1 }
 0x247   : > { %v4521_v5 = vpop.permute.xlu1 %2205  ;;  %v4523_v13 = vpop.permute.xlu0 %1950 }
 0x248   : > { %6344 = vst [vmem:[#allocation180_spill] sm:$0xff] %v4521_v5  ;;  %2515 = vperm.xlu1 %3623, %v2385_v51   ;;  %2260 = vperm.xlu0 %3622, %v2126_v60   ;;  %v4539_v5 = vrot.slane %v4531_v21, %v735_v2  ;;  %v1515_v2 = vsub.s32 4, %v4516_v47 }
 0x24a   : > { %v753_v28 = vmul.f32 %v4539_v5, %v3992_v25  ;;  %v493_v25 = vmul.f32 %v4548_v32, %v3857_v36  ;;  %v1014_v36 = vmul.f32 %v4553_v27, %v4088_v50  ;;  %v4584_v19 = vrot.slane %v4531_v21, %v1515_v2 }
 0x24b   : > { %v4542_v51 = vpop.permute.xlu1 %2754  ;;  %v4544_v60 = vpop.permute.xlu0 %2460  ;;  %v1274_v50 = vmul.f32 %v4570_v56, %v4181_v62 }
 0x24c   : > { %6346 = vst [vmem:[#allocation182_spill] sm:$0xff] %v4542_v51  ;;  %6347 = vst [vmem:[#allocation183_spill] sm:$0xff] %v4544_v60  ;;  %1500 = vperm.xlu1 %3623, %v1350_v37   ;;  %2809 = vperm.xlu0 %3622, %v2681_v59   ;;  %v492_v51 = vmul.f32 %v4548_v32, %v3843_v31  ;;  %v752_v60 = vmul.f32 %v4539_v5, %v3984_v18 }
 0x24d   : > { %v754_v37 = vmul.f32 %v4539_v5, %v3990_v22  ;;  %v1013_v59 = vmul.f32 %v4553_v27, %v4090_v45  ;;  %v494_v18 = vmul.f32 %v4548_v32, %v3855_v35  ;;  %v1012_v22 = vmul.f32 %v4553_v27, %v4082_v55  ;;  %v2127_v35 = vld [vmem:[%s3693_s29 + $0xf5] sm:$0xff] }
 0x24e   : > { %v785_v1 = vadd.f32 %v753_v28, %v493_v25  ;;  %v1273_v45 = vmul.f32 %v4570_v56, %v4183_v57  ;;  %v784_v15 = vadd.f32 %v752_v60, %v492_v51  ;;  %v1272_v55 = vmul.f32 %v4570_v56, %v4174_v54 }
 0x24f   : > { %v1956_v31 = vpop.permute.xlu1 %1955  ;;  %v1701_v23 = vpop.permute.xlu0 %1700  ;;  %v786_v14 = vadd.f32 %v754_v37, %v494_v18  ;;  %v1533_v28 = vmul.f32 %v4584_v19, %v4285_v9  ;;  %v4595_v57 = vrot.slane %v4531_v21, %v1775_v52  ;;  %v4600_v60 = vrot.slane %v4531_v21, %v2035_v20  ;;  %v1351_v37 = vld [vmem:[%s3693_s29 + $0x103] sm:$0xff] }
 0x250   : > { %2010 = vperm.xlu1 %3623, %v4557_v24   ;;  %1755 = vperm.xlu0 %3622, %v1867_v58   ;;  %v1045_v17 = vadd.f32 %v1013_v59, %v785_v1  ;;  %v1044_v25 = vadd.f32 %v1012_v22, %v784_v15  ;;  %v1532_v62 = vmul.f32 %v4584_v19, %v4277_v10  ;;  %v2682_v15 = vld [vmem:[%s6125_s5 + $0xb0] sm:$0xff] }
 0x251   : > { %v1046_v51 = vadd.f32 %v1014_v36, %v786_v14  ;;  %v1534_v9 = vmul.f32 %v4584_v19, %v4283_v61  ;;  %v1793_v52 = vmul.f32 %v4595_v57, %v4512_v0  ;;  %v755_v20 = vmul.f32 %v4539_v5, %v3998_v29 }
 0x252   : > { %v1305_v54 = vadd.f32 %v1273_v45, %v1045_v17  ;;  %v2295_v14 = vsub.s32 7, %v4516_v47  ;;  %v1792_v61 = vmul.f32 %v4595_v57, %v4501_v48  ;;  %v2053_v59 = vmul.f32 %v4600_v60, %v1956_v31 }
 0x253   : > { %v4597_v58 = vpop.permute.xlu1 %2465  ;;  %v2211_v2 = vpop.permute.xlu0 %2210  ;;  %v1306_v17 = vadd.f32 %v1274_v50, %v1046_v51  ;;  %v1794_v0 = vmul.f32 %v4595_v57, %v1701_v23  ;;  %v495_v36 = vmul.f32 %v4548_v32, %v3869_v40  ;;  %v1015_v29 = vmul.f32 %v4553_v27, %v4096_v41 }
 0x254   : > { %2520 = vperm.xlu1 %3623, %v2386_v16   ;;  %2265 = vperm.xlu0 %3622, %v2127_v35   ;;  %v1304_v16 = vadd.f32 %v1272_v55, %v1044_v25  ;;  %v1565_v10 = vadd.f32 %v1533_v28, %v1305_v54  ;;  %v1869_v35 = vld [vmem:[%s3693_s29 + $0x104] sm:$0xff]  ;;  %v4627_v23 = vrot.slane %v4531_v21, %v2295_v14 }
 0x255   : > { %v1566_v1 = vadd.f32 %v1534_v9, %v1306_v17  ;;  %v787_v48 = vadd.f32 %v755_v20, %v495_v36  ;;  %v2052_v31 = vmul.f32 %v4600_v60, %v4523_v13  ;;  %v1275_v40 = vmul.f32 %v4570_v56, %v4189_v34  ;;  %v2387_v13 = vld [vmem:[%s3693_s29 + $0xf6] sm:$0xff] }
 0x256   : > { %v1564_v47 = vadd.f32 %v1532_v62, %v1304_v16  ;;  %v1825_v45 = vadd.f32 %v1793_v52, %v1565_v10  ;;  %v2312_v51 = vmul.f32 %v4627_v23, %v2211_v2  ;;  %v2128_v9 = vld [vmem:[%s3693_s29 + $0xfd] sm:$0xff]  ;;  %v1535_v34 = vmul.f32 %v4584_v19, %v4293_v63  ;;  %v4644_v2 = vld [vmem:[%s6121_s1 + $0x8] ss:$0 sm:$0xff]  ;;  %v1352_v63 = vld [vmem:[%s3693_s29 + $0x10b] sm:$0xf] }
 0x257   : > { %v1706_v18 = vpop.permute.xlu1 %1705  ;;  %v4619_v22 = vpop.permute.xlu0 %2759  ;;  %v1826_v28 = vadd.f32 %v1794_v0, %v1566_v1  ;;  %v1047_v21 = vadd.f32 %v1015_v29, %v787_v48  ;;  %v756_v36 = vmul.f32 %v4539_v5, %v3996_v26  ;;  %v1870_v48 = vld [vmem:[%s3693_s29 + $0x10c] sm:$0xff] }
 0x258   : > { %6348 = vst [vmem:[#allocation184_spill] sm:$0xff] %v4619_v22  ;;  %1505 = vperm.xlu1 %3623, %v1351_v37   ;;  %2814 = vperm.xlu0 %3622, %v2682_v15   ;;  %v1824_v55 = vadd.f32 %v1792_v61, %v1564_v47  ;;  %v2085_v50 = vadd.f32 %v2053_v59, %v1825_v45  ;;  %v2683_v61 = vld [vmem:[%s6125_s5 + $0xb8] sm:$0xff] }
 0x259   : > { %v1307_v20 = vadd.f32 %v1275_v40, %v1047_v21  ;;  %v1795_v14 = vmul.f32 %v4595_v57, %v1706_v18  ;;  %v496_v45 = vmul.f32 %v4548_v32, %v3867_v39  ;;  %v2129_v39 = vld [vmem:[%s3693_s29 + $0x105] sm:$0xff] }
 0x25a   : > { %v2084_v52 = vadd.f32 %v2052_v31, %v1824_v55  ;;  %v1016_v31 = vmul.f32 %v4553_v27, %v4094_v42  ;;  %v1536_v42 = vmul.f32 %v4584_v19, %v4291_v46  ;;  %v757_v46 = vmul.f32 %v4539_v5, %v4004_v33 }
 0x25b   : > { %v2216_v41 = vpop.permute.xlu1 %2215  ;;  %v1961_v25 = vpop.permute.xlu0 %1960  ;;  %v1567_v59 = vadd.f32 %v1535_v34, %v1307_v20  ;;  %v788_v55 = vadd.f32 %v756_v36, %v496_v45  ;;  %v4696_v33 = vmul.f32 %v4548_v32, %v3763_v4  ;;  %v4700_v36 = vmul.f32 %v4548_v32, %v3771_v7 }
 0x25c   : > { %v2313_v54 = vmul.f32 %v4627_v23, %v2216_v41  ;;  %v2054_v62 = vmul.f32 %v4600_v60, %v1961_v25  ;;  %2015 = vperm.xlu1 %3623, %v1869_v35   ;;  %1760 = vperm.xlu0 %3622, %v4557_v24   ;;  %v2344_v24 = vadd.f32 %v2312_v51, %v2084_v52  ;;  %v2388_v51 = vld [vmem:[%s3693_s29 + $0xfe] sm:$0xff] }
 0x25d   : > { %v1827_v1 = vadd.f32 %v1795_v14, %v1567_v59  ;;  %v2684_v52 = vld [vmem:[%s6125_s5 + $0xc0] sm:$0xff]  ;;  %v4686_v14 = vmul.f32 %v4548_v32, %v3761_v3  ;;  %v1871_v59 = vld [vmem:[%s3693_s29 + $0x114] sm:$0xff]  ;;  %v1017_v3 = vmul.f32 %v4553_v27, %v4102_v38  ;;  %v1018_v4 = vmul.f32 %v4553_v27, %v4100_v49 }
 0x25e   : > { %v2345_v37 = vadd.f32 %v2313_v54, %v2085_v50  ;;  %v2086_v15 = vadd.f32 %v2054_v62, %v1826_v28  ;;  %v1276_v28 = vmul.f32 %v4570_v56, %v4187_v53  ;;  %v1048_v54 = vadd.f32 %v1016_v31, %v788_v55  ;;  %v2389_v55 = vld [vmem:[%s3693_s29 + $0x106] sm:$0xff] }
 0x25f   : > { %v4646_v16 = vpop.permute.xlu1 %2764  ;;  %v2471_v17 = vpop.permute.xlu0 %2470 }
 0x260   : > { %6349 = vst [vmem:[#allocation185_spill] sm:$0xff] %v4646_v16  ;;  %v2572_v10 = vmul.f32 %v4644_v2, %v2471_v17  ;;  %2525 = vperm.xlu1 %3623, %v2387_v13   ;;  %2270 = vperm.xlu0 %3622, %v2128_v9   ;;  %v1308_v53 = vadd.f32 %v1276_v28, %v1048_v54 }
 0x262   : > { %v4654_v0 = vadd.f32 %v2572_v10, %v2344_v24  ;;  %v1568_v20 = vadd.f32 %v1536_v42, %v1308_v53  ;;  %v497_v10 = vmul.f32 %v4548_v32, %v3881_v44  ;;  %v4708_v44 = vmul.f32 %v4548_v32, %v3773_v8 }
 0x263   : > { %v1966_v29 = vpop.permute.xlu1 %1965  ;;  %v1711_v47 = vpop.permute.xlu0 %1710  ;;  %v4720_v8 = vmul.f32 %v4548_v32, %v3783_v11 }
 0x264   : > { %v2055_v18 = vmul.f32 %v4600_v60, %v1966_v29  ;;  %1510 = vperm.xlu1 %3623, %v1352_v63   ;;  %2819 = vperm.xlu0 %3622, %v2683_v61   ;;  %v1796_v34 = vmul.f32 %v4595_v57, %v1711_v47  ;;  %v758_v63 = vmul.f32 %v4539_v5, %v4002_v30  ;;  %v2130_v61 = vld [vmem:[%s3693_s29 + $0x10d] sm:$0xff] }
 0x265   : > { %v498_v30 = vmul.f32 %v4548_v32, %v3879_v43  ;;  %v789_v47 = vadd.f32 %v757_v46, %v497_v10  ;;  %v4724_v43 = vmul.f32 %v4548_v32, %v3785_v12 }
 0x266   : > { %v2087_v40 = vadd.f32 %v2055_v18, %v1827_v1  ;;  %v1828_v17 = vadd.f32 %v1796_v34, %v1568_v20  ;;  %v1277_v18 = vmul.f32 %v4570_v56, %v4197_v6  ;;  %v2685_v6 = vld [vmem:[%s6125_s5 + $0xc8] sm:$0xff]  ;;  %v6359_v20 = vld [vmem:[#allocation5_spill] sm:$0xff] }
 0x267   : > { %v2476_v50 = vpop.permute.xlu1 %2475  ;;  %v2221_v26 = vpop.permute.xlu0 %2220  ;;  %v790_v49 = vadd.f32 %v758_v63, %v498_v30  ;;  %v4756_v46 = vmul.f32 %v4548_v32, %v6359_v20  ;;  %v2131_v63 = vld [vmem:[%s3693_s29 + $0x115] sm:$0xff] }
 0x268   : > { %v2573_v41 = vmul.f32 %v4644_v2, %v2476_v50  ;;  %v2314_v25 = vmul.f32 %v4627_v23, %v2221_v26  ;;  %2020 = vperm.xlu1 %3623, %v1870_v48   ;;  %1765 = vperm.xlu0 %3622, %v1869_v35   ;;  %v1612_v35 = vld [vmem:[%s3693_s29 + $0x10c] sm:$0xf]  ;;  %v6352_v48 = vld [vmem:[#allocation86_spill] sm:$0xff]  ;;  %v1049_v50 = vadd.f32 %v1017_v3, %v789_v47  ;;  %v6353_v26 = vld [vmem:[#allocation113_spill] sm:$0xff] }
 0x269   : > { %v1278_v31 = vmul.f32 %v4570_v56, %v6352_v48  ;;  %v1537_v28 = vmul.f32 %v4584_v19, %v6353_v26  ;;  %v1050_v54 = vadd.f32 %v1018_v4, %v790_v49  ;;  %v6363_v3 = vld [vmem:[#allocation9_spill] sm:$0xff]  ;;  %v6364_v47 = vld [vmem:[#allocation10_spill] sm:$0xff]  ;;  %v6367_v49 = vld [vmem:[#allocation23_spill] sm:$0xff] }
 0x26a   : > { %v4672_v62 = vadd.f32 %v2573_v41, %v2345_v37  ;;  %v2346_v21 = vadd.f32 %v2314_v25, %v2086_v15  ;;  %v6355_v25 = vld [vmem:[#allocation2_spill] sm:$0xff]  ;;  %v4774_v30 = vmul.f32 %v4548_v32, %v6363_v3  ;;  %v4778_v4 = vmul.f32 %v4548_v32, %v6364_v47 }
 0x26b   : > { %v1461_v13 = vpop.permute.xlu1 %1460  ;;  %v4674_v9 = vpop.permute.xlu0 %2769  ;;  %v4738_v12 = vmul.f32 %v4548_v32, %v6355_v25  ;;  %v1310_v10 = vadd.f32 %v1278_v31, %v1050_v54  ;;  %v740_v48 = vmul.f32 %v4539_v5, %v6367_v49  ;;  %v6369_v54 = vld [vmem:[#allocation12_spill] sm:$0xff] }
 0x26c   : > { %6350 = vst [vmem:[#allocation186_spill] sm:$0xff] %v4672_v62  ;;  %6351 = vst [vmem:[#allocation187_spill] sm:$0xff] %v4674_v9  ;;  %2530 = vperm.xlu1 %3623, %v2388_v51   ;;  %2275 = vperm.xlu0 %3622, %v2129_v39   ;;  %v6356_v51 = vld [vmem:[#allocation3_spill] sm:$0xff]  ;;  %v1538_v42 = vmul.f32 %v4584_v19, %v1461_v13  ;;  %v6374_v49 = vld [vmem:[#allocation24_spill] sm:$0xff] }
 0x26d   : > { %v4742_v39 = vmul.f32 %v4548_v32, %v6356_v51 }
 0x26e   : > { %v1570_v31 = vadd.f32 %v1538_v42, %v1310_v10  ;;  %v6371_v42 = vld [vmem:[#allocation14_spill] sm:$0xff]  ;;  %v6372_v10 = vld [vmem:[#allocation16_spill] sm:$0xff] }
 0x26f   : > { %v1971_v37 = vpop.permute.xlu1 %1970  ;;  %v1716_v15 = vpop.permute.xlu0 %1715 }
 0x270   : > { %v2056_v24 = vmul.f32 %v4600_v60, %v1971_v37  ;;  %1770 = vperm.xlu1 %3623, %v1612_v35   ;;  %2824 = vperm.xlu0 %3622, %v2684_v52   ;;  %v1309_v35 = vadd.f32 %v1277_v18, %v1049_v50  ;;  %v1797_v52 = vmul.f32 %v4595_v57, %v1716_v15  ;;  %v6360_v37 = vld [vmem:[#allocation6_spill] sm:$0xff] }
 0x271   : > { %v4760_v13 = vmul.f32 %v4548_v32, %v6360_v37  ;;  %v2686_v37 = vld [vmem:[%s6125_s5 + $0xd0] sm:$0xff] }
 0x272   : > { %v4704_v29 = vadd.f32 %v2056_v24, %v1828_v17  ;;  %v6361_v17 = vld [vmem:[#allocation7_spill] sm:$0xff] }
 0x273   : > { %v2481_v1 = vpop.permute.xlu1 %2480  ;;  %v2226_v7 = vpop.permute.xlu0 %2225  ;;  %v4764_v24 = vmul.f32 %v4548_v32, %v6361_v17  ;;  %v2390_v17 = vld [vmem:[%s3693_s29 + $0x10e] sm:$0xff] }
 0x274   : > { %v2574_v38 = vmul.f32 %v4644_v2, %v2481_v1  ;;  %v2315_v45 = vmul.f32 %v4627_v23, %v2226_v7  ;;  %2280 = vperm.xlu1 %3623, %v2130_v61   ;;  %2025 = vperm.xlu0 %3622, %v1871_v59   ;;  %v1872_v61 = vld [vmem:[%s3693_s29 + $0x11c] sm:$0xf]  ;;  %v6362_v59 = vld [vmem:[#allocation8_spill] sm:$0xff]  ;;  %v1569_v1 = vadd.f32 %v1537_v28, %v1309_v35  ;;  %v6368_v28 = vld [vmem:[#allocation11_spill] sm:$0xff] }
 0x275   : > { %v4770_v15 = vmul.f32 %v4548_v32, %v6362_v59  ;;  %v6365_v7 = vld [vmem:[#allocation21_spill] sm:$0xff]  ;;  %v4790_v51 = vmul.f32 %v4548_v32, %v6368_v28 }
 0x276   : > { %v4734_v41 = vadd.f32 %v2574_v38, %v2346_v21  ;;  %v2347_v11 = vadd.f32 %v2315_v45, %v2087_v40  ;;  %v6358_v21 = vld [vmem:[#allocation4_spill] sm:$0xff]  ;;  %v738_v18 = vmul.f32 %v4539_v5, %v6365_v7  ;;  %v6366_v38 = vld [vmem:[#allocation22_spill] sm:$0xff]  ;;  %v1829_v50 = vadd.f32 %v1797_v52, %v1569_v1  ;;  %v6370_v35 = vld [vmem:[#allocation13_spill] sm:$0xff] }
 0x277   : > { %v4745_v53 = vpop.permute.xlu1 %1465  ;;  %v4747_v34 = vpop.permute.xlu0 %2774  ;;  %v4751_v40 = vmul.f32 %v4548_v32, %v6358_v21  ;;  %v737_v45 = vmul.f32 %v4539_v5, %v6366_v38  ;;  %v499_v21 = vmul.f32 %v4548_v32, %v6369_v54  ;;  %v4796_v20 = vmul.f32 %v4548_v32, %v6370_v35  ;;  %v6375_v54 = vld [vmem:[#allocation62_spill] sm:$0xff] }
 0x278   : > { %6354 = vst [vmem:[#allocation86_spill] sm:$0xff] %v4734_v41  ;;  %6357 = vst [vmem:[#allocation113_spill] sm:$0xff] %v4747_v34  ;;  %2829 = vperm.xlu1 %3623, %v2685_v6   ;;  %2535 = vperm.xlu0 %3622, %v2389_v55   ;;  %v4800_v52 = vmul.f32 %v4548_v32, %v6371_v42  ;;  %v4815_v1 = vadd.f32 %v738_v18, %v4708_v44  ;;  %v6376_v18 = vld [vmem:[#allocation25_spill] sm:$0xff]  ;;  %v6385_v41 = vld [vmem:[#allocation32_spill] sm:$0xff] }
 0x279   : > { %v4818_v7 = vadd.f32 %v737_v45, %v4696_v33  ;;  %v4821_v38 = vadd.f32 %v740_v48, %v4700_v36  ;;  %v742_v33 = vmul.f32 %v4539_v5, %v6376_v18  ;;  %v6377_v45 = vld [vmem:[#allocation26_spill] sm:$0xff]  ;;  %v6378_v48 = vld [vmem:[#allocation27_spill] sm:$0xff]  ;;  %v2391_v42 = vld [vmem:[%s3693_s29 + $0x116] sm:$0xff] }
 0x27a   : > { %v741_v36 = vmul.f32 %v4539_v5, %v6377_v45  ;;  %v6383_v18 = vld [vmem:[#allocation30_spill] sm:$0xff] }
 0x27b   : > { %v1976_v6 = vpop.permute.xlu1 %1975  ;;  %v1721_v55 = vpop.permute.xlu0 %1720  ;;  %v745_v45 = vmul.f32 %v4539_v5, %v6383_v18 }
 0x27c   : > { %v2057_v26 = vmul.f32 %v4600_v60, %v1976_v6  ;;  %v1798_v25 = vmul.f32 %v4595_v57, %v1721_v55  ;;  %2285 = vperm.xlu1 %3623, %v2131_v63   ;;  %2030 = vperm.xlu0 %3622, %v1872_v61   ;;  %v4808_v63 = vmul.f32 %v4548_v32, %v6372_v10  ;;  %v6373_v61 = vld [vmem:[#allocation37_spill] sm:$0xff] }
 0x27d   : > { %v759_v59 = vmul.f32 %v4539_v5, %v6373_v61  ;;  %v739_v6 = vmul.f32 %v4539_v5, %v6374_v49  ;;  %v2132_v10 = vld [vmem:[%s3693_s29 + $0x11d] sm:$0xf]  ;;  %v6380_v49 = vld [vmem:[#allocation88_spill] sm:$0xff] }
 0x27e   : > { %v4812_v3 = vadd.f32 %v2057_v26, %v1829_v50  ;;  %v1830_v47 = vadd.f32 %v1798_v25, %v1570_v31  ;;  %v1019_v50 = vmul.f32 %v4553_v27, %v6375_v54  ;;  %v744_v26 = vmul.f32 %v4539_v5, %v6378_v48  ;;  %v6379_v25 = vld [vmem:[#allocation28_spill] sm:$0xff]  ;;  %v6384_v48 = vld [vmem:[#allocation31_spill] sm:$0xff] }
 0x27f   : > { %v2486_v55 = vpop.permute.xlu1 %2485  ;;  %v2231_v28 = vpop.permute.xlu0 %2230  ;;  %v743_v35 = vmul.f32 %v4539_v5, %v6379_v25  ;;  %v791_v61 = vadd.f32 %v759_v59, %v499_v21  ;;  %v748_v25 = vmul.f32 %v4539_v5, %v6384_v48  ;;  %v747_v21 = vmul.f32 %v4539_v5, %v6385_v41  ;;  %v6388_v41 = vld [vmem:[#allocation34_spill] sm:$0xff] }
 0x280   : > { %v2575_v31 = vmul.f32 %v4644_v2, %v2486_v55  ;;  %v2316_v44 = vmul.f32 %v4627_v23, %v2231_v28  ;;  %2834 = vperm.xlu1 %3623, %v2686_v37   ;;  %2540 = vperm.xlu0 %3622, %v2390_v17   ;;  %v1279_v55 = vmul.f32 %v4570_v56, %v6380_v49  ;;  %v6382_v28 = vld [vmem:[#allocation29_spill] sm:$0xff] }
 0x281   : > { %v746_v54 = vmul.f32 %v4539_v5, %v6382_v28  ;;  %v6387_v28 = vld [vmem:[#allocation33_spill] sm:$0xff]  ;;  %v749_v48 = vmul.f32 %v4539_v5, %v6388_v41 }
 0x282   : > { %v4841_v37 = vadd.f32 %v2575_v31, %v2347_v11  ;;  %v2348_v17 = vadd.f32 %v2316_v44, %v4704_v29  ;;  %v4857_v11 = vadd.f32 %v739_v6, %v4686_v14  ;;  %v1051_v29 = vadd.f32 %v1019_v50, %v791_v61  ;;  %v2392_v14 = vld [vmem:[%s3693_s29 + $0x11e] sm:$0xf] }
 0x283   : > { %v4852_v59 = vpop.permute.xlu1 %1470  ;;  %v4854_v49 = vpop.permute.xlu0 %2779  ;;  %v1539_v31 = vmul.f32 %v4584_v19, %v4745_v53  ;;  %v4862_v44 = vadd.f32 %v742_v33, %v4720_v8  ;;  %v750_v18 = vmul.f32 %v4539_v5, %v6387_v28  ;;  %v2687_v6 = vld [vmem:[%s6125_s5 + $0xd8] sm:$0xff]  ;;  %v773_v53 = vadd.f32 %v741_v36, %v4724_v43 }
 0x284   : > { %6381 = vst [vmem:[#allocation2_spill] sm:$0xff] %v4841_v37  ;;  %6386 = vst [vmem:[#allocation3_spill] sm:$0xff] %v4854_v49  ;;  %2545 = vperm.xlu1 %3623, %v2391_v42   ;;  %2290 = vperm.xlu0 %3622, %v2132_v10   ;;  %v6389_v37 = vld [vmem:[#allocation35_spill] sm:$0xff]  ;;  %v4876_v50 = vadd.f32 %v744_v26, %v4738_v12  ;;  %v4879_v8 = vadd.f32 %v743_v35, %v4742_v39 }
 0x285   : > { %v751_v62 = vmul.f32 %v4539_v5, %v6389_v37  ;;  %v1311_v33 = vadd.f32 %v1279_v55, %v1051_v29  ;;  %v4882_v42 = vadd.f32 %v746_v54, %v4751_v40  ;;  %v4885_v10 = vadd.f32 %v745_v45, %v4756_v46  ;;  %v2689_v55 = vld [vmem:[%s6125_s5 + $0xe8] sm:$0xff]  ;;  %v2688_v54 = vld [vmem:[%s6125_s5 + $0xe0] sm:$0xff] }
 0x286   : > { %v4888_v61 = vadd.f32 %v748_v25, %v4760_v13  ;;  %v4891_v37 = vadd.f32 %v747_v21, %v4764_v24  ;;  %v4896_v40 = vadd.f32 %v750_v18, %v4770_v15  ;;  %v4899_v46 = vadd.f32 %v749_v48, %v4774_v30  ;;  %v6390_v24 = vld [vmem:[#allocation36_spill] sm:$0xff]  ;;  %v6391_v45 = vld [vmem:[#allocation38_spill] sm:$0xff]  ;;  %v6392_v25 = vld [vmem:[#allocation39_spill] sm:$0xff] }
 0x287   : > { %v1981_v43 = vpop.permute.xlu1 %1980  ;;  %v1726_v36 = vpop.permute.xlu0 %1725  ;;  %v1571_v12 = vadd.f32 %v1539_v31, %v1311_v33  ;;  %v4902_v13 = vadd.f32 %v751_v62, %v4778_v4  ;;  %v760_v35 = vmul.f32 %v4539_v5, %v6390_v24  ;;  %v762_v15 = vmul.f32 %v4539_v5, %v6391_v45  ;;  %v6393_v4 = vld [vmem:[#allocation41_spill] sm:$0xff]  ;;  %v6394_v31 = vld [vmem:[#allocation46_spill] sm:$0xff]  ;;  %v6395_v18 = vld [vmem:[#allocation47_spill] sm:$0xff] }
 0x288   : > { %v2058_v26 = vmul.f32 %v4600_v60, %v1981_v43  ;;  %v1799_v39 = vmul.f32 %v4595_v57, %v1726_v36  ;;  %2550 = vperm.xlu1 %3623, %v2392_v14   ;;  %2839 = vperm.xlu0 %3622, %v2687_v6   ;;  %v761_v30 = vmul.f32 %v4539_v5, %v6392_v25  ;;  %v6396_v48 = vld [vmem:[#allocation48_spill] sm:$0xff]  ;;  %v6397_v43 = vld [vmem:[#allocation61_spill] sm:$0xff]  ;;  %v6399_v45 = vld [vmem:[#allocation50_spill] sm:$0xff] }
 0x289   : > { %v763_v29 = vmul.f32 %v4539_v5, %v6393_v4  ;;  %v998_v28 = vmul.f32 %v4553_v27, %v6394_v31  ;;  %v997_v41 = vmul.f32 %v4553_v27, %v6395_v18  ;;  %v1000_v14 = vmul.f32 %v4553_v27, %v6396_v48  ;;  %v6400_v4 = vld [vmem:[#allocation51_spill] sm:$0xff]  ;;  %v2691_v18 = vld [vmem:[%s6125_s5 + $0xf8] sm:$0xf] }
 0x28a   : > { %v4916_v21 = vadd.f32 %v2058_v26, %v1830_v47  ;;  %v4918_v62 = vadd.f32 %v1799_v39, %v1571_v12  ;;  %v1020_v47 = vmul.f32 %v4553_v27, %v6397_v43  ;;  %v792_v26 = vadd.f32 %v760_v35, %v4790_v51  ;;  %v6398_v39 = vld [vmem:[#allocation49_spill] sm:$0xff]  ;;  %v6401_v51 = vld [vmem:[#allocation87_spill] sm:$0xff] }
 0x28b   : > { %v2491_v6 = vpop.permute.xlu1 %2490  ;;  %v2236_v33 = vpop.permute.xlu0 %2235  ;;  %v999_v24 = vmul.f32 %v4553_v27, %v6398_v39  ;;  %v1002_v25 = vmul.f32 %v4553_v27, %v6399_v45  ;;  %v1001_v31 = vmul.f32 %v4553_v27, %v6400_v4  ;;  %v1280_v35 = vmul.f32 %v4570_v56, %v6401_v51 }
 0x28c   : > { %v2576_v36 = vmul.f32 %v4644_v2, %v2491_v6  ;;  %v2317_v12 = vmul.f32 %v4627_v23, %v2236_v33  ;;  %2849 = vperm.xlu1 %3623, %v2689_v55   ;;  %2844 = vperm.xlu0 %3622, %v2688_v54   ;;  %v2690_v55 = vld [vmem:[%s6125_s5 + $0xf0] sm:$0xff]  ;;  %v4946_v54 = vadd.f32 %v762_v15, %v4796_v20  ;;  %v6141_v4 = vmov 0.0|0.0  }
 0x28d   : > { %v4956_v33 = vadd.f32 %v761_v30, %v4800_v52  ;;  %v4959_v43 = vadd.f32 %v763_v29, %v4808_v63  ;;  %v4962_v39 = vadd.f32 %v998_v28, %v4815_v1  ;;  %v4965_v20 = vadd.f32 %v997_v41, %v4818_v7  ;;  %v6404_v30 = vld [vmem:[#allocation52_spill] sm:$0xff]  ;;  %v6405_v28 = vld [vmem:[#allocation53_spill] sm:$0xff]  ;;  %3585 = vmatprep.subr.bf16.mxu0 %v6141_v4 }
 0x28e   : > { %v4950_v48 = vadd.f32 %v2576_v36, %v2348_v17  ;;  %v4953_v6 = vadd.f32 %v2317_v12, %v4812_v3  ;;  %v4972_v17 = vadd.f32 %v1000_v14, %v4821_v38  ;;  %v1052_v3 = vadd.f32 %v1020_v47, %v792_v26  ;;  %v2694_v38 = vld [vmem:[%s6126_s6] sm:$0xff]  ;;  %v6407_v47 = vld [vmem:[#allocation55_spill] sm:$0xff]  ;;  %v6408_v12 = vld [vmem:[#allocation56_spill] sm:$0xff]  ;;  %3597 = vmatprep.subr.bf16.mxu1 %v6141_v4 }
 0x28f   : > { %v4967_v15 = vpop.permute.xlu1 %1475  ;;  %v4969_v45 = vpop.permute.xlu0 %2784  ;;  %v1540_v52 = vmul.f32 %v4584_v19, %v4852_v59  ;;  %v4977_v63 = vadd.f32 %v999_v24, %v4857_v11  ;;  %v4980_v1 = vadd.f32 %v1002_v25, %v4862_v44  ;;  %v4982_v7 = vadd.f32 %v1001_v31, %v773_v53  ;;  %v2695_v59 = vld [vmem:[%s6126_s6 + $0x8] sm:$0xff]  ;;  %v6406_v44 = vld [vmem:[#allocation54_spill] sm:$0xff] }
 0x290   : > { %6402 = vst [vmem:[#allocation4_spill] sm:$0xff] %v4950_v48  ;;  %6403 = vst [vmem:[#allocation5_spill] sm:$0xff] %v4969_v45  ;;  %2859 = vperm.xlu1 %3623, %v2691_v18   ;;  %2854 = vperm.xlu0 %3622, %v2690_v55   ;;  %v1004_v29 = vmul.f32 %v4553_v27, %v6404_v30  ;;  %v1003_v11 = vmul.f32 %v4553_v27, %v6405_v28  ;;  %v6410_v30 = vld [vmem:[#allocation58_spill] sm:$0xff] }
 0x291   : > { %v1312_v41 = vadd.f32 %v1280_v35, %v1052_v3  ;;  %v3586_v14 = vpack.c.bf16 %v2695_v59, %v2694_v38  ;;  %v1006_v53 = vmul.f32 %v4553_v27, %v6406_v44  ;;  %v1005_v36 = vmul.f32 %v4553_v27, %v6407_v47  ;;  %v6409_v35 = vld [vmem:[#allocation57_spill] sm:$0xff] }
 0x292   : > { %v1008_v26 = vmul.f32 %v4553_v27, %v6408_v12  ;;  %v5005_v51 = vadd.f32 %v1004_v29, %v4876_v50  ;;  %v1007_v3 = vmul.f32 %v4553_v27, %v6409_v35  ;;  %v1010_v38 = vmul.f32 %v4553_v27, %v6410_v30  ;;  %v2697_v59 = vld [vmem:[%s6126_s6 + $0x18] sm:$0xff]  ;;  %v6411_v12 = vld [vmem:[#allocation59_spill] sm:$0xff] }
 0x293   : > { %v1986_v24 = vpop.permute.xlu1 %1985  ;;  %v1731_v25 = vpop.permute.xlu0 %1730  ;;  %v1572_v31 = vadd.f32 %v1540_v52, %v1312_v41  ;;  %3587 = vmatpush3.bf16.msra.mxu0 %v3586_v14  ;;  %3599 = vmatpush3.bf16.msra.mxu1 %v3586_v14  ;;  %v2696_v52 = vld [vmem:[%s6126_s6 + $0x10] sm:$0xff]  ;;  %v5020_v50 = vadd.f32 %v1003_v11, %v4879_v8  ;;  %v5028_v14 = vadd.f32 %v1006_v53, %v4882_v42 }
 0x294   : > { %v2059_v18 = vmul.f32 %v4600_v60, %v1986_v24  ;;  %v1800_v55 = vmul.f32 %v4595_v57, %v1731_v25  ;;  %3588 = vmatprep.subr.bf16.mxu0 %v6141_v4  ;;  %3600 = vmatprep.subr.bf16.mxu1 %v6141_v4  ;;  %v3589_v41 = vpack.c.bf16 %v2697_v59, %v2696_v52  ;;  %v6412_v25 = vld [vmem:[#allocation64_spill] sm:$0xff] }
 0x295   : > { %v5031_v44 = vadd.f32 %v1005_v36, %v4885_v10  ;;  %v5034_v47 = vadd.f32 %v1008_v26, %v4888_v61  ;;  %v1009_v24 = vmul.f32 %v4553_v27, %v6411_v12  ;;  %v5043_v42 = vadd.f32 %v1007_v3, %v4891_v37  ;;  %v6413_v61 = vld [vmem:[#allocation60_spill] sm:$0xff]  ;;  %v2698_v36 = vld [vmem:[%s6126_s6 + $0x20] sm:$0xff]  ;;  %v2699_v26 = vld [vmem:[%s6126_s6 + $0x28] sm:$0xff] }
 0x296   : > { %v5023_v29 = vadd.f32 %v2059_v18, %v4918_v62  ;;  %v5025_v28 = vadd.f32 %v1800_v55, %v1572_v31  ;;  %v1021_v62 = vmul.f32 %v4553_v27, %v6412_v25  ;;  %v5046_v10 = vadd.f32 %v1010_v38, %v4896_v40  ;;  %v6414_v37 = vld [vmem:[#allocation90_spill] sm:$0xff]  ;;  %v6416_v38 = vld [vmem:[#allocation63_spill] sm:$0xff]  ;;  %v2700_v12 = vld [vmem:[%s6126_s6 + $0x30] sm:$0xff] }
 0x297   : > { %v2496_v8 = vpop.permute.xlu1 %2495  ;;  %v2241_v11 = vpop.permute.xlu0 %2240  ;;  %3590 = vmatpush3.bf16.msra.mxu0 %v3589_v41  ;;  %3602 = vmatpush3.bf16.msra.mxu1 %v3589_v41  ;;  %v1011_v53 = vmul.f32 %v4553_v27, %v6413_v61  ;;  %v1281_v55 = vmul.f32 %v4570_v56, %v6414_v37  ;;  %v3592_v3 = vpack.c.bf16 %v2699_v26, %v2698_v36  ;;  %v6420_v61 = vld [vmem:[#allocation72_spill] sm:$0xff] }
 0x298   : > { %v2577_v31 = vmul.f32 %v4644_v2, %v2496_v8  ;;  %v2318_v18 = vmul.f32 %v4627_v23, %v2241_v11  ;;  %3591 = vmatprep.subr.bf16.mxu0 %v6141_v4  ;;  %3603 = vmatprep.subr.bf16.mxu1 %v6141_v4  ;;  %v5065_v30 = vadd.f32 %v1009_v24, %v4899_v46  ;;  %v6418_v8 = vld [vmem:[#allocation66_spill] sm:$0xff] }
 0x299   : > { %v1022_v52 = vmul.f32 %v4553_v27, %v6416_v38  ;;  %v1023_v46 = vmul.f32 %v4553_v27, %v6418_v8  ;;  %v1541_v24 = vmul.f32 %v4584_v19, %v4967_v15  ;;  %v5085_v25 = vadd.f32 %v1011_v53, %v4902_v13  ;;  %v6422_v15 = vld [vmem:[#allocation74_spill] sm:$0xff]  ;;  %v6423_v53 = vld [vmem:[#allocation75_spill] sm:$0xff] }
 0x29a   : > { %v5061_v40 = vadd.f32 %v2577_v31, %v4953_v6  ;;  %v2350_v35 = vadd.f32 %v2318_v18, %v4916_v21  ;;  %v2701_v6 = vld [vmem:[%s6126_s6 + $0x38] sm:$0xff]  ;;  %v1053_v21 = vadd.f32 %v1021_v62, %v4956_v33  ;;  %v6419_v31 = vld [vmem:[#allocation71_spill] sm:$0xff]  ;;  %v1257_v36 = vmul.f32 %v4570_v56, %v6420_v61 }
 0x29b   : > { %v5069_v59 = vpop.permute.xlu1 %1480  ;;  %v5071_v41 = vpop.permute.xlu0 %2789  ;;  %3593 = vmatpush3.bf16.msra.mxu0 %v3592_v3  ;;  %v3595_v11 = vpack.c.bf16 %v2701_v6, %v2700_v12  ;;  %v1258_v18 = vmul.f32 %v4570_v56, %v6419_v31  ;;  %v3638_v33 = vmov 0.0   ;;  %v6421_v62 = vld [vmem:[#allocation73_spill] sm:$0xff]  ;;  %v1259_v37 = vmul.f32 %v4570_v56, %v6422_v15  ;;  %3605 = vmatpush3.bf16.msra.mxu1 %v3592_v3  ;;  %v6424_v6 = vld [vmem:[#allocation76_spill] sm:$0xff] }
 0x29c   : > { %6415 = vst [vmem:[#allocation6_spill] sm:$0xff] %v5061_v40  ;;  %6417 = vst [vmem:[#allocation7_spill] sm:$0xff] %v5071_v41  ;;  %3594 = vmatprep.subr.bf16.mxu0 %v6141_v4  ;;  %3563 = vmatprep.mubr.msk.f32.mxu0 %vm3637_vm0, %v3638_v33  ;;  %v1260_v26 = vmul.f32 %v4570_v56, %v6421_v62  ;;  %v1313_v38 = vadd.f32 %v1281_v55, %v1053_v21  ;;  %v6425_v31 = vld [vmem:[#allocation77_spill] sm:$0xff]  ;;  %v6426_v62 = vmov 0.0|0.0  }
 0x29d   : > { %3582 = vmatprep.mubr.msk.f32.mxu1 %vm3637_vm0, %v3638_v33  ;;  %v1054_v13 = vadd.f32 %v1022_v52, %v4946_v54  ;;  %v1262_v12 = vmul.f32 %v4570_v56, %v6423_v53  ;;  %v1261_v8 = vmul.f32 %v4570_v56, %v6424_v6  ;;  %v1264_v61 = vmul.f32 %v4570_v56, %v6425_v31  ;;  %v6427_v33 = vld [vmem:[#allocation78_spill] sm:$0xff]  ;;  %v6428_v6 = vld [vmem:[#allocation79_spill] sm:$0xff] }
 0x29e   : > { %3606 = vmatprep.subr.bf16.mxu1 %v6426_v62  ;;  %v1055_v15 = vadd.f32 %v1023_v46, %v4959_v43  ;;  %v1573_v55 = vadd.f32 %v1541_v24, %v1313_v38  ;;  %v1290_v52 = vadd.f32 %v1258_v18, %v4962_v39  ;;  %v1289_v21 = vadd.f32 %v1257_v36, %v4965_v20  ;;  %v6429_v24 = vld [vmem:[#allocation80_spill] sm:$0xff] }
 0x29f   : > { %v1991_v4 = vpop.permute.xlu1 %1990  ;;  %v1736_v40 = vpop.permute.xlu0 %1735  ;;  %3596 = vmatpush3.bf16.msra.mxu0 %v3595_v11  ;;  %v1263_v53 = vmul.f32 %v4570_v56, %v6427_v33  ;;  %v1266_v31 = vmul.f32 %v4570_v56, %v6428_v6  ;;  %v1292_v62 = vadd.f32 %v1260_v26, %v4972_v17  ;;  %v1291_v43 = vadd.f32 %v1259_v37, %v4977_v63  ;;  %v6430_v33 = vld [vmem:[#allocation81_spill] sm:$0xff]  ;;  %v6431_v63 = vld [vmem:[#allocation82_spill] sm:$0xff] }
 0x2a0   : > { %v2060_v3 = vmul.f32 %v4600_v60, %v1991_v4  ;;  %v1801_v54 = vmul.f32 %v4595_v57, %v1736_v40  ;;  %3608 = vmatpush3.bf16.msra.mxu1 %v3595_v11  ;;  %v1294_v40 = vadd.f32 %v1262_v12, %v4980_v1  ;;  %v1293_v39 = vadd.f32 %v1261_v8, %v4982_v7  ;;  %v6433_v12 = vld [vmem:[#allocation84_spill] sm:$0xff] }
 0x2a1   : > { %v1296_v20 = vadd.f32 %v1264_v61, %v5005_v51  ;;  %v1265_v18 = vmul.f32 %v4570_v56, %v6429_v24  ;;  %v1268_v17 = vmul.f32 %v4570_v56, %v6430_v33  ;;  %v1295_v1 = vadd.f32 %v1263_v53, %v5020_v50  ;;  %v6432_v51 = vld [vmem:[#allocation83_spill] sm:$0xff]  ;;  %v6434_v61 = vld [vmem:[#allocation85_spill] sm:$0xff]  ;;  %v6437_v53 = vld [vmem:[#allocation92_spill] sm:$0xff] }
 0x2a2   : > { %v5116_v46 = vadd.f32 %v2060_v3, %v5025_v28  ;;  %v1833_v4 = vadd.f32 %v1801_v54, %v1573_v55  ;;  %v1267_v28 = vmul.f32 %v4570_v56, %v6431_v63  ;;  %v1298_v7 = vadd.f32 %v1266_v31, %v5028_v14  ;;  %v6435_v3 = vld [vmem:[#allocation89_spill] sm:$0xff] }
 0x2a3   : > { %v2501_v36 = vpop.permute.xlu1 %2500  ;;  %v2246_v38 = vpop.permute.xlu0 %2245  ;;  %v1270_v37 = vmul.f32 %v4570_v56, %v6432_v51  ;;  %v1269_v8 = vmul.f32 %v4570_v56, %v6433_v12  ;;  %v1271_v55 = vmul.f32 %v4570_v56, %v6434_v61  ;;  %v1282_v54 = vmul.f32 %v4570_v56, %v6435_v3  ;;  %v6438_v31 = vld [vmem:[#allocation97_spill] sm:$0xff]  ;;  %v6442_v61 = vld [vmem:[#allocation100_spill] sm:$0xff] }
 0x2a4   : > { %v2578_v26 = vmul.f32 %v4644_v2, %v2501_v36  ;;  %v2319_v11 = vmul.f32 %v4627_v23, %v2246_v38  ;;  %v1297_v50 = vadd.f32 %v1265_v18, %v5031_v44  ;;  %v1283_v14 = vmul.f32 %v4570_v56, %v6437_v53  ;;  %v6439_v38 = vld [vmem:[#allocation98_spill] sm:$0xff]  ;;  %v6443_v53 = vld [vmem:[#allocation101_spill] sm:$0xff] }
 0x2a5   : > { %v1518_v36 = vmul.f32 %v4584_v19, %v6438_v31  ;;  %v1517_v33 = vmul.f32 %v4584_v19, %v6439_v38  ;;  %v1300_v12 = vadd.f32 %v1268_v17, %v5034_v47  ;;  %v1542_v44 = vmul.f32 %v4584_v19, %v5069_v59  ;;  %v6444_v17 = vld [vmem:[#allocation102_spill] sm:$0xff]  ;;  %v6445_v38 = vld [vmem:[#allocation103_spill] sm:$0xff] }
 0x2a6   : > { %v5139_v6 = vadd.f32 %v2578_v26, %v2350_v35  ;;  %v2351_v24 = vadd.f32 %v2319_v11, %v5023_v29  ;;  %v1299_v35 = vadd.f32 %v1267_v28, %v5043_v42  ;;  %v6441_v26 = vld [vmem:[#allocation99_spill] sm:$0xff]  ;;  %v1302_v18 = vadd.f32 %v1270_v37, %v5046_v10 }
 0x2a7   : > { %v1486_v63 = vpop.permute.xlu1 %1485  ;;  %v5149_v51 = vpop.permute.xlu0 %2794  ;;  %v1520_v29 = vmul.f32 %v4584_v19, %v6441_v26  ;;  %v5159_v11 = vadd.f32 %v1269_v8, %v5065_v30  ;;  %v1519_v3 = vmul.f32 %v4584_v19, %v6442_v61  ;;  %v1522_v31 = vmul.f32 %v4584_v19, %v6443_v53  ;;  %v6446_v8 = vld [vmem:[#allocation104_spill] sm:$0xff] }
 0x2a8   : > { %6436 = vst [vmem:[#allocation8_spill] sm:$0xff] %v5139_v6  ;;  %6440 = vst [vmem:[#allocation9_spill] sm:$0xff] %v5149_v51  ;;  %v5166_v47 = vadd.f32 %v1271_v55, %v5085_v25  ;;  %v1314_v42 = vadd.f32 %v1282_v54, %v1054_v13  ;;  %v1521_v28 = vmul.f32 %v4584_v19, %v6444_v17  ;;  %v6447_v17 = vld [vmem:[#allocation105_spill] sm:$0xff] }
 0x2a9   : > { %v1524_v59 = vmul.f32 %v4584_v19, %v6445_v38  ;;  %v1315_v10 = vadd.f32 %v1283_v14, %v1055_v15  ;;  %v1550_v37 = vadd.f32 %v1518_v36, %v1290_v52  ;;  %v1549_v30 = vadd.f32 %v1517_v33, %v1289_v21  ;;  %v6448_v15 = vld [vmem:[#allocation106_spill] sm:$0xff] }
 0x2aa   : > { %v1523_v26 = vmul.f32 %v4584_v19, %v6446_v8  ;;  %v1552_v48 = vadd.f32 %v1520_v29, %v1292_v62  ;;  %v1574_v53 = vadd.f32 %v1542_v44, %v1314_v42  ;;  %v1551_v55 = vadd.f32 %v1519_v3, %v1291_v43  ;;  %v6449_v29 = vld [vmem:[#allocation107_spill] sm:$0xff]  ;;  %v6451_v44 = vld [vmem:[#allocation112_spill] sm:$0xff] }
 0x2ab   : > { %v1996_v61 = vpop.permute.xlu1 %1995  ;;  %v1741_v6 = vpop.permute.xlu0 %1740  ;;  %v5176_v54 = vadd.f32 %v1522_v31, %v1294_v40  ;;  %v1526_v38 = vmul.f32 %v4584_v19, %v6447_v17  ;;  %v1525_v52 = vmul.f32 %v4584_v19, %v6448_v15  ;;  %v5182_v21 = vadd.f32 %v1521_v28, %v1293_v39  ;;  %v6450_v40 = vld [vmem:[#allocation108_spill] sm:$0xff]  ;;  %v6452_v39 = vld [vmem:[#allocation114_spill] sm:$0xff]  ;;  %v6453_v28 = vld [vmem:[#allocation115_spill] sm:$0xff] }
 0x2ac   : > { %v2061_v25 = vmul.f32 %v4600_v60, %v1996_v61  ;;  %v1802_v13 = vmul.f32 %v4595_v57, %v1741_v6  ;;  %v5184_v14 = vadd.f32 %v1524_v59, %v1296_v20  ;;  %v5188_v33 = vadd.f32 %v1523_v26, %v1295_v1  ;;  %v6454_v61 = vld [vmem:[#allocation109_spill] sm:$0xff]  ;;  %v6456_v17 = vld [vmem:[#allocation116_spill] sm:$0xff] }
 0x2ad   : > { %v1528_v43 = vmul.f32 %v4584_v19, %v6449_v29  ;;  %v1527_v6 = vmul.f32 %v4584_v19, %v6450_v40  ;;  %v1777_v3 = vmul.f32 %v4595_v57, %v6451_v44  ;;  %v1779_v20 = vmul.f32 %v4595_v57, %v6452_v39  ;;  %v6457_v29 = vld [vmem:[#allocation118_spill] sm:$0xff] }
 0x2ae   : > { %v5186_v36 = vadd.f32 %v2061_v25, %v1833_v4  ;;  %v1834_v62 = vadd.f32 %v1802_v13, %v1574_v53  ;;  %v1778_v4 = vmul.f32 %v4595_v57, %v6453_v28  ;;  %v5202_v8 = vadd.f32 %v1526_v38, %v1298_v7  ;;  %v6455_v25 = vld [vmem:[#allocation117_spill] sm:$0xff]  ;;  %v6459_v38 = vld [vmem:[#allocation119_spill] sm:$0xff] }
 0x2af   : > { %v2506_v31 = vpop.permute.xlu1 %2505  ;;  %v2251_v42 = vpop.permute.xlu0 %2250  ;;  %v5204_v26 = vadd.f32 %v1525_v52, %v1297_v50  ;;  %v1530_v53 = vmul.f32 %v4584_v19, %v6454_v61  ;;  %v2037_v13 = vmul.f32 %v4600_v60, %v6455_v25  ;;  %v2038_v15 = vmul.f32 %v4600_v60, %v6456_v17  ;;  %v6463_v17 = vld [vmem:[#allocation124_spill] sm:$0xff] }
 0x2b0   : > { %v2579_v1 = vmul.f32 %v4644_v2, %v2506_v31  ;;  %v2320_v59 = vmul.f32 %v4627_v23, %v2251_v42  ;;  %v2039_v40 = vmul.f32 %v4600_v60, %v6457_v29  ;;  %v5219_v7 = vadd.f32 %v1528_v43, %v1300_v12  ;;  %v6460_v42 = vld [vmem:[#allocation121_spill] sm:$0xff]  ;;  %v6462_v43 = vld [vmem:[#allocation120_spill] sm:$0xff] }
 0x2b1   : > { %v1809_v50 = vadd.f32 %v1777_v3, %v1549_v30  ;;  %v1780_v52 = vmul.f32 %v4595_v57, %v6459_v38  ;;  %v2297_v39 = vmul.f32 %v4627_v23, %v6460_v42  ;;  %v5229_v25 = vadd.f32 %v1527_v6, %v1299_v35  ;;  %v6464_v35 = vld [vmem:[#allocation122_spill] sm:$0xff] }
 0x2b2   : > { %v5214_v44 = vadd.f32 %v2579_v1, %v2351_v24  ;;  %v5217_v31 = vadd.f32 %v2320_v59, %v5116_v46  ;;  %v1811_v24 = vadd.f32 %v1779_v20, %v1551_v55  ;;  %v1810_v1 = vadd.f32 %v1778_v4, %v1550_v37  ;;  %v6461_v59 = vld [vmem:[#allocation110_spill] sm:$0xff]  ;;  %v6466_v4 = vld [vmem:[#allocation127_spill] sm:$0xff] }
 0x2b3   : > { %v5225_v28 = vpop.permute.xlu1 %1490  ;;  %v5227_v61 = vpop.permute.xlu0 %2799  ;;  %v1543_v46 = vmul.f32 %v4584_v19, %v1486_v63  ;;  %v1529_v12 = vmul.f32 %v4584_v19, %v6461_v59  ;;  %v2069_v30 = vadd.f32 %v2037_v13, %v1809_v50  ;;  %v2298_v3 = vmul.f32 %v4627_v23, %v6462_v43  ;;  %v6465_v63 = vld [vmem:[#allocation125_spill] sm:$0xff]  ;;  %v6467_v43 = vld [vmem:[#allocation123_spill] sm:$0xff] }
 0x2b4   : > { %6458 = vst [vmem:[#allocation10_spill] sm:$0xff] %v5214_v44  ;;  %v2557_v29 = vmul.f32 %v4644_v2, %v6463_v17  ;;  %v5238_v38 = vadd.f32 %v1530_v53, %v1302_v18  ;;  %v2070_v42 = vadd.f32 %v2038_v15, %v1810_v1  ;;  %v2071_v44 = vadd.f32 %v2039_v40, %v1811_v24 }
 0x2b5   : > { %v2040_v55 = vmul.f32 %v4600_v60, %v6464_v35  ;;  %v1812_v37 = vadd.f32 %v1780_v52, %v1552_v48  ;;  %v2329_v6 = vadd.f32 %v2297_v39, %v2069_v30  ;;  %v2299_v20 = vmul.f32 %v4627_v23, %v6465_v63  ;;  %v6468_v48 = vld [vmem:[#allocation128_spill] sm:$0xff]  ;;  %v6469_v39 = vld [vmem:[#allocation131_spill] sm:$0xff]  ;;  %v6470_v35 = vld [vmem:[#allocation129_spill] sm:$0xff] }
 0x2b6   : > { %v2558_v13 = vmul.f32 %v4644_v2, %v6466_v4  ;;  %v1781_v17 = vmul.f32 %v4595_v57, %v6467_v43  ;;  %v1575_v18 = vadd.f32 %v1543_v46, %v1315_v10  ;;  %v2330_v40 = vadd.f32 %v2298_v3, %v2070_v42  ;;  %v5259_v10 = vld [vmem:[%s6122_s2] ss:$0 sm:$0xff] }
 0x2b7   : > { %v2001_v50 = vpop.permute.xlu1 %2000  ;;  %v1746_v59 = vpop.permute.xlu0 %1745  ;;  %v2589_v24 = vadd.f32 %v2557_v29, %v2329_v6  ;;  %v2300_v52 = vmul.f32 %v4627_v23, %v6468_v48  ;;  %v2559_v1 = vmul.f32 %v4644_v2, %v6469_v39  ;;  %v2072_v30 = vadd.f32 %v2040_v55, %v1812_v37  ;;  %v6473_v42 = vld [vmem:[#allocation126_spill] sm:$0xff] }
 0x2b8   : > { %v2062_v53 = vmul.f32 %v4600_v60, %v2001_v50  ;;  %v1803_v15 = vmul.f32 %v4595_v57, %v1746_v59  ;;  %v2041_v63 = vmul.f32 %v4600_v60, %v6470_v35  ;;  %v2331_v29 = vadd.f32 %v2299_v20, %v2071_v44  ;;  %v6474_v50 = vld [vmem:[#allocation135_spill] sm:$0xff]  ;;  %v6478_v35 = vld [vmem:[#allocation133_spill] sm:$0xff] }
 0x2b9   : > { %v1782_v6 = vmul.f32 %v4595_v57, %v6473_v42  ;;  %v2590_v4 = vadd.f32 %v2558_v13, %v2330_v40  ;;  %v2560_v55 = vmul.f32 %v4644_v2, %v6474_v50  ;;  %v5272_v43 = vadd.f32 %v1529_v12, %v5159_v11  ;;  %v6479_v12 = vld [vmem:[#allocation139_spill] sm:$0xff] }
 0x2ba   : > { %v5261_v46 = vadd.f32 %v2062_v53, %v1834_v62  ;;  %v5263_v3 = vadd.f32 %v1803_v15, %v1575_v18  ;;  %v1813_v48 = vadd.f32 %v1781_v17, %v5182_v21  ;;  %v6475_v62 = vld [vmem:[#allocation132_spill] sm:$0xff]  ;;  %v2332_v20 = vadd.f32 %v2300_v52, %v2072_v30  ;;  %v6476_v53 = vld [vmem:[#allocation130_spill] sm:$0xff] }
 0x2bb   : > { %v5269_v37 = vpop.permute.xlu1 %2510  ;;  %v2256_v59 = vpop.permute.xlu0 %2255  ;;  %v2301_v18 = vmul.f32 %v4627_v23, %v6475_v62  ;;  %v1783_v13 = vmul.f32 %v4595_v57, %v6476_v53  ;;  %v2591_v15 = vadd.f32 %v2559_v1, %v2331_v29  ;;  %v5281_v40 = vadd.f32 %v5259_v10, %v2589_v24  ;;  %v6481_v52 = vld [vmem:[#allocation134_spill] sm:$0xff]  ;;  %v6485_v62 = vld [vmem:[#allocation137_spill] sm:$0xff] }
 0x2bc   : > { %6471 = vst [vmem:[#allocation21_spill] sm:$0xff] %v5261_v46  ;;  %6472 = vst [vmem:[#allocation22_spill] sm:$0xff] %v5263_v3  ;;  %v2321_v44 = vmul.f32 %v4627_v23, %v2256_v59  ;;  %v2073_v39 = vadd.f32 %v2041_v63, %v1813_v48  ;;  %v2042_v11 = vmul.f32 %v4600_v60, %v6478_v35  ;;  %v6484_v59 = vld [vmem:[#allocation136_spill] sm:$0xff] }
 0x2bd   : > { %6477 = vst [vmem:[#allocation23_spill] sm:$0xff] %v5281_v40  ;;  %v2561_v21 = vmul.f32 %v4644_v2, %v6479_v12  ;;  %v1814_v42 = vadd.f32 %v1782_v6, %v5176_v54  ;;  %v1784_v30 = vmul.f32 %v4595_v57, %v6481_v52  ;;  %v2592_v50 = vadd.f32 %v2560_v55, %v2332_v20  ;;  %v6486_v54 = vld [vmem:[#allocation138_spill] sm:$0xff]  ;;  %v6488_v20 = vld [vmem:[#allocation141_spill] sm:$0xff]  ;;  %v6490_v12 = vld [vmem:[#allocation140_spill] sm:$0xff] }
 0x2be   : > { %v5288_v17 = vadd.f32 %v2321_v44, %v5186_v36  ;;  %v5294_v1 = vadd.f32 %v5259_v10, %v2590_v4  ;;  %v2333_v29 = vadd.f32 %v2301_v18, %v2073_v39  ;;  %v2302_v48 = vmul.f32 %v4627_v23, %v6484_v59  ;;  %v6487_v44 = vld [vmem:[#allocation111_spill] sm:$0xff]  ;;  %v6491_v59 = vld [vmem:[#allocation142_spill] sm:$0xff] }
 0x2bf   : > { %v5296_v24 = vpop.permute.xlu1 %1495  ;;  %v5298_v63 = vpop.permute.xlu0 %2804  ;;  %v2043_v36 = vmul.f32 %v4600_v60, %v6485_v62  ;;  %v2862_v6 = vmul.f32 %v6486_v54, %v5281_v40  ;;  %v1531_v55 = vmul.f32 %v4584_v19, %v6487_v44  ;;  %v1815_v4 = vadd.f32 %v1783_v13, %v5188_v33  ;;  %v6492_v40 = vld [vmem:[#allocation143_spill] sm:$0xff]  ;;  %v6493_v33 = vld [vmem:[#allocation145_spill] sm:$0xff] }
 0x2c0   : > { %6480 = vst [vmem:[#allocation11_spill] sm:$0xff] %v5288_v17  ;;  %6482 = vst [vmem:[#allocation12_spill] sm:$0xff] %v5294_v1  ;;  %v2863_v53 = vmul.f32 %v6488_v20, %v5294_v1  ;;  %v5312_v35 = vadd.f32 %v5259_v10, %v2591_v15  ;;  %v2074_v18 = vadd.f32 %v2042_v11, %v1814_v42  ;;  %v6500_v1 = vld [vmem:[#allocation149_spill] sm:$0xff] }
 0x2c1   : > { %6483 = vst [vmem:[#allocation13_spill] sm:$0xff] %v5298_v63  ;;  %v2593_v39 = vadd.f32 %v2561_v21, %v2333_v29  ;;  %v1785_v52 = vmul.f32 %v4595_v57, %v6490_v12  ;;  %v2303_v62 = vmul.f32 %v4627_v23, %v6491_v59  ;;  %v1816_v54 = vadd.f32 %v1784_v30, %v5184_v14  ;;  %v6497_v12 = vld [vmem:[#allocation144_spill] sm:$0xff] }
 0x2c2   : > { %6489 = vst [vmem:[#allocation14_spill] sm:$0xff] %v5312_v35  ;;  %v2044_v44 = vmul.f32 %v4600_v60, %v6492_v40  ;;  %v2562_v13 = vmul.f32 %v4644_v2, %v6493_v33  ;;  %v5324_v20 = vadd.f32 %v5259_v10, %v2592_v50  ;;  %v2334_v21 = vadd.f32 %v2302_v48, %v2074_v18  ;;  %v6498_v40 = vld [vmem:[#allocation146_spill] sm:$0xff]  ;;  %v6499_v33 = vld [vmem:[#allocation148_spill] sm:$0xff] }
 0x2c3   : > { %v5326_v15 = vpop.permute.xlu1 %2005  ;;  %v5328_v11 = vpop.permute.xlu0 %1750  ;;  %v2075_v42 = vadd.f32 %v2043_v36, %v1815_v4  ;;  %v2895_v29 = vsel %vm2894_vm1, %v2862_v6, 0.0  ;;  %v2864_v14 = vmul.f32 %v6497_v12, %v5312_v35  ;;  %v2896_v30 = vsel %vm2894_vm1, %v2863_v53, 0.0  ;;  %v6501_v36 = vld [vmem:[#allocation151_spill] sm:$0xff]  ;;  %v6503_v12 = vld [vmem:[#allocation152_spill] sm:$0xff] }
 0x2c4   : > { %6494 = vst [vmem:[#allocation16_spill] sm:$0xff] %v5324_v20  ;;  %6495 = vst [vmem:[#allocation37_spill] sm:$0xff] %v5326_v15  ;;  %v2045_v59 = vmul.f32 %v4600_v60, %v6498_v40  ;;  %v2563_v50 = vmul.f32 %v4644_v2, %v6499_v33  ;;  %v2304_v46 = vmul.f32 %v4627_v23, %v6500_v1  ;;  %v6504_v35 = vld [vmem:[#allocation155_spill] sm:$0xff] }
 0x2c5   : > { %6496 = vst [vmem:[#allocation24_spill] sm:$0xff] %v5328_v11  ;;  %v1817_v3 = vadd.f32 %v1785_v52, %v5204_v26  ;;  %v2335_v48 = vadd.f32 %v2303_v62, %v2075_v42  ;;  %v2865_v6 = vmul.f32 %v6501_v36, %v5324_v20  ;;  %v5344_v4 = vadd.f32 %v5259_v10, %v2593_v39  ;;  %v6506_v62 = vld [vmem:[#allocation147_spill] sm:$0xff]  ;;  %v6507_v39 = vld [vmem:[#allocation154_spill] sm:$0xff] }
 0x2c6   : > { %v2076_v18 = vadd.f32 %v2044_v44, %v1816_v54  ;;  %v2594_v53 = vadd.f32 %v2562_v13, %v2334_v21  ;;  %v2305_v40 = vmul.f32 %v4627_v23, %v6503_v12  ;;  %v2564_v33 = vmul.f32 %v4644_v2, %v6504_v35  ;;  %v6508_v12 = vld [vmem:[#allocation158_spill] sm:$0xff] }
 0x2c7   : > { %6502 = vst [vmem:[#allocation62_spill] sm:$0xff] %v5344_v4  ;;  %v5350_v17 = vpop.permute.xlu1 %2515  ;;  %v5352_v1 = vpop.permute.xlu0 %2260  ;;  %v2897_v26 = vadd.f32 %v2896_v30, %v2895_v29  ;;  %v2898_v52 = vsel %vm2894_vm1, %v2864_v14, 0.0  ;;  %v1786_v42 = vmul.f32 %v4595_v57, %v6506_v62  ;;  %v2866_v54 = vmul.f32 %v6507_v39, %v5344_v4  ;;  %v6509_v20 = vld [vmem:[#allocation150_spill] sm:$0xff]  ;;  %v6510_v14 = vld [vmem:[#allocation153_spill] sm:$0xff]  ;;  %v6531_v39 = vld [vmem:[#allocation172_spill] sm:$0xff] }
 0x2c8   : > { %6505 = vst [vmem:[#allocation25_spill] sm:$0xff] %v5352_v1  ;;  %v2077_v44 = vadd.f32 %v2045_v59, %v1817_v3  ;;  %v2595_v13 = vadd.f32 %v2563_v50, %v2335_v48  ;;  %v2336_v21 = vadd.f32 %v2304_v46, %v2076_v18  ;;  %v2565_v36 = vmul.f32 %v4644_v2, %v6508_v12  ;;  %v6515_v50 = vld [vmem:[#allocation157_spill] sm:$0xff]  ;;  %v6520_v12 = vld [vmem:[#allocation162_spill] sm:$0xff] }
 0x2c9   : > { %v1563_v35 = vadd.f32 %v1531_v55, %v5166_v47  ;;  %v1787_v11 = vmul.f32 %v4595_v57, %v6509_v20  ;;  %v2900_v29 = vsel %vm2894_vm1, %v2865_v6, 0.0  ;;  %v2046_v30 = vmul.f32 %v4600_v60, %v6510_v14  ;;  %v6514_v55 = vld [vmem:[#allocation156_spill] sm:$0xff] }
 0x2ca   : > { %v2899_v62 = vadd.f32 %v2898_v52, %v2897_v26  ;;  %v2337_v1 = vadd.f32 %v2305_v40, %v2077_v44  ;;  %v2596_v15 = vadd.f32 %v2564_v33, %v2336_v21  ;;  %v5368_v3 = vadd.f32 %v5259_v10, %v2594_v53  ;;  %v6516_v40 = vld [vmem:[#allocation159_spill] sm:$0xff] }
 0x2cb   : > { %v5370_v46 = vpop.permute.xlu1 %1500  ;;  %v5372_v59 = vpop.permute.xlu0 %2809  ;;  %v1818_v2 = vadd.f32 %v1786_v42, %v5202_v8  ;;  %v2902_v47 = vsel %vm2894_vm1, %v2866_v54, 0.0  ;;  %v2047_v20 = vmul.f32 %v4600_v60, %v6514_v55  ;;  %v1788_v48 = vmul.f32 %v4595_v57, %v6515_v50  ;;  %v6518_v8 = vld [vmem:[#allocation160_spill] sm:$0xff]  ;;  %v6519_v54 = vld [vmem:[#allocation161_spill] sm:$0xff] }
 0x2cc   : > { %6511 = vst [vmem:[#allocation26_spill] sm:$0xff] %v5368_v3  ;;  %6512 = vst [vmem:[#allocation27_spill] sm:$0xff] %v5370_v46  ;;  %v2901_v6 = vadd.f32 %v2900_v29, %v2899_v62  ;;  %v2597_v18 = vadd.f32 %v2565_v36, %v2337_v1  ;;  %v2306_v53 = vmul.f32 %v4627_v23, %v6516_v40  ;;  %v5395_v36 = vld [vmem:[%s6121_s1 + $0x8] ss:$0 sm:$0xff]  ;;  %v6521_v1 = vld [vmem:[#allocation165_spill] sm:$0xff] }
 0x2cd   : > { %6513 = vst [vmem:[#allocation28_spill] sm:$0xff] %v5372_v59  ;;  %v5383_v33 = vadd.f32 %v5259_v10, %v2595_v13  ;;  %v1819_v26 = vadd.f32 %v1787_v11, %v5229_v25  ;;  %v2078_v52 = vadd.f32 %v2046_v30, %v1818_v2  ;;  %v1789_v42 = vmul.f32 %v4595_v57, %v6518_v8  ;;  %v6524_v2 = vld [vmem:[#allocation163_spill] sm:$0xff]  ;;  %v6525_v55 = vld [vmem:[#allocation164_spill] sm:$0xff]  ;;  %v6526_v40 = vld [vmem:[#allocation166_spill] sm:$0xff] }
 0x2ce   : > { %v2867_v44 = vmul.f32 %v6519_v54, %v5368_v3  ;;  %v2903_v21 = vadd.f32 %v2902_v47, %v2901_v6  ;;  %v2307_v29 = vmul.f32 %v4627_v23, %v6520_v12  ;;  %v2566_v13 = vmul.f32 %v5395_v36, %v6521_v1  ;;  %v6527_v12 = vld [vmem:[#allocation168_spill] sm:$0xff]  ;;  %v6530_v54 = vld [vmem:[#allocation170_spill] sm:$0xff]  ;;  %v6533_v3 = vld [vmem:[#allocation175_spill] sm:$0xff] }
 0x2cf   : > { %6517 = vst [vmem:[#allocation88_spill] sm:$0xff] %v5383_v33  ;;  %v5400_v25 = vadd.f32 %v5259_v10, %v2596_v15  ;;  %v5402_v11 = vpop.permute.xlu1 %2010  ;;  %v5404_v14 = vpop.permute.xlu0 %1755  ;;  %v2079_v30 = vadd.f32 %v2047_v20, %v1819_v26  ;;  %v1820_v62 = vadd.f32 %v1788_v48, %v5219_v7  ;;  %v2048_v47 = vmul.f32 %v4600_v60, %v6524_v2  ;;  %v6528_v48 = vld [vmem:[#allocation167_spill] sm:$0xff]  ;;  %v6529_v2 = vld [vmem:[#allocation169_spill] sm:$0xff] }
 0x2d0   : > { %6522 = vst [vmem:[#allocation29_spill] sm:$0xff] %v5402_v11  ;;  %6523 = vst [vmem:[#allocation30_spill] sm:$0xff] %v5404_v14  ;;  %v2868_v50 = vmul.f32 %v6525_v55, %v5383_v33  ;;  %v2338_v6 = vadd.f32 %v2306_v53, %v2078_v52  ;;  %v2049_v8 = vmul.f32 %v4600_v60, %v6526_v40  ;;  %v2904_v7 = vsel %vm2894_vm1, %v2867_v44, 0.0  ;;  %v6532_v44 = vld [vmem:[#allocation173_spill] sm:$0xff] }
 0x2d1   : > { %v2567_v15 = vmul.f32 %v5395_v36, %v6527_v12  ;;  %v5416_v1 = vadd.f32 %v5259_v10, %v2597_v18  ;;  %v1821_v20 = vadd.f32 %v1789_v42, %v5272_v43  ;;  %v1790_v26 = vmul.f32 %v4595_v57, %v6528_v48 }
 0x2d2   : > { %v2308_v55 = vmul.f32 %v4627_v23, %v6529_v2  ;;  %v2339_v53 = vadd.f32 %v2307_v29, %v2079_v30  ;;  %v2598_v52 = vadd.f32 %v2566_v13, %v2338_v6  ;;  %v1791_v40 = vmul.f32 %v4595_v57, %v6530_v54  ;;  %v6534_v54 = vld [vmem:[#allocation171_spill] sm:$0xff]  ;;  %v6535_v2 = vld [vmem:[#allocation176_spill] sm:$0xff] }
 0x2d3   : > { %v2309_v12 = vmul.f32 %v4627_v23, %v6531_v39  ;;  %v5428_v18 = vpop.permute.xlu1 %2520  ;;  %v5430_v33 = vpop.permute.xlu0 %2265  ;;  %v2080_v43 = vadd.f32 %v2048_v47, %v1820_v62  ;;  %v2906_v42 = vsel %vm2894_vm1, %v2868_v50, 0.0  ;;  %v2050_v48 = vmul.f32 %v4600_v60, %v6532_v44  ;;  %v6536_v62 = vld [vmem:[#allocation177_spill] sm:$0xff]  ;;  %v6537_v50 = vld [vmem:[#allocation178_spill] sm:$0xff] }
 0x2d4   : > { %v2568_v29 = vmul.f32 %v5395_v36, %v6533_v3  ;;  %v2081_v13 = vadd.f32 %v2049_v8, %v1821_v20  ;;  %v2599_v30 = vadd.f32 %v2567_v15, %v2339_v53  ;;  %v2869_v6 = vmul.f32 %v6534_v54, %v5400_v25  ;;  %v6538_v3 = vld [vmem:[#allocation174_spill] sm:$0xff] }
 0x2d5   : > { %v2051_v39 = vmul.f32 %v4600_v60, %v6535_v2  ;;  %v1822_v4 = vadd.f32 %v1790_v26, %v5238_v38  ;;  %v2340_v14 = vadd.f32 %v2308_v55, %v2080_v43  ;;  %v2569_v47 = vmul.f32 %v5395_v36, %v6536_v62  ;;  %v6540_v26 = vld [vmem:[#allocation180_spill] sm:$0xff]  ;;  %v6541_v2 = vld [vmem:[#allocation183_spill] sm:$0xff] }
 0x2d6   : > { %v2310_v44 = vmul.f32 %v4627_v23, %v6537_v50  ;;  %v1823_v11 = vadd.f32 %v1791_v40, %v1563_v35  ;;  %v2341_v46 = vadd.f32 %v2309_v12, %v2081_v13  ;;  %v2870_v8 = vmul.f32 %v6538_v3, %v5416_v1  ;;  %v6542_v3 = vld [vmem:[#allocation179_spill] sm:$0xff] }
 0x2d7   : > { %v5449_v15 = vadd.f32 %v5259_v10, %v2598_v52  ;;  %v5451_v20 = vpop.permute.xlu1 %1505  ;;  %v5453_v53 = vpop.permute.xlu0 %2814  ;;  %v2082_v38 = vadd.f32 %v2050_v48, %v1822_v4  ;;  %v2600_v55 = vadd.f32 %v2568_v29, %v2340_v14  ;;  %v2311_v43 = vmul.f32 %v4627_v23, %v6540_v26 }
 0x2d8   : > { %6539 = vst [vmem:[#allocation31_spill] sm:$0xff] %v5453_v53  ;;  %v2570_v62 = vmul.f32 %v5395_v36, %v6541_v2  ;;  %v2905_v35 = vadd.f32 %v2904_v7, %v2903_v21  ;;  %v2908_v40 = vsel %vm2894_vm1, %v2869_v6, 0.0  ;;  %v2083_v12 = vadd.f32 %v2051_v39, %v1823_v11  ;;  %v6543_v11 = vld [vmem:[#allocation182_spill] sm:$0xff] }
 0x2d9   : > { %v5461_v13 = vadd.f32 %v5259_v10, %v2599_v30  ;;  %v2601_v52 = vadd.f32 %v2569_v47, %v2341_v46  ;;  %v2342_v50 = vadd.f32 %v2310_v44, %v2082_v38  ;;  %v2871_v54 = vmul.f32 %v6542_v3, %v5449_v15  ;;  %v6558_v3 = vld [vmem:[#allocation186_spill] sm:$0xff] }
 0x2da   : > { %v2571_v4 = vmul.f32 %v5395_v36, %v4597_v58  ;;  %v2907_v14 = vadd.f32 %v2906_v42, %v2905_v35  ;;  %v2910_v48 = vsel %vm2894_vm1, %v2870_v8, 0.0  ;;  %v2343_v7 = vadd.f32 %v2311_v43, %v2083_v12  ;;  %v6548_v35 = vld [vmem:[#allocation17_spill] sm:$0xff]  ;;  %v6549_v12 = vld [vmem:[#allocation40_spill] sm:$0xff] }
 0x2db   : > { %v5468_v29 = vpop.permute.xlu1 %2015  ;;  %v5470_v21 = vpop.permute.xlu0 %1760  ;;  %v2872_v30 = vmul.f32 %v6543_v11, %v5461_v13  ;;  %v2602_v6 = vadd.f32 %v2570_v62, %v2342_v50  ;;  %v5475_v46 = vadd.f32 %v5259_v10, %v2600_v55  ;;  %v2912_v47 = vsel %vm2894_vm1, %v2871_v54, 0.0  ;;  %v6547_v54 = vld [vmem:[#allocation15_spill] sm:$0xff] }
 0x2dc   : > { %v2909_v39 = vadd.f32 %v2908_v40, %v2907_v14  ;;  %v2603_v44 = vadd.f32 %v2571_v4, %v2343_v7  ;;  %v5481_v42 = vadd.f32 %v5259_v10, %v2601_v52  ;;  %v504_v62 = vmul.f32 %v4548_v32, %v6547_v54  ;;  %v6550_v4 = vld [vmem:[#allocation42_spill] sm:$0xff]  ;;  %v6553_v54 = vld [vmem:[#allocation43_spill] sm:$0xff] }
 0x2dd   : > { %6544 = vst [vmem:[#allocation32_spill] sm:$0xff] %v5475_v46  ;;  %v2873_v58 = vmul.f32 %v4619_v22, %v5475_v46  ;;  %v2914_v43 = vsel %vm2894_vm1, %v2872_v30, 0.0  ;;  %v5491_v2 = vadd.f32 %v5259_v10, %v2602_v6  ;;  %v506_v40 = vmul.f32 %v4548_v32, %v6548_v35  ;;  %v6552_v6 = vld [vmem:[#allocation18_spill] sm:$0xff]  ;;  %v6559_v46 = vld [vmem:[#allocation65_spill] sm:$0xff] }
 0x2de   : > { %6545 = vst [vmem:[#allocation33_spill] sm:$0xff] %v5481_v42  ;;  %v2911_v8 = vadd.f32 %v2910_v48, %v2909_v39  ;;  %v2874_v55 = vmul.f32 %v4646_v16, %v5481_v42  ;;  %v764_v52 = vmul.f32 %v4539_v5, %v6549_v12  ;;  %v766_v14 = vmul.f32 %v4539_v5, %v6550_v4  ;;  %v6554_v16 = vld [vmem:[#allocation44_spill] sm:$0xff] }
 0x2df   : > { %v5483_v38 = vpop.permute.xlu1 %2525  ;;  %v5485_v26 = vpop.permute.xlu0 %2270  ;;  %6546 = vst [vmem:[#allocation34_spill] sm:$0xff] %v5491_v2  ;;  %v2916_v48 = vsel %vm2894_vm1, %v2873_v58, 0.0  ;;  %v2875_v7 = vmul.f32 %v4674_v9, %v5491_v2  ;;  %v5505_v30 = vadd.f32 %v5259_v10, %v2603_v44  ;;  %v505_v39 = vmul.f32 %v4548_v32, %v6552_v6  ;;  %v6555_v58 = vld [vmem:[#allocation19_spill] sm:$0xff] }
 0x2e0   : > { %v2913_v50 = vadd.f32 %v2912_v47, %v2911_v8  ;;  %v765_v35 = vmul.f32 %v4539_v5, %v6553_v54  ;;  %v768_v47 = vmul.f32 %v4539_v5, %v6554_v16  ;;  %v508_v9 = vmul.f32 %v4548_v32, %v6555_v58  ;;  %v6556_v54 = vld [vmem:[#allocation20_spill] sm:$0xff] }
 0x2e1   : > { %6551 = vst [vmem:[#allocation35_spill] sm:$0xff] %v5505_v30  ;;  %v2918_v44 = vsel %vm2894_vm1, %v2874_v55, 0.0  ;;  %v2876_v22 = vmul.f32 %v4747_v34, %v5505_v30  ;;  %v5524_v6 = vadd.f32 %v5259_v10, %v4654_v0  ;;  %v507_v16 = vmul.f32 %v4548_v32, %v6556_v54 }
 0x2e2   : > { %v2915_v8 = vadd.f32 %v2914_v43, %v2913_v50  ;;  %v796_v43 = vadd.f32 %v764_v52, %v504_v62  ;;  %v6557_v50 = vld [vmem:[#allocation45_spill] sm:$0xff]  ;;  %v798_v42 = vadd.f32 %v766_v14, %v506_v40  ;;  %v2920_v58 = vsel %vm2894_vm1, %v2875_v7, 0.0  ;;  %v6560_v40 = vld [vmem:[#allocation67_spill] sm:$0xff] }
 0x2e3   : > { %v5513_v12 = vpop.permute.xlu1 %1510  ;;  %v5515_v4 = vpop.permute.xlu0 %2819  ;;  %v767_v2 = vmul.f32 %v4539_v5, %v6557_v50  ;;  %v2877_v55 = vmul.f32 %v4854_v49, %v5524_v6  ;;  %v5535_v34 = vadd.f32 %v5259_v10, %v6558_v3  ;;  %v797_v0 = vadd.f32 %v765_v35, %v505_v39  ;;  %v6561_v3 = vld [vmem:[#allocation86_spill] sm:$0xff]  ;;  %v6563_v35 = vld [vmem:[#allocation68_spill] sm:$0xff] }
 0x2e4   : > { %v2917_v11 = vadd.f32 %v2916_v48, %v2915_v8  ;;  %v800_v30 = vadd.f32 %v768_v47, %v508_v9  ;;  %v1024_v32 = vmul.f32 %v4553_v27, %v6559_v46  ;;  %v1026_v14 = vmul.f32 %v4553_v27, %v6560_v40  ;;  %v6564_v46 = vld [vmem:[#allocation69_spill] sm:$0xff]  ;;  %v6566_v40 = vld [vmem:[#allocation2_spill] sm:$0xff] }
 0x2e5   : > { %v2922_v48 = vsel %vm2894_vm1, %v2876_v22, 0.0  ;;  %v2878_v7 = vmul.f32 %v4969_v45, %v5535_v34  ;;  %v5550_v39 = vadd.f32 %v5259_v10, %v6561_v3  ;;  %v799_v9 = vadd.f32 %v767_v2, %v507_v16  ;;  %v6568_v16 = vld [vmem:[#allocation91_spill] sm:$0xff]  ;;  %v6569_v45 = vld [vmem:[#allocation93_spill] sm:$0xff] }
 0x2e6   : > { %v2919_v62 = vadd.f32 %v2918_v44, %v2917_v11  ;;  %v1025_v11 = vmul.f32 %v4553_v27, %v6563_v35  ;;  %v1028_v47 = vmul.f32 %v4553_v27, %v6564_v46  ;;  %v6565_v44 = vld [vmem:[#allocation70_spill] sm:$0xff]  ;;  %v2924_v22 = vsel %vm2894_vm1, %v2877_v55, 0.0 }
 0x2e7   : > { %v5539_v52 = vpop.permute.xlu1 %2020  ;;  %v5541_v5 = vpop.permute.xlu0 %1765  ;;  %6562 = vst [vmem:[#allocation36_spill] sm:$0xff] %v5550_v39  ;;  %v1027_v54 = vmul.f32 %v4553_v27, %v6565_v44  ;;  %v2879_v50 = vmul.f32 %v5071_v41, %v5550_v39  ;;  %v5563_v3 = vadd.f32 %v5259_v10, %v6566_v40  ;;  %v1056_v2 = vadd.f32 %v1024_v32, %v796_v43  ;;  %v6570_v40 = vld [vmem:[#allocation4_spill] sm:$0xff] }
 0x2e8   : > { %v2921_v8 = vadd.f32 %v2920_v58, %v2919_v62  ;;  %v1284_v35 = vmul.f32 %v4570_v56, %v6568_v16  ;;  %v1286_v46 = vmul.f32 %v4570_v56, %v6569_v45  ;;  %v1058_v55 = vadd.f32 %v1026_v14, %v798_v42  ;;  %v6571_v16 = vld [vmem:[#allocation94_spill] sm:$0xff] }
 0x2e9   : > { %6567 = vst [vmem:[#allocation38_spill] sm:$0xff] %v5563_v3  ;;  %v2926_v44 = vsel %vm2894_vm1, %v2878_v7, 0.0  ;;  %v2880_v41 = vmul.f32 %v5149_v51, %v5563_v3  ;;  %v5578_v43 = vadd.f32 %v5259_v10, %v6570_v40  ;;  %v1057_v32 = vadd.f32 %v1025_v11, %v797_v0  ;;  %v6572_v3 = vld [vmem:[#allocation95_spill] sm:$0xff] }
 0x2ea   : > { %v2923_v58 = vadd.f32 %v2922_v48, %v2921_v8  ;;  %v1285_v49 = vmul.f32 %v4570_v56, %v6571_v16  ;;  %v2580_v48 = vmul.f32 %v5395_v36, %v5269_v37  ;;  %v1060_v8 = vadd.f32 %v1028_v47, %v800_v30  ;;  %v6574_v47 = vld [vmem:[#allocation6_spill] sm:$0xff] }
 0x2eb   : > { %v5569_v62 = vpop.permute.xlu1 %2530  ;;  %v5571_v27 = vpop.permute.xlu0 %2275  ;;  %v1059_v39 = vadd.f32 %v1027_v54, %v799_v9  ;;  %v2928_v42 = vsel %vm2894_vm1, %v2879_v50, 0.0  ;;  %v2881_v14 = vmul.f32 %v5227_v61, %v5578_v43  ;;  %v1316_v7 = vadd.f32 %v1284_v35, %v1056_v2  ;;  %v6575_v35 = vld [vmem:[#allocation8_spill] sm:$0xff] }
 0x2ec   : > { %v2925_v45 = vadd.f32 %v2924_v22, %v2923_v58  ;;  %v1318_v51 = vadd.f32 %v1286_v46, %v1058_v55  ;;  %v1288_v40 = vmul.f32 %v4570_v56, %v6572_v3  ;;  %v6573_v22 = vld [vmem:[#allocation96_spill] sm:$0xff]  ;;  %v2930_v30 = vsel %vm2894_vm1, %v2880_v41, 0.0 }
 0x2ed   : > { %v1287_v37 = vmul.f32 %v4570_v56, %v6573_v22  ;;  %v1544_v9 = vmul.f32 %v4584_v19, %v5225_v28  ;;  %v5600_v54 = vadd.f32 %v5259_v10, %v6574_v47  ;;  %v1317_v50 = vadd.f32 %v1285_v49, %v1057_v32  ;;  %v6577_v32 = vld [vmem:[#allocation25_spill] sm:$0xff]  ;;  %v6578_v22 = vld [vmem:[#allocation10_spill] sm:$0xff] }
 0x2ee   : > { %v2927_v0 = vadd.f32 %v2926_v44, %v2925_v45  ;;  %v2612_v3 = vadd.f32 %v2580_v48, %v5217_v31  ;;  %v5605_v46 = vadd.f32 %v5259_v10, %v6575_v35  ;;  %v2932_v58 = vsel %vm2894_vm1, %v2881_v14, 0.0  ;;  %v6576_v44 = vld [vmem:[#allocation37_spill] sm:$0xff] }
 0x2ef   : > { %v5589_v11 = vpop.permute.xlu1 %1770  ;;  %v5591_v16 = vpop.permute.xlu0 %2824  ;;  %v1545_v56 = vmul.f32 %v4584_v19, %v5296_v24  ;;  %v2882_v41 = vmul.f32 %v5298_v63, %v5600_v54  ;;  %v2581_v28 = vmul.f32 %v5395_v36, %v5350_v17  ;;  %v1320_v55 = vadd.f32 %v1288_v40, %v1060_v8  ;;  %v6579_v8 = vld [vmem:[#allocation24_spill] sm:$0xff] }
 0x2f0   : > { %v2929_v2 = vadd.f32 %v2928_v42, %v2927_v0  ;;  %v2063_v31 = vmul.f32 %v4600_v60, %v6576_v44  ;;  %v2322_v45 = vmul.f32 %v4627_v23, %v6577_v32  ;;  %v1319_v14 = vadd.f32 %v1287_v37, %v1059_v39  ;;  %v6581_v44 = vld [vmem:[#allocation22_spill] sm:$0xff] }
 0x2f1   : > { %v1576_v0 = vadd.f32 %v1544_v9, %v1316_v7  ;;  %v2883_v24 = vmul.f32 %v5372_v59, %v5605_v46  ;;  %v5622_v47 = vadd.f32 %v5259_v10, %v6578_v22  ;;  %v1804_v40 = vmul.f32 %v4595_v57, %v6579_v8  ;;  %v6580_v7 = vld [vmem:[#allocation11_spill] sm:$0xff] }
 0x2f2   : > { %v2931_v49 = vadd.f32 %v2930_v30, %v2929_v2  ;;  %v2582_v30 = vmul.f32 %v5395_v36, %v5428_v18  ;;  %v5629_v2 = vadd.f32 %v5259_v10, %v2612_v3  ;;  %v1577_v35 = vadd.f32 %v1545_v56, %v1317_v50  ;;  %v6583_v22 = vld [vmem:[#allocation27_spill] sm:$0xff] }
 0x2f3   : > { %v2281_v48 = vpop.permute.xlu1 %2280  ;;  %v2026_v42 = vpop.permute.xlu0 %2025  ;;  %v2934_v39 = vsel %vm2894_vm1, %v2882_v41, 0.0  ;;  %v2613_v37 = vadd.f32 %v2581_v28, %v6580_v7  ;;  %v2323_v9 = vmul.f32 %v4627_v23, %v5430_v33  ;;  %v2095_v32 = vadd.f32 %v2063_v31, %v6581_v44  ;;  %v6584_v41 = vld [vmem:[#allocation29_spill] sm:$0xff]  ;;  %v6585_v7 = vld [vmem:[#allocation30_spill] sm:$0xff] }
 0x2f4   : > { %v2933_v17 = vadd.f32 %v2932_v58, %v2931_v49  ;;  %v6582_v58 = vld [vmem:[#allocation21_spill] sm:$0xff]  ;;  %v1546_v8 = vmul.f32 %v4584_v19, %v6583_v22  ;;  %v2884_v18 = vmul.f32 %v5453_v53, %v5622_v47  ;;  %v2936_v56 = vsel %vm2894_vm1, %v2883_v24, 0.0 }
 0x2f5   : > { %v2354_v49 = vadd.f32 %v2322_v45, %v6582_v58  ;;  %v2064_v28 = vmul.f32 %v4600_v60, %v6584_v41  ;;  %v1805_v33 = vmul.f32 %v4595_v57, %v6585_v7  ;;  %v2583_v31 = vmul.f32 %v5395_v36, %v5483_v38 }
 0x2f6   : > { %v2935_v45 = vadd.f32 %v2934_v39, %v2933_v17  ;;  %v1836_v44 = vadd.f32 %v1804_v40, %v1576_v0  ;;  %v1547_v22 = vmul.f32 %v4584_v19, %v5451_v20  ;;  %v2355_v53 = vadd.f32 %v2323_v9, %v2095_v32 }
 0x2f7   : > { %v5641_v3 = vpop.permute.xlu1 %2829  ;;  %v2536_v50 = vpop.permute.xlu0 %2535  ;;  %v2614_v58 = vadd.f32 %v2582_v30, %v2354_v49  ;;  %v2065_v59 = vmul.f32 %v4600_v60, %v5468_v29  ;;  %v1806_v24 = vmul.f32 %v4595_v57, %v5470_v21  ;;  %v5657_v41 = vadd.f32 %v5259_v10, %v2613_v37 }
 0x2f8   : > { %v1578_v7 = vadd.f32 %v1546_v8, %v1318_v51  ;;  %v2937_v63 = vadd.f32 %v2936_v56, %v2935_v45  ;;  %v2938_v38 = vsel %vm2894_vm1, %v2884_v18, 0.0  ;;  %v2324_v0 = vmul.f32 %v4627_v23, %v5485_v26 }
 0x2f9   : > { %v2096_v20 = vadd.f32 %v2064_v28, %v1836_v44  ;;  %v1837_v30 = vadd.f32 %v1805_v33, %v1577_v35  ;;  %v2615_v39 = vadd.f32 %v2583_v31, %v2355_v53  ;;  %v1548_v29 = vmul.f32 %v4584_v19, %v5513_v12 }
 0x2fa   : > { %v1579_v9 = vadd.f32 %v1547_v22, %v1319_v14  ;;  %v2885_v21 = vmul.f32 %v5515_v4, %v5629_v2  ;;  %v2584_v51 = vmul.f32 %v5395_v36, %v5569_v62  ;;  %v5669_v37 = vadd.f32 %v5259_v10, %v2614_v58 }
 0x2fb   : > { %v2286_v17 = vpop.permute.xlu1 %2285  ;;  %v2031_v40 = vpop.permute.xlu0 %2030  ;;  %v2939_v32 = vadd.f32 %v2938_v38, %v2937_v63  ;;  %v2097_v26 = vadd.f32 %v2065_v59, %v1837_v30  ;;  %v1838_v49 = vadd.f32 %v1806_v24, %v1578_v7  ;;  %v2066_v35 = vmul.f32 %v4600_v60, %v5539_v52 }
 0x2fc   : > { %v2356_v53 = vadd.f32 %v2324_v0, %v2096_v20  ;;  %v1807_v19 = vmul.f32 %v4595_v57, %v5541_v5  ;;  %v2325_v12 = vmul.f32 %v4627_v23, %v5571_v27  ;;  %v1808_v14 = vmul.f32 %v4595_v57, %v5589_v11 }
 0x2fd   : > { %v1580_v18 = vadd.f32 %v1548_v29, %v1320_v55  ;;  %v2886_v63 = vmul.f32 %v5591_v16, %v5657_v41  ;;  %v2326_v59 = vmul.f32 %v4627_v23, %v2281_v48  ;;  %v5685_v52 = vadd.f32 %v5259_v10, %v2615_v39 }
 0x2fe   : > { %v2940_v5 = vsel %vm2894_vm1, %v2885_v21, 0.0  ;;  %v2616_v56 = vadd.f32 %v2584_v51, %v2356_v53  ;;  %v2067_v27 = vmul.f32 %v4600_v60, %v2026_v42  ;;  %v2585_v28 = vmul.f32 %v5395_v36, %v2536_v50 }
 0x2ff   : > { %v5679_v62 = vpop.permute.xlu1 %2834  ;;  %v2541_v8 = vpop.permute.xlu0 %2540  ;;  %v2098_v57 = vadd.f32 %v2066_v35, %v1838_v49  ;;  %v2887_v11 = vmul.f32 %v5641_v3, %v5669_v37  ;;  %v2068_v55 = vmul.f32 %v4600_v60, %v2031_v40  ;;  %v1839_v31 = vadd.f32 %v1807_v19, %v1579_v9 }
 0x300   : > { %v2586_v33 = vmul.f32 %v5395_v36, %v2541_v8  ;;  %v2357_v48 = vadd.f32 %v2325_v12, %v2097_v26  ;;  %v1840_v45 = vadd.f32 %v1808_v14, %v1580_v18  ;;  %v2327_v44 = vmul.f32 %v4627_v23, %v2286_v17 }
 0x301   : > { %v2942_v24 = vsel %vm2894_vm1, %v2886_v63, 0.0  ;;  %v2358_v42 = vadd.f32 %v2326_v59, %v2098_v57  ;;  %v2888_v50 = vmul.f32 %v5679_v62, %v5685_v52  ;;  %v2941_v38 = vadd.f32 %v2940_v5, %v2939_v32 }
 0x302   : > { %v2099_v0 = vadd.f32 %v2067_v27, %v1839_v31  ;;  %v2617_v60 = vadd.f32 %v2585_v28, %v2357_v48  ;;  %v5700_v40 = vadd.f32 %v5259_v10, %v2616_v56  ;;  %v2944_v20 = vsel %vm2894_vm1, %v2887_v11, 0.0 }
 0x303   : > { %v2546_v58 = vpop.permute.xlu1 %2545  ;;  %v2291_v22 = vpop.permute.xlu0 %2290  ;;  %v2100_v30 = vadd.f32 %v2068_v55, %v1840_v45  ;;  %v2618_v17 = vadd.f32 %v2586_v33, %v2358_v42  ;;  %v2943_v29 = vadd.f32 %v2942_v24, %v2941_v38  ;;  %v2946_v26 = vsel %vm2894_vm1, %v2888_v50, 0.0 }
 0x304   : > { %v2328_v7 = vmul.f32 %v4627_v23, %v2291_v22  ;;  %v2587_v39 = vmul.f32 %v5395_v36, %v2546_v58  ;;  %v2359_v9 = vadd.f32 %v2327_v44, %v2099_v0  ;;  %v5711_v53 = vadd.f32 %v5259_v10, %v2617_v60 }
 0x305   : > { %v2945_v35 = vadd.f32 %v2944_v20, %v2943_v29  ;;  %v5715_v8 = vadd.f32 %v5259_v10, %v2618_v17  ;;  %v6586_v17 = vld [vmem:[#allocation181_spill] sm:$0xff]  ;;  %v6587_v29 = vld [vmem:[#allocation23_spill] sm:$0xff] }
 0x306   : > { %v2360_v23 = vadd.f32 %v2328_v7, %v2100_v30  ;;  %v2619_v19 = vadd.f32 %v2587_v39, %v2359_v9 }
 0x307   : > { %v2551_v21 = vpop.permute.xlu1 %2550  ;;  %v5704_v51 = vpop.permute.xlu0 %2839  ;;  %v2947_v18 = vadd.f32 %v2946_v26, %v2945_v35 }
 0x308   : > { %v2588_v32 = vmul.f32 %v5395_v36, %v2551_v21  ;;  %v2889_v49 = vmul.f32 %v5704_v51, %v5700_v40  ;;  %v5730_v57 = vadd.f32 %v5259_v10, %v2619_v19  ;;  %v6588_v21 = vld [vmem:[#allocation12_spill] sm:$0xff]  ;;  %v6591_v19 = vld [vmem:[#allocation138_spill] sm:$0xff] }
 0x30a   : > { %v2620_v12 = vadd.f32 %v2588_v32, %v2360_v23  ;;  %v2948_v14 = vsel %vm2894_vm1, %v2889_v49, 0.0  ;;  %v6589_v23 = vld [vmem:[#allocation14_spill] sm:$0xff]  ;;  %v6590_v49 = vld [vmem:[#allocation16_spill] sm:$0xff] }
 0x30b   : > { %v5717_v63 = vpop.permute.xlu1 %2849  ;;  %v5719_v59 = vpop.permute.xlu0 %2844  ;;  %v2949_v56 = vadd.f32 %v2948_v14, %v2947_v18  ;;  %v6592_v14 = vld [vmem:[#allocation141_spill] sm:$0xff] }
 0x30c   : > { %v2891_v36 = vmul.f32 %v5717_v63, %v5715_v8  ;;  %v2890_v5 = vmul.f32 %v5719_v59, %v5711_v53  ;;  %v5727_v28 = vadd.f32 %v5259_v10, %v2620_v12 }
 0x30e   : > { %v2950_v27 = vsel %vm2894_vm1, %v2890_v5, 0.0  ;;  %v2952_v31 = vsel %vm2894_vm1, %v2891_v36, 0.0  ;;  %v6593_v36 = vld [vmem:[#allocation62_spill] sm:$0xff] }
 0x30f   : > { %v2951_v11 = vadd.f32 %v2950_v27, %v2949_v56  ;;  %v5732_v55 = vpop.permute.xlu1 %2859  ;;  %v5734_v33 = vpop.permute.xlu0 %2854  ;;  %v6594_v56 = vld [vmem:[#allocation144_spill] sm:$0xff] }
 0x310   : > { %v2893_v48 = vmul.f32 %v5732_v55, %v5727_v28  ;;  %v2892_v45 = vmul.f32 %v5734_v33, %v5730_v57 }
 0x311   : > { %v2953_v44 = vadd.f32 %v2952_v31, %v2951_v11  ;;  %v6595_v11 = vld [vmem:[#allocation26_spill] sm:$0xff] }
 0x312   : > { %v2954_v58 = vsel %vm2894_vm1, %v2892_v45, 0.0  ;;  %v2957_v10 = vsel %vm2956_vm2, %v2893_v48, 0.0  ;;  %v6596_v48 = vld [vmem:[#allocation151_spill] sm:$0xff] }
 0x313   : > { %v2955_v22 = vadd.f32 %v2954_v58, %v2953_v44 }
 0x315   : > { %v2958_v24 = vadd.f32 %v2957_v10, %v2955_v22  ;;  %v6597_v22 = vld [vmem:[#allocation88_spill] sm:$0xff] }
 0x317   : > { %v2959_v42 = vrot.slane %v2958_v24, 4 }
 0x319   : > { %v2960_v50 = vadd.f32 %v2959_v42, %v2958_v24  ;;  %v6598_v24 = vld [vmem:[#allocation154_spill] sm:$0xff] }
 0x31b   : > { %v2961_v7 = vrot.slane %v2960_v50, 2 }
 0x31d   : > { %v2962_v38 = vadd.f32 %v2961_v7, %v2960_v50 }
 0x31f   : > { %v2963_v0 = vrot.slane %v2962_v38, 1 }
 0x321   : > { %v2964_v60 = vadd.f32 %v2963_v0, %v2962_v38  ;;  %v6599_v38 = vld [vmem:[#allocation161_spill] sm:$0xff] }
 0x323   : > { %3564 = vmatmul.mubr.msk.f32.vlgmr.msra.gmra.mrb[0].mxu0 %vm2894_vm1, %v2964_v60 }
 0x3f6   : > { %v3034_v20 = vpop.f32.mrb[0].mxu0 }
 0x3f7   : > { %v3565_v30 = vpop.f32.mrb[1].mxu0  ;;  %v5745_v39 = vrot.slane %v3034_v20, %v6586_v17 }
 0x3f9   : > { %v5749_v9 = vsub.f32 %v6587_v29, %v5745_v39  ;;  %v5753_v26 = vsub.f32 %v6588_v21, %v5745_v39  ;;  %v5757_v32 = vsub.f32 %v6589_v23, %v5745_v39  ;;  %v5761_v35 = vsub.f32 %v6590_v49, %v5745_v39  ;;  %v6600_v23 = vld [vmem:[#allocation164_spill] sm:$0xff] }
 0x3fa   : > { %v5769_v5 = vsub.f32 %v6593_v36, %v5745_v39  ;;  %v5775_v31 = vsub.f32 %v6595_v11, %v5745_v39  ;;  %v5781_v10 = vsub.f32 %v6597_v22, %v5745_v39  ;;  %v5787_v7 = vsub.f32 %v5400_v25, %v5745_v39 }
 0x3fb   : > { %v3074_v12 = vmul.f32 %v5749_v9, %v6591_v19  ;;  %v3075_v18 = vmul.f32 %v5753_v26, %v6592_v14  ;;  %v3076_v27 = vmul.f32 %v5757_v32, %v6594_v56  ;;  %v3077_v45 = vmul.f32 %v5761_v35, %v6596_v48  ;;  %v6602_v48 = vld [vmem:[#allocation174_spill] sm:$0xff] }
 0x3fc   : > { %v3078_v42 = vmul.f32 %v5769_v5, %v6598_v24  ;;  %v3079_v0 = vmul.f32 %v5775_v31, %v6599_v38  ;;  %v5795_v21 = vsub.f32 %v5416_v1, %v5745_v39  ;;  %v3080_v49 = vmul.f32 %v5781_v10, %v6600_v23 }
 0x3fd   : > { %v3106_v44 = vmul.f32 %v3074_v12, %v3074_v12  ;;  %v3107_v58 = vmul.f32 %v3075_v18, %v3075_v18  ;;  %v3108_v50 = vmul.f32 %v3076_v27, %v3076_v27  ;;  %v3109_v60 = vmul.f32 %v3077_v45, %v3077_v45  ;;  %v6601_v18 = vld [vmem:[#allocation171_spill] sm:$0xff] }
 0x3fe   : > { %v3110_v19 = vmul.f32 %v3078_v42, %v3078_v42  ;;  %v5802_v14 = vsub.f32 %v5449_v15, %v5745_v39  ;;  %v3081_v36 = vmul.f32 %v5787_v7, %v6601_v18  ;;  %v3111_v56 = vmul.f32 %v3079_v0, %v3079_v0  ;;  %v6603_v15 = vld [vmem:[#allocation32_spill] sm:$0xff]  ;;  %v6604_v42 = vld [vmem:[#allocation179_spill] sm:$0xff] }
 0x3ff   : > { %v3138_v20 = vsel %vm2894_vm1, %v3106_v44, 0.0  ;;  %v3139_v30 = vsel %vm2894_vm1, %v3107_v58, 0.0  ;;  %v3141_v25 = vsel %vm2894_vm1, %v3108_v50, 0.0  ;;  %v3143_v27 = vsel %vm2894_vm1, %v3109_v60, 0.0  ;;  %v6608_v18 = vld [vmem:[#allocation184_spill] sm:$0xff] }
 0x400   : > { %v3140_v29 = vadd.f32 %v3139_v30, %v3138_v20  ;;  %v5809_v1 = vsub.f32 %v5461_v13, %v5745_v39  ;;  %v3082_v45 = vmul.f32 %v5795_v21, %v6602_v48  ;;  %v3112_v44 = vmul.f32 %v3080_v49, %v3080_v49  ;;  %v6605_v13 = vld [vmem:[#allocation33_spill] sm:$0xff]  ;;  %v6606_v30 = vld [vmem:[#allocation182_spill] sm:$0xff]  ;;  %v6609_v48 = vld [vmem:[#allocation35_spill] sm:$0xff] }
 0x401   : > { %v3145_v58 = vsel %vm2894_vm1, %v3110_v19, 0.0  ;;  %v5816_v24 = vsub.f32 %v6603_v15, %v5745_v39  ;;  %v3083_v50 = vmul.f32 %v5802_v14, %v6604_v42  ;;  %v3113_v38 = vmul.f32 %v3081_v36, %v3081_v36 }
 0x402   : > { %v3142_v12 = vadd.f32 %v3141_v25, %v3140_v29  ;;  %v3147_v0 = vsel %vm2894_vm1, %v3111_v56, 0.0  ;;  %v5823_v20 = vsub.f32 %v6605_v13, %v5745_v39  ;;  %v3084_v29 = vmul.f32 %v5809_v1, %v6606_v30  ;;  %v6607_v25 = vld [vmem:[#allocation34_spill] sm:$0xff] }
 0x403   : > { %v3114_v23 = vmul.f32 %v3082_v45, %v3082_v45  ;;  %v3149_v49 = vsel %vm2894_vm1, %v3112_v44, 0.0  ;;  %v3085_v36 = vmul.f32 %v5816_v24, %v6608_v18  ;;  %v3115_v56 = vmul.f32 %v3083_v50, %v3083_v50 }
 0x404   : > { %v3144_v11 = vadd.f32 %v3143_v27, %v3142_v12  ;;  %v5830_v12 = vsub.f32 %v6607_v25, %v5745_v39  ;;  %v3151_v27 = vsel %vm2894_vm1, %v3113_v38, 0.0  ;;  %v3116_v44 = vmul.f32 %v3084_v29, %v3084_v29 }
 0x405   : > { %v3153_v15 = vsel %vm2894_vm1, %v3114_v23, 0.0  ;;  %v3117_v38 = vmul.f32 %v3085_v36, %v3085_v36  ;;  %v3155_v13 = vsel %vm2894_vm1, %v3115_v56, 0.0 }
 0x406   : > { %v3146_v22 = vadd.f32 %v3145_v58, %v3144_v11  ;;  %v5837_v58 = vsub.f32 %v6609_v48, %v5745_v39  ;;  %v3157_v25 = vsel %vm2894_vm1, %v3116_v44, 0.0 }
 0x407   : > { %v3159_v48 = vsel %vm2894_vm1, %v3117_v38, 0.0 }
 0x408   : > { %v3148_v60 = vadd.f32 %v3147_v0, %v3146_v22  ;;  %v6610_v22 = vld [vmem:[#allocation185_spill] sm:$0xff]  ;;  %v5844_v0 = vsub.f32 %v5524_v6, %v5745_v39  ;;  %v6613_v6 = vld [vmem:[#allocation36_spill] sm:$0xff] }
 0x409   : > { %v3086_v45 = vmul.f32 %v5823_v20, %v6610_v22 }
 0x40a   : > { %v3150_v19 = vadd.f32 %v3149_v49, %v3148_v60  ;;  %v6611_v60 = vld [vmem:[#allocation187_spill] sm:$0xff]  ;;  %v5851_v49 = vsub.f32 %v5535_v34, %v5745_v39  ;;  %v6615_v34 = vld [vmem:[#allocation38_spill] sm:$0xff] }
 0x40b   : > { %v3087_v50 = vmul.f32 %v5830_v12, %v6611_v60  ;;  %v3118_v23 = vmul.f32 %v3086_v45, %v3086_v45 }
 0x40c   : > { %v3152_v11 = vadd.f32 %v3151_v27, %v3150_v19  ;;  %v6612_v19 = vld [vmem:[#allocation113_spill] sm:$0xff]  ;;  %v5858_v27 = vsub.f32 %v6613_v6, %v5745_v39  ;;  %v5879_v6 = vsub.f32 %v5600_v54, %v5745_v39  ;;  %v5893_v54 = vsub.f32 %v5622_v47, %v5745_v39 }
 0x40d   : > { %v3088_v29 = vmul.f32 %v5837_v58, %v6612_v19  ;;  %v3119_v56 = vmul.f32 %v3087_v50, %v3087_v50  ;;  %v3161_v60 = vsel %vm2894_vm1, %v3118_v23, 0.0  ;;  %v6617_v19 = vld [vmem:[#allocation7_spill] sm:$0xff]  ;;  %v5907_v47 = vsub.f32 %v5657_v41, %v5745_v39 }
 0x40e   : > { %v3154_v42 = vadd.f32 %v3153_v15, %v3152_v11  ;;  %v6614_v11 = vld [vmem:[#allocation3_spill] sm:$0xff]  ;;  %v5865_v15 = vsub.f32 %v6615_v34, %v5745_v39  ;;  %v3091_v50 = vmul.f32 %v5858_v27, %v6617_v19  ;;  %v5921_v41 = vsub.f32 %v5685_v52, %v5745_v39 }
 0x40f   : > { %v3089_v36 = vmul.f32 %v5844_v0, %v6614_v11  ;;  %v3120_v44 = vmul.f32 %v3088_v29, %v3088_v29  ;;  %v6618_v11 = vld [vmem:[#allocation9_spill] sm:$0xff]  ;;  %v5935_v52 = vsub.f32 %v5711_v53, %v5745_v39  ;;  %v5949_v53 = vsub.f32 %v5730_v57, %v5745_v39 }
 0x410   : > { %v3156_v30 = vadd.f32 %v3155_v13, %v3154_v42  ;;  %v6616_v42 = vld [vmem:[#allocation5_spill] sm:$0xff]  ;;  %v3092_v29 = vmul.f32 %v5865_v15, %v6618_v11  ;;  %v6621_v11 = vld [vmem:[#allocation31_spill] sm:$0xff] }
 0x411   : > { %v3090_v45 = vmul.f32 %v5851_v49, %v6616_v42  ;;  %v3121_v38 = vmul.f32 %v3089_v36, %v3089_v36  ;;  %v3104_v57 = vmul.f32 %v5949_v53, %v5734_v33 }
 0x412   : > { %v3158_v18 = vadd.f32 %v3157_v25, %v3156_v30  ;;  %v5872_v30 = vsub.f32 %v5578_v43, %v5745_v39  ;;  %v3163_v25 = vsel %vm2894_vm1, %v3119_v56, 0.0  ;;  %v5886_v43 = vsub.f32 %v5605_v46, %v5745_v39 }
 0x413   : > { %v3122_v23 = vmul.f32 %v3090_v45, %v3090_v45  ;;  %v3123_v56 = vmul.f32 %v3091_v50, %v3091_v50  ;;  %v3167_v34 = vsel %vm2894_vm1, %v3121_v38, 0.0  ;;  %v5900_v46 = vsub.f32 %v5629_v2, %v5745_v39 }
 0x414   : > { %v3160_v22 = vadd.f32 %v3159_v48, %v3158_v18  ;;  %v3165_v48 = vsel %vm2894_vm1, %v3120_v44, 0.0  ;;  %v3093_v36 = vmul.f32 %v5872_v30, %v5227_v61  ;;  %v3124_v44 = vmul.f32 %v3092_v29, %v3092_v29  ;;  %v6620_v61 = vld [vmem:[#allocation28_spill] sm:$0xff] }
 0x415   : > { %v3095_v50 = vmul.f32 %v5886_v43, %v6620_v61  ;;  %v3096_v29 = vmul.f32 %v5893_v54, %v6621_v11  ;;  %v5914_v2 = vsub.f32 %v5669_v37, %v5745_v39  ;;  %v5928_v37 = vsub.f32 %v5700_v40, %v5745_v39 }
 0x416   : > { %v3162_v13 = vadd.f32 %v3161_v60, %v3160_v22  ;;  %v6619_v60 = vld [vmem:[#allocation13_spill] sm:$0xff]  ;;  %v3125_v38 = vmul.f32 %v3093_v36, %v3093_v36  ;;  %v3097_v36 = vmul.f32 %v5900_v46, %v5515_v4  ;;  %v5942_v40 = vsub.f32 %v5715_v8, %v5745_v39 }
 0x417   : > { %v3094_v45 = vmul.f32 %v5879_v6, %v6619_v60  ;;  %v3098_v60 = vmul.f32 %v5907_v47, %v5591_v16  ;;  %v3099_v4 = vmul.f32 %v5914_v2, %v5641_v3  ;;  %v3100_v16 = vmul.f32 %v5921_v41, %v5679_v62 }
 0x418   : > { %v3164_v18 = vadd.f32 %v3163_v25, %v3162_v13  ;;  %v3169_v13 = vsel %vm2894_vm1, %v3122_v23, 0.0  ;;  %v3171_v25 = vsel %vm2894_vm1, %v3123_v56, 0.0  ;;  %v3127_v56 = vmul.f32 %v3095_v50, %v3095_v50 }
 0x419   : > { %v3126_v23 = vmul.f32 %v3094_v45, %v3094_v45  ;;  %v3128_v45 = vmul.f32 %v3096_v29, %v3096_v29  ;;  %v3101_v3 = vmul.f32 %v5928_v37, %v5704_v51  ;;  %v3131_v11 = vmul.f32 %v3099_v4, %v3099_v4 }
 0x41a   : > { %v3166_v22 = vadd.f32 %v3165_v48, %v3164_v18  ;;  %v3173_v48 = vsel %vm2894_vm1, %v3124_v44, 0.0  ;;  %v3179_v61 = vsel %vm2894_vm1, %v3127_v56, 0.0  ;;  %v3102_v62 = vmul.f32 %v5935_v52, %v5719_v59 }
 0x41b   : > { %v3177_v44 = vsel %vm2894_vm1, %v3126_v23, 0.0  ;;  %v5956_v8 = vsub.f32 %v5727_v28, %v5745_v39  ;;  %v3103_v51 = vmul.f32 %v5942_v40, %v5717_v63  ;;  %v3133_v56 = vmul.f32 %v3101_v3, %v3101_v3 }
 0x41c   : > { %v3168_v42 = vadd.f32 %v3167_v34, %v3166_v22  ;;  %v3175_v34 = vsel %vm2894_vm1, %v3125_v38, 0.0  ;;  %v3130_v38 = vmul.f32 %v3098_v60, %v3098_v60  ;;  %v3134_v60 = vmul.f32 %v3102_v62, %v3102_v62 }
 0x41d   : > { %v3191_v28 = vsel %vm2894_vm1, %v3133_v56, 0.0  ;;  %v3136_v4 = vmul.f32 %v3104_v57, %v3104_v57 }
 0x41e   : > { %v3170_v19 = vadd.f32 %v3169_v13, %v3168_v42  ;;  %v3193_v63 = vsel %vm2894_vm1, %v3134_v60, 0.0 }
 0x41f   : > { %v3197_v33 = vsel %vm2894_vm1, %v3136_v4, 0.0 }
 0x420   : > { %v3172_v18 = vadd.f32 %v3171_v25, %v3170_v19  ;;  %v3129_v19 = vmul.f32 %v3097_v36, %v3097_v36  ;;  %v3181_v25 = vsel %vm2894_vm1, %v3128_v45, 0.0 }
 0x422   : > { %v3174_v22 = vadd.f32 %v3173_v48, %v3172_v18  ;;  %v3183_v29 = vsel %vm2894_vm1, %v3129_v19, 0.0  ;;  %v3132_v48 = vmul.f32 %v3100_v16, %v3100_v16 }
 0x424   : > { %v3176_v42 = vadd.f32 %v3175_v34, %v3174_v22  ;;  %v3185_v22 = vsel %vm2894_vm1, %v3130_v38, 0.0  ;;  %v3187_v34 = vsel %vm2894_vm1, %v3131_v11, 0.0  ;;  %v3189_v59 = vsel %vm2894_vm1, %v3132_v48, 0.0 }
 0x426   : > { %v3178_v13 = vadd.f32 %v3177_v44, %v3176_v42  ;;  %v3105_v44 = vmul.f32 %v5956_v8, %v5732_v55 }
 0x428   : > { %v3180_v50 = vadd.f32 %v3179_v61, %v3178_v13  ;;  %v3135_v13 = vmul.f32 %v3103_v51, %v3103_v51  ;;  %v3137_v61 = vmul.f32 %v3105_v44, %v3105_v44 }
 0x42a   : > { %v3182_v18 = vadd.f32 %v3181_v25, %v3180_v50  ;;  %v3195_v50 = vsel %vm2894_vm1, %v3135_v13, 0.0  ;;  %v3199_v25 = vsel %vm2956_vm2, %v3137_v61, 0.0 }
 0x42c   : > { %v3184_v23 = vadd.f32 %v3183_v29, %v3182_v18 }
 0x42e   : > { %v3186_v36 = vadd.f32 %v3185_v22, %v3184_v23 }
 0x430   : > { %v3188_v42 = vadd.f32 %v3187_v34, %v3186_v36 }
 0x432   : > { %v3190_v45 = vadd.f32 %v3189_v59, %v3188_v42 }
 0x434   : > { %v3192_v39 = vadd.f32 %v3191_v28, %v3190_v45 }
 0x436   : > { %v3194_v19 = vadd.f32 %v3193_v63, %v3192_v39 }
 0x438   : > { %v3196_v16 = vadd.f32 %v3195_v50, %v3194_v19 }
 0x43a   : > { %v3198_v38 = vadd.f32 %v3197_v33, %v3196_v16 }
 0x43c   : > { %v3200_v18 = vadd.f32 %v3199_v25, %v3198_v38 }
 0x43e   : > { %v3201_v3 = vrot.slane %v3200_v18, 4 }
 0x440   : > { %v3202_v55 = vadd.f32 %v3201_v3, %v3200_v18  ;;  %v3525_v3 = vld [vmem:[%s6124_s4] ss:$0 sm:$0xff] }
 0x442   : > { %v3203_v11 = vrot.slane %v3202_v55, 2 }
 0x444   : > { %v3204_v29 = vadd.f32 %v3203_v11, %v3202_v55 }
 0x446   : > { %v3205_v23 = vrot.slane %v3204_v29, 1 }
 0x448   : > { %v3206_v62 = vadd.f32 %v3205_v23, %v3204_v29 }
 0x44a   : > { %3583 = vmatmul.mubr.msk.f32.vlgmr.msra.gmra.mrb[0].mxu1 %vm2894_vm1, %v3206_v62 }
 0x51d   : > { %v3276_v48 = vpop.f32.mrb[0].mxu1 }
 0x51e   : > { %v3277_v22 = vadd.f32 1e-05, %v3276_v48  ;;  %v3584_v36 = vpop.f32.mrb[1].mxu1 }
 0x520   : > { %3624 = vrsqrt.f32 %v3277_v22 }
 0x52a   : > { %v3625_v51 = vpop.eup %3624 }
 0x52b   : > { %v3284_v56 = vrot.slane %v3625_v51, %v6586_v17 }
 0x52d   : > { %v3285_v34 = vmul.f32 %v3284_v56, %v5749_v9  ;;  %v3286_v42 = vmul.f32 %v3284_v56, %v5753_v26  ;;  %v3287_v57 = vmul.f32 %v3284_v56, %v5757_v32  ;;  %v3288_v60 = vmul.f32 %v3284_v56, %v5761_v35 }
 0x52e   : > { %v3289_v59 = vmul.f32 %v3284_v56, %v5769_v5  ;;  %v3290_v45 = vmul.f32 %v3284_v56, %v5775_v31  ;;  %v3291_v44 = vmul.f32 %v3284_v56, %v5781_v10  ;;  %v3292_v13 = vmul.f32 %v3284_v56, %v5787_v7 }
 0x52f   : > { %v3293_v28 = vmul.f32 %v3284_v56, %v5795_v21  ;;  %v3294_v17 = vmul.f32 %v3284_v56, %v5802_v14  ;;  %v3295_v9 = vmul.f32 %v3284_v56, %v5809_v1  ;;  %v3296_v26 = vmul.f32 %v3284_v56, %v5816_v24  ;;  %v3524_v1 = vld [vmem:[%s6123_s3] ss:$0 sm:$0xff] }
 0x530   : > { %v3297_v32 = vmul.f32 %v3284_v56, %v5823_v20  ;;  %v3298_v35 = vmul.f32 %v3284_v56, %v5830_v12  ;;  %v3299_v5 = vmul.f32 %v3284_v56, %v5837_v58  ;;  %v3300_v31 = vmul.f32 %v3284_v56, %v5844_v0 }
 0x531   : > { %v3301_v10 = vmul.f32 %v3284_v56, %v5851_v49  ;;  %v3302_v7 = vmul.f32 %v3284_v56, %v5858_v27  ;;  %v3303_v21 = vmul.f32 %v3284_v56, %v5865_v15  ;;  %v3304_v14 = vmul.f32 %v3284_v56, %v5872_v30 }
 0x532   : > { %v3305_v24 = vmul.f32 %v3284_v56, %v5879_v6  ;;  %v3306_v20 = vmul.f32 %v3284_v56, %v5886_v43  ;;  %v3307_v12 = vmul.f32 %v3284_v56, %v5893_v54  ;;  %v3308_v58 = vmul.f32 %v3284_v56, %v5900_v46 }
 0x533   : > { %v3309_v0 = vmul.f32 %v3284_v56, %v5907_v47  ;;  %v3310_v49 = vmul.f32 %v3284_v56, %v5914_v2  ;;  %v3311_v27 = vmul.f32 %v3284_v56, %v5921_v41  ;;  %v3312_v15 = vmul.f32 %v3284_v56, %v5928_v37 }
 0x534   : > { %v3313_v30 = vmul.f32 %v3284_v56, %v5935_v52  ;;  %v3314_v39 = vmul.f32 %v3284_v56, %v5942_v40  ;;  %v3315_v6 = vmul.f32 %v3284_v56, %v5949_v53  ;;  %v3316_v43 = vmul.f32 %v3284_v56, %v5956_v8 }
 0x535   : > { %v3323_v4 = vmul.f32 %v3524_v1, %v3285_v34  ;;  %v3324_v54 = vmul.f32 %v3524_v1, %v3286_v42  ;;  %v3325_v63 = vmul.f32 %v3524_v1, %v3287_v57  ;;  %v3326_v46 = vmul.f32 %v3524_v1, %v3288_v60 }
 0x536   : > { %v3327_v19 = vmul.f32 %v3524_v1, %v3289_v59  ;;  %v3328_v47 = vmul.f32 %v3524_v1, %v3290_v45  ;;  %v3329_v61 = vmul.f32 %v3524_v1, %v3291_v44  ;;  %v3330_v2 = vmul.f32 %v3524_v1, %v3292_v13 }
 0x537   : > { %v3331_v50 = vmul.f32 %v3524_v1, %v3293_v28  ;;  %v3332_v41 = vmul.f32 %v3524_v1, %v3294_v17  ;;  %v3333_v16 = vmul.f32 %v3524_v1, %v3295_v9  ;;  %v3334_v37 = vmul.f32 %v3524_v1, %v3296_v26 }
 0x538   : > { %v3335_v33 = vmul.f32 %v3524_v1, %v3297_v32  ;;  %v3336_v52 = vmul.f32 %v3524_v1, %v3298_v35  ;;  %v3337_v38 = vmul.f32 %v3524_v1, %v3299_v5  ;;  %v3338_v40 = vmul.f32 %v3524_v1, %v3300_v31 }
 0x539   : > { %v3339_v25 = vmul.f32 %v3524_v1, %v3301_v10  ;;  %v3340_v53 = vmul.f32 %v3524_v1, %v3302_v7  ;;  %v3341_v18 = vmul.f32 %v3524_v1, %v3303_v21  ;;  %v3342_v8 = vmul.f32 %v3524_v1, %v3304_v14 }
 0x53a   : > { %v3343_v55 = vmul.f32 %v3524_v1, %v3305_v24  ;;  %v3344_v11 = vmul.f32 %v3524_v1, %v3306_v20  ;;  %v3345_v29 = vmul.f32 %v3524_v1, %v3307_v12  ;;  %v3346_v23 = vmul.f32 %v3524_v1, %v3308_v58 }
 0x53b   : > { %v3347_v62 = vmul.f32 %v3524_v1, %v3309_v0  ;;  %v3348_v48 = vmul.f32 %v3524_v1, %v3310_v49  ;;  %v3349_v22 = vmul.f32 %v3524_v1, %v3311_v27  ;;  %v3350_v36 = vmul.f32 %v3524_v1, %v3312_v15 }
 0x53c   : > { %v3351_v51 = vmul.f32 %v3524_v1, %v3313_v30  ;;  %v3352_v56 = vmul.f32 %v3524_v1, %v3314_v39  ;;  %v3353_v34 = vmul.f32 %v3524_v1, %v3315_v6  ;;  %v3354_v42 = vmul.f32 %v3524_v1, %v3316_v43 }
 0x53d   : > { %v3361_v57 = vadd.f32 %v3525_v3, %v3323_v4  ;;  %v3362_v60 = vadd.f32 %v3525_v3, %v3324_v54  ;;  %v3363_v59 = vadd.f32 %v3525_v3, %v3325_v63  ;;  %v3364_v45 = vadd.f32 %v3525_v3, %v3326_v46 }
 0x53e   : > { %v3365_v44 = vadd.f32 %v3525_v3, %v3327_v19  ;;  %v3366_v13 = vadd.f32 %v3525_v3, %v3328_v47  ;;  %v3367_v28 = vadd.f32 %v3525_v3, %v3329_v61  ;;  %v3368_v17 = vadd.f32 %v3525_v3, %v3330_v2 }
 0x53f   : > { %v3369_v9 = vadd.f32 %v3525_v3, %v3331_v50  ;;  %v3370_v26 = vadd.f32 %v3525_v3, %v3332_v41  ;;  %v3371_v32 = vadd.f32 %v3525_v3, %v3333_v16  ;;  %v3372_v35 = vadd.f32 %v3525_v3, %v3334_v37 }
 0x540   : > { %v3373_v5 = vadd.f32 %v3525_v3, %v3335_v33  ;;  %v3374_v31 = vadd.f32 %v3525_v3, %v3336_v52  ;;  %v3375_v10 = vadd.f32 %v3525_v3, %v3337_v38  ;;  %v3376_v7 = vadd.f32 %v3525_v3, %v3338_v40 }
 0x541   : > { %v3377_v21 = vadd.f32 %v3525_v3, %v3339_v25  ;;  %v3378_v14 = vadd.f32 %v3525_v3, %v3340_v53  ;;  %v3379_v1 = vadd.f32 %v3525_v3, %v3341_v18  ;;  %v3380_v24 = vadd.f32 %v3525_v3, %v3342_v8 }
 0x542   : > { %v6012_v20 = vadd.f32 %v3525_v3, %v3343_v55  ;;  %v6014_v12 = vadd.f32 %v3525_v3, %v3344_v11  ;;  %v6016_v58 = vadd.f32 %v3525_v3, %v3345_v29  ;;  %v6018_v0 = vadd.f32 %v3525_v3, %v3346_v23 }
 0x543   : > { %v6020_v49 = vadd.f32 %v3525_v3, %v3347_v62  ;;  %v6022_v27 = vadd.f32 %v3525_v3, %v3348_v48  ;;  %v6024_v15 = vadd.f32 %v3525_v3, %v3349_v22  ;;  %v6026_v30 = vadd.f32 %v3525_v3, %v3350_v36 }
 0x544   : > { %v6033_v39 = vadd.f32 %v3525_v3, %v3351_v51  ;;  %v6035_v6 = vadd.f32 %v3525_v3, %v3352_v56  ;;  %v6037_v43 = vadd.f32 %v3525_v3, %v3353_v34  ;;  %v6039_v4 = vadd.f32 %v3525_v3, %v3354_v42 }
 0x545   : > { %v3393_v54 = vmax.f32 %v3361_v57, 0.0  ;;  %v3394_v63 = vmax.f32 %v3362_v60, 0.0  ;;  %v3395_v46 = vmax.f32 %v3363_v59, 0.0  ;;  %v3396_v19 = vmax.f32 %v3364_v45, 0.0 }
 0x546   : > { %v3397_v47 = vmax.f32 %v3365_v44, 0.0  ;;  %v3398_v61 = vmax.f32 %v3366_v13, 0.0  ;;  %v3399_v2 = vmax.f32 %v3367_v28, 0.0  ;;  %v3400_v50 = vmax.f32 %v3368_v17, 0.0 }
 0x547   : > { %v3401_v41 = vmax.f32 %v3369_v9, 0.0  ;;  %v3402_v16 = vmax.f32 %v3370_v26, 0.0  ;;  %v3403_v37 = vmax.f32 %v3371_v32, 0.0  ;;  %v3404_v33 = vmax.f32 %v3372_v35, 0.0  ;;  %3425 = vst.msk [vmem:[%s6031_s19] sm:$0xff] %vm2894_vm1, %v3393_v54  ;;  %3426 = vst.msk [vmem:[%s6031_s19 + $0x8] sm:$0xff] %vm2894_vm1, %v3394_v63 }
 0x548   : > { %3427 = vst.msk [vmem:[%s6031_s19 + $0x10] sm:$0xff] %vm2894_vm1, %v3395_v46  ;;  %3428 = vst.msk [vmem:[%s6031_s19 + $0x18] sm:$0xff] %vm2894_vm1, %v3396_v19  ;;  %v3405_v52 = vmax.f32 %v3373_v5, 0.0  ;;  %v3406_v38 = vmax.f32 %v3374_v31, 0.0  ;;  %v3407_v40 = vmax.f32 %v3375_v10, 0.0  ;;  %v3408_v25 = vmax.f32 %v3376_v7, 0.0 }
 0x549   : > { %3429 = vst.msk [vmem:[%s6031_s19 + $0x20] sm:$0xff] %vm2894_vm1, %v3397_v47  ;;  %3430 = vst.msk [vmem:[%s6031_s19 + $0x28] sm:$0xff] %vm2894_vm1, %v3398_v61  ;;  %v3409_v53 = vmax.f32 %v3377_v21, 0.0  ;;  %v3410_v18 = vmax.f32 %v3378_v14, 0.0  ;;  %v3411_v8 = vmax.f32 %v3379_v1, 0.0  ;;  %v3412_v3 = vmax.f32 %v3380_v24, 0.0 }
 0x54a   : > { %3431 = vst.msk [vmem:[%s6031_s19 + $0x30] sm:$0xff] %vm2894_vm1, %v3399_v2  ;;  %3432 = vst.msk [vmem:[%s6031_s19 + $0x38] sm:$0xff] %vm2894_vm1, %v3400_v50  ;;  %v3413_v55 = vmax.f32 %v6012_v20, 0.0  ;;  %v3414_v11 = vmax.f32 %v6014_v12, 0.0  ;;  %v3415_v29 = vmax.f32 %v6016_v58, 0.0  ;;  %v3416_v23 = vmax.f32 %v6018_v0, 0.0 }
 0x54b   : > { %3433 = vst.msk [vmem:[%s6031_s19 + $0x40] sm:$0xff] %vm2894_vm1, %v3401_v41  ;;  %3434 = vst.msk [vmem:[%s6031_s19 + $0x48] sm:$0xff] %vm2894_vm1, %v3402_v16  ;;  %v3417_v62 = vmax.f32 %v6020_v49, 0.0  ;;  %v3418_v48 = vmax.f32 %v6022_v27, 0.0  ;;  %v3419_v22 = vmax.f32 %v6024_v15, 0.0  ;;  %v3420_v36 = vmax.f32 %v6026_v30, 0.0 }
 0x54c   : > { %3435 = vst.msk [vmem:[%s6031_s19 + $0x50] sm:$0xff] %vm2894_vm1, %v3403_v37  ;;  %3436 = vst.msk [vmem:[%s6031_s19 + $0x58] sm:$0xff] %vm2894_vm1, %v3404_v33  ;;  %v3421_v51 = vmax.f32 %v6033_v39, 0.0  ;;  %v3422_v56 = vmax.f32 %v6035_v6, 0.0  ;;  %v3423_v34 = vmax.f32 %v6037_v43, 0.0  ;;  %v3424_v42 = vmax.f32 %v6039_v4, 0.0 }
 0x54d   : > { %3437 = vst.msk [vmem:[%s6031_s19 + $0x60] sm:$0xff] %vm2894_vm1, %v3405_v52  ;;  %3438 = vst.msk [vmem:[%s6031_s19 + $0x68] sm:$0xff] %vm2894_vm1, %v3406_v38 }
 0x54e   : > { %3439 = vst.msk [vmem:[%s6031_s19 + $0x70] sm:$0xff] %vm2894_vm1, %v3407_v40  ;;  %3440 = vst.msk [vmem:[%s6031_s19 + $0x78] sm:$0xff] %vm2894_vm1, %v3408_v25 }
 0x54f   : > { %3441 = vst.msk [vmem:[%s6031_s19 + $0x80] sm:$0xff] %vm2894_vm1, %v3409_v53  ;;  %3442 = vst.msk [vmem:[%s6031_s19 + $0x88] sm:$0xff] %vm2894_vm1, %v3410_v18 }
 0x550   : > { %3443 = vst.msk [vmem:[%s6031_s19 + $0x90] sm:$0xff] %vm2894_vm1, %v3411_v8  ;;  %3444 = vst.msk [vmem:[%s6031_s19 + $0x98] sm:$0xff] %vm2894_vm1, %v3412_v3 }
 0x551   : > { %3445 = vst.msk [vmem:[%s6031_s19 + $0xa0] sm:$0xff] %vm2894_vm1, %v3413_v55  ;;  %3446 = vst.msk [vmem:[%s6031_s19 + $0xa8] sm:$0xff] %vm2894_vm1, %v3414_v11 }
 0x552   : > { %3447 = vst.msk [vmem:[%s6031_s19 + $0xb0] sm:$0xff] %vm2894_vm1, %v3415_v29  ;;  %3448 = vst.msk [vmem:[%s6031_s19 + $0xb8] sm:$0xff] %vm2894_vm1, %v3416_v23 }
 0x553   : > { %3449 = vst.msk [vmem:[%s6031_s19 + $0xc0] sm:$0xff] %vm2894_vm1, %v3417_v62  ;;  %3450 = vst.msk [vmem:[%s6031_s19 + $0xc8] sm:$0xff] %vm2894_vm1, %v3418_v48 }
 0x554   : > { %3451 = vst.msk [vmem:[%s6031_s19 + $0xd0] sm:$0xff] %vm2894_vm1, %v3419_v22  ;;  %3452 = vst.msk [vmem:[%s6031_s19 + $0xd8] sm:$0xff] %vm2894_vm1, %v3420_v36 }
 0x555   : > { %3453 = vst.msk [vmem:[%s6031_s19 + $0xe0] sm:$0xff] %vm2894_vm1, %v3421_v51  ;;  %3454 = vst.msk [vmem:[%s6031_s19 + $0xe8] sm:$0xff] %vm2894_vm1, %v3422_v56 }
 0x556   : > { %3455 = vst.msk [vmem:[%s6031_s19 + $0xf0] sm:$0xff] %vm2894_vm1, %v3423_v34 }
 0x557   : > { %3456 = vst.msk [vmem:[%s6031_s19 + $0xf8] sm:$0xf] %vm2956_vm2, %v3424_v42 }
 0x558 PF: > { %s17_s24 = sadd.s32 1, %s3633_s24  }
 0x559   : > { %p14_p4 = scmp.ge.s32.totalorder %s17_s24, 4  }
 0x55b   :  { %16 = sbr.rel (!%p14_p4) target bundleno = 1 (0x1), region = 78 }

// kernel: continuous_resnet_forward.4
= control target key start
LH: loop header
LB: loop body
LE: loop exit
PB: predicated region body
PF: predicated region fallthrough
CT: control target
= control target key end

     0   :  { %s4729_s24 = smov 0   ;;  %s5607_s0 = inlined_call_operand.vmem [shape: f32[2,2,2,81,64], index: 0, kind: input, shape index: {}]   ;;  %s5608_s1 = inlined_call_operand.vmem [shape: f32[16,64,64], index: 1, kind: input, shape index: {}]   ;;  %s5609_s2 = inlined_call_operand.vmem [shape: f32[1,64], index: 2, kind: input, shape index: {}]   ;;  %s5610_s3 = inlined_call_operand.vmem [shape: f32[1,64], index: 3, kind: input, shape index: {}]   ;;  %s5611_s4 = inlined_call_operand.vmem [shape: f32[1,64], index: 4, kind: input, shape index: {}]   ;;  %s5612_s5 = inlined_call_operand.vmem [shape: f32[63,1], index: 5, kind: input, shape index: {}]   ;;  %s5613_s6 = inlined_call_operand.vmem [shape: f32[64,64], index: 6, kind: input, shape index: {}]   ;;  %s5614_s7 = inlined_call_operand.vmem [shape: f32[2,63,64], index: 7, kind: output, shape index: {}]  }
   0x1 LB: > { %s3140_s25 = sadd.s32 4294967295, %s4683_s24   ;;  %p3144_p0 = scmp.ge.s32.totalorder %s4683_s24, 1  ;;  %s4683_s24 = sphi %s4729_s24, %s17_s24  }
   0x2   : > { %p237_p1 = scmp.lt.s32.totalorder %s4683_s24, 3 }
   0x4   : > { %p238_p2 = pnand %p3144_p0, %p237_p1 }
   0x5   : > { %v3156_v0 = vld [vmem:[%s5608_s1 + $0x40] sm:$0xff] (!%p238_p2)  ;;  %v3157_v1 = vld [vmem:[%s5608_s1 + $0x48] sm:$0xff] (!%p238_p2)  ;;  %p269_p3 = scmp.lt.s32.totalorder (!%p238_p2), %s3140_s25, 1  ;;  %v3158_v5 = vld [vmem:[%s5608_s1 + $0x50] sm:$0xff] (!%p238_p2)  ;;  %vm313_vm0 = vcmask (!%p238_p2), 523264   ;;  %vm4687_vm1 = vmmov (!%p238_p2), 0  }
   0x6   : > { %241 = sbr.rel (%p238_p2) target bundleno = 889 (0x379), region = 48  ;;  %v3300_v2 = vld [vmem:[%s5608_s1 + $0x1c0] sm:$0xff] (!%p238_p2)  ;;  %v4260_v3 = vpack.c.bf16 (!%p238_p2), %v3157_v1, %v3156_v0  ;;  %v3301_v4 = vld [vmem:[%s5608_s1 + $0x1c8] sm:$0xff] (!%p238_p2)  ;;  %v3159_v6 = vld [vmem:[%s5608_s1 + $0x58] sm:$0xff] (!%p238_p2)  ;;  %vm2824_vm2 = vcmask (!%p238_p2), 522240  }
   0x7   : > { %v4372_v7 = vpack.c.bf16 (!%p238_p2), %v3301_v4, %v3300_v2  ;;  %v4264_v8 = vpack.c.bf16 (!%p238_p2), %v3159_v6, %v3158_v5  ;;  %v3302_v9 = vld [vmem:[%s5608_s1 + $0x1d0] sm:$0xff] (!%p238_p2)  ;;  %v3303_v10 = vld [vmem:[%s5608_s1 + $0x1d8] sm:$0xff] (!%p238_p2)  ;;  %v3160_v11 = vld [vmem:[%s5608_s1 + $0x60] sm:$0xff] (!%p238_p2) }
   0x8   : > { %4261 = vmatprep.subr.bf16.mxu1 (!%p238_p2), %v4260_v3  ;;  %v4376_v12 = vpack.c.bf16 (!%p238_p2), %v3303_v10, %v3302_v9  ;;  %v3161_v13 = vld [vmem:[%s5608_s1 + $0x68] sm:$0xff] (!%p238_p2)  ;;  %v3304_v14 = vld [vmem:[%s5608_s1 + $0x1e0] sm:$0xff] (!%p238_p2)  ;;  %v3162_v18 = vld [vmem:[%s5608_s1 + $0x70] sm:$0xff] (!%p238_p2) }
   0x9   : > { %v3305_v15 = vld [vmem:[%s5608_s1 + $0x1e8] sm:$0xff] (!%p238_p2)  ;;  %4373 = vmatprep.subr.bf16.mxu0 (!%p238_p2), %v4372_v7  ;;  %4263 = vmatpush3.bf16.msra.mxu1 (!%p238_p2), %v4260_v3  ;;  %v4268_v16 = vpack.c.bf16 (!%p238_p2), %v3161_v13, %v3160_v11  ;;  %v3163_v19 = vld [vmem:[%s5608_s1 + $0x78] sm:$0xff] (!%p238_p2)  ;;  %v3306_v20 = vld [vmem:[%s5608_s1 + $0x1f0] sm:$0xff] (!%p238_p2) }
   0xa   : > { %4375 = vmatpush3.bf16.msra.mxu0 (!%p238_p2), %v4372_v7  ;;  %4265 = vmatprep.subr.bf16.mxu1 (!%p238_p2), %v4264_v8  ;;  %v4380_v17 = vpack.c.bf16 (!%p238_p2), %v3305_v15, %v3304_v14  ;;  %v3307_v21 = vld [vmem:[%s5608_s1 + $0x1f8] sm:$0xff] (!%p238_p2)  ;;  %v4272_v24 = vpack.c.bf16 (!%p238_p2), %v3163_v19, %v3162_v18  ;;  %v287_v26 = vld [vmem:[%s5608_s1] sm:$0xff] (!%p238_p2)  ;;  %v288_v27 = vld [vmem:[%s5608_s1 + $0x8] sm:$0xff] (!%p238_p2) }
   0xb   : > { %4377 = vmatprep.subr.bf16.mxu0 (!%p238_p2), %v4376_v12  ;;  %v4384_v25 = vpack.c.bf16 (!%p238_p2), %v3307_v21, %v3306_v20  ;;  %v3316_v28 = vld [vmem:[%s5608_s1 + $0x200] sm:$0xff] (!%p238_p2)  ;;  %v3317_v29 = vld [vmem:[%s5608_s1 + $0x208] sm:$0xff] (!%p238_p2)  ;;  %v4276_v30 = vpack.c.bf16 (!%p238_p2), %v288_v27, %v287_v26  ;;  %v289_v32 = vld [vmem:[%s5608_s1 + $0x10] sm:$0xff] (!%p238_p2) }
   0xc   : > { %v4388_v31 = vpack.c.bf16 (!%p238_p2), %v3317_v29, %v3316_v28  ;;  %v290_v33 = vld [vmem:[%s5608_s1 + $0x18] sm:$0xff] (!%p238_p2)  ;;  %v3318_v35 = vld [vmem:[%s5608_s1 + $0x210] sm:$0xff] (!%p238_p2)  ;;  %v291_v42 = vld [vmem:[%s5608_s1 + $0x20] sm:$0xff] (!%p238_p2) }
   0xd   : > { %s5616_s25 = smov (!%p269_p3, %s3140_s25), 1  ;;  %4267 = vmatpush3.bf16.msra.mxu1 %v4264_v8  ;;  %v3319_v36 = vld [vmem:[%s5608_s1 + $0x218] sm:$0xff]  ;;  %v4280_v39 = vpack.c.bf16 %v290_v33, %v289_v32  ;;  %v292_v43 = vld [vmem:[%s5608_s1 + $0x28] sm:$0xff]  ;;  %v3320_v45 = vld [vmem:[%s5608_s1 + $0x220] sm:$0xff] }
   0xe   : > { %s4660_s29 = smul.u32 352, %s5616_s25  ;;  %4379 = vmatpush3.bf16.msra.mxu0 %v4376_v12  ;;  %4269 = vmatprep.subr.bf16.mxu1 %v4268_v16  ;;  %v4392_v41 = vpack.c.bf16 %v3319_v36, %v3318_v35  ;;  %v3321_v46 = vld [vmem:[%s5608_s1 + $0x228] sm:$0xff]  ;;  %v4284_v49 = vpack.c.bf16 %v292_v43, %v291_v42  ;;  %v293_v52 = vld [vmem:[%s5608_s1 + $0x30] sm:$0xff]  ;;  %v294_v53 = vld [vmem:[%s5608_s1 + $0x38] sm:$0xff]  ;;  %s3499_s19 = sshll.u32 %s5616_s25, 6 }
   0xf   : > { %4381 = vmatprep.subr.bf16.mxu0 %v4380_v17  ;;  %v4396_v51 = vpack.c.bf16 %v3321_v46, %v3320_v45  ;;  %v3322_v55 = vld [vmem:[%s5608_s1 + $0x230] sm:$0xff]  ;;  %v3323_v56 = vld [vmem:[%s5608_s1 + $0x238] sm:$0xff]  ;;  %v4288_v59 = vpack.c.bf16 %v294_v53, %v293_v52  ;;  %v3180_v62 = vld [vmem:[%s5608_s1 + $0x80] sm:$0xff] }
  0x10   : > { %s4788_s15 = scalar_lea.vmem %s5607_s0, %s4660_s29  ;;  %v4400_v61 = vpack.c.bf16 %v3323_v56, %v3322_v55  ;;  %v3181_v63 = vld [vmem:[%s5608_s1 + $0x88] sm:$0xff]  ;;  %v3340_v1 = vld [vmem:[%s5608_s1 + $0x240] sm:$0xff]  ;;  %v3182_v8 = vld [vmem:[%s5608_s1 + $0x90] sm:$0xff] }
  0x11   : > { %v3148_v22 = vld [vmem:[%s4788_s15 + $0x58] sm:$0xff]  ;;  %v3292_v23 = vld [vmem:[%s4788_s15 + $0x109] sm:$0xff]  ;;  %4271 = vmatpush3.bf16.msra.mxu1 %v4268_v16  ;;  %v3149_v34 = vld [vmem:[%s4788_s15 + $0x60] sm:$0xff]  ;;  %v4292_v5 = vpack.c.bf16 %v3181_v63, %v3180_v62 }
  0x12   : > { %3790 = vmatprep.mubr.msk.f32.mxu1 %vm313_vm0, %v3148_v22  ;;  %3986 = vmatprep.mubr.msk.f32.mxu0 %vm313_vm0, %v3292_v23  ;;  %v4823_v37 = vld [vmem:[%s4788_s15 + $0x111] sm:$0xff]  ;;  %v3150_v38 = vld [vmem:[%s4788_s15 + $0x68] sm:$0xff]  ;;  %v4828_v40 = vld [vmem:[%s4788_s15 + $0x119] sm:$0xff] }
  0x13   : > { %4383 = vmatpush3.bf16.msra.mxu0 %v4380_v17  ;;  %4273 = vmatprep.subr.bf16.mxu1 %v4272_v24  ;;  %v3151_v44 = vld [vmem:[%s4788_s15 + $0x70] sm:$0xff]  ;;  %v4847_v47 = vld [vmem:[%s4788_s15 + $0x121] sm:$0xff]  ;;  %v3152_v48 = vld [vmem:[%s4788_s15 + $0x78] sm:$0xff] }
  0x14   : > { %4385 = vmatprep.subr.bf16.mxu0 %v4384_v25  ;;  %v4854_v50 = vld [vmem:[%s4788_s15 + $0x129] sm:$0xff]  ;;  %v3153_v54 = vld [vmem:[%s4788_s15 + $0x80] sm:$0xff]  ;;  %v4873_v57 = vld [vmem:[%s4788_s15 + $0x131] sm:$0xff] }
  0x15   : > { %4275 = vmatpush3.bf16.msra.mxu1 %v4272_v24  ;;  %v3154_v58 = vld [vmem:[%s4788_s15 + $0x88] sm:$0xff]  ;;  %v4880_v60 = vld [vmem:[%s4788_s15 + $0x139] sm:$0xff]  ;;  %v3155_v0 = vld [vmem:[%s4788_s15 + $0x90] sm:$0x7f] }
  0x16   : > { %4277 = vmatprep.subr.bf16.mxu1 %v4276_v30  ;;  %v3341_v2 = vld [vmem:[%s5608_s1 + $0x248] sm:$0xff]  ;;  %v3299_v3 = vld [vmem:[%s4788_s15 + $0x141] sm:$0x7f]  ;;  %v3183_v9 = vld [vmem:[%s5608_s1 + $0x98] sm:$0xff] }
  0x17   : > { %4387 = vmatpush3.bf16.msra.mxu0 %v4384_v25  ;;  %v279_v4 = vld [vmem:[%s4788_s15] sm:$0xff]  ;;  %v4904_v6 = vld [vmem:[%s4788_s15 + $0x9] sm:$0xff]  ;;  %v4404_v7 = vpack.c.bf16 %v3341_v2, %v3340_v1  ;;  %v3343_v12 = vld [vmem:[%s5608_s1 + $0x258] sm:$0xff]  ;;  %v4296_v15 = vpack.c.bf16 %v3183_v9, %v3182_v8 }
  0x18   : > { %4389 = vmatprep.subr.bf16.mxu0 %v4388_v31  ;;  %3791 = vmatmul.mubr.msk.f32.vlgmr.msra.gmra.mrb[0].mxu1 %vm313_vm0, %v3149_v34  ;;  %v280_v10 = vld [vmem:[%s4788_s15 + $0x8] sm:$0xff]  ;;  %v3342_v11 = vld [vmem:[%s5608_s1 + $0x250] sm:$0xff]  ;;  %v4929_v16 = vld [vmem:[%s4788_s15 + $0x19] sm:$0xff] }
  0x19   : > { %4279 = vmatpush3.bf16.msra.mxu1 %v4276_v30  ;;  %3793 = vmatprep.mubr.msk.f32.mxu1 %vm313_vm0, %v3150_v38  ;;  %v4922_v13 = vld [vmem:[%s4788_s15 + $0x11] sm:$0xff]  ;;  %v4408_v17 = vpack.c.bf16 %v3343_v12, %v3342_v11  ;;  %v3184_v18 = vld [vmem:[%s5608_s1 + $0xa0] sm:$0xff]  ;;  %v3185_v19 = vld [vmem:[%s5608_s1 + $0xa8] sm:$0xff] }
  0x1a   : > { %3987 = vmatmul.mubr.msk.f32.vlgmr.msra.gmra.mrb[0].mxu0 %vm313_vm0, %v4823_v37  ;;  %4281 = vmatprep.subr.bf16.mxu1 %v4280_v39  ;;  %v281_v14 = vld [vmem:[%s4788_s15 + $0x10] sm:$0xff]  ;;  %v282_v20 = vld [vmem:[%s4788_s15 + $0x18] sm:$0xff]  ;;  %v3344_v21 = vld [vmem:[%s5608_s1 + $0x260] sm:$0xff]  ;;  %v4300_v25 = vpack.c.bf16 %v3185_v19, %v3184_v18 }
  0x1b   : > { %4391 = vmatpush3.bf16.msra.mxu0 %v4388_v31  ;;  %3989 = vmatprep.mubr.msk.f32.mxu0 %vm313_vm0, %v4828_v40  ;;  %v3345_v22 = vld [vmem:[%s5608_s1 + $0x268] sm:$0xff]  ;;  %v283_v24 = vld [vmem:[%s4788_s15 + $0x20] sm:$0xff]  ;;  %v3186_v28 = vld [vmem:[%s5608_s1 + $0xb0] sm:$0xff] }
  0x1c   : > { %3794 = vmatmul.mubr.msk.f32.gmra.mrb[2].mxu1 %vm313_vm0, %v3151_v44  ;;  %4393 = vmatprep.subr.bf16.mxu0 %v4392_v41  ;;  %v4948_v23 = vld [vmem:[%s4788_s15 + $0x21] sm:$0xff]  ;;  %v4955_v26 = vld [vmem:[%s4788_s15 + $0x29] sm:$0xff]  ;;  %v4412_v27 = vpack.c.bf16 %v3345_v22, %v3344_v21  ;;  %v3187_v29 = vld [vmem:[%s5608_s1 + $0xb8] sm:$0xff] }
  0x1d   : > { %4283 = vmatpush3.bf16.msra.mxu1 %v4280_v39  ;;  %3796 = vmatprep.mubr.msk.f32.mxu1 %vm313_vm0, %v3152_v48  ;;  %v284_v30 = vld [vmem:[%s4788_s15 + $0x28] sm:$0xff]  ;;  %v3346_v31 = vld [vmem:[%s5608_s1 + $0x270] sm:$0xff]  ;;  %v3347_v32 = vld [vmem:[%s5608_s1 + $0x278] sm:$0xff]  ;;  %v4304_v35 = vpack.c.bf16 %v3187_v29, %v3186_v28 }
  0x1e   : > { %3990 = vmatmul.mubr.msk.f32.gmra.mrb[2].mxu0 %vm313_vm0, %v4847_v47  ;;  %4285 = vmatprep.subr.bf16.mxu1 %v4284_v49  ;;  %v4974_v33 = vld [vmem:[%s4788_s15 + $0x31] sm:$0xff]  ;;  %v1504_v36 = vld [vmem:[%s4788_s15 + $0x39] sm:$0xff]  ;;  %v4416_v38 = vpack.c.bf16 %v3347_v32, %v3346_v31  ;;  %v3357_v44 = vld [vmem:[%s5608_s1 + $0x288] sm:$0xff] }
  0x1f   : > { %4395 = vmatpush3.bf16.msra.mxu0 %v4392_v41  ;;  %3992 = vmatprep.mubr.msk.f32.mxu0 %vm313_vm0, %v4854_v50  ;;  %v285_v34 = vld [vmem:[%s4788_s15 + $0x30] sm:$0xff]  ;;  %v3204_v39 = vld [vmem:[%s5608_s1 + $0xc0] sm:$0xff]  ;;  %v3205_v41 = vld [vmem:[%s5608_s1 + $0xc8] sm:$0xff] }
  0x20   : > { %3797 = vmatmul.mubr.msk.f32.gmra.mrb[4].mxu1 %vm313_vm0, %v3153_v54  ;;  %4397 = vmatprep.subr.bf16.mxu0 %v4396_v51  ;;  %v286_v42 = vld [vmem:[%s4788_s15 + $0x38] sm:$0x7f]  ;;  %v3356_v43 = vld [vmem:[%s5608_s1 + $0x280] sm:$0xff]  ;;  %v4308_v48 = vpack.c.bf16 %v3205_v41, %v3204_v39  ;;  %v3206_v52 = vld [vmem:[%s5608_s1 + $0xd0] sm:$0xff] }
  0x21   : > { %4287 = vmatpush3.bf16.msra.mxu1 %v4284_v49  ;;  %3799 = vmatprep.mubr.msk.f32.mxu1 %vm313_vm0, %v3154_v58  ;;  %v1505_v45 = vld [vmem:[%s4788_s15 + $0x41] sm:$0x7f]  ;;  %v3207_v53 = vld [vmem:[%s5608_s1 + $0xd8] sm:$0xff]  ;;  %v3358_v54 = vld [vmem:[%s5608_s1 + $0x290] sm:$0xff] }
  0x22   : > { %3993 = vmatmul.mubr.msk.f32.gmra.mrb[4].mxu0 %vm313_vm0, %v4873_v57  ;;  %4289 = vmatprep.subr.bf16.mxu1 %v4288_v59  ;;  %v572_v46 = vld [vmem:[%s4788_s15 + $0x1] sm:$0xff]  ;;  %v3359_v55 = vld [vmem:[%s5608_s1 + $0x298] sm:$0xff]  ;;  %v5019_v56 = vld [vmem:[%s4788_s15 + $0x69] sm:$0xff]  ;;  %v4312_v58 = vpack.c.bf16 %v3207_v53, %v3206_v52 }
  0x23   : > { %4399 = vmatpush3.bf16.msra.mxu0 %v4396_v51  ;;  %3995 = vmatprep.mubr.msk.f32.mxu0 %vm313_vm0, %v4880_v60  ;;  %v5002_v49 = vld [vmem:[%s4788_s15 + $0x61] sm:$0xff]  ;;  %v4420_v51 = vpack.c.bf16 %v3357_v44, %v3356_v43  ;;  %v5045_v2 = vld [vmem:[%s4788_s15 + $0x79] sm:$0xff]  ;;  %v3362_v8 = vld [vmem:[%s5608_s1 + $0x2b0] sm:$0xff] }
  0x24   : > { %3800 = vmatmul.mubr.msk.f32.gmra.mrb[6].mxu1 %vm313_vm0, %v3155_v0  ;;  %4401 = vmatprep.subr.bf16.mxu0 %v4400_v61  ;;  %v3208_v62 = vld [vmem:[%s5608_s1 + $0xe0] sm:$0xff]  ;;  %v3209_v63 = vld [vmem:[%s5608_s1 + $0xe8] sm:$0xff]  ;;  %v3363_v9 = vld [vmem:[%s5608_s1 + $0x2b8] sm:$0xff] }
  0x25   : > { %4291 = vmatpush3.bf16.msra.mxu1 %v4288_v59  ;;  %3818 = vmatprep.mubr.msk.f32.mxu1 %vm313_vm0, %v279_v4  ;;  %v5026_v59 = vld [vmem:[%s4788_s15 + $0x71] sm:$0xff]  ;;  %v3360_v0 = vld [vmem:[%s5608_s1 + $0x2a0] sm:$0xff]  ;;  %v3361_v1 = vld [vmem:[%s5608_s1 + $0x2a8] sm:$0xff] }
  0x26   : > { %3996 = vmatmul.mubr.msk.f32.gmra.mrb[6].mxu0 %vm313_vm0, %v3299_v3  ;;  %4293 = vmatprep.subr.bf16.mxu1 %v4292_v5  ;;  %v4316_v3 = vpack.c.bf16 %v3209_v63, %v3208_v62  ;;  %v5052_v4 = vld [vmem:[%s4788_s15 + $0x81] sm:$0xff]  ;;  %v3338_v12 = vld [vmem:[%s4788_s15 + $0x91] sm:$0xff]  ;;  %v3339_v19 = vld [vmem:[%s4788_s15 + $0x99] sm:$0x7f] }
  0x27   : > { %4403 = vmatpush3.bf16.msra.mxu0 %v4400_v61  ;;  %4014 = vmatprep.mubr.msk.f32.mxu0 %vm313_vm0, %v4904_v6  ;;  %v4424_v61 = vpack.c.bf16 %v3359_v55, %v3358_v54  ;;  %v3381_v18 = vld [vmem:[%s5608_s1 + $0x2c8] sm:$0xff]  ;;  %v1807_v28 = vld [vmem:[%s4788_s15 + $0x12] sm:$0xff]  ;;  %v3232_v32 = vld [vmem:[%s5608_s1 + $0x120] sm:$0xff] }
  0x28   : > { %3819 = vmatmul.mubr.msk.f32.vlgmr.msra.gmra.mrb[0].mxu1 %vm313_vm0, %v280_v10  ;;  %4405 = vmatprep.subr.bf16.mxu0 %v4404_v7  ;;  %v5071_v10 = vld [vmem:[%s4788_s15 + $0x89] sm:$0xff]  ;;  %v3235_v43 = vld [vmem:[%s5608_s1 + $0x138] sm:$0xff]  ;;  %v3252_v52 = vld [vmem:[%s5608_s1 + $0x140] sm:$0xff] }
  0x29   : > { %4295 = vmatpush3.bf16.msra.mxu1 %v4292_v5  ;;  %3821 = vmatprep.mubr.msk.f32.mxu1 %vm313_vm0, %v281_v14  ;;  %v4428_v5 = vpack.c.bf16 %v3361_v1, %v3360_v0  ;;  %v3228_v14 = vld [vmem:[%s5608_s1 + $0x100] sm:$0xff]  ;;  %v1806_v22 = vld [vmem:[%s4788_s15 + $0xa] sm:$0xff]  ;;  %v3255_v1 = vld [vmem:[%s5608_s1 + $0x158] sm:$0xff] }
  0x2a   : > { %4015 = vmatmul.mubr.msk.f32.vlgmr.msra.gmra.mrb[0].mxu0 %vm313_vm0, %v4922_v13  ;;  %4297 = vmatprep.subr.bf16.mxu1 %v4296_v15  ;;  %v1810_v39 = vld [vmem:[%s4788_s15 + $0x2a] sm:$0xff]  ;;  %v3404_v55 = vld [vmem:[%s5608_s1 + $0x300] sm:$0xff] }
  0x2b   : > { %4407 = vmatpush3.bf16.msra.mxu0 %v4404_v7  ;;  %4017 = vmatprep.mubr.msk.f32.mxu0 %vm313_vm0, %v4929_v16  ;;  %v3211_v7 = vld [vmem:[%s5608_s1 + $0xf8] sm:$0xff]  ;;  %v3386_v44 = vld [vmem:[%s5608_s1 + $0x2f0] sm:$0xff]  ;;  %v3253_v53 = vld [vmem:[%s5608_s1 + $0x148] sm:$0xff] }
  0x2c   : > { %3822 = vmatmul.mubr.msk.f32.gmra.mrb[2].mxu1 %vm313_vm0, %v282_v20  ;;  %4409 = vmatprep.subr.bf16.mxu0 %v4408_v17  ;;  %v3196_v20 = vld [vmem:[%s4788_s15 + $0x59] sm:$0xff]  ;;  %v3203_v54 = vld [vmem:[%s4788_s15 + $0x91] sm:$0x7f]  ;;  %v3372_v62 = vld [vmem:[%s4788_s15 + $0x62] sm:$0xff] }
  0x2d   : > { %4299 = vmatpush3.bf16.msra.mxu1 %v4296_v15  ;;  %3824 = vmatprep.mubr.msk.f32.mxu1 %vm313_vm0, %v283_v24  ;;  %v3229_v15 = vld [vmem:[%s5608_s1 + $0x108] sm:$0xff]  ;;  %v3230_v24 = vld [vmem:[%s5608_s1 + $0x110] sm:$0xff] }
  0x2e   : > { %4018 = vmatmul.mubr.msk.f32.gmra.mrb[2].mxu0 %vm313_vm0, %v4948_v23  ;;  %4301 = vmatprep.subr.bf16.mxu1 %v4300_v25  ;;  %v4324_v21 = vpack.c.bf16 %v3229_v15, %v3228_v14  ;;  %v3254_v0 = vld [vmem:[%s5608_s1 + $0x150] sm:$0xff]  ;;  %v3409_v14 = vld [vmem:[%s5608_s1 + $0x328] sm:$0xff]  ;;  %v3375_v15 = vld [vmem:[%s4788_s15 + $0x7a] sm:$0xff] }
  0x2f   : > { %4411 = vmatpush3.bf16.msra.mxu0 %v4408_v17  ;;  %4020 = vmatprep.mubr.msk.f32.mxu0 %vm313_vm0, %v4955_v26  ;;  %v3380_v17 = vld [vmem:[%s5608_s1 + $0x2c0] sm:$0xff] }
  0x30   : > { %3825 = vmatmul.mubr.msk.f32.gmra.mrb[4].mxu1 %vm313_vm0, %v284_v30  ;;  %4413 = vmatprep.subr.bf16.mxu0 %v4412_v27  ;;  %v1808_v30 = vld [vmem:[%s4788_s15 + $0x1a] sm:$0xff] }
  0x31   : > { %4303 = vmatpush3.bf16.msra.mxu1 %v4300_v25  ;;  %3827 = vmatprep.mubr.msk.f32.mxu1 %vm313_vm0, %v285_v34  ;;  %v3231_v25 = vld [vmem:[%s5608_s1 + $0x118] sm:$0xff]  ;;  %v3384_v34 = vld [vmem:[%s5608_s1 + $0x2e0] sm:$0xff] }
  0x32   : > { %4021 = vmatmul.mubr.msk.f32.gmra.mrb[4].mxu0 %vm313_vm0, %v4974_v33  ;;  %4305 = vmatprep.subr.bf16.mxu1 %v4304_v35  ;;  %v4328_v29 = vpack.c.bf16 %v3231_v25, %v3230_v24  ;;  %v3411_v24 = vld [vmem:[%s5608_s1 + $0x338] sm:$0xff]  ;;  %v3377_v25 = vld [vmem:[%s4788_s15 + $0x8a] sm:$0xff] }
  0x33   : > { %4415 = vmatpush3.bf16.msra.mxu0 %v4412_v27  ;;  %4023 = vmatprep.mubr.msk.f32.mxu0 %vm313_vm0, %v1504_v36  ;;  %v3383_v27 = vld [vmem:[%s5608_s1 + $0x2d8] sm:$0xff]  ;;  %v1809_v36 = vld [vmem:[%s4788_s15 + $0x22] sm:$0xff] }
  0x34   : > { %3828 = vmatmul.mubr.msk.f32.gmra.mrb[6].mxu1 %vm313_vm0, %v286_v42  ;;  %4417 = vmatprep.subr.bf16.mxu0 %v4416_v38  ;;  %v3234_v42 = vld [vmem:[%s5608_s1 + $0x130] sm:$0xff] }
  0x35   : > { %4307 = vmatpush3.bf16.msra.mxu1 %v4304_v35  ;;  %3846 = vmatprep.mubr.msk.f32.mxu1 %vm313_vm0, %v572_v46  ;;  %v3385_v35 = vld [vmem:[%s5608_s1 + $0x2e8] sm:$0xff]  ;;  %v1811_v46 = vld [vmem:[%s4788_s15 + $0x32] sm:$0xff] }
  0x36   : > { %4024 = vmatmul.mubr.msk.f32.gmra.mrb[6].mxu0 %vm313_vm0, %v1505_v45  ;;  %4309 = vmatprep.subr.bf16.mxu1 %v4308_v48  ;;  %v4444_v41 = vpack.c.bf16 %v3385_v35, %v3384_v34  ;;  %v3387_v45 = vld [vmem:[%s5608_s1 + $0x2f8] sm:$0xff]  ;;  %v3429_v34 = vld [vmem:[%s5608_s1 + $0x348] sm:$0xff] }
  0x37   : > { %4419 = vmatpush3.bf16.msra.mxu0 %v4416_v38  ;;  %4042 = vmatprep.mubr.msk.f32.mxu0 %vm313_vm0, %v5002_v49  ;;  %v3379_v35 = vld [vmem:[%s4788_s15 + $0x9a] sm:$0x7f] }
  0x38   : > { %3847 = vmatmul.mubr.msk.f32.vlgmr.msra.gmra.mrb[0].mxu1 %vm313_vm0, %v4904_v6  ;;  %4421 = vmatprep.subr.bf16.mxu0 %v4420_v51  ;;  %v3210_v6 = vld [vmem:[%s5608_s1 + $0xf0] sm:$0xff] }
  0x39   : > { %4311 = vmatpush3.bf16.msra.mxu1 %v4308_v48  ;;  %3849 = vmatprep.mubr.msk.f32.mxu1 %vm313_vm0, %v4922_v13  ;;  %v4320_v11 = vpack.c.bf16 %v3211_v7, %v3210_v6  ;;  %v4432_v13 = vpack.c.bf16 %v3363_v9, %v3362_v8  ;;  %v4336_v48 = vpack.c.bf16 %v3235_v43, %v3234_v42  ;;  %v3222_v6 = vld [vmem:[%s4788_s15 + $0xc0] sm:$0xff]  ;;  %v3374_v8 = vld [vmem:[%s4788_s15 + $0x72] sm:$0xff] }
  0x3a   : > { %4043 = vmatmul.mubr.msk.f32.vlgmr.msra.gmra.mrb[0].mxu0 %vm313_vm0, %v5019_v56  ;;  %4313 = vmatprep.subr.bf16.mxu1 %v4312_v58  ;;  %v4344_v7 = vpack.c.bf16 %v3255_v1, %v3254_v0  ;;  %v3278_v42 = vld [vmem:[%s5608_s1 + $0x190] sm:$0xff]  ;;  %v3279_v43 = vld [vmem:[%s5608_s1 + $0x198] sm:$0xff] }
  0x3b   : > { %4423 = vmatpush3.bf16.msra.mxu0 %v4420_v51  ;;  %4045 = vmatprep.mubr.msk.f32.mxu0 %vm313_vm0, %v5026_v59  ;;  %v4448_v51 = vpack.c.bf16 %v3387_v45, %v3386_v44  ;;  %v3245_v44 = vld [vmem:[%s4788_s15 + $0x110] sm:$0xff]  ;;  %v5311_v0 = vld [vmem:[%s4788_s15 + $0xd9] sm:$0xff] }
  0x3c   : > { %3850 = vmatmul.mubr.msk.f32.gmra.mrb[2].mxu1 %vm313_vm0, %v4929_v16  ;;  %4425 = vmatprep.subr.bf16.mxu0 %v4424_v61  ;;  %v579_v16 = vld [vmem:[%s4788_s15 + $0x39] sm:$0x7f]  ;;  %v3430_v45 = vld [vmem:[%s5608_s1 + $0x350] sm:$0xff] }
  0x3d   : > { %4315 = vmatpush3.bf16.msra.mxu1 %v4312_v58  ;;  %3852 = vmatprep.mubr.msk.f32.mxu1 %vm313_vm0, %v4948_v23  ;;  %v4436_v23 = vpack.c.bf16 %v3381_v18, %v3380_v17  ;;  %v1813_v58 = vld [vmem:[%s4788_s15 + $0x42] sm:$0x7f] }
  0x3e   : > { %4046 = vmatmul.mubr.msk.f32.gmra.mrb[2].mxu0 %vm313_vm0, %v5045_v2  ;;  %4317 = vmatprep.subr.bf16.mxu1 %v4316_v3  ;;  %v3376_v18 = vld [vmem:[%s4788_s15 + $0x82] sm:$0xff] }
  0x3f   : > { %4427 = vmatpush3.bf16.msra.mxu0 %v4424_v61  ;;  %4048 = vmatprep.mubr.msk.f32.mxu0 %vm313_vm0, %v5052_v4  ;;  %v4340_v61 = vpack.c.bf16 %v3253_v53, %v3252_v52  ;;  %v5285_v52 = vld [vmem:[%s4788_s15 + $0xc9] sm:$0xff] }
  0x40   : > { %3853 = vmatmul.mubr.msk.f32.gmra.mrb[4].mxu1 %vm313_vm0, %v4955_v26  ;;  %4429 = vmatprep.subr.bf16.mxu0 %v4428_v5  ;;  %v3382_v26 = vld [vmem:[%s5608_s1 + $0x2d0] sm:$0xff] }
  0x41   : > { %4319 = vmatpush3.bf16.msra.mxu1 %v4316_v3  ;;  %3855 = vmatprep.mubr.msk.f32.mxu1 %vm313_vm0, %v4974_v33  ;;  %v4440_v31 = vpack.c.bf16 %v3383_v27, %v3382_v26  ;;  %v3233_v33 = vld [vmem:[%s5608_s1 + $0x128] sm:$0xff]  ;;  %v3406_v3 = vld [vmem:[%s5608_s1 + $0x310] sm:$0xff]  ;;  %v3226_v26 = vld [vmem:[%s4788_s15 + $0xe0] sm:$0xff] }
  0x42   : > { %4049 = vmatmul.mubr.msk.f32.gmra.mrb[4].mxu0 %vm313_vm0, %v5071_v10  ;;  %4321 = vmatprep.subr.bf16.mxu1 %v4320_v11  ;;  %v4332_v38 = vpack.c.bf16 %v3233_v33, %v3232_v32  ;;  %v3227_v32 = vld [vmem:[%s4788_s15 + $0xe8] sm:$0x7f]  ;;  %v3428_v33 = vld [vmem:[%s5608_s1 + $0x340] sm:$0xff] }
  0x43   : > { %4431 = vmatpush3.bf16.msra.mxu0 %v4428_v5  ;;  %4051 = vmatprep.mubr.msk.f32.mxu0 %vm313_vm0, %v3338_v12  ;;  %v3373_v5 = vld [vmem:[%s4788_s15 + $0x6a] sm:$0xff] }
  0x44   : > { %3856 = vmatmul.mubr.msk.f32.gmra.mrb[6].mxu1 %vm313_vm0, %v579_v16  ;;  %4433 = vmatprep.subr.bf16.mxu0 %v4432_v13  ;;  %v3223_v12 = vld [vmem:[%s4788_s15 + $0xc8] sm:$0xff]  ;;  %v3224_v16 = vld [vmem:[%s4788_s15 + $0xd0] sm:$0xff] }
  0x45   : > { %4323 = vmatpush3.bf16.msra.mxu1 %v4320_v11  ;;  %3874 = vmatprep.mubr.msk.f32.mxu1 %vm313_vm0, %v3196_v20  ;;  %v3257_v11 = vld [vmem:[%s5608_s1 + $0x168] sm:$0xff]  ;;  %v3258_v20 = vld [vmem:[%s5608_s1 + $0x170] sm:$0xff] }
  0x46   : > { %4052 = vmatmul.mubr.msk.f32.gmra.mrb[6].mxu0 %vm313_vm0, %v3339_v19  ;;  %4325 = vmatprep.subr.bf16.mxu1 %v4324_v21 }
  0x47   : > { %4435 = vmatpush3.bf16.msra.mxu0 %v4432_v13  ;;  %4070 = vmatprep.mubr.msk.f32.mxu0 %vm313_vm0, %v1806_v22  ;;  %v3408_v13 = vld [vmem:[%s5608_s1 + $0x320] sm:$0xff]  ;;  %v3225_v22 = vld [vmem:[%s4788_s15 + $0xd8] sm:$0xff] }
  0x48   : > { %3875 = vmatmul.mubr.msk.f32.vlgmr.msra.gmra.mrb[0].mxu1 %vm313_vm0, %v5002_v49  ;;  %4437 = vmatprep.subr.bf16.mxu0 %v4436_v23  ;;  %v1812_v49 = vld [vmem:[%s4788_s15 + $0x3a] sm:$0xff]  ;;  %v4460_v19 = vpack.c.bf16 %v3409_v14, %v3408_v13  ;;  %v3453_v13 = vld [vmem:[%s5608_s1 + $0x388] sm:$0xff] }
  0x49   : > { %4327 = vmatpush3.bf16.msra.mxu1 %v4324_v21  ;;  %3877 = vmatprep.mubr.msk.f32.mxu1 %vm313_vm0, %v5019_v56  ;;  %v3405_v56 = vld [vmem:[%s5608_s1 + $0x308] sm:$0xff]  ;;  %v3259_v21 = vld [vmem:[%s5608_s1 + $0x178] sm:$0xff]  ;;  %v3251_v14 = vld [vmem:[%s4788_s15 + $0x140] sm:$0x7f] }
  0x4a   : > { %4071 = vmatmul.mubr.msk.f32.vlgmr.msra.gmra.mrb[0].mxu0 %vm313_vm0, %v1807_v28  ;;  %4329 = vmatprep.subr.bf16.mxu1 %v4328_v29  ;;  %v4452_v63 = vpack.c.bf16 %v3405_v56, %v3404_v55  ;;  %v4352_v27 = vpack.c.bf16 %v3259_v21, %v3258_v20  ;;  %v3378_v28 = vld [vmem:[%s4788_s15 + $0x92] sm:$0xff]  ;;  %v3281_v55 = vld [vmem:[%s5608_s1 + $0x1a8] sm:$0xff]  ;;  %v3247_v56 = vld [vmem:[%s4788_s15 + $0x120] sm:$0xff] }
  0x4b   : > { %4439 = vmatpush3.bf16.msra.mxu0 %v4436_v23  ;;  %4073 = vmatprep.mubr.msk.f32.mxu0 %vm313_vm0, %v1808_v30  ;;  %v3410_v23 = vld [vmem:[%s5608_s1 + $0x330] sm:$0xff]  ;;  %v3276_v30 = vld [vmem:[%s5608_s1 + $0x180] sm:$0xff] }
  0x4c   : > { %3878 = vmatmul.mubr.msk.f32.gmra.mrb[2].mxu1 %vm313_vm0, %v5026_v59  ;;  %4441 = vmatprep.subr.bf16.mxu0 %v4440_v31  ;;  %v3220_v59 = vld [vmem:[%s4788_s15 + $0xb0] sm:$0xff]  ;;  %v3456_v21 = vld [vmem:[%s5608_s1 + $0x3a0] sm:$0xff] }
  0x4d   : > { %4331 = vmatpush3.bf16.msra.mxu1 %v4328_v29  ;;  %3880 = vmatprep.mubr.msk.f32.mxu1 %vm313_vm0, %v5045_v2  ;;  %v3221_v2 = vld [vmem:[%s4788_s15 + $0xb8] sm:$0xff]  ;;  %v4464_v29 = vpack.c.bf16 %v3411_v24, %v3410_v23  ;;  %v4685_v23 = vmov 0   ;;  %v2745_v24 = vld [vmem:[%s5612_s5] sm:$0xff] }
  0x4e   : > { %4074 = vmatmul.mubr.msk.f32.gmra.mrb[2].mxu0 %vm313_vm0, %v1809_v36  ;;  %4333 = vmatprep.subr.bf16.mxu1 %v4332_v38  ;;  %v3244_v36 = vld [vmem:[%s4788_s15 + $0x108] sm:$0xff] }
  0x4f   : > { %4443 = vmatpush3.bf16.msra.mxu0 %v4440_v31  ;;  %4076 = vmatprep.mubr.msk.f32.mxu0 %vm313_vm0, %v1810_v39  ;;  %v3277_v31 = vld [vmem:[%s5608_s1 + $0x188] sm:$0xff]  ;;  %v5260_v39 = vld [vmem:[%s4788_s15 + $0xb9] sm:$0xff] }
  0x50   : > { %3881 = vmatmul.mubr.msk.f32.gmra.mrb[4].mxu1 %vm313_vm0, %v5052_v4  ;;  %4445 = vmatprep.subr.bf16.mxu0 %v4444_v41  ;;  %v3407_v4 = vld [vmem:[%s5608_s1 + $0x318] sm:$0xff] }
  0x51   : > { %4335 = vmatpush3.bf16.msra.mxu1 %v4332_v38  ;;  %3883 = vmatprep.mubr.msk.f32.mxu1 %vm313_vm0, %v5071_v10  ;;  %v4456_v9 = vpack.c.bf16 %v3407_v4, %v3406_v3  ;;  %v3256_v10 = vld [vmem:[%s5608_s1 + $0x160] sm:$0xff]  ;;  %v4356_v38 = vpack.c.bf16 %v3277_v31, %v3276_v30  ;;  %v3283_v3 = vld [vmem:[%s5608_s1 + $0x1b8] sm:$0xff]  ;;  %v3249_v4 = vld [vmem:[%s4788_s15 + $0x130] sm:$0xff] }
  0x52   : > { %4077 = vmatmul.mubr.msk.f32.gmra.mrb[4].mxu0 %vm313_vm0, %v1811_v46  ;;  %4337 = vmatprep.subr.bf16.mxu1 %v4336_v48  ;;  %v4348_v17 = vpack.c.bf16 %v3257_v11, %v3256_v10  ;;  %v3431_v46 = vld [vmem:[%s5608_s1 + $0x358] sm:$0xff]  ;;  %v3402_v10 = vld [vmem:[%s4788_s15 + $0xe9] sm:$0xff]  ;;  %v2749_v31 = vld [vmem:[%s5612_s5 + $0x20] sm:$0xff] }
  0x53   : > { %4447 = vmatpush3.bf16.msra.mxu0 %v4444_v41  ;;  %4079 = vmatprep.mubr.msk.f32.mxu0 %vm313_vm0, %v1812_v49  ;;  %v4468_v41 = vpack.c.bf16 %v3429_v34, %v3428_v33  ;;  %v3246_v49 = vld [vmem:[%s4788_s15 + $0x118] sm:$0xff]  ;;  %v4472_v53 = vpack.c.bf16 %v3431_v46, %v3430_v45  ;;  %v3275_v30 = vld [vmem:[%s4788_s15 + $0xe9] sm:$0x7f] }
  0x54   : > { %3884 = vmatmul.mubr.msk.f32.gmra.mrb[6].mxu1 %vm313_vm0, %v3203_v54  ;;  %4449 = vmatprep.subr.bf16.mxu0 %v4448_v51  ;;  %v3280_v54 = vld [vmem:[%s5608_s1 + $0x1a0] sm:$0xff]  ;;  %v2752_v45 = vld [vmem:[%s5612_s5 + $0x38] sm:$0x7f] }
  0x55   : > { %4339 = vmatpush3.bf16.msra.mxu1 %v4336_v48  ;;  %3902 = vmatprep.mubr.msk.f32.mxu1 %vm313_vm0, %v3220_v59  ;;  %v5278_v48 = vld [vmem:[%s4788_s15 + $0xc1] sm:$0xff]  ;;  %v3447_v46 = vld [vmem:[%s4788_s15 + $0xd2] sm:$0xff] }
  0x56   : > { %4080 = vmatmul.mubr.msk.f32.gmra.mrb[6].mxu0 %vm313_vm0, %v1813_v58  ;;  %4341 = vmatprep.subr.bf16.mxu1 %v4340_v61  ;;  %v3432_v58 = vld [vmem:[%s5608_s1 + $0x360] sm:$0xff]  ;;  %v3433_v59 = vld [vmem:[%s5608_s1 + $0x368] sm:$0xff] }
  0x57   : > { %4451 = vmatpush3.bf16.msra.mxu0 %v4448_v51  ;;  %4098 = vmatprep.mubr.msk.f32.mxu0 %vm313_vm0, %v3372_v62  ;;  %v4360_v51 = vpack.c.bf16 %v3279_v43, %v3278_v42  ;;  %v3248_v62 = vld [vmem:[%s4788_s15 + $0x128] sm:$0xff]  ;;  %v4476_v1 = vpack.c.bf16 %v3433_v59, %v3432_v58  ;;  %v3444_v33 = vld [vmem:[%s4788_s15 + $0xba] sm:$0xff]  ;;  %v3468_v58 = vld [vmem:[%s4788_s15 + $0x112] sm:$0xff] }
  0x58   : > { %3903 = vmatmul.mubr.msk.f32.vlgmr.msra.gmra.mrb[0].mxu1 %vm313_vm0, %v3221_v2  ;;  %4453 = vmatprep.subr.bf16.mxu0 %v4452_v63  ;;  %v3282_v2 = vld [vmem:[%s5608_s1 + $0x1b0] sm:$0xff]  ;;  %v3480_v43 = vld [vmem:[%s5608_s1 + $0x3e0] sm:$0xff] }
  0x59   : > { %4343 = vmatpush3.bf16.msra.mxu1 %v4340_v61  ;;  %3905 = vmatprep.mubr.msk.f32.mxu1 %vm313_vm0, %v3222_v6  ;;  %v5304_v61 = vld [vmem:[%s4788_s15 + $0xd1] sm:$0xff]  ;;  %v3469_v59 = vld [vmem:[%s4788_s15 + $0x11a] sm:$0xff] }
  0x5a   : > { %4099 = vmatmul.mubr.msk.f32.vlgmr.msra.gmra.mrb[0].mxu0 %vm313_vm0, %v3373_v5  ;;  %4345 = vmatprep.subr.bf16.mxu1 %v4344_v7  ;;  %v3434_v5 = vld [vmem:[%s5608_s1 + $0x370] sm:$0xff]  ;;  %v3435_v6 = vld [vmem:[%s5608_s1 + $0x378] sm:$0xff] }
  0x5b   : > { %4455 = vmatpush3.bf16.msra.mxu0 %v4452_v63  ;;  %4101 = vmatprep.mubr.msk.f32.mxu0 %vm313_vm0, %v3374_v8  ;;  %v4364_v63 = vpack.c.bf16 %v3281_v55, %v3280_v54  ;;  %v3250_v8 = vld [vmem:[%s4788_s15 + $0x138] sm:$0xff]  ;;  %v4480_v11 = vpack.c.bf16 %v3435_v6, %v3434_v5  ;;  %v3450_v54 = vld [vmem:[%s4788_s15 + $0xea] sm:$0xff]  ;;  %v4686_v6 = vmov 0.0|0.0  }
  0x5c   : > { %3906 = vmatmul.mubr.msk.f32.gmra.mrb[2].mxu1 %vm313_vm0, %v3223_v12  ;;  %4457 = vmatprep.subr.bf16.mxu0 %v4456_v9  ;;  %v3452_v12 = vld [vmem:[%s5608_s1 + $0x380] sm:$0xff] }
  0x5d   : > { %4347 = vmatpush3.bf16.msra.mxu1 %v4344_v7  ;;  %3908 = vmatprep.mubr.msk.f32.mxu1 %vm313_vm0, %v3224_v16  ;;  %v5330_v7 = vld [vmem:[%s4788_s15 + $0xe1] sm:$0xff]  ;;  %v3268_v16 = vld [vmem:[%s4788_s15 + $0xb1] sm:$0xff] }
  0x5e   : > { %4102 = vmatmul.mubr.msk.f32.gmra.mrb[2].mxu0 %vm313_vm0, %v3375_v15  ;;  %4349 = vmatprep.subr.bf16.mxu1 %v4348_v17  ;;  %v3403_v15 = vld [vmem:[%s4788_s15 + $0xf1] sm:$0x7f] }
  0x5f   : > { %4459 = vmatpush3.bf16.msra.mxu0 %v4456_v9  ;;  %4104 = vmatprep.mubr.msk.f32.mxu0 %vm313_vm0, %v3376_v18  ;;  %v4368_v9 = vpack.c.bf16 %v3283_v3, %v3282_v2  ;;  %v3454_v18 = vld [vmem:[%s5608_s1 + $0x390] sm:$0xff]  ;;  %v2755_v3 = vld [vmem:[%s5613_s6] sm:$0xff] }
  0x60   : > { %3909 = vmatmul.mubr.msk.f32.gmra.mrb[4].mxu1 %vm313_vm0, %v3225_v22  ;;  %4461 = vmatprep.subr.bf16.mxu0 %v4460_v19  ;;  %v3457_v22 = vld [vmem:[%s5608_s1 + $0x3a8] sm:$0xff] }
  0x61   : > { %4351 = vmatpush3.bf16.msra.mxu1 %v4348_v17  ;;  %3911 = vmatprep.mubr.msk.f32.mxu1 %vm313_vm0, %v3226_v26  ;;  %v4484_v17 = vpack.c.bf16 %v3453_v13, %v3452_v12  ;;  %v2747_v26 = vld [vmem:[%s5612_s5 + $0x10] sm:$0xff] }
  0x62   : > { %4105 = vmatmul.mubr.msk.f32.gmra.mrb[4].mxu0 %vm313_vm0, %v3377_v25  ;;  %4353 = vmatprep.subr.bf16.mxu1 %v4352_v27  ;;  %v3458_v25 = vld [vmem:[%s5608_s1 + $0x3b0] sm:$0xff] }
  0x63   : > { %4463 = vmatpush3.bf16.msra.mxu0 %v4460_v19  ;;  %4107 = vmatprep.mubr.msk.f32.mxu0 %vm313_vm0, %v3378_v28  ;;  %v3455_v19 = vld [vmem:[%s5608_s1 + $0x398] sm:$0xff]  ;;  %v3475_v2 = vld [vmem:[%s4788_s15 + $0x14a] sm:$0x7f] }
  0x64   : > { %3912 = vmatmul.mubr.msk.f32.gmra.mrb[6].mxu1 %vm313_vm0, %v3227_v32  ;;  %4465 = vmatprep.subr.bf16.mxu0 %v4464_v29  ;;  %v4488_v20 = vpack.c.bf16 %v3455_v19, %v3454_v18  ;;  %v3427_v32 = vld [vmem:[%s4788_s15 + $0x149] sm:$0x7f]  ;;  %v2761_v13 = vld [vmem:[%s5613_s6 + $0x30] sm:$0xff] }
  0x65   : > { %4355 = vmatpush3.bf16.msra.mxu1 %v4352_v27  ;;  %3930 = vmatprep.mubr.msk.f32.mxu1 %vm313_vm0, %v3244_v36  ;;  %v3426_v27 = vld [vmem:[%s4788_s15 + $0x141] sm:$0xff] }
  0x66   : > { %4108 = vmatmul.mubr.msk.f32.gmra.mrb[6].mxu0 %vm313_vm0, %v3379_v35  ;;  %4357 = vmatprep.subr.bf16.mxu1 %v4356_v38  ;;  %v3479_v35 = vld [vmem:[%s5608_s1 + $0x3d8] sm:$0xff]  ;;  %v2750_v36 = vld [vmem:[%s5612_s5 + $0x28] sm:$0xff] }
  0x67   : > { %4467 = vmatpush3.bf16.msra.mxu0 %v4464_v29  ;;  %4126 = vmatprep.mubr.msk.f32.mxu0 %vm313_vm0, %v5260_v39  ;;  %v3477_v29 = vld [vmem:[%s5608_s1 + $0x3c8] sm:$0xff] }
  0x68   : > { %3931 = vmatmul.mubr.msk.f32.vlgmr.msra.gmra.mrb[0].mxu1 %vm313_vm0, %v3245_v44  ;;  %4469 = vmatprep.subr.bf16.mxu0 %v4468_v41  ;;  %v3481_v44 = vld [vmem:[%s5608_s1 + $0x3e8] sm:$0xff] }
  0x69   : > { %4359 = vmatpush3.bf16.msra.mxu1 %v4356_v38  ;;  %3933 = vmatprep.mubr.msk.f32.mxu1 %vm313_vm0, %v3246_v49  ;;  %v2751_v38 = vld [vmem:[%s5612_s5 + $0x30] sm:$0xff]  ;;  %v4508_v49 = vpack.c.bf16 %v3481_v44, %v3480_v43 }
  0x6a   : > { %4127 = vmatmul.mubr.msk.f32.vlgmr.msra.gmra.mrb[0].mxu0 %vm313_vm0, %v5278_v48  ;;  %4361 = vmatprep.subr.bf16.mxu1 %v4360_v51 }
  0x6b   : > { %4471 = vmatpush3.bf16.msra.mxu0 %v4468_v41  ;;  %4129 = vmatprep.mubr.msk.f32.mxu0 %vm313_vm0, %v5285_v52  ;;  %v3446_v41 = vld [vmem:[%s4788_s15 + $0xca] sm:$0xff] }
  0x6c   : > { %3934 = vmatmul.mubr.msk.f32.gmra.mrb[2].mxu1 %vm313_vm0, %v3247_v56  ;;  %4473 = vmatprep.subr.bf16.mxu0 %v4472_v53  ;;  %v3451_v56 = vld [vmem:[%s4788_s15 + $0xf2] sm:$0x7f] }
  0x6d   : > { %4363 = vmatpush3.bf16.msra.mxu1 %v4360_v51  ;;  %3936 = vmatprep.mubr.msk.f32.mxu1 %vm313_vm0, %v3248_v62  ;;  %v3482_v51 = vld [vmem:[%s5608_s1 + $0x3f0] sm:$0xff] }
  0x6e   : > { %4130 = vmatmul.mubr.msk.f32.gmra.mrb[2].mxu0 %vm313_vm0, %v5304_v61  ;;  %4365 = vmatprep.subr.bf16.mxu1 %v4364_v63  ;;  %v3471_v62 = vld [vmem:[%s4788_s15 + $0x12a] sm:$0xff] }
  0x6f   : > { %4475 = vmatpush3.bf16.msra.mxu0 %v4472_v53  ;;  %4132 = vmatprep.mubr.msk.f32.mxu0 %vm313_vm0, %v5311_v0  ;;  %v3449_v53 = vld [vmem:[%s4788_s15 + $0xe2] sm:$0xff] }
  0x70   : > { %3937 = vmatmul.mubr.msk.f32.gmra.mrb[4].mxu1 %vm313_vm0, %v3249_v4  ;;  %4477 = vmatprep.subr.bf16.mxu0 %v4476_v1  ;;  %v2756_v4 = vld [vmem:[%s5613_s6 + $0x8] sm:$0xff] }
  0x71   : > { %4367 = vmatpush3.bf16.msra.mxu1 %v4364_v63  ;;  %3939 = vmatprep.mubr.msk.f32.mxu1 %vm313_vm0, %v3250_v8  ;;  %v3472_v63 = vld [vmem:[%s4788_s15 + $0x132] sm:$0xff]  ;;  %v5487_v5 = vpack.c.bf16 %v2756_v4, %v2755_v3 }
  0x72   : > { %4133 = vmatmul.mubr.msk.f32.gmra.mrb[4].mxu0 %vm313_vm0, %v5330_v7  ;;  %4369 = vmatprep.subr.bf16.mxu1 %v4368_v9  ;;  %v2758_v8 = vld [vmem:[%s5613_s6 + $0x18] sm:$0xff] }
  0x73   : > { %4479 = vmatpush3.bf16.msra.mxu0 %v4476_v1  ;;  %4135 = vmatprep.mubr.msk.f32.mxu0 %vm313_vm0, %v3402_v10  ;;  %v3474_v1 = vld [vmem:[%s4788_s15 + $0x142] sm:$0xff] }
  0x74   : > { %3940 = vmatmul.mubr.msk.f32.gmra.mrb[6].mxu1 %vm313_vm0, %v3251_v14  ;;  %4481 = vmatprep.subr.bf16.mxu0 %v4480_v11  ;;  %v2759_v10 = vld [vmem:[%s5613_s6 + $0x20] sm:$0xff]  ;;  %v2762_v14 = vld [vmem:[%s5613_s6 + $0x38] sm:$0xff] }
  0x75   : > { %4371 = vmatpush3.bf16.msra.mxu1 %v4368_v9  ;;  %3958 = vmatprep.mubr.msk.f32.mxu1 %vm313_vm0, %v3268_v16  ;;  %v4688_v16 = vmov 0.0  }
  0x76   : > { %4136 = vmatmul.mubr.msk.f32.gmra.mrb[6].mxu0 %vm313_vm0, %v3403_v15  ;;  %4673 = vset.pattern.permute.xlu0 %v4685_v23  ;;  %v5518_v15 = vpack.c.bf16 %v2762_v14, %v2761_v13 }
  0x77   : > { %4483 = vmatpush3.bf16.msra.mxu0 %v4480_v11  ;;  %4154 = vmatprep.mubr.msk.f32.mxu0 %vm313_vm0, %v4823_v37  ;;  %v4492_v37 = vpack.c.bf16 %v3457_v22, %v3456_v21  ;;  %v2760_v11 = vld [vmem:[%s5613_s6 + $0x28] sm:$0xff] }
  0x78   : > { %4485 = vmatprep.subr.bf16.mxu0 %v4484_v17  ;;  %3959 = vmatmul.mubr.msk.f32.vlgmr.msra.gmra.mrb[0].mxu1 %vm313_vm0, %v5260_v39  ;;  %v3445_v39 = vld [vmem:[%s4788_s15 + $0xc2] sm:$0xff]  ;;  %v5508_v12 = vpack.c.bf16 %v2760_v11, %v2759_v10 }
  0x79   : > { %3961 = vmatprep.mubr.msk.f32.mxu1 %vm313_vm0, %v5278_v48  ;;  %2765 = vperm.xlu0 %4673, %v2745_v24   ;;  %v3448_v48 = vld [vmem:[%s4788_s15 + $0xda] sm:$0xff] }
  0x7a   : > { %4155 = vmatmul.mubr.msk.f32.vlgmr.msra.gmra.mrb[0].mxu0 %vm313_vm0, %v4828_v40  ;;  %v3459_v40 = vld [vmem:[%s5608_s1 + $0x3b8] sm:$0xff]  ;;  %4674 = vset.pattern.permute.xlu1 %v4685_v23 }
  0x7b   : > { %4487 = vmatpush3.bf16.msra.mxu0 %v4484_v17  ;;  %4157 = vmatprep.mubr.msk.f32.mxu0 %vm313_vm0, %v4847_v47  ;;  %v2746_v47 = vld [vmem:[%s5612_s5 + $0x8] sm:$0xff]  ;;  %v4496_v28 = vpack.c.bf16 %v3459_v40, %v3458_v25 }
  0x7c   : > { %4489 = vmatprep.subr.bf16.mxu0 %v4488_v20  ;;  %3962 = vmatmul.mubr.msk.f32.gmra.mrb[2].mxu1 %vm313_vm0, %v5285_v52  ;;  %v3483_v52 = vld [vmem:[%s5608_s1 + $0x3f8] sm:$0xff] }
  0x7d   : > { %3964 = vmatprep.mubr.msk.f32.mxu1 %vm313_vm0, %v5304_v61  ;;  %2775 = vperm.xlu1 %4674, %v2747_v26   ;;  %v4512_v55 = vpack.c.bf16 %v3483_v52, %v3482_v51  ;;  %v3470_v61 = vld [vmem:[%s4788_s15 + $0x122] sm:$0xff]  ;;  %v3492_v26 = vld [vmem:[%s5609_s2] ss:$0 sm:$0xff] }
  0x7e   : > { %4158 = vmatmul.mubr.msk.f32.gmra.mrb[2].mxu0 %vm313_vm0, %v4854_v50  ;;  %v3476_v50 = vld [vmem:[%s5608_s1 + $0x3c0] sm:$0xff]  ;;  %2770 = vperm.xlu0 %4673, %v2746_v47  }
  0x7f   : > { %4491 = vmatpush3.bf16.msra.mxu0 %v4488_v20  ;;  %4160 = vmatprep.mubr.msk.f32.mxu0 %vm313_vm0, %v4873_v57  ;;  %v2748_v57 = vld [vmem:[%s5612_s5 + $0x18] sm:$0xff]  ;;  %v4500_v34 = vpack.c.bf16 %v3477_v29, %v3476_v50 }
  0x80   : > { %4493 = vmatprep.subr.bf16.mxu0 %v4492_v37  ;;  %3965 = vmatmul.mubr.msk.f32.gmra.mrb[4].mxu1 %vm313_vm0, %v5311_v0  ;;  %v3473_v0 = vld [vmem:[%s4788_s15 + $0x13a] sm:$0xff]  ;;  %s278_s15 = scalar_lea.vmem %s5614_s7, %s3499_s19 }
  0x81   : > { %3967 = vmatprep.mubr.msk.f32.mxu1 %vm313_vm0, %v5330_v7  ;;  %2780 = vperm.xlu1 %4674, %v2748_v57   ;;  %v2757_v7 = vld [vmem:[%s5613_s6 + $0x10] sm:$0xff] }
  0x82   : > { %4161 = vmatmul.mubr.msk.f32.gmra.mrb[4].mxu0 %vm313_vm0, %v4880_v60  ;;  %v3478_v60 = vld [vmem:[%s5608_s1 + $0x3d0] sm:$0xff]  ;;  %2785 = vperm.xlu0 %4673, %v2749_v31   ;;  %v5498_v9 = vpack.c.bf16 %v2758_v8, %v2757_v7 }
  0x83   : > { %4495 = vmatpush3.bf16.msra.mxu0 %v4492_v37  ;;  %4163 = vmatprep.mubr.msk.f32.mxu0 %vm313_vm0, %v3426_v27  ;;  %v4504_v42 = vpack.c.bf16 %v3479_v35, %v3478_v60 }
  0x84   : > { %4497 = vmatprep.subr.bf16.mxu0 %v4496_v28  ;;  %3968 = vmatmul.mubr.msk.f32.gmra.mrb[6].mxu1 %vm313_vm0, %v3275_v30 }
  0x85   : > { %2790 = vperm.xlu1 %4674, %v2750_v36   ;;  %4516 = vmatprep.subr.bf16.mxu1 %v4686_v6 }
  0x86   : > { %4164 = vmatmul.mubr.msk.f32.gmra.mrb[6].mxu0 %vm313_vm0, %v3427_v32  ;;  %2795 = vperm.xlu0 %4673, %v2751_v38  }
  0x87   : > { %4499 = vmatpush3.bf16.msra.mxu0 %v4496_v28  ;;  %4182 = vmatprep.mubr.msk.f32.mxu0 %vm313_vm0, %v3444_v33 }
  0x88   : > { %4501 = vmatprep.subr.bf16.mxu0 %v4500_v34  ;;  %4518 = vmatpush3.bf16.msra.mxu1 %v5487_v5 }
  0x89   : > { %2800 = vperm.xlu1 %4674, %v2752_v45   ;;  %4519 = vmatprep.subr.bf16.mxu1 %v4686_v6 }
  0x8a   : > { %4183 = vmatmul.mubr.msk.f32.vlgmr.msra.gmra.mrb[0].mxu0 %vm313_vm0, %v3445_v39  ;;  %4238 = vmatprep.mubr.msk.f32.mxu1 %vm4687_vm1, %v4688_v16 }
  0x8b   : > { %4503 = vmatpush3.bf16.msra.mxu0 %v4500_v34  ;;  %4185 = vmatprep.mubr.msk.f32.mxu0 %vm313_vm0, %v3446_v41 }
  0x8c   : > { %4505 = vmatprep.subr.bf16.mxu0 %v4504_v42  ;;  %4521 = vmatpush3.bf16.msra.mxu1 %v5498_v9 }
  0x8d   : > { %4522 = vmatprep.subr.bf16.mxu1 %v4686_v6 }
  0x8e   : > { %4186 = vmatmul.mubr.msk.f32.gmra.mrb[2].mxu0 %vm313_vm0, %v3447_v46 }
  0x8f   : > { %4507 = vmatpush3.bf16.msra.mxu0 %v4504_v42  ;;  %4188 = vmatprep.mubr.msk.f32.mxu0 %vm313_vm0, %v3448_v48 }
  0x90   : > { %4509 = vmatprep.subr.bf16.mxu0 %v4508_v49  ;;  %4524 = vmatpush3.bf16.msra.mxu1 %v5508_v12 }
  0x91   : > { %4525 = vmatprep.subr.bf16.mxu1 %v4686_v6 }
  0x92   : > { %4189 = vmatmul.mubr.msk.f32.gmra.mrb[4].mxu0 %vm313_vm0, %v3449_v53 }
  0x93   : > { %4511 = vmatpush3.bf16.msra.mxu0 %v4508_v49  ;;  %4191 = vmatprep.mubr.msk.f32.mxu0 %vm313_vm0, %v3450_v54 }
  0x94   : > { %4513 = vmatprep.subr.bf16.mxu0 %v4512_v55  ;;  %4527 = vmatpush3.bf16.msra.mxu1 %v5518_v15 }
  0x95   : > { %4528 = vmatprep.subr.bf16.mxu1 %v4686_v6 }
  0x96   : > { %4192 = vmatmul.mubr.msk.f32.gmra.mrb[6].mxu0 %vm313_vm0, %v3451_v56 }
  0x97   : > { %4515 = vmatpush3.bf16.msra.mxu0 %v4512_v55  ;;  %4210 = vmatprep.mubr.msk.f32.mxu0 %vm313_vm0, %v3468_v58 }
  0x9a   : > { %4211 = vmatmul.mubr.msk.f32.vlgmr.msra.gmra.mrb[0].mxu0 %vm313_vm0, %v3469_v59 }
  0x9b   : > { %4213 = vmatprep.mubr.msk.f32.mxu0 %vm313_vm0, %v3470_v61 }
  0x9e   : > { %4214 = vmatmul.mubr.msk.f32.gmra.mrb[2].mxu0 %vm313_vm0, %v3471_v62 }
  0x9f   : > { %4216 = vmatprep.mubr.msk.f32.mxu0 %vm313_vm0, %v3472_v63 }
  0xa2   : > { %4217 = vmatmul.mubr.msk.f32.gmra.mrb[4].mxu0 %vm313_vm0, %v3473_v0 }
  0xa3   : > { %4219 = vmatprep.mubr.msk.f32.mxu0 %vm313_vm0, %v3474_v1 }
  0xa6   : > { %4220 = vmatmul.mubr.msk.f32.gmra.mrb[6].mxu0 %vm313_vm0, %v3475_v2 }
  0xf8   : > { %v5524_v37 = vpop.permute.xlu0 %2765 }
  0xfc   : > { %v5526_v25 = vpop.permute.xlu1 %2775 }
  0xfd   : > { %v5533_v29 = vpop.permute.xlu0 %2770 }
 0x100   : > { %v5537_v31 = vpop.permute.xlu1 %2780 }
 0x101   : > { %v2786_v49 = vpop.permute.xlu0 %2785 }
 0x104   : > { %v5550_v52 = vpop.permute.xlu1 %2790 }
 0x105   : > { %v2796_v8 = vpop.permute.xlu0 %2795 }
 0x108   : > { %v2801_v10 = vpop.permute.xlu1 %2800 }
 0x14b   : > { %v3960_v17 = vpop.f32.mrb[0].mxu1 }
 0x14c   : > { %v1297_v18 = vpop.f32.mrb[1].mxu1 }
 0x14f   : > { %v3963_v19 = vpop.f32.mrb[2].mxu1 }
 0x150   : > { %v1307_v20 = vpop.f32.mrb[3].mxu1 }
 0x153   : > { %v3966_v21 = vpop.f32.mrb[4].mxu1 }
 0x154   : > { %v1317_v22 = vpop.f32.mrb[5].mxu1 }
 0x157   : > { %v3969_v23 = vpop.f32.mrb[6].mxu1 }
 0x158   : > { %v1327_v24 = vpop.f32.mrb[7].mxu1 }
 0x16d   : > { %v4212_v40 = vpop.f32.mrb[0].mxu0 }
 0x16e   : > { %v4540_v47 = vadd.f32 %v4212_v40, %v3960_v17  ;;  %v2683_v27 = vpop.f32.mrb[1].mxu0 }
 0x16f   : > { %v4541_v28 = vadd.f32 %v2683_v27, %v1297_v18 }
 0x170   : > { %v5531_v50 = vadd.f32 %v4540_v47, %v3492_v26 }
 0x171   : > { %v5535_v57 = vadd.f32 %v4541_v28, %v3492_v26  ;;  %v4215_v30 = vpop.f32.mrb[2].mxu0  ;;  %v2906_v28 = vlaneseq }
 0x172   : > { %v2804_v32 = vmul.f32 %v5533_v29, %v5531_v50  ;;  %v4542_v33 = vadd.f32 %v4215_v30, %v3963_v19  ;;  %v2693_v34 = vpop.f32.mrb[3].mxu0 }
 0x173   : > { %v2803_v60 = vmul.f32 %v5524_v37, %v5535_v57  ;;  %v4543_v35 = vadd.f32 %v2693_v34, %v1307_v20  ;;  %v2907_v30 = vshrl.u32 %v2906_v28, 7 }
 0x174   : > { %v5543_v36 = vadd.f32 %v4542_v33, %v3492_v26  ;;  %v2812_v38 = vsel %vm313_vm0, %v2804_v32, 0.0 }
 0x175   : > { %v2811_v39 = vsel %vm313_vm0, %v2803_v60, 0.0  ;;  %v2739_v41 = vadd.f32 %v4543_v35, %v3492_v26  ;;  %v4218_v42 = vpop.f32.mrb[4].mxu0  ;;  %v2908_v32 = vsub.s32 0, %v2907_v30 }
 0x176   : > { %v4544_v43 = vadd.f32 %v4218_v42, %v3966_v21  ;;  %v2703_v44 = vpop.f32.mrb[5].mxu0  ;;  %v2806_v45 = vmul.f32 %v5537_v31, %v5543_v36  ;;  %v2813_v51 = vadd.f32 %v2812_v38, %v2811_v39 }
 0x177   : > { %v2805_v46 = vmul.f32 %v5526_v25, %v2739_v41  ;;  %v4545_v48 = vadd.f32 %v2703_v44, %v1317_v22 }
 0x178   : > { %v2742_v53 = vadd.f32 %v4544_v43, %v3492_v26  ;;  %v2816_v62 = vsel %vm313_vm0, %v2806_v45, 0.0 }
 0x179   : > { %v2814_v54 = vsel %vm313_vm0, %v2805_v46, 0.0  ;;  %v2741_v55 = vadd.f32 %v4545_v48, %v3492_v26  ;;  %v4221_v56 = vpop.f32.mrb[6].mxu0 }
 0x17a   : > { %v2815_v58 = vadd.f32 %v2814_v54, %v2813_v51  ;;  %v4546_v59 = vadd.f32 %v4221_v56, %v3969_v23  ;;  %v2713_v61 = vpop.f32.mrb[7].mxu0  ;;  %v2808_v63 = vmul.f32 %v5550_v52, %v2742_v53 }
 0x17b   : > { %v2807_v0 = vmul.f32 %v2786_v49, %v2741_v55  ;;  %v4547_v1 = vadd.f32 %v2713_v61, %v1327_v24 }
 0x17c   : > { %v2817_v2 = vadd.f32 %v2816_v62, %v2815_v58  ;;  %v2744_v3 = vadd.f32 %v4546_v59, %v3492_v26  ;;  %v2820_v13 = vsel %vm313_vm0, %v2808_v63, 0.0 }
 0x17d   : > { %v2818_v4 = vsel %vm313_vm0, %v2807_v0, 0.0  ;;  %v2743_v7 = vadd.f32 %v4547_v1, %v3492_v26 }
 0x17e   : > { %v2819_v11 = vadd.f32 %v2818_v4, %v2817_v2  ;;  %v2810_v14 = vmul.f32 %v2801_v10, %v2744_v3 }
 0x17f   : > { %v2809_v17 = vmul.f32 %v2796_v8, %v2743_v7 }
 0x180   : > { %v2821_v18 = vadd.f32 %v2820_v13, %v2819_v11  ;;  %v2825_v21 = vsel %vm2824_vm2, %v2810_v14, 0.0 }
 0x181   : > { %v2822_v19 = vsel %vm313_vm0, %v2809_v17, 0.0 }
 0x182   : > { %v2823_v20 = vadd.f32 %v2822_v19, %v2821_v18 }
 0x184   : > { %v2826_v22 = vadd.f32 %v2825_v21, %v2823_v20  ;;  %v3495_v21 = vld [vmem:[%s5610_s3] ss:$0 sm:$0xff] }
 0x186   : > { %v2827_v23 = vrot.slane %v2826_v22, 4 }
 0x188   : > { %v2828_v24 = vadd.f32 %v2827_v23, %v2826_v22 }
 0x18a   : > { %v2829_v40 = vrot.slane %v2828_v24, 2 }
 0x18c   : > { %v2830_v47 = vadd.f32 %v2829_v40, %v2828_v24 }
 0x18e   : > { %v2831_v26 = vrot.slane %v2830_v47, 1 }
 0x190   : > { %v2832_v27 = vadd.f32 %v2831_v26, %v2830_v47  ;;  %v3496_v47 = vld [vmem:[%s5611_s4] ss:$0 sm:$0xff] }
 0x192   : > { %4239 = vmatmul.mubr.msk.f32.vlgmr.msra.gmra.mrb[8].mxu1 %vm313_vm0, %v2832_v27 }
 0x193   : > { %4530 = vmatpush3.bf16.msra.mxu1 %v5487_v5  ;;  %4257 = vmatprep.mubr.msk.f32.mxu1 %vm4687_vm1, %v4688_v16 }
 0x194   : > { %4531 = vmatprep.subr.bf16.mxu1 %v4686_v6 }
 0x197   : > { %4533 = vmatpush3.bf16.msra.mxu1 %v5498_v9 }
 0x198   : > { %4534 = vmatprep.subr.bf16.mxu1 %v4686_v6 }
 0x19b   : > { %4536 = vmatpush3.bf16.msra.mxu1 %v5508_v12 }
 0x19c   : > { %4537 = vmatprep.subr.bf16.mxu1 %v4686_v6 }
 0x19f   : > { %4539 = vmatpush3.bf16.msra.mxu1 %v5518_v15 }
 0x265   : > { %v2902_v33 = vpop.f32.mrb[8].mxu1 }
 0x266   : > { %v2909_v5 = vrot.slane %v2902_v33, %v2908_v32  ;;  %v4240_v34 = vpop.f32.mrb[9].mxu1 }
 0x268   : > { %v2910_v16 = vsub.f32 %v5535_v57, %v2909_v5  ;;  %v2911_v60 = vsub.f32 %v5531_v50, %v2909_v5  ;;  %v2912_v35 = vsub.f32 %v2739_v41, %v2909_v5  ;;  %v2913_v9 = vsub.f32 %v5543_v36, %v2909_v5 }
 0x269   : > { %v2914_v38 = vsub.f32 %v2741_v55, %v2909_v5  ;;  %v2915_v39 = vsub.f32 %v2742_v53, %v2909_v5  ;;  %v2916_v43 = vsub.f32 %v2743_v7, %v2909_v5  ;;  %v2917_v48 = vsub.f32 %v2744_v3, %v2909_v5 }
 0x26a   : > { %v2918_v12 = vmul.f32 %v2910_v16, %v5524_v37  ;;  %v2919_v6 = vmul.f32 %v2911_v60, %v5533_v29  ;;  %v2920_v15 = vmul.f32 %v2912_v35, %v5526_v25  ;;  %v2921_v42 = vmul.f32 %v2913_v9, %v5537_v31 }
 0x26b   : > { %v2922_v44 = vmul.f32 %v2914_v38, %v2786_v49  ;;  %v2923_v50 = vmul.f32 %v2915_v39, %v5550_v52  ;;  %v2924_v53 = vmul.f32 %v2916_v43, %v2796_v8  ;;  %v2925_v31 = vmul.f32 %v2917_v48, %v2801_v10 }
 0x26c   : > { %v2926_v45 = vmul.f32 %v2918_v12, %v2918_v12  ;;  %v2927_v46 = vmul.f32 %v2919_v6, %v2919_v6  ;;  %v2928_v57 = vmul.f32 %v2920_v15, %v2920_v15  ;;  %v2929_v41 = vmul.f32 %v2921_v42, %v2921_v42 }
 0x26d   : > { %v2930_v29 = vmul.f32 %v2922_v44, %v2922_v44  ;;  %v2931_v55 = vmul.f32 %v2923_v50, %v2923_v50  ;;  %v2932_v58 = vmul.f32 %v2924_v53, %v2924_v53  ;;  %v2933_v61 = vmul.f32 %v2925_v31, %v2925_v31 }
 0x26e   : > { %v2934_v36 = vsel %vm313_vm0, %v2926_v45, 0.0  ;;  %v2935_v51 = vsel %vm313_vm0, %v2927_v46, 0.0  ;;  %v2937_v25 = vsel %vm313_vm0, %v2928_v57, 0.0  ;;  %v2939_v49 = vsel %vm313_vm0, %v2929_v41, 0.0 }
 0x26f   : > { %v2936_v37 = vadd.f32 %v2935_v51, %v2934_v36  ;;  %v2941_v59 = vsel %vm313_vm0, %v2930_v29, 0.0  ;;  %v2943_v62 = vsel %vm313_vm0, %v2931_v55, 0.0  ;;  %v2945_v0 = vsel %vm313_vm0, %v2932_v58, 0.0 }
 0x270   : > { %v2947_v2 = vsel %vm2824_vm2, %v2933_v61, 0.0 }
 0x271   : > { %v2938_v54 = vadd.f32 %v2937_v25, %v2936_v37 }
 0x273   : > { %v2940_v56 = vadd.f32 %v2939_v49, %v2938_v54 }
 0x275   : > { %v2942_v52 = vadd.f32 %v2941_v59, %v2940_v56 }
 0x277   : > { %v2944_v63 = vadd.f32 %v2943_v62, %v2942_v52 }
 0x279   : > { %v2946_v1 = vadd.f32 %v2945_v0, %v2944_v63 }
 0x27b   : > { %v2948_v3 = vadd.f32 %v2947_v2, %v2946_v1 }
 0x27d   : > { %v2949_v4 = vrot.slane %v2948_v3, 4 }
 0x27f   : > { %v2950_v7 = vadd.f32 %v2949_v4, %v2948_v3 }
 0x281   : > { %v2951_v8 = vrot.slane %v2950_v7, 2 }
 0x283   : > { %v2952_v10 = vadd.f32 %v2951_v8, %v2950_v7 }
 0x285   : > { %v2953_v11 = vrot.slane %v2952_v10, 1 }
 0x287   : > { %v2954_v13 = vadd.f32 %v2953_v11, %v2952_v10 }
 0x289   : > { %4258 = vmatmul.mubr.msk.f32.vlgmr.msra.gmra.mrb[10].mxu1 %vm313_vm0, %v2954_v13 }
 0x35c   : > { %v3024_v14 = vpop.f32.mrb[10].mxu1 }
 0x35d   : > { %v3025_v17 = vadd.f32 1e-05, %v3024_v14  ;;  %v4259_v18 = vpop.f32.mrb[11].mxu1 }
 0x35f   : > { %4675 = vrsqrt.f32 %v3025_v17 }
 0x369   : > { %v4676_v19 = vpop.eup %4675 }
 0x36a   : > { %v3032_v20 = vrot.slane %v4676_v19, %v2908_v32 }
 0x36c   : > { %v3033_v22 = vmul.f32 %v3032_v20, %v2910_v16  ;;  %v3034_v23 = vmul.f32 %v3032_v20, %v2911_v60  ;;  %v3035_v24 = vmul.f32 %v3032_v20, %v2912_v35  ;;  %v3036_v40 = vmul.f32 %v3032_v20, %v2913_v9 }
 0x36d   : > { %v3037_v26 = vmul.f32 %v3032_v20, %v2914_v38  ;;  %v3038_v27 = vmul.f32 %v3032_v20, %v2915_v39  ;;  %v3039_v28 = vmul.f32 %v3032_v20, %v2916_v43  ;;  %v3040_v30 = vmul.f32 %v3032_v20, %v2917_v48 }
 0x36e   : > { %v3047_v33 = vmul.f32 %v3495_v21, %v3033_v22  ;;  %v3048_v5 = vmul.f32 %v3495_v21, %v3034_v23  ;;  %v3049_v32 = vmul.f32 %v3495_v21, %v3035_v24  ;;  %v3050_v34 = vmul.f32 %v3495_v21, %v3036_v40 }
 0x36f   : > { %v3051_v12 = vmul.f32 %v3495_v21, %v3037_v26  ;;  %v3052_v6 = vmul.f32 %v3495_v21, %v3038_v27  ;;  %v3053_v15 = vmul.f32 %v3495_v21, %v3039_v28  ;;  %v3054_v16 = vmul.f32 %v3495_v21, %v3040_v30 }
 0x370   : > { %v3061_v60 = vadd.f32 %v3496_v47, %v3047_v33  ;;  %v3062_v35 = vadd.f32 %v3496_v47, %v3048_v5  ;;  %v3063_v9 = vadd.f32 %v3496_v47, %v3049_v32  ;;  %v3064_v42 = vadd.f32 %v3496_v47, %v3050_v34 }
 0x371   : > { %v3065_v38 = vadd.f32 %v3496_v47, %v3051_v12  ;;  %v3066_v39 = vadd.f32 %v3496_v47, %v3052_v6  ;;  %v3067_v43 = vadd.f32 %v3496_v47, %v3053_v15  ;;  %v3068_v44 = vadd.f32 %v3496_v47, %v3054_v16 }
 0x372   : > { %v3069_v45 = vmax.f32 %v3061_v60, 0.0  ;;  %v3070_v46 = vmax.f32 %v3062_v35, 0.0  ;;  %v3071_v57 = vmax.f32 %v3063_v9, 0.0  ;;  %v3072_v48 = vmax.f32 %v3064_v42, 0.0 }
 0x373   : > { %v3073_v50 = vmax.f32 %v3065_v38, 0.0  ;;  %v3074_v41 = vmax.f32 %v3066_v39, 0.0  ;;  %v3075_v36 = vmax.f32 %v3067_v43, 0.0  ;;  %v3076_v51 = vmax.f32 %v3068_v44, 0.0 }
 0x374   : > { %3077 = vst.msk [vmem:[%s278_s15] sm:$0xff] %vm313_vm0, %v3069_v45  ;;  %3078 = vst.msk [vmem:[%s278_s15 + $0x8] sm:$0xff] %vm313_vm0, %v3070_v46 }
 0x375   : > { %3079 = vst.msk [vmem:[%s278_s15 + $0x10] sm:$0xff] %vm313_vm0, %v3071_v57  ;;  %3080 = vst.msk [vmem:[%s278_s15 + $0x18] sm:$0xff] %vm313_vm0, %v3072_v48 }
 0x376   : > { %3081 = vst.msk [vmem:[%s278_s15 + $0x20] sm:$0xff] %vm313_vm0, %v3073_v50  ;;  %3082 = vst.msk [vmem:[%s278_s15 + $0x28] sm:$0xff] %vm313_vm0, %v3074_v41 }
 0x377   : > { %3083 = vst.msk [vmem:[%s278_s15 + $0x30] sm:$0xff] %vm313_vm0, %v3075_v36 }
 0x378   : > { %3084 = vst.msk [vmem:[%s278_s15 + $0x38] sm:$0x7f] %vm2824_vm2, %v3076_v51 }
 0x379 PF: > { %s17_s24 = sadd.s32 1, %s4683_s24  }
 0x37a   : > { %p14_p4 = scmp.ge.s32.totalorder %s17_s24, 4  }
 0x37c   :  { %16 = sbr.rel (!%p14_p4) target bundleno = 1 (0x1), region = 96 }

// kernel: continuous_resnet_forward.5
= control target key start
LH: loop header
LB: loop body
LE: loop exit
PB: predicated region body
PF: predicated region fallthrough
CT: control target
= control target key end

     0   :  { %14 = vsyncpa [#allocation3], 0  ;;  %s4107_s0 = inlined_call_operand.vmem [shape: f32[2,2,2,25,64], index: 0, kind: input, shape index: {}]   ;;  %s4108_s1 = inlined_call_operand.vmem [shape: f32[16,64,64], index: 1, kind: input, shape index: {}]   ;;  %s4109_s2 = inlined_call_operand.vmem [shape: f32[1,64], index: 2, kind: input, shape index: {}]   ;;  %s4110_s3 = inlined_call_operand.vmem [shape: f32[1,64], index: 3, kind: input, shape index: {}]   ;;  %s4111_s4 = inlined_call_operand.vmem [shape: f32[1,64], index: 4, kind: input, shape index: {}]   ;;  %s4112_s5 = inlined_call_operand.vmem [shape: f32[15,1], index: 5, kind: input, shape index: {}]   ;;  %s4113_s6 = inlined_call_operand.vmem [shape: f32[64,64], index: 6, kind: input, shape index: {}]   ;;  %s4114_s7 = inlined_call_operand.vmem [shape: f32[64,10], index: 7, kind: input, shape index: {}]   ;;  %s4115_s8 = inlined_call_operand.vmem [shape: f32[1,10], index: 8, kind: input, shape index: {}]   ;;  %s4116_s9 = inlined_call_operand.hbm [shape: f32[2,1,10], index: 9, kind: output, shape index: {}]  }
   0x1   :  { %16 = vsyncpa [#allocation3 + $0x1], 0  ;;  %s3457_s30 = smov 0   ;;  %s3459_s10 = smov 0  }
   0x2   :  { %s3461_s11 = smov 0   ;;  %s3463_s12 = smov 0  }
   0x3 LB: > { %s3478_s13 = sadd.s32 4294967295, %s3400_s12   ;;  %s2230_s14 = sadd.s32 4294967294, %s3400_s12   ;;  %s3400_s12 = sphi %s3463_s12, %s4122_s12   ;;  %s3396_s11 = sphi %s3461_s11, %s4121_s11   ;;  %s3392_s10 = sphi %s3459_s10, %s4120_s10   ;;  %s3388_s30 = sphi %s3457_s30, %s4119_s30  }
   0x4   : > { %s3482_s15 = sadd.s32 1, %s3400_s12   ;;  %s223_s16 = sadd.s32 1, %s3396_s11 }
   0x5   : > { %s220_s17 = ssub.s32 %s3400_s12, %s3482_s15  ;;  %p233_p0 = scmp.ne.s32.totalorder %s3396_s11, %s3392_s10 }
   0x6   : > { %p221_p1 = scmp.eq.s32.totalorder %s220_s17, 0  ;;  %p234_p2 = scmp.eq.s32.totalorder %s3478_s13, 1 }
   0x7   : > { %p239_p3 = scmp.ne.s32.totalorder %s3392_s10, %s3388_s30  ;;  %p240_p4 = scmp.eq.s32.totalorder %s2230_s14, 1 }
   0x8   : > { %s3493_s18 = scalar_select %p221_p1, %s3396_s11, %s223_s16  }
   0x9   : > { %p3495_p5 = por %p234_p2, %p233_p0  ;;  %p3499_p6 = por %p240_p4, %p239_p3 }
   0xa   : > { %p2233_p7 = scmp.ge.s32.totalorder %s3400_s12, 1  ;;  %p290_p8 = scmp.lt.s32.totalorder %s3400_s12, 3 }
   0xc   : > { %p291_p9 = pnand %p2233_p7, %p290_p8 }
   0xd   : > { %v2238_v0 = vld [vmem:[%s4108_s1 + $0x40] sm:$0xff] (!%p291_p9)  ;;  %v2239_v1 = vld [vmem:[%s4108_s1 + $0x48] sm:$0xff] (!%p291_p9)  ;;  %p325_p10 = scmp.lt.s32.totalorder (!%p291_p9), %s3478_s13, 1  ;;  %v2240_v5 = vld [vmem:[%s4108_s1 + $0x50] sm:$0xff] (!%p291_p9)  ;;  %vm352_vm0 = vcmask (!%p291_p9), 523264   ;;  %vm3404_vm1 = vmmov (!%p291_p9), 0  }
   0xe   : > { %294 = sbr.rel (%p291_p9) target bundleno = 1128 (0x468), region = 56  ;;  %v2298_v2 = vld [vmem:[%s4108_s1 + $0x180] sm:$0xff] (!%p291_p9)  ;;  %v2970_v3 = vpack.c.bf16 (!%p291_p9), %v2239_v1, %v2238_v0  ;;  %v2299_v4 = vld [vmem:[%s4108_s1 + $0x188] sm:$0xff] (!%p291_p9)  ;;  %v2241_v6 = vld [vmem:[%s4108_s1 + $0x58] sm:$0xff] (!%p291_p9)  ;;  %vm1867_vm2 = vcmask (!%p291_p9), 522240   ;;  %s323_s21 = sand.u32 (!%p291_p9), 1, %s3392_s10  }
   0xf   : > { %v3066_v7 = vpack.c.bf16 (!%p291_p9), %v2299_v4, %v2298_v2  ;;  %v2974_v8 = vpack.c.bf16 (!%p291_p9), %v2241_v6, %v2240_v5  ;;  %v2300_v9 = vld [vmem:[%s4108_s1 + $0x190] sm:$0xff] (!%p291_p9)  ;;  %v2301_v10 = vld [vmem:[%s4108_s1 + $0x198] sm:$0xff] (!%p291_p9)  ;;  %v2242_v11 = vld [vmem:[%s4108_s1 + $0x60] sm:$0xff] (!%p291_p9)  ;;  %s2418_s24 = sshll.u32 (!%p291_p9), %s3478_s13, 4  ;;  %vm2160_vm3 = vcmask (!%p291_p9), 73728  }
  0x10   : > { %2971 = vmatprep.subr.bf16.mxu1 (!%p291_p9), %v2970_v3  ;;  %v3070_v12 = vpack.c.bf16 (!%p291_p9), %v2301_v10, %v2300_v9  ;;  %v2243_v13 = vld [vmem:[%s4108_s1 + $0x68] sm:$0xff] (!%p291_p9)  ;;  %v2302_v14 = vld [vmem:[%s4108_s1 + $0x1a0] sm:$0xff] (!%p291_p9)  ;;  %v2244_v17 = vld [vmem:[%s4108_s1 + $0x70] sm:$0xff] (!%p291_p9)  ;;  %s4065_s14 = scalar_lea.hbm (!%p291_p9), %s4116_s9, %s2418_s24 }
  0x11   : > { %v2303_v15 = vld [vmem:[%s4108_s1 + $0x1a8] sm:$0xff] (!%p291_p9)  ;;  %3067 = vmatprep.subr.bf16.mxu0 (!%p291_p9), %v3066_v7  ;;  %2973 = vmatpush3.bf16.msra.mxu1 (!%p291_p9), %v2970_v3  ;;  %v2978_v16 = vpack.c.bf16 (!%p291_p9), %v2243_v13, %v2242_v11  ;;  %v2245_v19 = vld [vmem:[%s4108_s1 + $0x78] sm:$0xff] (!%p291_p9)  ;;  %v2304_v22 = vld [vmem:[%s4108_s1 + $0x1b0] sm:$0xff] (!%p291_p9) }
  0x12   : > { %3069 = vmatpush3.bf16.msra.mxu0 (!%p291_p9), %v3066_v7  ;;  %2975 = vmatprep.subr.bf16.mxu1 (!%p291_p9), %v2974_v8  ;;  %v3074_v18 = vpack.c.bf16 (!%p291_p9), %v2303_v15, %v2302_v14  ;;  %v2305_v23 = vld [vmem:[%s4108_s1 + $0x1b8] sm:$0xff] (!%p291_p9)  ;;  %v2982_v24 = vpack.c.bf16 (!%p291_p9), %v2245_v19, %v2244_v17  ;;  %v332_v26 = vld [vmem:[%s4108_s1] sm:$0xff] (!%p291_p9)  ;;  %v333_v27 = vld [vmem:[%s4108_s1 + $0x8] sm:$0xff] (!%p291_p9) }
  0x13   : > { %3071 = vmatprep.subr.bf16.mxu0 (!%p291_p9), %v3070_v12  ;;  %v3078_v25 = vpack.c.bf16 (!%p291_p9), %v2305_v23, %v2304_v22  ;;  %v2310_v28 = vld [vmem:[%s4108_s1 + $0x1c0] sm:$0xff] (!%p291_p9)  ;;  %v2311_v29 = vld [vmem:[%s4108_s1 + $0x1c8] sm:$0xff] (!%p291_p9)  ;;  %v2986_v30 = vpack.c.bf16 (!%p291_p9), %v333_v27, %v332_v26  ;;  %v334_v32 = vld [vmem:[%s4108_s1 + $0x10] sm:$0xff] (!%p291_p9) }
  0x14   : > { %v3082_v31 = vpack.c.bf16 (!%p291_p9), %v2311_v29, %v2310_v28  ;;  %v335_v33 = vld [vmem:[%s4108_s1 + $0x18] sm:$0xff] (!%p291_p9)  ;;  %v2312_v34 = vld [vmem:[%s4108_s1 + $0x1d0] sm:$0xff] (!%p291_p9)  ;;  %v336_v40 = vld [vmem:[%s4108_s1 + $0x20] sm:$0xff] (!%p291_p9) }
  0x15   : > { %s326_s27 = scalar_select %p325_p10, %s3478_s13, 1  ;;  %2977 = vmatpush3.bf16.msra.mxu1 %v2974_v8  ;;  %v2313_v35 = vld [vmem:[%s4108_s1 + $0x1d8] sm:$0xff]  ;;  %v2990_v38 = vpack.c.bf16 %v335_v33, %v334_v32  ;;  %v337_v41 = vld [vmem:[%s4108_s1 + $0x28] sm:$0xff]  ;;  %v2314_v42 = vld [vmem:[%s4108_s1 + $0x1e0] sm:$0xff] }
  0x16   : > { %3073 = vmatpush3.bf16.msra.mxu0 %v3070_v12  ;;  %2979 = vmatprep.subr.bf16.mxu1 %v2978_v16  ;;  %v3086_v39 = vpack.c.bf16 %v2313_v35, %v2312_v34  ;;  %v2315_v43 = vld [vmem:[%s4108_s1 + $0x1e8] sm:$0xff]  ;;  %v2994_v46 = vpack.c.bf16 %v337_v41, %v336_v40  ;;  %v338_v48 = vld [vmem:[%s4108_s1 + $0x30] sm:$0xff]  ;;  %v339_v49 = vld [vmem:[%s4108_s1 + $0x38] sm:$0xff]  ;;  %s3406_s13 = smov [#allocation2]  }
  0x17   : > { %s2421_s22 = sshll.u32 %s326_s27, 7  ;;  %3075 = vmatprep.subr.bf16.mxu0 %v3074_v18  ;;  %v3090_v47 = vpack.c.bf16 %v2315_v43, %v2314_v42  ;;  %v2316_v50 = vld [vmem:[%s4108_s1 + $0x1f0] sm:$0xff]  ;;  %v2317_v51 = vld [vmem:[%s4108_s1 + $0x1f8] sm:$0xff]  ;;  %v2998_v52 = vpack.c.bf16 %v339_v49, %v338_v48  ;;  %v2250_v54 = vld [vmem:[%s4108_s1 + $0x80] sm:$0xff]  ;;  %s2163_s27 = scalar_lea.sflag [#allocation3], %s323_s21 }
  0x18   : > { %s3549_s28 = scalar_lea.vmem %s4107_s0, %s2421_s22  ;;  %v3094_v53 = vpack.c.bf16 %v2317_v51, %v2316_v50  ;;  %v2251_v55 = vld [vmem:[%s4108_s1 + $0x88] sm:$0xff]  ;;  %v2320_v56 = vld [vmem:[%s4108_s1 + $0x200] sm:$0xff]  ;;  %v2252_v60 = vld [vmem:[%s4108_s1 + $0x90] sm:$0xff]  ;;  %s3342_s17 = sshll.u32 %s3406_s13, 4  ;;  %s3343_s17 = int_to_ptr.vmem [resolvable:$false] %s3342_s17 }
  0x19   : > { %v2236_v20 = vld [vmem:[%s3549_s28 + $0x20] sm:$0xff]  ;;  %2981 = vmatpush3.bf16.msra.mxu1 %v2978_v16  ;;  %v2237_v36 = vld [vmem:[%s3549_s28 + $0x28] sm:$0x7f]  ;;  %v3002_v58 = vpack.c.bf16 %v2251_v55, %v2250_v54  ;;  %v2253_v61 = vld [vmem:[%s4108_s1 + $0x98] sm:$0xff]  ;;  %v3402_v16 = vmov 0   ;;  %s3344_s22 = scalar_lea.vmem %s3343_s17, 32 }
  0x1a   : > { %v2296_v21 = vld [vmem:[%s3549_s28 + $0x41] sm:$0xff]  ;;  %2625 = vmatprep.mubr.msk.f32.mxu1 %vm352_vm0, %v2236_v20  ;;  %3077 = vmatpush3.bf16.msra.mxu0 %v3074_v18  ;;  %v2297_v37 = vld [vmem:[%s3549_s28 + $0x49] sm:$0x7f]  ;;  %v2322_v62 = vld [vmem:[%s4108_s1 + $0x210] sm:$0xff]  ;;  %v3006_v2 = vpack.c.bf16 %v2253_v61, %v2252_v60 }
  0x1b   : > { %2739 = vmatprep.mubr.msk.f32.mxu0 %vm352_vm0, %v2296_v21  ;;  %2983 = vmatprep.subr.bf16.mxu1 %v2982_v24  ;;  %v330_v44 = vld [vmem:[%s3549_s28] sm:$0xff]  ;;  %v2321_v57 = vld [vmem:[%s4108_s1 + $0x208] sm:$0xff]  ;;  %v2323_v63 = vld [vmem:[%s4108_s1 + $0x218] sm:$0xff] }
  0x1c   : > { %3079 = vmatprep.subr.bf16.mxu0 %v3078_v25  ;;  %v2308_v45 = vld [vmem:[%s3549_s28 + $0x61] sm:$0xff]  ;;  %v3098_v59 = vpack.c.bf16 %v2321_v57, %v2320_v56  ;;  %v2309_v1 = vld [vmem:[%s3549_s28 + $0x69] sm:$0x7f]  ;;  %v3102_v3 = vpack.c.bf16 %v2323_v63, %v2322_v62  ;;  %v2256_v12 = vld [vmem:[%s4108_s1 + $0xb0] sm:$0xff]  ;;  %3335 = vset.pattern.permute.xlu0 %v3402_v16 }
  0x1d   : > { %2985 = vmatpush3.bf16.msra.mxu1 %v2982_v24  ;;  %v331_v0 = vld [vmem:[%s3549_s28 + $0x8] sm:$0x7f]  ;;  %v2254_v4 = vld [vmem:[%s4108_s1 + $0xa0] sm:$0xff]  ;;  %v2257_v13 = vld [vmem:[%s4108_s1 + $0xb8] sm:$0xff] }
  0x1e   : > { %3081 = vmatpush3.bf16.msra.mxu0 %v3078_v25  ;;  %2987 = vmatprep.subr.bf16.mxu1 %v2986_v30  ;;  %v2255_v5 = vld [vmem:[%s4108_s1 + $0xa8] sm:$0xff]  ;;  %v2324_v6 = vld [vmem:[%s4108_s1 + $0x220] sm:$0xff]  ;;  %v2326_v14 = vld [vmem:[%s4108_s1 + $0x230] sm:$0xff]  ;;  %v3014_v17 = vpack.c.bf16 %v2257_v13, %v2256_v12 }
  0x1f   : > { %3083 = vmatprep.subr.bf16.mxu0 %v3082_v31  ;;  %v2325_v7 = vld [vmem:[%s4108_s1 + $0x228] sm:$0xff]  ;;  %v3010_v10 = vpack.c.bf16 %v2255_v5, %v2254_v4  ;;  %v2327_v15 = vld [vmem:[%s4108_s1 + $0x238] sm:$0xff]  ;;  %v2262_v19 = vld [vmem:[%s4108_s1 + $0xc0] sm:$0xff] }
  0x20   : > { %2626 = vmatmul.mubr.msk.f32.vlgmr.msra.gmra.mrb[0].mxu1 %vm352_vm0, %v2237_v36  ;;  %v515_v8 = vld [vmem:[%s3549_s28 + $0x1] sm:$0xff]  ;;  %v3106_v11 = vpack.c.bf16 %v2325_v7, %v2324_v6  ;;  %v3110_v18 = vpack.c.bf16 %v2327_v15, %v2326_v14  ;;  %v2264_v25 = vld [vmem:[%s4108_s1 + $0xd0] sm:$0xff]  ;;  %v2265_v26 = vld [vmem:[%s4108_s1 + $0xd8] sm:$0xff] }
  0x21   : > { %2989 = vmatpush3.bf16.msra.mxu1 %v2986_v30  ;;  %2740 = vmatmul.mubr.msk.f32.vlgmr.msra.gmra.mrb[0].mxu0 %vm352_vm0, %v2297_v37  ;;  %v1081_v9 = vld [vmem:[%s3549_s28 + $0x5] sm:$0xff]  ;;  %v2334_v27 = vld [vmem:[%s4108_s1 + $0x250] sm:$0xff]  ;;  %v2335_v28 = vld [vmem:[%s4108_s1 + $0x258] sm:$0xff] }
  0x22   : > { %3085 = vmatpush3.bf16.msra.mxu0 %v3082_v31  ;;  %2991 = vmatprep.subr.bf16.mxu1 %v2990_v38  ;;  %v2263_v20 = vld [vmem:[%s4108_s1 + $0xc8] sm:$0xff]  ;;  %v2332_v21 = vld [vmem:[%s4108_s1 + $0x240] sm:$0xff]  ;;  %v3022_v31 = vpack.c.bf16 %v2265_v26, %v2264_v25  ;;  %v3118_v32 = vpack.c.bf16 %v2335_v28, %v2334_v27  ;;  %v2268_v42 = vld [vmem:[%s4108_s1 + $0xf0] sm:$0xff] }
  0x23   : > { %3087 = vmatprep.subr.bf16.mxu0 %v3086_v39  ;;  %2644 = vmatprep.mubr.msk.f32.mxu1 %vm352_vm0, %v330_v44  ;;  %v2333_v22 = vld [vmem:[%s4108_s1 + $0x248] sm:$0xff]  ;;  %v3018_v23 = vpack.c.bf16 %v2263_v20, %v2262_v19  ;;  %v2266_v33 = vld [vmem:[%s4108_s1 + $0xe0] sm:$0xff]  ;;  %v2269_v43 = vld [vmem:[%s4108_s1 + $0xf8] sm:$0xff] }
  0x24   : > { %2758 = vmatprep.mubr.msk.f32.mxu0 %vm352_vm0, %v2308_v45  ;;  %v3114_v24 = vpack.c.bf16 %v2333_v22, %v2332_v21  ;;  %v516_v29 = vld [vmem:[%s3549_s28 + $0x9] sm:$0x7f]  ;;  %v2336_v35 = vld [vmem:[%s4108_s1 + $0x260] sm:$0xff]  ;;  %v2338_v44 = vld [vmem:[%s4108_s1 + $0x270] sm:$0xff] }
  0x25   : > { %2993 = vmatpush3.bf16.msra.mxu1 %v2990_v38  ;;  %v1082_v30 = vld [vmem:[%s3549_s28 + $0xd] sm:$0x7f]  ;;  %v2260_v37 = vld [vmem:[%s3549_s28 + $0x21] sm:$0xff]  ;;  %v2339_v45 = vld [vmem:[%s4108_s1 + $0x278] sm:$0xff] }
  0x26   : > { %3089 = vmatpush3.bf16.msra.mxu0 %v3086_v39  ;;  %2995 = vmatprep.subr.bf16.mxu1 %v2994_v46  ;;  %v2267_v34 = vld [vmem:[%s4108_s1 + $0xe8] sm:$0xff]  ;;  %v1842_v40 = vld [vmem:[%s4112_s5] sm:$0xff]  ;;  %v3126_v48 = vpack.c.bf16 %v2339_v45, %v2338_v44  ;;  %v2276_v55 = vld [vmem:[%s4108_s1 + $0x110] sm:$0xff] }
  0x27   : > { %3091 = vmatprep.subr.bf16.mxu0 %v3090_v47  ;;  %v2337_v36 = vld [vmem:[%s4108_s1 + $0x268] sm:$0xff]  ;;  %v3026_v39 = vpack.c.bf16 %v2267_v34, %v2266_v33  ;;  %1856 = vperm.xlu0 %3335, %v1842_v40   ;;  %v2274_v49 = vld [vmem:[%s4108_s1 + $0x100] sm:$0xff]  ;;  %v2277_v56 = vld [vmem:[%s4108_s1 + $0x118] sm:$0xff] }
  0x28   : > { %v2330_v38 = vld [vmem:[%s3549_s28 + $0x25] sm:$0xff]  ;;  %v3122_v41 = vpack.c.bf16 %v2337_v36, %v2336_v35  ;;  %v2344_v57 = vld [vmem:[%s4108_s1 + $0x290] sm:$0xff]  ;;  %v3038_v61 = vpack.c.bf16 %v2277_v56, %v2276_v55  ;;  %v2289_v20 = vld [vmem:[%s4108_s1 + $0x158] sm:$0xff] }
  0x29   : > { %2997 = vmatpush3.bf16.msra.mxu1 %v2994_v46  ;;  %v1843_v46 = vld [vmem:[%s4112_s5 + $0x8] sm:$0x7f]  ;;  %v2342_v51 = vld [vmem:[%s4108_s1 + $0x280] sm:$0xff]  ;;  %v2280_v7 = vld [vmem:[%s4108_s1 + $0x130] sm:$0xff] }
  0x2a   : > { %3093 = vmatpush3.bf16.msra.mxu0 %v3090_v47  ;;  %2999 = vmatprep.subr.bf16.mxu1 %v2998_v52  ;;  %v3030_v47 = vpack.c.bf16 %v2269_v43, %v2268_v42  ;;  %v2275_v50 = vld [vmem:[%s4108_s1 + $0x108] sm:$0xff]  ;;  %v2278_v63 = vld [vmem:[%s4108_s1 + $0x120] sm:$0xff]  ;;  %v2288_v19 = vld [vmem:[%s4108_s1 + $0x150] sm:$0xff] }
  0x2b   : > { %3095 = vmatprep.subr.bf16.mxu0 %v3094_v53  ;;  %1861 = vperm.xlu0 %3335, %v1843_v46   ;;  %v2331_v60 = vld [vmem:[%s3549_s28 + $0x2d] sm:$0x7f]  ;;  %v2286_v13 = vld [vmem:[%s4108_s1 + $0x140] sm:$0xff]  ;;  %v2357_v22 = vld [vmem:[%s4108_s1 + $0x2d8] sm:$0xff]  ;;  %v3054_v25 = vpack.c.bf16 %v2289_v20, %v2288_v19 }
  0x2c   : > { %v1269_v4 = vld [vmem:[%s3549_s28 + $0x6] sm:$0xff]  ;;  %v2356_v21 = vld [vmem:[%s4108_s1 + $0x2d0] sm:$0xff]  ;;  %v2293_v36 = vld [vmem:[%s4108_s1 + $0x178] sm:$0xff] }
  0x2d   : > { %3001 = vmatpush3.bf16.msra.mxu1 %v2998_v52  ;;  %v2343_v52 = vld [vmem:[%s4108_s1 + $0x288] sm:$0xff]  ;;  %v2354_v15 = vld [vmem:[%s4108_s1 + $0x2c0] sm:$0xff]  ;;  %v3150_v26 = vpack.c.bf16 %v2357_v22, %v2356_v21  ;;  %v2292_v35 = vld [vmem:[%s4108_s1 + $0x170] sm:$0xff] }
  0x2e   : > { %3097 = vmatpush3.bf16.msra.mxu0 %v3094_v53  ;;  %3003 = vmatprep.subr.bf16.mxu1 %v3002_v58  ;;  %v3034_v53 = vpack.c.bf16 %v2275_v50, %v2274_v49  ;;  %v3130_v54 = vpack.c.bf16 %v2343_v52, %v2342_v51  ;;  %v2287_v14 = vld [vmem:[%s4108_s1 + $0x148] sm:$0xff]  ;;  %v2290_v27 = vld [vmem:[%s4108_s1 + $0x160] sm:$0xff]  ;;  %v2368_v44 = vld [vmem:[%s4108_s1 + $0x310] sm:$0xff] }
  0x2f   : > { %3099 = vmatprep.subr.bf16.mxu0 %v3098_v59  ;;  %v2355_v16 = vld [vmem:[%s4108_s1 + $0x2c8] sm:$0xff]  ;;  %v2369_v45 = vld [vmem:[%s4108_s1 + $0x318] sm:$0xff]  ;;  %v2370_v50 = vld [vmem:[%s4108_s1 + $0x320] sm:$0xff] }
  0x30   : > { %2645 = vmatmul.mubr.msk.f32.vlgmr.msra.gmra.mrb[0].mxu1 %vm352_vm0, %v331_v0  ;;  %v2279_v0 = vld [vmem:[%s4108_s1 + $0x128] sm:$0xff]  ;;  %v2378_v56 = vld [vmem:[%s4108_s1 + $0x340] sm:$0xff] }
  0x31   : > { %3005 = vmatpush3.bf16.msra.mxu1 %v3002_v58  ;;  %2759 = vmatmul.mubr.msk.f32.vlgmr.msra.gmra.mrb[0].mxu0 %vm352_vm0, %v2309_v1  ;;  %v2345_v58 = vld [vmem:[%s4108_s1 + $0x298] sm:$0xff]  ;;  %v2346_v1 = vld [vmem:[%s4108_s1 + $0x2a0] sm:$0xff]  ;;  %v3042_v5 = vpack.c.bf16 %v2279_v0, %v2278_v63  ;;  %v2291_v28 = vld [vmem:[%s4108_s1 + $0x168] sm:$0xff] }
  0x32   : > { %3101 = vmatpush3.bf16.msra.mxu0 %v3098_v59  ;;  %3007 = vmatprep.subr.bf16.mxu1 %v3006_v2  ;;  %v2261_v59 = vld [vmem:[%s3549_s28 + $0x29] sm:$0x7f]  ;;  %v3134_v62 = vpack.c.bf16 %v2345_v58, %v2344_v57  ;;  %v3058_v33 = vpack.c.bf16 %v2291_v28, %v2290_v27  ;;  %v2382_v0 = vld [vmem:[%s4108_s1 + $0x360] sm:$0xff] }
  0x33   : > { %3103 = vmatprep.subr.bf16.mxu0 %v3102_v3  ;;  %2663 = vmatprep.mubr.msk.f32.mxu1 %vm352_vm0, %v515_v8  ;;  %v2281_v8 = vld [vmem:[%s4108_s1 + $0x138] sm:$0xff]  ;;  %v2367_v42 = vld [vmem:[%s4108_s1 + $0x308] sm:$0xff]  ;;  %v2402_v20 = vld [vmem:[%s4108_s1 + $0x3c0] sm:$0xff] }
  0x34   : > { %2777 = vmatprep.mubr.msk.f32.mxu0 %vm352_vm0, %v1081_v9  ;;  %v2348_v9 = vld [vmem:[%s4108_s1 + $0x2b0] sm:$0xff]  ;;  %v2285_v46 = vld [vmem:[%s3549_s28 + $0x68] sm:$0x7f]  ;;  %v2406_v28 = vld [vmem:[%s4108_s1 + $0x3e0] sm:$0xff] }
  0x35   : > { %3009 = vmatpush3.bf16.msra.mxu1 %v3006_v2  ;;  %v2347_v2 = vld [vmem:[%s4108_s1 + $0x2a8] sm:$0xff] }
  0x36   : > { %3105 = vmatpush3.bf16.msra.mxu0 %v3102_v3  ;;  %3011 = vmatprep.subr.bf16.mxu1 %v3010_v10  ;;  %v2272_v3 = vld [vmem:[%s3549_s28 + $0x40] sm:$0xff]  ;;  %v3138_v6 = vpack.c.bf16 %v2347_v2, %v2346_v1  ;;  %v2371_v51 = vld [vmem:[%s4108_s1 + $0x328] sm:$0xff] }
  0x37   : > { %3107 = vmatprep.subr.bf16.mxu0 %v3106_v11  ;;  %v2364_v49 = vld [vmem:[%s3549_s28 + $0x45] sm:$0xff]  ;;  %v3170_v52 = vpack.c.bf16 %v2371_v51, %v2370_v50 }
  0x38   : > { %v2379_v57 = vld [vmem:[%s4108_s1 + $0x348] sm:$0xff] }
  0x39   : > { %3013 = vmatpush3.bf16.msra.mxu1 %v3010_v10  ;;  %v2349_v10 = vld [vmem:[%s4108_s1 + $0x2b8] sm:$0xff]  ;;  %v3178_v58 = vpack.c.bf16 %v2379_v57, %v2378_v56  ;;  %v2376_v63 = vld [vmem:[%s3549_s28 + $0x65] sm:$0xff] }
  0x3a   : > { %3109 = vmatpush3.bf16.msra.mxu0 %v3106_v11  ;;  %3015 = vmatprep.subr.bf16.mxu1 %v3014_v17  ;;  %v3046_v11 = vpack.c.bf16 %v2281_v8, %v2280_v7  ;;  %v3142_v12 = vpack.c.bf16 %v2349_v10, %v2348_v9  ;;  %v2383_v1 = vld [vmem:[%s4108_s1 + $0x368] sm:$0xff]  ;;  %v2392_v9 = vld [vmem:[%s4108_s1 + $0x390] sm:$0xff]  ;;  %v2393_v10 = vld [vmem:[%s4108_s1 + $0x398] sm:$0xff] }
  0x3b   : > { %3111 = vmatprep.subr.bf16.mxu0 %v3110_v18  ;;  %v3186_v2 = vpack.c.bf16 %v2383_v1, %v2382_v0  ;;  %v2391_v7 = vld [vmem:[%s4108_s1 + $0x388] sm:$0xff] }
  0x3c   : > { %v2403_v21 = vld [vmem:[%s4108_s1 + $0x3c8] sm:$0xff] }
  0x3d   : > { %3017 = vmatpush3.bf16.msra.mxu1 %v3014_v17  ;;  %v3050_v17 = vpack.c.bf16 %v2287_v14, %v2286_v13  ;;  %v2388_v13 = vld [vmem:[%s3549_s28 + $0x46] sm:$0xff]  ;;  %v3210_v22 = vpack.c.bf16 %v2403_v21, %v2402_v20 }
  0x3e   : > { %3113 = vmatpush3.bf16.msra.mxu0 %v3110_v18  ;;  %3019 = vmatprep.subr.bf16.mxu1 %v3018_v23  ;;  %v3146_v18 = vpack.c.bf16 %v2355_v16, %v2354_v15  ;;  %v2394_v14 = vld [vmem:[%s4108_s1 + $0x3a0] sm:$0xff]  ;;  %v2395_v15 = vld [vmem:[%s4108_s1 + $0x3a8] sm:$0xff] }
  0x3f   : > { %3115 = vmatprep.subr.bf16.mxu0 %v3114_v24  ;;  %v3202_v16 = vpack.c.bf16 %v2395_v15, %v2394_v14  ;;  %v2400_v27 = vld [vmem:[%s3549_s28 + $0x66] sm:$0xff] }
  0x40   : > { %2664 = vmatmul.mubr.msk.f32.vlgmr.msra.gmra.mrb[0].mxu1 %vm352_vm0, %v516_v29  ;;  %v2358_v29 = vld [vmem:[%s4108_s1 + $0x2e0] sm:$0xff] }
  0x41   : > { %3021 = vmatpush3.bf16.msra.mxu1 %v3018_v23  ;;  %2778 = vmatmul.mubr.msk.f32.vlgmr.msra.gmra.mrb[0].mxu0 %vm352_vm0, %v1082_v30  ;;  %v2273_v23 = vld [vmem:[%s3549_s28 + $0x48] sm:$0x7f] }
  0x42   : > { %3117 = vmatpush3.bf16.msra.mxu0 %v3114_v24  ;;  %3023 = vmatprep.subr.bf16.mxu1 %v3022_v31  ;;  %v1270_v24 = vld [vmem:[%s3549_s28 + $0xe] sm:$0x7f] }
  0x43   : > { %3119 = vmatprep.subr.bf16.mxu0 %v3118_v32  ;;  %2682 = vmatprep.mubr.msk.f32.mxu1 %vm352_vm0, %v2260_v37  ;;  %v2359_v30 = vld [vmem:[%s4108_s1 + $0x2e8] sm:$0xff]  ;;  %v2360_v37 = vld [vmem:[%s4108_s1 + $0x2f0] sm:$0xff] }
  0x44   : > { %2796 = vmatprep.mubr.msk.f32.mxu0 %vm352_vm0, %v2330_v38  ;;  %v3154_v34 = vpack.c.bf16 %v2359_v30, %v2358_v29  ;;  %v2361_v38 = vld [vmem:[%s4108_s1 + $0x2f8] sm:$0xff]  ;;  %v2407_v29 = vld [vmem:[%s4108_s1 + $0x3e8] sm:$0xff] }
  0x45   : > { %3025 = vmatpush3.bf16.msra.mxu1 %v3022_v31  ;;  %v2284_v31 = vld [vmem:[%s3549_s28 + $0x60] sm:$0xff]  ;;  %v3158_v40 = vpack.c.bf16 %v2361_v38, %v2360_v37  ;;  %v3218_v30 = vpack.c.bf16 %v2407_v29, %v2406_v28  ;;  %v3403_v38 = vmov 0.0|0.0   ;;  %v2079_v29 = vld [vmem:[%s4114_s7 + $0x8] sm:$0xff] }
  0x46   : > { %3121 = vmatpush3.bf16.msra.mxu0 %v3118_v32  ;;  %3027 = vmatprep.subr.bf16.mxu1 %v3026_v39  ;;  %v2352_v32 = vld [vmem:[%s3549_s28 + $0x26] sm:$0xff] }
  0x47   : > { %3123 = vmatprep.subr.bf16.mxu0 %v3122_v41  ;;  %v2078_v28 = vld [vmem:[%s4114_s7] sm:$0xff] }
  0x49   : > { %3029 = vmatpush3.bf16.msra.mxu1 %v3026_v39  ;;  %v3062_v39 = vpack.c.bf16 %v2293_v36, %v2292_v35  ;;  %v1846_v35 = vld [vmem:[%s4113_s6] sm:$0xff]  ;;  %v1847_v36 = vld [vmem:[%s4113_s6 + $0x8] sm:$0xff] }
  0x4a   : > { %3125 = vmatpush3.bf16.msra.mxu0 %v3122_v41  ;;  %3031 = vmatprep.subr.bf16.mxu1 %v3030_v47  ;;  %v2366_v41 = vld [vmem:[%s4108_s1 + $0x300] sm:$0xff]  ;;  %v3227_v37 = vpack.c.bf16 %v1847_v36, %v1846_v35  ;;  %v2083_v35 = vld [vmem:[%s4114_s7 + $0x28] sm:$0xff] }
  0x4b   : > { %3127 = vmatprep.subr.bf16.mxu0 %v3126_v48  ;;  %v3162_v43 = vpack.c.bf16 %v2367_v42, %v2366_v41  ;;  %v1850_v42 = vld [vmem:[%s4113_s6 + $0x20] sm:$0xff] }
  0x4d   : > { %3033 = vmatpush3.bf16.msra.mxu1 %v3030_v47  ;;  %v2353_v47 = vld [vmem:[%s3549_s28 + $0x2e] sm:$0x7f] }
  0x4e   : > { %3129 = vmatpush3.bf16.msra.mxu0 %v3126_v48  ;;  %3035 = vmatprep.subr.bf16.mxu1 %v3034_v53  ;;  %v3166_v48 = vpack.c.bf16 %v2369_v45, %v2368_v44  ;;  %v1852_v45 = vld [vmem:[%s4113_s6 + $0x30] sm:$0xff] }
  0x4f   : > { %3131 = vmatprep.subr.bf16.mxu0 %v3130_v54 }
  0x50   : > { %2683 = vmatmul.mubr.msk.f32.vlgmr.msra.gmra.mrb[0].mxu1 %vm352_vm0, %v2261_v59  ;;  %v2380_v59 = vld [vmem:[%s4108_s1 + $0x350] sm:$0xff] }
  0x51   : > { %3037 = vmatpush3.bf16.msra.mxu1 %v3034_v53  ;;  %2797 = vmatmul.mubr.msk.f32.vlgmr.msra.gmra.mrb[0].mxu0 %vm352_vm0, %v2331_v60  ;;  %v2372_v53 = vld [vmem:[%s4108_s1 + $0x330] sm:$0xff]  ;;  %v2381_v60 = vld [vmem:[%s4108_s1 + $0x358] sm:$0xff] }
  0x52   : > { %3133 = vmatpush3.bf16.msra.mxu0 %v3130_v54  ;;  %3039 = vmatprep.subr.bf16.mxu1 %v3038_v61  ;;  %v2373_v54 = vld [vmem:[%s4108_s1 + $0x338] sm:$0xff] }
  0x53   : > { %3135 = vmatprep.subr.bf16.mxu0 %v3134_v62  ;;  %2701 = vmatprep.mubr.msk.f32.mxu1 %vm352_vm0, %v2272_v3  ;;  %v3174_v55 = vpack.c.bf16 %v2373_v54, %v2372_v53  ;;  %v2384_v3 = vld [vmem:[%s4108_s1 + $0x370] sm:$0xff]  ;;  %v2412_v53 = vld [vmem:[%s4109_s2] ss:$0 sm:$0xff] }
  0x54   : > { %2815 = vmatprep.mubr.msk.f32.mxu0 %vm352_vm0, %v1269_v4  ;;  %v2385_v4 = vld [vmem:[%s4108_s1 + $0x378] sm:$0xff] }
  0x55   : > { %3041 = vmatpush3.bf16.msra.mxu1 %v3038_v61  ;;  %v2365_v61 = vld [vmem:[%s3549_s28 + $0x4d] sm:$0x7f] }
  0x56   : > { %3137 = vmatpush3.bf16.msra.mxu0 %v3134_v62  ;;  %3043 = vmatprep.subr.bf16.mxu1 %v3042_v5  ;;  %v3182_v62 = vpack.c.bf16 %v2381_v60, %v2380_v59 }
  0x57   : > { %3139 = vmatprep.subr.bf16.mxu0 %v3138_v6 }
  0x59   : > { %3045 = vmatpush3.bf16.msra.mxu1 %v3042_v5  ;;  %v3190_v5 = vpack.c.bf16 %v2385_v4, %v2384_v3 }
  0x5a   : > { %3141 = vmatpush3.bf16.msra.mxu0 %v3138_v6  ;;  %3047 = vmatprep.subr.bf16.mxu1 %v3046_v11  ;;  %v2390_v6 = vld [vmem:[%s4108_s1 + $0x380] sm:$0xff] }
  0x5b   : > { %3143 = vmatprep.subr.bf16.mxu0 %v3142_v12  ;;  %v3194_v8 = vpack.c.bf16 %v2391_v7, %v2390_v6  ;;  %v1949_v7 = vlaneseq }
  0x5d   : > { %3049 = vmatpush3.bf16.msra.mxu1 %v3046_v11  ;;  %v2377_v11 = vld [vmem:[%s3549_s28 + $0x6d] sm:$0x7f] }
  0x5e   : > { %3145 = vmatpush3.bf16.msra.mxu0 %v3142_v12  ;;  %3051 = vmatprep.subr.bf16.mxu1 %v3050_v17  ;;  %v3198_v12 = vpack.c.bf16 %v2393_v10, %v2392_v9 }
  0x5f   : > { %3147 = vmatprep.subr.bf16.mxu0 %v3146_v18 }
  0x60   : > { %2702 = vmatmul.mubr.msk.f32.vlgmr.msra.gmra.mrb[0].mxu1 %vm352_vm0, %v2273_v23  ;;  %v2404_v23 = vld [vmem:[%s4108_s1 + $0x3d0] sm:$0xff] }
  0x61   : > { %3053 = vmatpush3.bf16.msra.mxu1 %v3050_v17  ;;  %2816 = vmatmul.mubr.msk.f32.vlgmr.msra.gmra.mrb[0].mxu0 %vm352_vm0, %v1270_v24  ;;  %v2396_v17 = vld [vmem:[%s4108_s1 + $0x3b0] sm:$0xff]  ;;  %v2405_v24 = vld [vmem:[%s4108_s1 + $0x3d8] sm:$0xff] }
  0x62   : > { %3149 = vmatpush3.bf16.msra.mxu0 %v3146_v18  ;;  %3055 = vmatprep.subr.bf16.mxu1 %v3054_v25  ;;  %v2397_v18 = vld [vmem:[%s4108_s1 + $0x3b8] sm:$0xff] }
  0x63   : > { %3151 = vmatprep.subr.bf16.mxu0 %v3150_v26  ;;  %2720 = vmatprep.mubr.msk.f32.mxu1 %vm352_vm0, %v2284_v31  ;;  %v3206_v19 = vpack.c.bf16 %v2397_v18, %v2396_v17  ;;  %v2408_v31 = vld [vmem:[%s4108_s1 + $0x3f0] sm:$0xff] }
  0x64   : > { %2834 = vmatprep.mubr.msk.f32.mxu0 %vm352_vm0, %v2352_v32  ;;  %v2409_v32 = vld [vmem:[%s4108_s1 + $0x3f8] sm:$0xff] }
  0x65   : > { %3057 = vmatpush3.bf16.msra.mxu1 %v3054_v25  ;;  %v2389_v25 = vld [vmem:[%s3549_s28 + $0x4e] sm:$0x7f] }
  0x66   : > { %3153 = vmatpush3.bf16.msra.mxu0 %v3150_v26  ;;  %3059 = vmatprep.subr.bf16.mxu1 %v3058_v33  ;;  %v3214_v26 = vpack.c.bf16 %v2405_v24, %v2404_v23 }
  0x67   : > { %3155 = vmatprep.subr.bf16.mxu0 %v3154_v34 }
  0x69   : > { %3061 = vmatpush3.bf16.msra.mxu1 %v3058_v33  ;;  %v3222_v33 = vpack.c.bf16 %v2409_v32, %v2408_v31  ;;  %v3251_v31 = vpack.c.bf16 %v2079_v29, %v2078_v28  ;;  %v2081_v32 = vld [vmem:[%s4114_s7 + $0x18] sm:$0xff] }
  0x6a   : > { %3157 = vmatpush3.bf16.msra.mxu0 %v3154_v34  ;;  %3063 = vmatprep.subr.bf16.mxu1 %v3062_v39  ;;  %v2401_v34 = vld [vmem:[%s3549_s28 + $0x6e] sm:$0x7f]  ;;  %s324_s28 = scalar_lea.vmem [#allocation2], %s323_s21 }
  0x6b   : > { %3159 = vmatprep.subr.bf16.mxu0 %v3158_v40  ;;  %s2175_s25 = sshll.u32 %s324_s28, 4  ;;  %s4067_s25 = int_to_ptr.vmem [resolvable:$true] %s2175_s25 }
  0x6c   : > { %s3338_s16 = scalar_lea.vmem %s4067_s25, 16  ;;  %p3345_p0 = scmp.lt.s32.totalorder %s4067_s25, %s3343_s17 }
  0x6d   : > { %3065 = vmatpush3.bf16.msra.mxu1 %v3062_v39  ;;  %v1848_v39 = vld [vmem:[%s4113_s6 + $0x10] sm:$0xff]  ;;  %p3339_p11 = scmp.ne.s32.totalorder %s4067_s25, %s3338_s16  ;;  %p3346_p1 = scmp.lt.s32.totalorder %s3344_s22, %s3338_s16 }
  0x6e   : > { %3161 = vmatpush3.bf16.msra.mxu0 %v3158_v40  ;;  %3226 = vmatprep.subr.bf16.mxu1 %v3403_v38  ;;  %v1849_v40 = vld [vmem:[%s4113_s6 + $0x18] sm:$0xff] }
  0x6f   : > { %3163 = vmatprep.subr.bf16.mxu0 %v3162_v43  ;;  %v3230_v41 = vpack.c.bf16 %v1849_v40, %v1848_v39  ;;  %v2085_v39 = vld [vmem:[%s4114_s7 + $0x38] sm:$0xff]  ;;  %p3340_p12 = pnand %p3339_p11, %p3495_p5  ;;  %p3347_p2 = por %p3346_p1, %p3345_p0 }
  0x70   : > { %2721 = vmatmul.mubr.msk.f32.vlgmr.msra.gmra.mrb[0].mxu1 %vm352_vm0, %v2285_v46  ;;  %v1853_v46 = vld [vmem:[%s4113_s6 + $0x38] sm:$0xff] }
  0x71   : > { %2835 = vmatmul.mubr.msk.f32.vlgmr.msra.gmra.mrb[0].mxu0 %vm352_vm0, %v2353_v47  ;;  %3228 = vmatpush3.bf16.msra.mxu1 %v3227_v37  ;;  %v3236_v47 = vpack.c.bf16 %v1853_v46, %v1852_v45  ;;  %v2415_v46 = vld [vmem:[%s4110_s3] ss:$0 sm:$0xff]  ;;  %p3341_p13 = pneg %p3340_p12 }
  0x72   : > { %3165 = vmatpush3.bf16.msra.mxu0 %v3162_v43  ;;  %2853 = vmatprep.mubr.msk.f32.mxu0 %vm352_vm0, %v2364_v49  ;;  %v1851_v43 = vld [vmem:[%s4113_s6 + $0x28] sm:$0xff] }
  0x73   : > { %3167 = vmatprep.subr.bf16.mxu0 %v3166_v48  ;;  %3229 = vmatprep.subr.bf16.mxu1 %v3403_v38  ;;  %v3233_v44 = vpack.c.bf16 %v1851_v43, %v1850_v42  ;;  %p3348_p3 = pnand %p3347_p2, %p3341_p13 }
  0x75   : > { %3231 = vmatpush3.bf16.msra.mxu1 %v3230_v41 }
  0x76   : > { %3169 = vmatpush3.bf16.msra.mxu0 %v3166_v48  ;;  %3232 = vmatprep.subr.bf16.mxu1 %v3403_v38  ;;  %v3405_v48 = vmov 0.0  }
  0x77   : > { %3171 = vmatprep.subr.bf16.mxu0 %v3170_v52  ;;  %2929 = vmatprep.mubr.msk.f32.mxu1 %vm3404_vm1, %v3405_v48 }
  0x79   : > { %3234 = vmatpush3.bf16.msra.mxu1 %v3233_v44 }
  0x7a   : > { %3173 = vmatpush3.bf16.msra.mxu0 %v3170_v52  ;;  %3235 = vmatprep.subr.bf16.mxu1 %v3403_v38 }
  0x7b   : > { %3175 = vmatprep.subr.bf16.mxu0 %v3174_v55 }
  0x7d   : > { %3237 = vmatpush3.bf16.msra.mxu1 %v3236_v47 }
  0x7e   : > { %3177 = vmatpush3.bf16.msra.mxu0 %v3174_v55  ;;  %3238 = vmatprep.subr.bf16.mxu1 %v3403_v38 }
  0x7f   : > { %3179 = vmatprep.subr.bf16.mxu0 %v3178_v58 }
  0x81   : > { %2854 = vmatmul.mubr.msk.f32.vlgmr.msra.gmra.mrb[0].mxu0 %vm352_vm0, %v2365_v61 }
  0x82   : > { %3181 = vmatpush3.bf16.msra.mxu0 %v3178_v58  ;;  %2872 = vmatprep.mubr.msk.f32.mxu0 %vm352_vm0, %v2376_v63 }
  0x83   : > { %3183 = vmatprep.subr.bf16.mxu0 %v3182_v62 }
  0x86   : > { %3185 = vmatpush3.bf16.msra.mxu0 %v3182_v62 }
  0x87   : > { %3187 = vmatprep.subr.bf16.mxu0 %v3186_v2 }
  0x8a   : > { %3189 = vmatpush3.bf16.msra.mxu0 %v3186_v2 }
  0x8b   : > { %3191 = vmatprep.subr.bf16.mxu0 %v3190_v5 }
  0x8e   : > { %3193 = vmatpush3.bf16.msra.mxu0 %v3190_v5 }
  0x8f   : > { %3195 = vmatprep.subr.bf16.mxu0 %v3194_v8 }
  0x91   : > { %2873 = vmatmul.mubr.msk.f32.vlgmr.msra.gmra.mrb[0].mxu0 %vm352_vm0, %v2377_v11 }
  0x92   : > { %3197 = vmatpush3.bf16.msra.mxu0 %v3194_v8  ;;  %2891 = vmatprep.mubr.msk.f32.mxu0 %vm352_vm0, %v2388_v13  ;;  %v1950_v8 = vshrl.u32 %v1949_v7, 7 }
  0x93   : > { %3199 = vmatprep.subr.bf16.mxu0 %v3198_v12 }
  0x94   : > { %v1951_v9 = vsub.s32 0, %v1950_v8 }
  0x96   : > { %3201 = vmatpush3.bf16.msra.mxu0 %v3198_v12 }
  0x97   : > { %3203 = vmatprep.subr.bf16.mxu0 %v3202_v16 }
  0x9a   : > { %3205 = vmatpush3.bf16.msra.mxu0 %v3202_v16 }
  0x9b   : > { %3207 = vmatprep.subr.bf16.mxu0 %v3206_v19 }
  0x9e   : > { %3209 = vmatpush3.bf16.msra.mxu0 %v3206_v19 }
  0x9f   : > { %3211 = vmatprep.subr.bf16.mxu0 %v3210_v22 }
  0xa1   : > { %2892 = vmatmul.mubr.msk.f32.vlgmr.msra.gmra.mrb[0].mxu0 %vm352_vm0, %v2389_v25 }
  0xa2   : > { %3213 = vmatpush3.bf16.msra.mxu0 %v3210_v22  ;;  %2910 = vmatprep.mubr.msk.f32.mxu0 %vm352_vm0, %v2400_v27 }
  0xa3   : > { %3215 = vmatprep.subr.bf16.mxu0 %v3214_v26 }
  0xa6   : > { %3217 = vmatpush3.bf16.msra.mxu0 %v3214_v26  ;;  %v3996_v51 = vpop.permute.xlu0 %1856 }
  0xa7   : > { %3219 = vmatprep.subr.bf16.mxu0 %v3218_v30 }
  0xaa   : > { %3221 = vmatpush3.bf16.msra.mxu0 %v3218_v30  ;;  %v4001_v58 = vpop.permute.xlu0 %1861  ;;  %v2080_v30 = vld [vmem:[%s4114_s7 + $0x10] sm:$0xff] }
  0xab   : > { %3223 = vmatprep.subr.bf16.mxu0 %v3222_v33 }
  0xae   : > { %3225 = vmatpush3.bf16.msra.mxu0 %v3222_v33  ;;  %v3254_v33 = vpack.c.bf16 %v2081_v32, %v2080_v30 }
  0xb1   : > { %2911 = vmatmul.mubr.msk.f32.vlgmr.msra.gmra.mrb[0].mxu0 %vm352_vm0, %v2401_v34  ;;  %v2082_v34 = vld [vmem:[%s4114_s7 + $0x20] sm:$0xff] }
  0xb2   : > { %v3257_v36 = vpack.c.bf16 %v2083_v35, %v2082_v34 }
 0x143   : > { %v2722_v49 = vpop.f32.mrb[0].mxu1 }
 0x144   : > { %v882_v50 = vpop.f32.mrb[1].mxu1 }
 0x184   : > { %v2912_v52 = vpop.f32.mrb[0].mxu0 }
 0x185   : > { %v3262_v54 = vadd.f32 %v2912_v52, %v2722_v49  ;;  %v1822_v55 = vpop.f32.mrb[1].mxu0  ;;  %v2416_v49 = vld [vmem:[%s4111_s4] ss:$0 sm:$0xff] }
 0x186   : > { %v3263_v56 = vadd.f32 %v1822_v55, %v882_v50 }
 0x187   : > { %v1841_v57 = vadd.f32 %v3262_v54, %v2412_v53 }
 0x188   : > { %v1840_v59 = vadd.f32 %v3263_v56, %v2412_v53 }
 0x189   : > { %v1865_v60 = vmul.f32 %v4001_v58, %v1841_v57 }
 0x18a   : > { %v1864_v61 = vmul.f32 %v3996_v51, %v1840_v59 }
 0x18b   : > { %v1868_v62 = vsel %vm1867_vm2, %v1865_v60, 0.0 }
 0x18c   : > { %v1866_v63 = vsel %vm352_vm0, %v1864_v61, 0.0 }
 0x18d   : > { %v1869_v0 = vadd.f32 %v1868_v62, %v1866_v63 }
 0x18f   : > { %v1870_v1 = vrot.slane %v1869_v0, 4 }
 0x191   : > { %v1871_v2 = vadd.f32 %v1870_v1, %v1869_v0 }
 0x193   : > { %v1872_v3 = vrot.slane %v1871_v2, 2 }
 0x195   : > { %v1873_v4 = vadd.f32 %v1872_v3, %v1871_v2 }
 0x197   : > { %v1874_v5 = vrot.slane %v1873_v4, 1 }
 0x199   : > { %v1875_v6 = vadd.f32 %v1874_v5, %v1873_v4 }
 0x19b   : > { %2930 = vmatmul.mubr.msk.f32.vlgmr.msra.gmra.mrb[2].mxu1 %vm352_vm0, %v1875_v6 }
 0x19c   : > { %3240 = vmatpush3.bf16.msra.mxu1 %v3227_v37  ;;  %2948 = vmatprep.mubr.msk.f32.mxu1 %vm3404_vm1, %v3405_v48  ;;  %v2084_v37 = vld [vmem:[%s4114_s7 + $0x30] sm:$0xff] }
 0x19d   : > { %3241 = vmatprep.subr.bf16.mxu1 %v3403_v38  ;;  %v3260_v40 = vpack.c.bf16 %v2085_v39, %v2084_v37 }
 0x1a0   : > { %3243 = vmatpush3.bf16.msra.mxu1 %v3230_v41 }
 0x1a1   : > { %3244 = vmatprep.subr.bf16.mxu1 %v3403_v38 }
 0x1a4   : > { %3246 = vmatpush3.bf16.msra.mxu1 %v3233_v44 }
 0x1a5   : > { %3247 = vmatprep.subr.bf16.mxu1 %v3403_v38 }
 0x1a8   : > { %3249 = vmatpush3.bf16.msra.mxu1 %v3236_v47 }
 0x1a9   : > { %3250 = vmatprep.subr.bf16.mxu1 %v3403_v38 }
 0x26e   : > { %v1945_v10 = vpop.f32.mrb[2].mxu1 }
 0x26f   : > { %v1952_v11 = vrot.slane %v1945_v10, %v1951_v9  ;;  %v2931_v12 = vpop.f32.mrb[3].mxu1 }
 0x271   : > { %v1953_v13 = vsub.f32 %v1840_v59, %v1952_v11  ;;  %v1954_v14 = vsub.f32 %v1841_v57, %v1952_v11 }
 0x273   : > { %v1955_v15 = vmul.f32 %v1953_v13, %v3996_v51  ;;  %v1956_v16 = vmul.f32 %v1954_v14, %v4001_v58 }
 0x275   : > { %v1957_v17 = vmul.f32 %v1955_v15, %v1955_v15  ;;  %v1958_v18 = vmul.f32 %v1956_v16, %v1956_v16 }
 0x277   : > { %v1959_v19 = vsel %vm352_vm0, %v1957_v17, 0.0  ;;  %v1960_v20 = vsel %vm1867_vm2, %v1958_v18, 0.0 }
 0x278   : > { %v1961_v21 = vadd.f32 %v1960_v20, %v1959_v19 }
 0x27a   : > { %v1962_v22 = vrot.slane %v1961_v21, 4 }
 0x27c   : > { %v1963_v23 = vadd.f32 %v1962_v22, %v1961_v21 }
 0x27e   : > { %v1964_v24 = vrot.slane %v1963_v23, 2 }
 0x280   : > { %v1965_v25 = vadd.f32 %v1964_v24, %v1963_v23 }
 0x282   : > { %v1966_v26 = vrot.slane %v1965_v25, 1 }
 0x284   : > { %v1967_v27 = vadd.f32 %v1966_v26, %v1965_v25 }
 0x286   : > { %2949 = vmatmul.mubr.msk.f32.vlgmr.msra.gmra.mrb[4].mxu1 %vm352_vm0, %v1967_v27 }
 0x287   : > { %2967 = vmatprep.mubr.msk.f32.mxu1 %vm3404_vm1, %v3405_v48  ;;  %3252 = vmatpush3.bf16.msra.mxu1 %v3251_v31 }
 0x288   : > { %3253 = vmatprep.subr.bf16.mxu1 %v3403_v38 }
 0x28b   : > { %3255 = vmatpush3.bf16.msra.mxu1 %v3254_v33 }
 0x28c   : > { %3256 = vmatprep.subr.bf16.mxu1 %v3403_v38 }
 0x28f   : > { %3258 = vmatpush3.bf16.msra.mxu1 %v3257_v36 }
 0x290   : > { %3259 = vmatprep.subr.bf16.mxu1 %v3403_v38 }
 0x293   : > { %3261 = vmatpush3.bf16.msra.mxu1 %v3260_v40 }
 0x359   : > { %v2037_v41 = vpop.f32.mrb[4].mxu1 }
 0x35a   : > { %v2038_v42 = vadd.f32 1e-05, %v2037_v41  ;;  %v2950_v43 = vpop.f32.mrb[5].mxu1 }
 0x35c   : > { %3336 = vrsqrt.f32 %v2038_v42 }
 0x366   : > { %v3337_v44 = vpop.eup %3336 }
 0x367   : > { %v2045_v45 = vrot.slane %v3337_v44, %v1951_v9 }
 0x369   : > { %v2046_v47 = vmul.f32 %v2045_v45, %v1953_v13  ;;  %v2047_v48 = vmul.f32 %v2045_v45, %v1954_v14 }
 0x36b   : > { %v2054_v50 = vmul.f32 %v2415_v46, %v2046_v47  ;;  %v2055_v52 = vmul.f32 %v2415_v46, %v2047_v48 }
 0x36d   : > { %v2062_v38 = vadd.f32 %v2416_v49, %v2054_v50  ;;  %v2063_v53 = vadd.f32 %v2416_v49, %v2055_v52 }
 0x36f   : > { %v2064_v54 = vmax.f32 %v2062_v38, 0.0  ;;  %v2065_v55 = vmax.f32 %v2063_v53, 0.0 }
 0x371   : > { %v2066_v56 = vmul.f32 %v2064_v54, %v3996_v51  ;;  %v2067_v57 = vmul.f32 %v2065_v55, %v4001_v58  ;;  %v2086_v51 = vld [vmem:[%s4115_s8] sm:$0x1] }
 0x373   : > { %v2068_v59 = vsel %vm352_vm0, %v2066_v56, 0.0  ;;  %v2069_v60 = vsel %vm1867_vm2, %v2067_v57, 0.0 }
 0x374   : > { %v2070_v61 = vadd.f32 %v2069_v60, %v2068_v59 }
 0x376   : > { %v2071_v62 = vrot.slane %v2070_v61, 4 }
 0x378   : > { %v2072_v63 = vadd.f32 %v2071_v62, %v2070_v61 }
 0x37a   : > { %v2073_v0 = vrot.slane %v2072_v63, 2 }
 0x37c   : > { %v2074_v1 = vadd.f32 %v2073_v0, %v2072_v63 }
 0x37e   : > { %v2075_v2 = vrot.slane %v2074_v1, 1 }
 0x380   : > { %v2076_v3 = vadd.f32 %v2075_v2, %v2074_v1 }
 0x382   : > { %v2077_v4 = vmul.f32 0.11111111, %v2076_v3 }
 0x384   : > { %2968 = vmatmul.mubr.msk.f32.vlgmr.msra.gmra.mrb[6].mxu1 %vm352_vm0, %v2077_v4 }
 0x457   : > { %v2156_v58 = vpop.f32.mrb[6].mxu1 }
 0x458   : > { %v2157_v5 = vadd.f32 %v2156_v58, %v2086_v51  ;;  %v2969_v6 = vpop.f32.mrb[7].mxu1 }
 0x45a   : > { %2161 = vst.msk [vmem:[%s324_s28] sm:$0x1] %vm2160_vm3, %v2157_v5 }
 0x45b   : > { %3351 = shalt.err (!%p3348_p3)
}
 0x45c   : > { %s3352_s21 = scalar_lea.hbm %s4065_s14, 16  ;;  %s3356_s28 = scalar_lea.hbm %s4116_s9, 32 }
 0x45d   : > { %p3353_p4 = scmp.ne.s32.totalorder %s4065_s14, %s3352_s21  ;;  %p3357_p9 = scmp.lt.u32.totalorder %s4065_s14, %s4116_s9 }
 0x45e   : > { %p3358_p10 = scmp.lt.u32.totalorder %s3356_s28, %s3352_s21  ;;  %p3360_p12 = scmp.lt.u32.totalorder %s3352_s21, %s4065_s14 }
 0x45f   : > { %p3354_p7 = pnand %p3353_p4, %p3495_p5 }
 0x460   : > { %p3359_p11 = por %p3358_p10, %p3357_p9 }
 0x461   : > { %p3355_p8 = pneg %p3354_p7 }
 0x462   : > { %p3361_p13 = por %p3360_p12, %p3359_p11 }
 0x464   : > { %p3362_p0 = pnand %p3361_p13, %p3355_p8 }
 0x466   : > { %3365 = shalt.err (!%p3362_p0)
}
 0x467   : > { %3292 = dma.vmem_to_hbm [thread:$0]  (%p3495_p5), %s4067_s25, 16, %s4065_s14, %s2163_s27  }
 0x468 PF: > { %p3298_p1 = scmp.ge.s32.totalorder %s3400_s12, 2  ;;  %s2187_s16 = sand.u32 1, %s3388_s30  }
 0x469   : > { %s2188_s13 = scalar_lea.sflag [#allocation3], %s2187_s16 }
 0x46a   : > { %p3295_p2 = pnand %p3298_p1, %p3499_p6 }
 0x46c   : > { %3383 = dma.done.wait (!%p3295_p2), %s2188_s13, 16  }
 0x46d   : > { %3385 = vsyncadd (!%p3295_p2), %s2188_s13, 4294967280  ;;  %p19_p3 = scmp.ge.s32.totalorder %s3482_s15, 4   ;;  %s4119_s30 = smov %s3392_s10 }
 0x46e   : > { %s4120_s10 = smov %s3396_s11  ;;  %s4121_s11 = smov %s3493_s18 }
 0x46f   : > { %s4122_s12 = smov %s3482_s15  ;;  %21 = sbr.rel (!%p19_p3) target bundleno = 3 (0x3), region = 109 }
 0x476   :  { %2192 = vsyncpa [#allocation3], 1 }
 0x477   :  { %2194 = vsyncpa [#allocation3 + $0x1], 1 }

</bundles_post_ra>
